<compile_context>
chip_gen: v6e
topology: v6e:2x2x1
jax: 0.10.0
libtpu: 0.0.40
codegen_flags: <defaults>
</compile_context>

<pallas_src>
import functools

import jax
import jax.numpy as jnp
from jax.experimental import pallas as pl
from jax.experimental.pallas import tpu as pltpu


# ----------------------------------------------------------------------------
# Hardware query (perf-only: a wrong answer still gives correct results).
# Conservative default = 1 TensorCore, so single-TC v5e/v6e never pay for a
# pointless grid split; multi-TC (v7x-style) chips get one image / M-half per
# core when detectable.
# ----------------------------------------------------------------------------
def _num_tensorcores() -> int:
    try:
        info = pltpu.get_tpu_info()
        for name in ("num_cores", "core_count", "num_tensorcores"):
            v = getattr(info, name, None)
            if v:
                return max(1, min(2, int(v)))
    except Exception:
        pass
    try:
        return max(1, min(2, int(getattr(jax.devices()[0], "num_cores", 1) or 1)))
    except Exception:
        return 1


# ----------------------------------------------------------------------------
# Pallas kernels
# ----------------------------------------------------------------------------
def _stem_kernel(x_ref, w_ref, b_ref, o_ref):
    """conv1-as-matmul: (TM, K) @ (K, 64) on the MXU + fused bias + ReLU.

    x/w are bf16 (BN scale already folded into w); accumulate + epilogue f32;
    output bf16 (conv->conv edge dtype).
    """
    acc = jnp.dot(x_ref[...], w_ref[...], preferred_element_type=jnp.float32)
    o_ref[...] = jnp.maximum(acc + b_ref[...], 0.0).astype(o_ref.dtype)


def _trunk_kernel(ee_ref, eo_ref, oe_ref, oo_ref, w1_ref, b1_ref, wh_ref,
                  bh_ref, o_ref, *, images_per_block, num_classes, hp, wp):
    """Fused maxpool(3x3,s2,p1) + layer1 (2 BasicBlocks) + 1x1 heads.

    Per image, the pooled (hp, wp, 64) activation is kept flat as a
    (hp*wp, 64) tile (row = h*wp + w, lane = channel).  A 3x3 / pad-1 conv is
    9 shifted (hp*wp, 64) @ (64, 64) matmuls: a shift by (dy-1)*wp + (dx-1)
    rows of the zero-extended activation, plus a row mask for the dx taps that
    would otherwise wrap across the W boundary.  Accumulation and the
    bias / residual / ReLU / sigmoid epilogues are f32; MXU inputs are bf16.
    """
    C = w1_ref.shape[-1]
    HW = hp * wp
    pad_rows = wp + 1  # covers the largest |shift| = wp + 1

    # w coordinate of each flat row (to mask horizontal wrap-around).
    w_idx = jax.lax.broadcasted_iota(jnp.int32, (HW, 1), 0) % wp
    mask_l = w_idx >= 1            # dx == 0  ->  source column w-1 >= 0
    mask_r = w_idx <= wp - 2       # dx == 2  ->  source column w+1 <= wp-1
    zrows = jnp.zeros((pad_rows, C), jnp.bfloat16)

    def conv3x3(act_bf16, layer):
        """Direct 3x3 / pad-1 conv of a flat (HW, C) bf16 map -> f32 (HW, C)."""
        apad = jnp.concatenate([zrows, act_bf16, zrows], axis=0)
        acc = jnp.zeros((HW, C), jnp.float32)
        for dy in range(3):
            for dx in range(3):
                s = (dy - 1) * wp + (dx - 1)
                x = apad[pad_rows + s:pad_rows + s + HW, :]
                if dx == 0:
                    x = jnp.where(mask_l, x, jnp.zeros_like(x))
                elif dx == 2:
                    x = jnp.where(mask_r, x, jnp.zeros_like(x))
                acc += jnp.dot(x, w1_ref[layer, dy * 3 + dx],
                               preferred_element_type=jnp.float32)
        return acc + b1_ref[layer]                       # (HW, C) + (1, C)

    for b in range(images_per_block):
        # ---- maxpool 3x3 / stride 2 / pad 1 from even/odd row/col phases.
        # (zero padding is safe: the map is post-ReLU, so 0 never wins.)
        p = oo_ref[b]                                    # (hp, wp, C)
        p = jnp.maximum(p, ee_ref[b, 0:hp, 0:wp, :])
        p = jnp.maximum(p, ee_ref[b, 0:hp, 1:wp + 1, :])
        p = jnp.maximum(p, ee_ref[b, 1:hp + 1, 0:wp, :])
        p = jnp.maximum(p, ee_ref[b, 1:hp + 1, 1:wp + 1, :])
        p = jnp.maximum(p, eo_ref[b, 0:hp, :, :])
        p = jnp.maximum(p, eo_ref[b, 1:hp + 1, :, :])
        p = jnp.maximum(p, oe_ref[b, :, 0:wp, :])
        p = jnp.maximum(p, oe_ref[b, :, 1:wp + 1, :])
        # Flatten (hp, wp, C) -> (HW, C) with plain sublane concatenation.
        f_bf16 = jnp.concatenate([p[h] for h in range(hp)], axis=0)
        act_f32 = f_bf16.astype(jnp.float32)

        # ---- layer1: two BasicBlocks (conv-bn-relu, conv-bn, +id, relu).
        for blk in range(2):
            identity = act_f32
            h1 = jnp.maximum(conv3x3(f_bf16, 2 * blk), 0.0)
            h2 = conv3x3(h1.astype(jnp.bfloat16), 2 * blk + 1)
            act_f32 = jnp.maximum(h2 + identity, 0.0)
            f_bf16 = act_f32.astype(jnp.bfloat16)

        # ---- heads: single (HW, C) @ (C, 8) matmul; sigmoid on heatmap cols.
        y = jnp.dot(f_bf16, wh_ref[...], preferred_element_type=jnp.float32)
        y = y + bh_ref[...]
        col = jax.lax.broadcasted_iota(jnp.int32, y.shape, 1)
        y = jnp.where(col < num_classes, jax.nn.sigmoid(y), y)
        o_ref[b] = y


# ----------------------------------------------------------------------------
# pallas_call wrappers
# ----------------------------------------------------------------------------
def stem_conv(patches_bf16, w_bf16, bias_f32, *, n_blocks):
    M, K = patches_bf16.shape
    Cout = w_bf16.shape[1]
    tm = M // n_blocks
    return pl.pallas_call(
        _stem_kernel,
        out_shape=jax.ShapeDtypeStruct((M, Cout), jnp.bfloat16),
        grid_spec=pltpu.PrefetchScalarGridSpec(
            num_scalar_prefetch=0,
            grid=(n_blocks,),
            in_specs=[
                pl.BlockSpec((tm, K), lambda i: (i, 0)),
                pl.BlockSpec((K, Cout), lambda i: (0, 0)),
                pl.BlockSpec((1, Cout), lambda i: (0, 0)),
            ],
            out_specs=pl.BlockSpec((tm, Cout), lambda i: (i, 0)),
        ),
        compiler_params=pltpu.CompilerParams(
            dimension_semantics=("parallel",)),
    )(patches_bf16, w_bf16, bias_f32)


def trunk_fused(ee, eo, oe, oo, w1, b1, wh, bh, *, images_per_block,
                num_classes):
    N = ee.shape[0]
    hp = oo.shape[1]
    wp = oo.shape[2]
    nb = images_per_block
    n_out = wh.shape[1]
    kernel = functools.partial(_trunk_kernel, images_per_block=nb,
                               num_classes=num_classes, hp=hp, wp=wp)
    return pl.pallas_call(
        kernel,
        out_shape=jax.ShapeDtypeStruct((N, hp * wp, n_out), jnp.float32),
        grid_spec=pltpu.PrefetchScalarGridSpec(
            num_scalar_prefetch=0,
            grid=(N // nb,),
            in_specs=[
                pl.BlockSpec((nb,) + ee.shape[1:], lambda i: (i, 0, 0, 0)),
                pl.BlockSpec((nb,) + eo.shape[1:], lambda i: (i, 0, 0, 0)),
                pl.BlockSpec((nb,) + oe.shape[1:], lambda i: (i, 0, 0, 0)),
                pl.BlockSpec((nb,) + oo.shape[1:], lambda i: (i, 0, 0, 0)),
                pl.BlockSpec(w1.shape, lambda i: (0, 0, 0, 0)),
                pl.BlockSpec(b1.shape, lambda i: (0, 0, 0)),
                pl.BlockSpec(wh.shape, lambda i: (0, 0)),
                pl.BlockSpec(bh.shape, lambda i: (0, 0)),
            ],
            out_specs=pl.BlockSpec((nb, hp * wp, n_out), lambda i: (i, 0, 0)),
        ),
        compiler_params=pltpu.CompilerParams(
            dimension_semantics=("parallel",)),
    )(ee, eo, oe, oo, w1, b1, wh, bh)


# ----------------------------------------------------------------------------
# Host-side helpers
# ----------------------------------------------------------------------------
def _im2col(x_nhwc, kh, kw, stride, pad):
    """Patch matrix for the single 7x7 stem conv (K index = (dy*kw+dx)*C + c)."""
    N, H, W, C = x_nhwc.shape
    Ho = (H + 2 * pad - kh) // stride + 1
    Wo = (W + 2 * pad - kw) // stride + 1
    xp = jnp.pad(x_nhwc, ((0, 0), (pad, pad), (pad, pad), (0, 0)))
    cols = []
    for dy in range(kh):
        for dx in range(kw):
            cols.append(xp[:, dy:dy + stride * Ho:stride,
                           dx:dx + stride * Wo:stride, :])
    patches = jnp.stack(cols, axis=3)              # (N, Ho, Wo, kh*kw, C)
    return patches.reshape(N * Ho * Wo, kh * kw * C), (N, Ho, Wo)


def _bn_fold(gamma, beta, mean, var, eps=1e-5):
    scale = gamma / jnp.sqrt(var + eps)
    return scale, beta - mean * scale


def prepare_params(params, num_classes=1):
    """Fold BN into the weights and pack everything kernel-ready.

    Called once OUTSIDE jit: all scale folds are done in f32, then cast to
    bf16, so the fold does not compound bf16 rounding.
    """
    prepped = {}

    # conv1 (7x7, s2, p3) + bn1: OIHW -> (K = 7*7*3, 64), BN scale folded.
    s, b = _bn_fold(*params["bn1"])
    w = jnp.transpose(params["conv1_w"], (2, 3, 1, 0)).reshape(7 * 7 * 3, 64)
    prepped["stem_w"] = (w * s[None, :]).astype(jnp.bfloat16)
    prepped["stem_b"] = b.reshape(1, 64).astype(jnp.float32)

    # layer1: 4 convs (b0.conv1, b0.conv2, b1.conv1, b1.conv2); per-tap
    # (cin, cout) matrices with BN scale folded, stacked -> (4, 9, 64, 64).
    w_list, b_list = [], []
    for blk in range(2):
        for conv in (1, 2):
            s, b = _bn_fold(*params[f"l1b{blk}_bn{conv}"])
            w = jnp.transpose(params[f"l1b{blk}_conv{conv}_w"], (2, 3, 1, 0))
            w = w.reshape(9, 64, 64) * s[None, None, :]
            w_list.append(w)
            b_list.append(b.reshape(1, 64))
    prepped["l1_w"] = jnp.stack(w_list).astype(jnp.bfloat16)   # (4, 9, 64, 64)
    prepped["l1_b"] = jnp.stack(b_list).astype(jnp.float32)    # (4, 1, 64)

    # Heads: heatmap/offset/size fused into one (64, n_pad) matmul; Cout padded
    # to a multiple of 8 (zero columns, sliced off outside).
    n_head = num_classes + 4
    n_pad = ((n_head + 7) // 8) * 8
    wh = jnp.concatenate([params["heat_w"].reshape(num_classes, 64),
                          params["off_w"].reshape(2, 64),
                          params["size_w"].reshape(2, 64)], axis=0).T
    bh = jnp.concatenate([params["heat_b"], params["off_b"], params["size_b"]])
    prepped["head_w"] = jnp.pad(wh, ((0, 0), (0, n_pad - n_head))).astype(jnp.bfloat16)
    prepped["head_b"] = jnp.pad(bh, (0, n_pad - n_head)).reshape(1, n_pad).astype(jnp.float32)
    return prepped


# ----------------------------------------------------------------------------
# Deterministic synthetic parameters (shapes match the PyTorch module)
# ----------------------------------------------------------------------------
def init_params(key, num_classes=1):
    ks = list(jax.random.split(key, 32))
    it = iter(ks)

    def w(shape, s=0.05):
        return jax.random.normal(next(it), shape, jnp.float32) * s

    def bn(c):
        return (1.0 + 0.1 * jax.random.normal(next(it), (c,), jnp.float32),
                0.1 * jax.random.normal(next(it), (c,), jnp.float32),
                0.1 * jax.random.normal(next(it), (c,), jnp.float32),
                1.0 + 0.1 * jax.random.uniform(next(it), (c,), jnp.float32))

    p = {"conv1_w": w((64, 3, 7, 7)), "bn1": bn(64)}
    for b in range(2):  # layer1: two BasicBlocks (64 -> 64, stride 1)
        p[f"l1b{b}_conv1_w"] = w((64, 64, 3, 3))
        p[f"l1b{b}_bn1"] = bn(64)
        p[f"l1b{b}_conv2_w"] = w((64, 64, 3, 3))
        p[f"l1b{b}_bn2"] = bn(64)
    p["heat_w"] = w((num_classes, 64, 1, 1))
    p["heat_b"] = w((num_classes,), 0.1)
    p["off_w"] = w((2, 64, 1, 1))
    p["off_b"] = w((2,), 0.1)
    p["size_w"] = w((2, 64, 1, 1))
    p["size_b"] = w((2,), 0.1)
    return p


# ----------------------------------------------------------------------------
# Forward pass (matches CenterNet.forward semantics)
# ----------------------------------------------------------------------------
def centernet_forward(prepped, x_nchw, num_classes=1, num_cores=1):
    x = jnp.transpose(x_nchw, (0, 2, 3, 1)).astype(jnp.bfloat16)  # NCHW -> NHWC

    # --- stem: conv1 (7x7, s2, p3) + folded BN + ReLU, one im2col matmul.
    patches, (N, Ho, Wo) = _im2col(x, 7, 7, 2, 3)
    M = N * Ho * Wo
    n_blocks = num_cores if (num_cores > 1 and M % (8 * num_cores) == 0) else 1
    f = stem_conv(patches, prepped["stem_w"], prepped["stem_b"],
                  n_blocks=n_blocks)
    f = f.reshape(N, Ho, Wo, 64)                                   # bf16

    # --- even/odd row/column phases of the zero-padded map (pool padding with
    #     zeros is exact here because the map is post-ReLU).
    Hp = (Ho - 1) // 2 + 1
    Wp = (Wo - 1) // 2 + 1
    xp = jnp.pad(f, ((0, 0), (1, 1), (1, 1), (0, 0)))
    ee = xp[:, 0:2 * Hp + 1:2, 0:2 * Wp + 1:2, :]                  # (N,Hp+1,Wp+1,64)
    eo = xp[:, 0:2 * Hp + 1:2, 1:2 * Wp:2, :]                      # (N,Hp+1,Wp,  64)
    oe = xp[:, 1:2 * Hp:2, 0:2 * Wp + 1:2, :]                      # (N,Hp,  Wp+1,64)
    oo = xp[:, 1:2 * Hp:2, 1:2 * Wp:2, :]                          # (N,Hp,  Wp,  64)

    # --- fused trunk: maxpool + layer1 + heads in one VMEM-resident kernel.
    images_per_block = 1 if num_cores > 1 else N
    out = trunk_fused(ee, eo, oe, oo, prepped["l1_w"], prepped["l1_b"],
                      prepped["head_w"], prepped["head_b"],
                      images_per_block=images_per_block,
                      num_classes=num_classes)
    out = out.reshape(N, Hp, Wp, -1)
    heat = out[..., :num_classes]
    off = out[..., num_classes:num_classes + 2]
    size = out[..., num_classes + 2:num_classes + 4]

    to_nchw = lambda t: jnp.transpose(t, (0, 3, 1, 2))
    return to_nchw(heat), to_nchw(off), to_nchw(size)


if __name__ == "__main__":
    key = jax.random.PRNGKey(0)
    pkey, xkey = jax.random.split(key)
    params = init_params(pkey, num_classes=1)
    prepped = prepare_params(params, num_classes=1)   # BN fold/packing, outside jit
    x = jax.random.normal(xkey, (2, 3, 32, 32), jnp.float32)  # NCHW input

    cores = _num_tensorcores()
    fwd = jax.jit(functools.partial(centernet_forward, num_classes=1,
                                    num_cores=cores))
    heatmap, offset, size = fwd(prepped, x)
    jax.block_until_ready((heatmap, offset, size))

    # 32 -> conv1 s2 -> 16 -> maxpool s2 -> 8; layer1 preserves spatial dims.
    assert heatmap.shape == (2, 1, 8, 8), heatmap.shape
    assert offset.shape == (2, 2, 8, 8), offset.shape
    assert size.shape == (2, 2, 8, 8), size.shape
    assert bool(jnp.all(jnp.isfinite(heatmap)))
    assert bool(jnp.all(jnp.isfinite(offset)))
    assert bool(jnp.all(jnp.isfinite(size)))
    assert bool(jnp.all((heatmap >= 0.0) & (heatmap <= 1.0)))  # sigmoid range
    print("KERNEL_OK")
</pallas_src>

<mosaic_0001>
module attributes {stable_mosaic.version = 11 : i64} {
  func.func @_stem_kernel(%arg0: i32, %arg1: memref<512x147xbf16, #tpu.memory_space<vmem>>, %arg2: memref<147x64xbf16, #tpu.memory_space<vmem>>, %arg3: memref<1x64xf32, #tpu.memory_space<vmem>>, %arg4: memref<512x64xbf16, #tpu.memory_space<vmem>>) attributes {dimension_semantics = [#tpu.dimension_semantics<parallel>], iteration_bounds = array<i64: 1>, scalar_prefetch = 0 : i64, scratch_operands = 0 : i64, tpu.core_type = #tpu.core_type<tc>, window_params = [{transform_indices = @transform_0, window_bounds = array<i64: 512, 147>}, {pipeline_mode = #tpu.pipeline_mode<synchronous>, transform_indices = @transform_1, window_bounds = array<i64: 147, 64>}, {pipeline_mode = #tpu.pipeline_mode<synchronous>, transform_indices = @transform_2, window_bounds = array<i64: 1, 64>}, {transform_indices = @transform_3, window_bounds = array<i64: 512, 64>}]} {
    %c0 = arith.constant 0 : index
    %c0_0 = arith.constant 0 : index
    %0 = vector.load %arg1[%c0, %c0_0] : memref<512x147xbf16, #tpu.memory_space<vmem>>, vector<512x147xbf16>
    %c0_1 = arith.constant 0 : index
    %c0_2 = arith.constant 0 : index
    %1 = vector.load %arg2[%c0_1, %c0_2] : memref<147x64xbf16, #tpu.memory_space<vmem>>, vector<147x64xbf16>
    %cst = arith.constant dense<0.000000e+00> : vector<512x64xf32>
    %2 = tpu.matmul %0, %1, %cst {dimension_numbers = #tpu.dot_dimension_numbers<[1], [0], [0], [1], [0, 0, 1, 1], [], []>} : vector<512x147xbf16>, vector<147x64xbf16>, vector<512x64xf32> -> vector<512x64xf32>
    %c0_3 = arith.constant 0 : index
    %c0_4 = arith.constant 0 : index
    %3 = vector.load %arg3[%c0_3, %c0_4] : memref<1x64xf32, #tpu.memory_space<vmem>>, vector<1x64xf32>
    %4 = vector.broadcast %3 : vector<1x64xf32> to vector<512x64xf32>
    %5 = arith.addf %2, %4 : vector<512x64xf32>
    %cst_5 = arith.constant 0.000000e+00 : f32
    %6 = vector.broadcast %cst_5 : f32 to vector<512x64xf32>
    %7 = arith.maximumf %5, %6 : vector<512x64xf32>
    %8 = arith.truncf %7 : vector<512x64xf32> to vector<512x64xbf16>
    %c0_6 = arith.constant 0 : index
    %c0_7 = arith.constant 0 : index
    %9 = vector.load %arg4[%c0_6, %c0_7] : memref<512x64xbf16, #tpu.memory_space<vmem>>, vector<512x64xbf16>
    tpu.vector_store %arg4[%c0_6, %c0_7], %8 {strides = array<i32>} : memref<512x64xbf16, #tpu.memory_space<vmem>>, vector<512x64xbf16>,
    return
  }
  func.func @transform_0(%arg0: i32) -> (i32, i32) {
    %c0_i32 = arith.constant 0 : i32
    %c0_i32_0 = arith.constant 0 : i32
    return %arg0, %c0_i32 : i32, i32
  }
  func.func @transform_1(%arg0: i32) -> (i32, i32) {
    %c0_i32 = arith.constant 0 : i32
    %c0_i32_0 = arith.constant 0 : i32
    %c0_i32_1 = arith.constant 0 : i32
    return %c0_i32, %c0_i32_0 : i32, i32
  }
  func.func @transform_2(%arg0: i32) -> (i32, i32) {
    %c0_i32 = arith.constant 0 : i32
    %c0_i32_0 = arith.constant 0 : i32
    %c0_i32_1 = arith.constant 0 : i32
    return %c0_i32, %c0_i32_0 : i32, i32
  }
  func.func @transform_3(%arg0: i32) -> (i32, i32) {
    %c0_i32 = arith.constant 0 : i32
    %c0_i32_0 = arith.constant 0 : i32
    return %arg0, %c0_i32 : i32, i32
  }
}

module attributes {stable_mosaic.version = 11 : i64} {
  func.func @_trunk_kernel(%arg0: i32, %arg1: memref<2x9x9x64xbf16, #tpu.memory_space<vmem>>, %arg2: memref<2x9x8x64xbf16, #tpu.memory_space<vmem>>, %arg3: memref<2x8x9x64xbf16, #tpu.memory_space<vmem>>, %arg4: memref<2x8x8x64xbf16, #tpu.memory_space<vmem>>, %arg5: memref<4x9x64x64xbf16, #tpu.memory_space<vmem>>, %arg6: memref<4x1x64xf32, #tpu.memory_space<vmem>>, %arg7: memref<64x8xbf16, #tpu.memory_space<vmem>>, %arg8: memref<1x8xf32, #tpu.memory_space<vmem>>, %arg9: memref<2x64x8xf32, #tpu.memory_space<vmem>>) attributes {dimension_semantics = [#tpu.dimension_semantics<parallel>], iteration_bounds = array<i64: 1>, scalar_prefetch = 0 : i64, scratch_operands = 0 : i64, tpu.core_type = #tpu.core_type<tc>, window_params = [{transform_indices = @transform_0, window_bounds = array<i64: 2, 9, 9, 64>}, {transform_indices = @transform_1, window_bounds = array<i64: 2, 9, 8, 64>}, {transform_indices = @transform_2, window_bounds = array<i64: 2, 8, 9, 64>}, {transform_indices = @transform_3, window_bounds = array<i64: 2, 8, 8, 64>}, {pipeline_mode = #tpu.pipeline_mode<synchronous>, transform_indices = @transform_4, window_bounds = array<i64: 4, 9, 64, 64>}, {pipeline_mode = #tpu.pipeline_mode<synchronous>, transform_indices = @transform_5, window_bounds = array<i64: 4, 1, 64>}, {pipeline_mode = #tpu.pipeline_mode<synchronous>, transform_indices = @transform_6, window_bounds = array<i64: 64, 8>}, {pipeline_mode = #tpu.pipeline_mode<synchronous>, transform_indices = @transform_7, window_bounds = array<i64: 1, 8>}, {transform_indices = @transform_8, window_bounds = array<i64: 2, 64, 8>}]} {
    %0 = tpu.iota {dimensions = array<i32: 0>} : vector<64x1xi32>
    %c8_i32 = arith.constant 8 : i32
    %c0_i32 = arith.constant 0 : i32
    %1 = arith.cmpi eq, %c8_i32, %c0_i32 : i32
    %c1_i32 = arith.constant 1 : i32
    %2 = arith.select %1, %c1_i32, %c8_i32 : i32
    %3 = vector.broadcast %2 : i32 to vector<64x1xi32>
    %4 = arith.remsi %0, %3 : vector<64x1xi32>
    %c0_i32_0 = arith.constant 0 : i32
    %5 = vector.broadcast %c0_i32_0 : i32 to vector<64x1xi32>
    %6 = arith.cmpi ne, %4, %5 : vector<64x1xi32>
    %c0_i32_1 = arith.constant 0 : i32
    %7 = vector.broadcast %c0_i32_1 : i32 to vector<64x1xi32>
    %8 = arith.cmpi slt, %4, %7 : vector<64x1xi32>
    %c0_i32_2 = arith.constant 0 : i32
    %9 = arith.cmpi slt, %2, %c0_i32_2 : i32
    %10 = vector.broadcast %9 : i1 to vector<64x1xi1>
    %11 = vector.broadcast %10 : vector<64x1xi1> to vector<64x1xi1>
    %12 = arith.xori %8, %11 : vector<64x1xi1>
    %13 = arith.andi %12, %6 : vector<64x1xi1>
    %14 = vector.broadcast %2 : i32 to vector<64x1xi32>
    %15 = arith.addi %4, %14 : vector<64x1xi32>
    %16 = arith.select %13, %15, %4 : vector<64x1xi1>, vector<64x1xi32>
    %c1_i32_3 = arith.constant 1 : i32
    %17 = vector.broadcast %c1_i32_3 : i32 to vector<64x1xi32>
    %18 = arith.cmpi sge, %16, %17 : vector<64x1xi32>
    %c6_i32 = arith.constant 6 : i32
    %19 = vector.broadcast %c6_i32 : i32 to vector<64x1xi32>
    %20 = arith.cmpi sle, %16, %19 : vector<64x1xi32>
    %cst = arith.constant 0.000000e+00 : bf16
    %21 = vector.broadcast %cst : bf16 to vector<9x64xbf16>
    %c0 = arith.constant 0 : index
    %c0_4 = arith.constant 0 : index
    %c0_5 = arith.constant 0 : index
    %c0_6 = arith.constant 0 : index
    %22 = vector.load %arg4[%c0, %c0_4, %c0_5, %c0_6] : memref<2x8x8x64xbf16, #tpu.memory_space<vmem>>, vector<1x8x8x64xbf16>
    %23 = vector.shape_cast %22 : vector<1x8x8x64xbf16> to vector<8x8x64xbf16>
    %c0_7 = arith.constant 0 : index
    %c0_8 = arith.constant 0 : index
    %c0_9 = arith.constant 0 : index
    %c0_10 = arith.constant 0 : index
    %24 = vector.load %arg1[%c0_7, %c0_8, %c0_9, %c0_10] : memref<2x9x9x64xbf16, #tpu.memory_space<vmem>>, vector<1x8x8x64xbf16>
    %25 = vector.shape_cast %24 : vector<1x8x8x64xbf16> to vector<8x8x64xbf16>
    %26 = arith.maximumf %23, %25 : vector<8x8x64xbf16>
    %c0_11 = arith.constant 0 : index
    %c0_12 = arith.constant 0 : index
    %c1 = arith.constant 1 : index
    %c0_13 = arith.constant 0 : index
    %27 = vector.load %arg1[%c0_11, %c0_12, %c1, %c0_13] : memref<2x9x9x64xbf16, #tpu.memory_space<vmem>>, vector<1x8x8x64xbf16>
    %28 = vector.shape_cast %27 : vector<1x8x8x64xbf16> to vector<8x8x64xbf16>
    %29 = arith.maximumf %26, %28 : vector<8x8x64xbf16>
    %c0_14 = arith.constant 0 : index
    %c1_15 = arith.constant 1 : index
    %c0_16 = arith.constant 0 : index
    %c0_17 = arith.constant 0 : index
    %30 = vector.load %arg1[%c0_14, %c1_15, %c0_16, %c0_17] : memref<2x9x9x64xbf16, #tpu.memory_space<vmem>>, vector<1x8x8x64xbf16>
    %31 = vector.shape_cast %30 : vector<1x8x8x64xbf16> to vector<8x8x64xbf16>
    %32 = arith.maximumf %29, %31 : vector<8x8x64xbf16>
    %c0_18 = arith.constant 0 : index
    %c1_19 = arith.constant 1 : index
    %c1_20 = arith.constant 1 : index
    %c0_21 = arith.constant 0 : index
    %33 = vector.load %arg1[%c0_18, %c1_19, %c1_20, %c0_21] : memref<2x9x9x64xbf16, #tpu.memory_space<vmem>>, vector<1x8x8x64xbf16>
    %34 = vector.shape_cast %33 : vector<1x8x8x64xbf16> to vector<8x8x64xbf16>
    %35 = arith.maximumf %32, %34 : vector<8x8x64xbf16>
    %c0_22 = arith.constant 0 : index
    %c0_23 = arith.constant 0 : index
    %c0_24 = arith.constant 0 : index
    %c0_25 = arith.constant 0 : index
    %36 = vector.load %arg2[%c0_22, %c0_23, %c0_24, %c0_25] : memref<2x9x8x64xbf16, #tpu.memory_space<vmem>>, vector<1x8x8x64xbf16>
    %37 = vector.shape_cast %36 : vector<1x8x8x64xbf16> to vector<8x8x64xbf16>
    %38 = arith.maximumf %35, %37 : vector<8x8x64xbf16>
    %c0_26 = arith.constant 0 : index
    %c1_27 = arith.constant 1 : index
    %c0_28 = arith.constant 0 : index
    %c0_29 = arith.constant 0 : index
    %39 = vector.load %arg2[%c0_26, %c1_27, %c0_28, %c0_29] : memref<2x9x8x64xbf16, #tpu.memory_space<vmem>>, vector<1x8x8x64xbf16>
    %40 = vector.shape_cast %39 : vector<1x8x8x64xbf16> to vector<8x8x64xbf16>
    %41 = arith.maximumf %38, %40 : vector<8x8x64xbf16>
    %c0_30 = arith.constant 0 : index
    %c0_31 = arith.constant 0 : index
    %c0_32 = arith.constant 0 : index
    %c0_33 = arith.constant 0 : index
    %42 = vector.load %arg3[%c0_30, %c0_31, %c0_32, %c0_33] : memref<2x8x9x64xbf16, #tpu.memory_space<vmem>>, vector<1x8x8x64xbf16>
    %43 = vector.shape_cast %42 : vector<1x8x8x64xbf16> to vector<8x8x64xbf16>
    %44 = arith.maximumf %41, %43 : vector<8x8x64xbf16>
    %c0_34 = arith.constant 0 : index
    %c0_35 = arith.constant 0 : index
    %c1_36 = arith.constant 1 : index
    %c0_37 = arith.constant 0 : index
    %45 = vector.load %arg3[%c0_34, %c0_35, %c1_36, %c0_37] : memref<2x8x9x64xbf16, #tpu.memory_space<vmem>>, vector<1x8x8x64xbf16>
    %46 = vector.shape_cast %45 : vector<1x8x8x64xbf16> to vector<8x8x64xbf16>
    %47 = arith.maximumf %44, %46 : vector<8x8x64xbf16>
    %48 = vector.extract_strided_slice %47 {offsets = [0, 0, 0], sizes = [1, 8, 64], strides = [1, 1, 1]} : vector<8x8x64xbf16> to vector<1x8x64xbf16>
    %49 = vector.shape_cast %48 : vector<1x8x64xbf16> to vector<8x64xbf16>
    %50 = vector.extract_strided_slice %47 {offsets = [1, 0, 0], sizes = [1, 8, 64], strides = [1, 1, 1]} : vector<8x8x64xbf16> to vector<1x8x64xbf16>
    %51 = vector.shape_cast %50 : vector<1x8x64xbf16> to vector<8x64xbf16>
    %52 = vector.extract_strided_slice %47 {offsets = [2, 0, 0], sizes = [1, 8, 64], strides = [1, 1, 1]} : vector<8x8x64xbf16> to vector<1x8x64xbf16>
    %53 = vector.shape_cast %52 : vector<1x8x64xbf16> to vector<8x64xbf16>
    %54 = vector.extract_strided_slice %47 {offsets = [3, 0, 0], sizes = [1, 8, 64], strides = [1, 1, 1]} : vector<8x8x64xbf16> to vector<1x8x64xbf16>
    %55 = vector.shape_cast %54 : vector<1x8x64xbf16> to vector<8x64xbf16>
    %56 = vector.extract_strided_slice %47 {offsets = [4, 0, 0], sizes = [1, 8, 64], strides = [1, 1, 1]} : vector<8x8x64xbf16> to vector<1x8x64xbf16>
    %57 = vector.shape_cast %56 : vector<1x8x64xbf16> to vector<8x64xbf16>
    %58 = vector.extract_strided_slice %47 {offsets = [5, 0, 0], sizes = [1, 8, 64], strides = [1, 1, 1]} : vector<8x8x64xbf16> to vector<1x8x64xbf16>
    %59 = vector.shape_cast %58 : vector<1x8x64xbf16> to vector<8x64xbf16>
    %60 = vector.extract_strided_slice %47 {offsets = [6, 0, 0], sizes = [1, 8, 64], strides = [1, 1, 1]} : vector<8x8x64xbf16> to vector<1x8x64xbf16>
    %61 = vector.shape_cast %60 : vector<1x8x64xbf16> to vector<8x64xbf16>
    %62 = vector.extract_strided_slice %47 {offsets = [7, 0, 0], sizes = [1, 8, 64], strides = [1, 1, 1]} : vector<8x8x64xbf16> to vector<1x8x64xbf16>
    %63 = vector.shape_cast %62 : vector<1x8x64xbf16> to vector<8x64xbf16>
    %64 = tpu.concatenate %49, %51, %53, %55, %57, %59, %61, %63 in 0 : vector<8x64xbf16>, vector<8x64xbf16>, vector<8x64xbf16>, vector<8x64xbf16>, vector<8x64xbf16>, vector<8x64xbf16>, vector<8x64xbf16>, vector<8x64xbf16> -> vector<64x64xbf16>
    %65 = arith.extf %64 : vector<64x64xbf16> to vector<64x64xf32>
    %66 = tpu.concatenate %21, %64, %21 in 0 : vector<9x64xbf16>, vector<64x64xbf16>, vector<9x64xbf16> -> vector<82x64xbf16>
    %cst_38 = arith.constant 0.000000e+00 : f32
    %67 = vector.broadcast %cst_38 : f32 to vector<64x64xf32>
    %68 = vector.extract_strided_slice %66 {offsets = [0, 0], sizes = [64, 64], strides = [1, 1]} : vector<82x64xbf16> to vector<64x64xbf16>
    %cst_39 = arith.constant 0.000000e+00 : bf16
    %69 = vector.broadcast %cst_39 : bf16 to vector<64x64xbf16>
    %70 = vector.shape_cast %18 : vector<64x1xi1> to vector<64x1xi1>
    %71 = vector.broadcast %70 : vector<64x1xi1> to vector<64x64xi1>
    %72 = arith.select %71, %68, %69 : vector<64x64xi1>, vector<64x64xbf16>
    %c0_40 = arith.constant 0 : index
    %c0_41 = arith.constant 0 : index
    %c0_42 = arith.constant 0 : index
    %c0_43 = arith.constant 0 : index
    %73 = vector.load %arg5[%c0_40, %c0_41, %c0_42, %c0_43] : memref<4x9x64x64xbf16, #tpu.memory_space<vmem>>, vector<1x1x64x64xbf16>
    %74 = vector.shape_cast %73 : vector<1x1x64x64xbf16> to vector<64x64xbf16>
    %cst_44 = arith.constant dense<0.000000e+00> : vector<64x64xf32>
    %75 = tpu.matmul %72, %74, %cst_44 {dimension_numbers = #tpu.dot_dimension_numbers<[1], [0], [0], [1], [0, 0, 1, 1], [], []>} : vector<64x64xbf16>, vector<64x64xbf16>, vector<64x64xf32> -> vector<64x64xf32>
    %76 = arith.addf %67, %75 : vector<64x64xf32>
    %77 = vector.extract_strided_slice %66 {offsets = [1, 0], sizes = [64, 64], strides = [1, 1]} : vector<82x64xbf16> to vector<64x64xbf16>
    %c0_45 = arith.constant 0 : index
    %c1_46 = arith.constant 1 : index
    %c0_47 = arith.constant 0 : index
    %c0_48 = arith.constant 0 : index
    %78 = vector.load %arg5[%c0_45, %c1_46, %c0_47, %c0_48] : memref<4x9x64x64xbf16, #tpu.memory_space<vmem>>, vector<1x1x64x64xbf16>
    %79 = vector.shape_cast %78 : vector<1x1x64x64xbf16> to vector<64x64xbf16>
    %cst_49 = arith.constant dense<0.000000e+00> : vector<64x64xf32>
    %80 = tpu.matmul %77, %79, %cst_49 {dimension_numbers = #tpu.dot_dimension_numbers<[1], [0], [0], [1], [0, 0, 1, 1], [], []>} : vector<64x64xbf16>, vector<64x64xbf16>, vector<64x64xf32> -> vector<64x64xf32>
    %81 = arith.addf %76, %80 : vector<64x64xf32>
    %82 = vector.extract_strided_slice %66 {offsets = [2, 0], sizes = [64, 64], strides = [1, 1]} : vector<82x64xbf16> to vector<64x64xbf16>
    %cst_50 = arith.constant 0.000000e+00 : bf16
    %83 = vector.broadcast %cst_50 : bf16 to vector<64x64xbf16>
    %84 = vector.shape_cast %20 : vector<64x1xi1> to vector<64x1xi1>
    %85 = vector.broadcast %84 : vector<64x1xi1> to vector<64x64xi1>
    %86 = arith.select %85, %82, %83 : vector<64x64xi1>, vector<64x64xbf16>
    %c0_51 = arith.constant 0 : index
    %c2 = arith.constant 2 : index
    %c0_52 = arith.constant 0 : index
    %c0_53 = arith.constant 0 : index
    %87 = vector.load %arg5[%c0_51, %c2, %c0_52, %c0_53] : memref<4x9x64x64xbf16, #tpu.memory_space<vmem>>, vector<1x1x64x64xbf16>
    %88 = vector.shape_cast %87 : vector<1x1x64x64xbf16> to vector<64x64xbf16>
    %cst_54 = arith.constant dense<0.000000e+00> : vector<64x64xf32>
    %89 = tpu.matmul %86, %88, %cst_54 {dimension_numbers = #tpu.dot_dimension_numbers<[1], [0], [0], [1], [0, 0, 1, 1], [], []>} : vector<64x64xbf16>, vector<64x64xbf16>, vector<64x64xf32> -> vector<64x64xf32>
    %90 = arith.addf %81, %89 : vector<64x64xf32>
    %91 = vector.extract_strided_slice %66 {offsets = [8, 0], sizes = [64, 64], strides = [1, 1]} : vector<82x64xbf16> to vector<64x64xbf16>
    %cst_55 = arith.constant 0.000000e+00 : bf16
    %92 = vector.broadcast %cst_55 : bf16 to vector<64x64xbf16>
    %93 = vector.shape_cast %18 : vector<64x1xi1> to vector<64x1xi1>
    %94 = vector.broadcast %93 : vector<64x1xi1> to vector<64x64xi1>
    %95 = arith.select %94, %91, %92 : vector<64x64xi1>, vector<64x64xbf16>
    %c0_56 = arith.constant 0 : index
    %c3 = arith.constant 3 : index
    %c0_57 = arith.constant 0 : index
    %c0_58 = arith.constant 0 : index
    %96 = vector.load %arg5[%c0_56, %c3, %c0_57, %c0_58] : memref<4x9x64x64xbf16, #tpu.memory_space<vmem>>, vector<1x1x64x64xbf16>
    %97 = vector.shape_cast %96 : vector<1x1x64x64xbf16> to vector<64x64xbf16>
    %cst_59 = arith.constant dense<0.000000e+00> : vector<64x64xf32>
    %98 = tpu.matmul %95, %97, %cst_59 {dimension_numbers = #tpu.dot_dimension_numbers<[1], [0], [0], [1], [0, 0, 1, 1], [], []>} : vector<64x64xbf16>, vector<64x64xbf16>, vector<64x64xf32> -> vector<64x64xf32>
    %99 = arith.addf %90, %98 : vector<64x64xf32>
    %100 = vector.extract_strided_slice %66 {offsets = [9, 0], sizes = [64, 64], strides = [1, 1]} : vector<82x64xbf16> to vector<64x64xbf16>
    %c0_60 = arith.constant 0 : index
    %c4 = arith.constant 4 : index
    %c0_61 = arith.constant 0 : index
    %c0_62 = arith.constant 0 : index
    %101 = vector.load %arg5[%c0_60, %c4, %c0_61, %c0_62] : memref<4x9x64x64xbf16, #tpu.memory_space<vmem>>, vector<1x1x64x64xbf16>
    %102 = vector.shape_cast %101 : vector<1x1x64x64xbf16> to vector<64x64xbf16>
    %cst_63 = arith.constant dense<0.000000e+00> : vector<64x64xf32>
    %103 = tpu.matmul %100, %102, %cst_63 {dimension_numbers = #tpu.dot_dimension_numbers<[1], [0], [0], [1], [0, 0, 1, 1], [], []>} : vector<64x64xbf16>, vector<64x64xbf16>, vector<64x64xf32> -> vector<64x64xf32>
    %104 = arith.addf %99, %103 : vector<64x64xf32>
    %105 = vector.extract_strided_slice %66 {offsets = [10, 0], sizes = [64, 64], strides = [1, 1]} : vector<82x64xbf16> to vector<64x64xbf16>
    %cst_64 = arith.constant 0.000000e+00 : bf16
    %106 = vector.broadcast %cst_64 : bf16 to vector<64x64xbf16>
    %107 = vector.shape_cast %20 : vector<64x1xi1> to vector<64x1xi1>
    %108 = vector.broadcast %107 : vector<64x1xi1> to vector<64x64xi1>
    %109 = arith.select %108, %105, %106 : vector<64x64xi1>, vector<64x64xbf16>
    %c0_65 = arith.constant 0 : index
    %c5 = arith.constant 5 : index
    %c0_66 = arith.constant 0 : index
    %c0_67 = arith.constant 0 : index
    %110 = vector.load %arg5[%c0_65, %c5, %c0_66, %c0_67] : memref<4x9x64x64xbf16, #tpu.memory_space<vmem>>, vector<1x1x64x64xbf16>
    %111 = vector.shape_cast %110 : vector<1x1x64x64xbf16> to vector<64x64xbf16>
    %cst_68 = arith.constant dense<0.000000e+00> : vector<64x64xf32>
    %112 = tpu.matmul %109, %111, %cst_68 {dimension_numbers = #tpu.dot_dimension_numbers<[1], [0], [0], [1], [0, 0, 1, 1], [], []>} : vector<64x64xbf16>, vector<64x64xbf16>, vector<64x64xf32> -> vector<64x64xf32>
    %113 = arith.addf %104, %112 : vector<64x64xf32>
    %114 = vector.extract_strided_slice %66 {offsets = [16, 0], sizes = [64, 64], strides = [1, 1]} : vector<82x64xbf16> to vector<64x64xbf16>
    %cst_69 = arith.constant 0.000000e+00 : bf16
    %115 = vector.broadcast %cst_69 : bf16 to vector<64x64xbf16>
    %116 = vector.shape_cast %18 : vector<64x1xi1> to vector<64x1xi1>
    %117 = vector.broadcast %116 : vector<64x1xi1> to vector<64x64xi1>
    %118 = arith.select %117, %114, %115 : vector<64x64xi1>, vector<64x64xbf16>
    %c0_70 = arith.constant 0 : index
    %c6 = arith.constant 6 : index
    %c0_71 = arith.constant 0 : index
    %c0_72 = arith.constant 0 : index
    %119 = vector.load %arg5[%c0_70, %c6, %c0_71, %c0_72] : memref<4x9x64x64xbf16, #tpu.memory_space<vmem>>, vector<1x1x64x64xbf16>
    %120 = vector.shape_cast %119 : vector<1x1x64x64xbf16> to vector<64x64xbf16>
    %cst_73 = arith.constant dense<0.000000e+00> : vector<64x64xf32>
    %121 = tpu.matmul %118, %120, %cst_73 {dimension_numbers = #tpu.dot_dimension_numbers<[1], [0], [0], [1], [0, 0, 1, 1], [], []>} : vector<64x64xbf16>, vector<64x64xbf16>, vector<64x64xf32> -> vector<64x64xf32>
    %122 = arith.addf %113, %121 : vector<64x64xf32>
    %123 = vector.extract_strided_slice %66 {offsets = [17, 0], sizes = [64, 64], strides = [1, 1]} : vector<82x64xbf16> to vector<64x64xbf16>
    %c0_74 = arith.constant 0 : index
    %c7 = arith.constant 7 : index
    %c0_75 = arith.constant 0 : index
    %c0_76 = arith.constant 0 : index
    %124 = vector.load %arg5[%c0_74, %c7, %c0_75, %c0_76] : memref<4x9x64x64xbf16, #tpu.memory_space<vmem>>, vector<1x1x64x64xbf16>
    %125 = vector.shape_cast %124 : vector<1x1x64x64xbf16> to vector<64x64xbf16>
    %cst_77 = arith.constant dense<0.000000e+00> : vector<64x64xf32>
    %126 = tpu.matmul %123, %125, %cst_77 {dimension_numbers = #tpu.dot_dimension_numbers<[1], [0], [0], [1], [0, 0, 1, 1], [], []>} : vector<64x64xbf16>, vector<64x64xbf16>, vector<64x64xf32> -> vector<64x64xf32>
    %127 = arith.addf %122, %126 : vector<64x64xf32>
    %128 = vector.extract_strided_slice %66 {offsets = [18, 0], sizes = [64, 64], strides = [1, 1]} : vector<82x64xbf16> to vector<64x64xbf16>
    %cst_78 = arith.constant 0.000000e+00 : bf16
    %129 = vector.broadcast %cst_78 : bf16 to vector<64x64xbf16>
    %130 = vector.shape_cast %20 : vector<64x1xi1> to vector<64x1xi1>
    %131 = vector.broadcast %130 : vector<64x1xi1> to vector<64x64xi1>
    %132 = arith.select %131, %128, %129 : vector<64x64xi1>, vector<64x64xbf16>
    %c0_79 = arith.constant 0 : index
    %c8 = arith.constant 8 : index
    %c0_80 = arith.constant 0 : index
    %c0_81 = arith.constant 0 : index
    %133 = vector.load %arg5[%c0_79, %c8, %c0_80, %c0_81] : memref<4x9x64x64xbf16, #tpu.memory_space<vmem>>, vector<1x1x64x64xbf16>
    %134 = vector.shape_cast %133 : vector<1x1x64x64xbf16> to vector<64x64xbf16>
    %cst_82 = arith.constant dense<0.000000e+00> : vector<64x64xf32>
    %135 = tpu.matmul %132, %134, %cst_82 {dimension_numbers = #tpu.dot_dimension_numbers<[1], [0], [0], [1], [0, 0, 1, 1], [], []>} : vector<64x64xbf16>, vector<64x64xbf16>, vector<64x64xf32> -> vector<64x64xf32>
    %136 = arith.addf %127, %135 : vector<64x64xf32>
    %c0_83 = arith.constant 0 : index
    %c0_84 = arith.constant 0 : index
    %c0_85 = arith.constant 0 : index
    %137 = vector.load %arg6[%c0_83, %c0_84, %c0_85] : memref<4x1x64xf32, #tpu.memory_space<vmem>>, vector<1x1x64xf32>
    %138 = vector.shape_cast %137 : vector<1x1x64xf32> to vector<1x64xf32>
    %139 = vector.broadcast %138 : vector<1x64xf32> to vector<64x64xf32>
    %140 = arith.addf %136, %139 : vector<64x64xf32>
    %cst_86 = arith.constant 0.000000e+00 : f32
    %141 = vector.broadcast %cst_86 : f32 to vector<64x64xf32>
    %142 = arith.maximumf %140, %141 : vector<64x64xf32>
    %143 = arith.truncf %142 : vector<64x64xf32> to vector<64x64xbf16>
    %144 = tpu.concatenate %21, %143, %21 in 0 : vector<9x64xbf16>, vector<64x64xbf16>, vector<9x64xbf16> -> vector<82x64xbf16>
    %cst_87 = arith.constant 0.000000e+00 : f32
    %145 = vector.broadcast %cst_87 : f32 to vector<64x64xf32>
    %146 = vector.extract_strided_slice %144 {offsets = [0, 0], sizes = [64, 64], strides = [1, 1]} : vector<82x64xbf16> to vector<64x64xbf16>
    %cst_88 = arith.constant 0.000000e+00 : bf16
    %147 = vector.broadcast %cst_88 : bf16 to vector<64x64xbf16>
    %148 = vector.shape_cast %18 : vector<64x1xi1> to vector<64x1xi1>
    %149 = vector.broadcast %148 : vector<64x1xi1> to vector<64x64xi1>
    %150 = arith.select %149, %146, %147 : vector<64x64xi1>, vector<64x64xbf16>
    %c1_89 = arith.constant 1 : index
    %c0_90 = arith.constant 0 : index
    %c0_91 = arith.constant 0 : index
    %c0_92 = arith.constant 0 : index
    %151 = vector.load %arg5[%c1_89, %c0_90, %c0_91, %c0_92] : memref<4x9x64x64xbf16, #tpu.memory_space<vmem>>, vector<1x1x64x64xbf16>
    %152 = vector.shape_cast %151 : vector<1x1x64x64xbf16> to vector<64x64xbf16>
    %cst_93 = arith.constant dense<0.000000e+00> : vector<64x64xf32>
    %153 = tpu.matmul %150, %152, %cst_93 {dimension_numbers = #tpu.dot_dimension_numbers<[1], [0], [0], [1], [0, 0, 1, 1], [], []>} : vector<64x64xbf16>, vector<64x64xbf16>, vector<64x64xf32> -> vector<64x64xf32>
    %154 = arith.addf %145, %153 : vector<64x64xf32>
    %155 = vector.extract_strided_slice %144 {offsets = [1, 0], sizes = [64, 64], strides = [1, 1]} : vector<82x64xbf16> to vector<64x64xbf16>
    %c1_94 = arith.constant 1 : index
    %c1_95 = arith.constant 1 : index
    %c0_96 = arith.constant 0 : index
    %c0_97 = arith.constant 0 : index
    %156 = vector.load %arg5[%c1_94, %c1_95, %c0_96, %c0_97] : memref<4x9x64x64xbf16, #tpu.memory_space<vmem>>, vector<1x1x64x64xbf16>
    %157 = vector.shape_cast %156 : vector<1x1x64x64xbf16> to vector<64x64xbf16>
    %cst_98 = arith.constant dense<0.000000e+00> : vector<64x64xf32>
    %158 = tpu.matmul %155, %157, %cst_98 {dimension_numbers = #tpu.dot_dimension_numbers<[1], [0], [0], [1], [0, 0, 1, 1], [], []>} : vector<64x64xbf16>, vector<64x64xbf16>, vector<64x64xf32> -> vector<64x64xf32>
    %159 = arith.addf %154, %158 : vector<64x64xf32>
    %160 = vector.extract_strided_slice %144 {offsets = [2, 0], sizes = [64, 64], strides = [1, 1]} : vector<82x64xbf16> to vector<64x64xbf16>
    %cst_99 = arith.constant 0.000000e+00 : bf16
    %161 = vector.broadcast %cst_99 : bf16 to vector<64x64xbf16>
    %162 = vector.shape_cast %20 : vector<64x1xi1> to vector<64x1xi1>
    %163 = vector.broadcast %162 : vector<64x1xi1> to vector<64x64xi1>
    %164 = arith.select %163, %160, %161 : vector<64x64xi1>, vector<64x64xbf16>
    %c1_100 = arith.constant 1 : index
    %c2_101 = arith.constant 2 : index
    %c0_102 = arith.constant 0 : index
    %c0_103 = arith.constant 0 : index
    %165 = vector.load %arg5[%c1_100, %c2_101, %c0_102, %c0_103] : memref<4x9x64x64xbf16, #tpu.memory_space<vmem>>, vector<1x1x64x64xbf16>
    %166 = vector.shape_cast %165 : vector<1x1x64x64xbf16> to vector<64x64xbf16>
    %cst_104 = arith.constant dense<0.000000e+00> : vector<64x64xf32>
    %167 = tpu.matmul %164, %166, %cst_104 {dimension_numbers = #tpu.dot_dimension_numbers<[1], [0], [0], [1], [0, 0, 1, 1], [], []>} : vector<64x64xbf16>, vector<64x64xbf16>, vector<64x64xf32> -> vector<64x64xf32>
    %168 = arith.addf %159, %167 : vector<64x64xf32>
    %169 = vector.extract_strided_slice %144 {offsets = [8, 0], sizes = [64, 64], strides = [1, 1]} : vector<82x64xbf16> to vector<64x64xbf16>
    %cst_105 = arith.constant 0.000000e+00 : bf16
    %170 = vector.broadcast %cst_105 : bf16 to vector<64x64xbf16>
    %171 = vector.shape_cast %18 : vector<64x1xi1> to vector<64x1xi1>
    %172 = vector.broadcast %171 : vector<64x1xi1> to vector<64x64xi1>
    %173 = arith.select %172, %169, %170 : vector<64x64xi1>, vector<64x64xbf16>
    %c1_106 = arith.constant 1 : index
    %c3_107 = arith.constant 3 : index
    %c0_108 = arith.constant 0 : index
    %c0_109 = arith.constant 0 : index
    %174 = vector.load %arg5[%c1_106, %c3_107, %c0_108, %c0_109] : memref<4x9x64x64xbf16, #tpu.memory_space<vmem>>, vector<1x1x64x64xbf16>
    %175 = vector.shape_cast %174 : vector<1x1x64x64xbf16> to vector<64x64xbf16>
    %cst_110 = arith.constant dense<0.000000e+00> : vector<64x64xf32>
    %176 = tpu.matmul %173, %175, %cst_110 {dimension_numbers = #tpu.dot_dimension_numbers<[1], [0], [0], [1], [0, 0, 1, 1], [], []>} : vector<64x64xbf16>, vector<64x64xbf16>, vector<64x64xf32> -> vector<64x64xf32>
    %177 = arith.addf %168, %176 : vector<64x64xf32>
    %178 = vector.extract_strided_slice %144 {offsets = [9, 0], sizes = [64, 64], strides = [1, 1]} : vector<82x64xbf16> to vector<64x64xbf16>
    %c1_111 = arith.constant 1 : index
    %c4_112 = arith.constant 4 : index
    %c0_113 = arith.constant 0 : index
    %c0_114 = arith.constant 0 : index
    %179 = vector.load %arg5[%c1_111, %c4_112, %c0_113, %c0_114] : memref<4x9x64x64xbf16, #tpu.memory_space<vmem>>, vector<1x1x64x64xbf16>
    %180 = vector.shape_cast %179 : vector<1x1x64x64xbf16> to vector<64x64xbf16>
    %cst_115 = arith.constant dense<0.000000e+00> : vector<64x64xf32>
    %181 = tpu.matmul %178, %180, %cst_115 {dimension_numbers = #tpu.dot_dimension_numbers<[1], [0], [0], [1], [0, 0, 1, 1], [], []>} : vector<64x64xbf16>, vector<64x64xbf16>, vector<64x64xf32> -> vector<64x64xf32>
    %182 = arith.addf %177, %181 : vector<64x64xf32>
    %183 = vector.extract_strided_slice %144 {offsets = [10, 0], sizes = [64, 64], strides = [1, 1]} : vector<82x64xbf16> to vector<64x64xbf16>
    %cst_116 = arith.constant 0.000000e+00 : bf16
    %184 = vector.broadcast %cst_116 : bf16 to vector<64x64xbf16>
    %185 = vector.shape_cast %20 : vector<64x1xi1> to vector<64x1xi1>
    %186 = vector.broadcast %185 : vector<64x1xi1> to vector<64x64xi1>
    %187 = arith.select %186, %183, %184 : vector<64x64xi1>, vector<64x64xbf16>
    %c1_117 = arith.constant 1 : index
    %c5_118 = arith.constant 5 : index
    %c0_119 = arith.constant 0 : index
    %c0_120 = arith.constant 0 : index
    %188 = vector.load %arg5[%c1_117, %c5_118, %c0_119, %c0_120] : memref<4x9x64x64xbf16, #tpu.memory_space<vmem>>, vector<1x1x64x64xbf16>
    %189 = vector.shape_cast %188 : vector<1x1x64x64xbf16> to vector<64x64xbf16>
    %cst_121 = arith.constant dense<0.000000e+00> : vector<64x64xf32>
    %190 = tpu.matmul %187, %189, %cst_121 {dimension_numbers = #tpu.dot_dimension_numbers<[1], [0], [0], [1], [0, 0, 1, 1], [], []>} : vector<64x64xbf16>, vector<64x64xbf16>, vector<64x64xf32> -> vector<64x64xf32>
    %191 = arith.addf %182, %190 : vector<64x64xf32>
    %192 = vector.extract_strided_slice %144 {offsets = [16, 0], sizes = [64, 64], strides = [1, 1]} : vector<82x64xbf16> to vector<64x64xbf16>
    %cst_122 = arith.constant 0.000000e+00 : bf16
    %193 = vector.broadcast %cst_122 : bf16 to vector<64x64xbf16>
    %194 = vector.shape_cast %18 : vector<64x1xi1> to vector<64x1xi1>
    %195 = vector.broadcast %194 : vector<64x1xi1> to vector<64x64xi1>
    %196 = arith.select %195, %192, %193 : vector<64x64xi1>, vector<64x64xbf16>
    %c1_123 = arith.constant 1 : index
    %c6_124 = arith.constant 6 : index
    %c0_125 = arith.constant 0 : index
    %c0_126 = arith.constant 0 : index
    %197 = vector.load %arg5[%c1_123, %c6_124, %c0_125, %c0_126] : memref<4x9x64x64xbf16, #tpu.memory_space<vmem>>, vector<1x1x64x64xbf16>
    %198 = vector.shape_cast %197 : vector<1x1x64x64xbf16> to vector<64x64xbf16>
    %cst_127 = arith.constant dense<0.000000e+00> : vector<64x64xf32>
    %199 = tpu.matmul %196, %198, %cst_127 {dimension_numbers = #tpu.dot_dimension_numbers<[1], [0], [0], [1], [0, 0, 1, 1], [], []>} : vector<64x64xbf16>, vector<64x64xbf16>, vector<64x64xf32> -> vector<64x64xf32>
    %200 = arith.addf %191, %199 : vector<64x64xf32>
    %201 = vector.extract_strided_slice %144 {offsets = [17, 0], sizes = [64, 64], strides = [1, 1]} : vector<82x64xbf16> to vector<64x64xbf16>
    %c1_128 = arith.constant 1 : index
    %c7_129 = arith.constant 7 : index
    %c0_130 = arith.constant 0 : index
    %c0_131 = arith.constant 0 : index
    %202 = vector.load %arg5[%c1_128, %c7_129, %c0_130, %c0_131] : memref<4x9x64x64xbf16, #tpu.memory_space<vmem>>, vector<1x1x64x64xbf16>
    %203 = vector.shape_cast %202 : vector<1x1x64x64xbf16> to vector<64x64xbf16>
    %cst_132 = arith.constant dense<0.000000e+00> : vector<64x64xf32>
    %204 = tpu.matmul %201, %203, %cst_132 {dimension_numbers = #tpu.dot_dimension_numbers<[1], [0], [0], [1], [0, 0, 1, 1], [], []>} : vector<64x64xbf16>, vector<64x64xbf16>, vector<64x64xf32> -> vector<64x64xf32>
    %205 = arith.addf %200, %204 : vector<64x64xf32>
    %206 = vector.extract_strided_slice %144 {offsets = [18, 0], sizes = [64, 64], strides = [1, 1]} : vector<82x64xbf16> to vector<64x64xbf16>
    %cst_133 = arith.constant 0.000000e+00 : bf16
    %207 = vector.broadcast %cst_133 : bf16 to vector<64x64xbf16>
    %208 = vector.shape_cast %20 : vector<64x1xi1> to vector<64x1xi1>
    %209 = vector.broadcast %208 : vector<64x1xi1> to vector<64x64xi1>
    %210 = arith.select %209, %206, %207 : vector<64x64xi1>, vector<64x64xbf16>
    %c1_134 = arith.constant 1 : index
    %c8_135 = arith.constant 8 : index
    %c0_136 = arith.constant 0 : index
    %c0_137 = arith.constant 0 : index
    %211 = vector.load %arg5[%c1_134, %c8_135, %c0_136, %c0_137] : memref<4x9x64x64xbf16, #tpu.memory_space<vmem>>, vector<1x1x64x64xbf16>
    %212 = vector.shape_cast %211 : vector<1x1x64x64xbf16> to vector<64x64xbf16>
    %cst_138 = arith.constant dense<0.000000e+00> : vector<64x64xf32>
    %213 = tpu.matmul %210, %212, %cst_138 {dimension_numbers = #tpu.dot_dimension_numbers<[1], [0], [0], [1], [0, 0, 1, 1], [], []>} : vector<64x64xbf16>, vector<64x64xbf16>, vector<64x64xf32> -> vector<64x64xf32>
    %214 = arith.addf %205, %213 : vector<64x64xf32>
    %c1_139 = arith.constant 1 : index
    %c0_140 = arith.constant 0 : index
    %c0_141 = arith.constant 0 : index
    %215 = vector.load %arg6[%c1_139, %c0_140, %c0_141] : memref<4x1x64xf32, #tpu.memory_space<vmem>>, vector<1x1x64xf32>
    %216 = vector.shape_cast %215 : vector<1x1x64xf32> to vector<1x64xf32>
    %217 = vector.broadcast %216 : vector<1x64xf32> to vector<64x64xf32>
    %218 = arith.addf %214, %217 : vector<64x64xf32>
    %219 = arith.addf %218, %65 : vector<64x64xf32>
    %cst_142 = arith.constant 0.000000e+00 : f32
    %220 = vector.broadcast %cst_142 : f32 to vector<64x64xf32>
    %221 = arith.maximumf %219, %220 : vector<64x64xf32>
    %222 = arith.truncf %221 : vector<64x64xf32> to vector<64x64xbf16>
    %223 = tpu.concatenate %21, %222, %21 in 0 : vector<9x64xbf16>, vector<64x64xbf16>, vector<9x64xbf16> -> vector<82x64xbf16>
    %cst_143 = arith.constant 0.000000e+00 : f32
    %224 = vector.broadcast %cst_143 : f32 to vector<64x64xf32>
    %225 = vector.extract_strided_slice %223 {offsets = [0, 0], sizes = [64, 64], strides = [1, 1]} : vector<82x64xbf16> to vector<64x64xbf16>
    %cst_144 = arith.constant 0.000000e+00 : bf16
    %226 = vector.broadcast %cst_144 : bf16 to vector<64x64xbf16>
    %227 = vector.shape_cast %18 : vector<64x1xi1> to vector<64x1xi1>
    %228 = vector.broadcast %227 : vector<64x1xi1> to vector<64x64xi1>
    %229 = arith.select %228, %225, %226 : vector<64x64xi1>, vector<64x64xbf16>
    %c2_145 = arith.constant 2 : index
    %c0_146 = arith.constant 0 : index
    %c0_147 = arith.constant 0 : index
    %c0_148 = arith.constant 0 : index
    %230 = vector.load %arg5[%c2_145, %c0_146, %c0_147, %c0_148] : memref<4x9x64x64xbf16, #tpu.memory_space<vmem>>, vector<1x1x64x64xbf16>
    %231 = vector.shape_cast %230 : vector<1x1x64x64xbf16> to vector<64x64xbf16>
    %cst_149 = arith.constant dense<0.000000e+00> : vector<64x64xf32>
    %232 = tpu.matmul %229, %231, %cst_149 {dimension_numbers = #tpu.dot_dimension_numbers<[1], [0], [0], [1], [0, 0, 1, 1], [], []>} : vector<64x64xbf16>, vector<64x64xbf16>, vector<64x64xf32> -> vector<64x64xf32>
    %233 = arith.addf %224, %232 : vector<64x64xf32>
    %234 = vector.extract_strided_slice %223 {offsets = [1, 0], sizes = [64, 64], strides = [1, 1]} : vector<82x64xbf16> to vector<64x64xbf16>
    %c2_150 = arith.constant 2 : index
    %c1_151 = arith.constant 1 : index
    %c0_152 = arith.constant 0 : index
    %c0_153 = arith.constant 0 : index
    %235 = vector.load %arg5[%c2_150, %c1_151, %c0_152, %c0_153] : memref<4x9x64x64xbf16, #tpu.memory_space<vmem>>, vector<1x1x64x64xbf16>
    %236 = vector.shape_cast %235 : vector<1x1x64x64xbf16> to vector<64x64xbf16>
    %cst_154 = arith.constant dense<0.000000e+00> : vector<64x64xf32>
    %237 = tpu.matmul %234, %236, %cst_154 {dimension_numbers = #tpu.dot_dimension_numbers<[1], [0], [0], [1], [0, 0, 1, 1], [], []>} : vector<64x64xbf16>, vector<64x64xbf16>, vector<64x64xf32> -> vector<64x64xf32>
    %238 = arith.addf %233, %237 : vector<64x64xf32>
    %239 = vector.extract_strided_slice %223 {offsets = [2, 0], sizes = [64, 64], strides = [1, 1]} : vector<82x64xbf16> to vector<64x64xbf16>
    %cst_155 = arith.constant 0.000000e+00 : bf16
    %240 = vector.broadcast %cst_155 : bf16 to vector<64x64xbf16>
    %241 = vector.shape_cast %20 : vector<64x1xi1> to vector<64x1xi1>
    %242 = vector.broadcast %241 : vector<64x1xi1> to vector<64x64xi1>
    %243 = arith.select %242, %239, %240 : vector<64x64xi1>, vector<64x64xbf16>
    %c2_156 = arith.constant 2 : index
    %c2_157 = arith.constant 2 : index
    %c0_158 = arith.constant 0 : index
    %c0_159 = arith.constant 0 : index
    %244 = vector.load %arg5[%c2_156, %c2_157, %c0_158, %c0_159] : memref<4x9x64x64xbf16, #tpu.memory_space<vmem>>, vector<1x1x64x64xbf16>
    %245 = vector.shape_cast %244 : vector<1x1x64x64xbf16> to vector<64x64xbf16>
    %cst_160 = arith.constant dense<0.000000e+00> : vector<64x64xf32>
    %246 = tpu.matmul %243, %245, %cst_160 {dimension_numbers = #tpu.dot_dimension_numbers<[1], [0], [0], [1], [0, 0, 1, 1], [], []>} : vector<64x64xbf16>, vector<64x64xbf16>, vector<64x64xf32> -> vector<64x64xf32>
    %247 = arith.addf %238, %246 : vector<64x64xf32>
    %248 = vector.extract_strided_slice %223 {offsets = [8, 0], sizes = [64, 64], strides = [1, 1]} : vector<82x64xbf16> to vector<64x64xbf16>
    %cst_161 = arith.constant 0.000000e+00 : bf16
    %249 = vector.broadcast %cst_161 : bf16 to vector<64x64xbf16>
    %250 = vector.shape_cast %18 : vector<64x1xi1> to vector<64x1xi1>
    %251 = vector.broadcast %250 : vector<64x1xi1> to vector<64x64xi1>
    %252 = arith.select %251, %248, %249 : vector<64x64xi1>, vector<64x64xbf16>
    %c2_162 = arith.constant 2 : index
    %c3_163 = arith.constant 3 : index
    %c0_164 = arith.constant 0 : index
    %c0_165 = arith.constant 0 : index
    %253 = vector.load %arg5[%c2_162, %c3_163, %c0_164, %c0_165] : memref<4x9x64x64xbf16, #tpu.memory_space<vmem>>, vector<1x1x64x64xbf16>
    %254 = vector.shape_cast %253 : vector<1x1x64x64xbf16> to vector<64x64xbf16>
    %cst_166 = arith.constant dense<0.000000e+00> : vector<64x64xf32>
    %255 = tpu.matmul %252, %254, %cst_166 {dimension_numbers = #tpu.dot_dimension_numbers<[1], [0], [0], [1], [0, 0, 1, 1], [], []>} : vector<64x64xbf16>, vector<64x64xbf16>, vector<64x64xf32> -> vector<64x64xf32>
    %256 = arith.addf %247, %255 : vector<64x64xf32>
    %257 = vector.extract_strided_slice %223 {offsets = [9, 0], sizes = [64, 64], strides = [1, 1]} : vector<82x64xbf16> to vector<64x64xbf16>
    %c2_167 = arith.constant 2 : index
    %c4_168 = arith.constant 4 : index
    %c0_169 = arith.constant 0 : index
    %c0_170 = arith.constant 0 : index
    %258 = vector.load %arg5[%c2_167, %c4_168, %c0_169, %c0_170] : memref<4x9x64x64xbf16, #tpu.memory_space<vmem>>, vector<1x1x64x64xbf16>
    %259 = vector.shape_cast %258 : vector<1x1x64x64xbf16> to vector<64x64xbf16>
    %cst_171 = arith.constant dense<0.000000e+00> : vector<64x64xf32>
    %260 = tpu.matmul %257, %259, %cst_171 {dimension_numbers = #tpu.dot_dimension_numbers<[1], [0], [0], [1], [0, 0, 1, 1], [], []>} : vector<64x64xbf16>, vector<64x64xbf16>, vector<64x64xf32> -> vector<64x64xf32>
    %261 = arith.addf %256, %260 : vector<64x64xf32>
    %262 = vector.extract_strided_slice %223 {offsets = [10, 0], sizes = [64, 64], strides = [1, 1]} : vector<82x64xbf16> to vector<64x64xbf16>
    %cst_172 = arith.constant 0.000000e+00 : bf16
    %263 = vector.broadcast %cst_172 : bf16 to vector<64x64xbf16>
    %264 = vector.shape_cast %20 : vector<64x1xi1> to vector<64x1xi1>
    %265 = vector.broadcast %264 : vector<64x1xi1> to vector<64x64xi1>
    %266 = arith.select %265, %262, %263 : vector<64x64xi1>, vector<64x64xbf16>
    %c2_173 = arith.constant 2 : index
    %c5_174 = arith.constant 5 : index
    %c0_175 = arith.constant 0 : index
    %c0_176 = arith.constant 0 : index
    %267 = vector.load %arg5[%c2_173, %c5_174, %c0_175, %c0_176] : memref<4x9x64x64xbf16, #tpu.memory_space<vmem>>, vector<1x1x64x64xbf16>
    %268 = vector.shape_cast %267 : vector<1x1x64x64xbf16> to vector<64x64xbf16>
    %cst_177 = arith.constant dense<0.000000e+00> : vector<64x64xf32>
    %269 = tpu.matmul %266, %268, %cst_177 {dimension_numbers = #tpu.dot_dimension_numbers<[1], [0], [0], [1], [0, 0, 1, 1], [], []>} : vector<64x64xbf16>, vector<64x64xbf16>, vector<64x64xf32> -> vector<64x64xf32>
    %270 = arith.addf %261, %269 : vector<64x64xf32>
    %271 = vector.extract_strided_slice %223 {offsets = [16, 0], sizes = [64, 64], strides = [1, 1]} : vector<82x64xbf16> to vector<64x64xbf16>
    %cst_178 = arith.constant 0.000000e+00 : bf16
    %272 = vector.broadcast %cst_178 : bf16 to vector<64x64xbf16>
    %273 = vector.shape_cast %18 : vector<64x1xi1> to vector<64x1xi1>
    %274 = vector.broadcast %273 : vector<64x1xi1> to vector<64x64xi1>
    %275 = arith.select %274, %271, %272 : vector<64x64xi1>, vector<64x64xbf16>
    %c2_179 = arith.constant 2 : index
    %c6_180 = arith.constant 6 : index
    %c0_181 = arith.constant 0 : index
    %c0_182 = arith.constant 0 : index
    %276 = vector.load %arg5[%c2_179, %c6_180, %c0_181, %c0_182] : memref<4x9x64x64xbf16, #tpu.memory_space<vmem>>, vector<1x1x64x64xbf16>
    %277 = vector.shape_cast %276 : vector<1x1x64x64xbf16> to vector<64x64xbf16>
    %cst_183 = arith.constant dense<0.000000e+00> : vector<64x64xf32>
    %278 = tpu.matmul %275, %277, %cst_183 {dimension_numbers = #tpu.dot_dimension_numbers<[1], [0], [0], [1], [0, 0, 1, 1], [], []>} : vector<64x64xbf16>, vector<64x64xbf16>, vector<64x64xf32> -> vector<64x64xf32>
    %279 = arith.addf %270, %278 : vector<64x64xf32>
    %280 = vector.extract_strided_slice %223 {offsets = [17, 0], sizes = [64, 64], strides = [1, 1]} : vector<82x64xbf16> to vector<64x64xbf16>
    %c2_184 = arith.constant 2 : index
    %c7_185 = arith.constant 7 : index
    %c0_186 = arith.constant 0 : index
    %c0_187 = arith.constant 0 : index
    %281 = vector.load %arg5[%c2_184, %c7_185, %c0_186, %c0_187] : memref<4x9x64x64xbf16, #tpu.memory_space<vmem>>, vector<1x1x64x64xbf16>
    %282 = vector.shape_cast %281 : vector<1x1x64x64xbf16> to vector<64x64xbf16>
    %cst_188 = arith.constant dense<0.000000e+00> : vector<64x64xf32>
    %283 = tpu.matmul %280, %282, %cst_188 {dimension_numbers = #tpu.dot_dimension_numbers<[1], [0], [0], [1], [0, 0, 1, 1], [], []>} : vector<64x64xbf16>, vector<64x64xbf16>, vector<64x64xf32> -> vector<64x64xf32>
    %284 = arith.addf %279, %283 : vector<64x64xf32>
    %285 = vector.extract_strided_slice %223 {offsets = [18, 0], sizes = [64, 64], strides = [1, 1]} : vector<82x64xbf16> to vector<64x64xbf16>
    %cst_189 = arith.constant 0.000000e+00 : bf16
    %286 = vector.broadcast %cst_189 : bf16 to vector<64x64xbf16>
    %287 = vector.shape_cast %20 : vector<64x1xi1> to vector<64x1xi1>
    %288 = vector.broadcast %287 : vector<64x1xi1> to vector<64x64xi1>
    %289 = arith.select %288, %285, %286 : vector<64x64xi1>, vector<64x64xbf16>
    %c2_190 = arith.constant 2 : index
    %c8_191 = arith.constant 8 : index
    %c0_192 = arith.constant 0 : index
    %c0_193 = arith.constant 0 : index
    %290 = vector.load %arg5[%c2_190, %c8_191, %c0_192, %c0_193] : memref<4x9x64x64xbf16, #tpu.memory_space<vmem>>, vector<1x1x64x64xbf16>
    %291 = vector.shape_cast %290 : vector<1x1x64x64xbf16> to vector<64x64xbf16>
    %cst_194 = arith.constant dense<0.000000e+00> : vector<64x64xf32>
    %292 = tpu.matmul %289, %291, %cst_194 {dimension_numbers = #tpu.dot_dimension_numbers<[1], [0], [0], [1], [0, 0, 1, 1], [], []>} : vector<64x64xbf16>, vector<64x64xbf16>, vector<64x64xf32> -> vector<64x64xf32>
    %293 = arith.addf %284, %292 : vector<64x64xf32>
    %c2_195 = arith.constant 2 : index
    %c0_196 = arith.constant 0 : index
    %c0_197 = arith.constant 0 : index
    %294 = vector.load %arg6[%c2_195, %c0_196, %c0_197] : memref<4x1x64xf32, #tpu.memory_space<vmem>>, vector<1x1x64xf32>
    %295 = vector.shape_cast %294 : vector<1x1x64xf32> to vector<1x64xf32>
    %296 = vector.broadcast %295 : vector<1x64xf32> to vector<64x64xf32>
    %297 = arith.addf %293, %296 : vector<64x64xf32>
    %cst_198 = arith.constant 0.000000e+00 : f32
    %298 = vector.broadcast %cst_198 : f32 to vector<64x64xf32>
    %299 = arith.maximumf %297, %298 : vector<64x64xf32>
    %300 = arith.truncf %299 : vector<64x64xf32> to vector<64x64xbf16>
    %301 = tpu.concatenate %21, %300, %21 in 0 : vector<9x64xbf16>, vector<64x64xbf16>, vector<9x64xbf16> -> vector<82x64xbf16>
    %cst_199 = arith.constant 0.000000e+00 : f32
    %302 = vector.broadcast %cst_199 : f32 to vector<64x64xf32>
    %303 = vector.extract_strided_slice %301 {offsets = [0, 0], sizes = [64, 64], strides = [1, 1]} : vector<82x64xbf16> to vector<64x64xbf16>
    %cst_200 = arith.constant 0.000000e+00 : bf16
    %304 = vector.broadcast %cst_200 : bf16 to vector<64x64xbf16>
    %305 = vector.shape_cast %18 : vector<64x1xi1> to vector<64x1xi1>
    %306 = vector.broadcast %305 : vector<64x1xi1> to vector<64x64xi1>
    %307 = arith.select %306, %303, %304 : vector<64x64xi1>, vector<64x64xbf16>
    %c3_201 = arith.constant 3 : index
    %c0_202 = arith.constant 0 : index
    %c0_203 = arith.constant 0 : index
    %c0_204 = arith.constant 0 : index
    %308 = vector.load %arg5[%c3_201, %c0_202, %c0_203, %c0_204] : memref<4x9x64x64xbf16, #tpu.memory_space<vmem>>, vector<1x1x64x64xbf16>
    %309 = vector.shape_cast %308 : vector<1x1x64x64xbf16> to vector<64x64xbf16>
    %cst_205 = arith.constant dense<0.000000e+00> : vector<64x64xf32>
    %310 = tpu.matmul %307, %309, %cst_205 {dimension_numbers = #tpu.dot_dimension_numbers<[1], [0], [0], [1], [0, 0, 1, 1], [], []>} : vector<64x64xbf16>, vector<64x64xbf16>, vector<64x64xf32> -> vector<64x64xf32>
    %311 = arith.addf %302, %310 : vector<64x64xf32>
    %312 = vector.extract_strided_slice %301 {offsets = [1, 0], sizes = [64, 64], strides = [1, 1]} : vector<82x64xbf16> to vector<64x64xbf16>
    %c3_206 = arith.constant 3 : index
    %c1_207 = arith.constant 1 : index
    %c0_208 = arith.constant 0 : index
    %c0_209 = arith.constant 0 : index
    %313 = vector.load %arg5[%c3_206, %c1_207, %c0_208, %c0_209] : memref<4x9x64x64xbf16, #tpu.memory_space<vmem>>, vector<1x1x64x64xbf16>
    %314 = vector.shape_cast %313 : vector<1x1x64x64xbf16> to vector<64x64xbf16>
    %cst_210 = arith.constant dense<0.000000e+00> : vector<64x64xf32>
    %315 = tpu.matmul %312, %314, %cst_210 {dimension_numbers = #tpu.dot_dimension_numbers<[1], [0], [0], [1], [0, 0, 1, 1], [], []>} : vector<64x64xbf16>, vector<64x64xbf16>, vector<64x64xf32> -> vector<64x64xf32>
    %316 = arith.addf %311, %315 : vector<64x64xf32>
    %317 = vector.extract_strided_slice %301 {offsets = [2, 0], sizes = [64, 64], strides = [1, 1]} : vector<82x64xbf16> to vector<64x64xbf16>
    %cst_211 = arith.constant 0.000000e+00 : bf16
    %318 = vector.broadcast %cst_211 : bf16 to vector<64x64xbf16>
    %319 = vector.shape_cast %20 : vector<64x1xi1> to vector<64x1xi1>
    %320 = vector.broadcast %319 : vector<64x1xi1> to vector<64x64xi1>
    %321 = arith.select %320, %317, %318 : vector<64x64xi1>, vector<64x64xbf16>
    %c3_212 = arith.constant 3 : index
    %c2_213 = arith.constant 2 : index
    %c0_214 = arith.constant 0 : index
    %c0_215 = arith.constant 0 : index
    %322 = vector.load %arg5[%c3_212, %c2_213, %c0_214, %c0_215] : memref<4x9x64x64xbf16, #tpu.memory_space<vmem>>, vector<1x1x64x64xbf16>
    %323 = vector.shape_cast %322 : vector<1x1x64x64xbf16> to vector<64x64xbf16>
    %cst_216 = arith.constant dense<0.000000e+00> : vector<64x64xf32>
    %324 = tpu.matmul %321, %323, %cst_216 {dimension_numbers = #tpu.dot_dimension_numbers<[1], [0], [0], [1], [0, 0, 1, 1], [], []>} : vector<64x64xbf16>, vector<64x64xbf16>, vector<64x64xf32> -> vector<64x64xf32>
    %325 = arith.addf %316, %324 : vector<64x64xf32>
    %326 = vector.extract_strided_slice %301 {offsets = [8, 0], sizes = [64, 64], strides = [1, 1]} : vector<82x64xbf16> to vector<64x64xbf16>
    %cst_217 = arith.constant 0.000000e+00 : bf16
    %327 = vector.broadcast %cst_217 : bf16 to vector<64x64xbf16>
    %328 = vector.shape_cast %18 : vector<64x1xi1> to vector<64x1xi1>
    %329 = vector.broadcast %328 : vector<64x1xi1> to vector<64x64xi1>
    %330 = arith.select %329, %326, %327 : vector<64x64xi1>, vector<64x64xbf16>
    %c3_218 = arith.constant 3 : index
    %c3_219 = arith.constant 3 : index
    %c0_220 = arith.constant 0 : index
    %c0_221 = arith.constant 0 : index
    %331 = vector.load %arg5[%c3_218, %c3_219, %c0_220, %c0_221] : memref<4x9x64x64xbf16, #tpu.memory_space<vmem>>, vector<1x1x64x64xbf16>
    %332 = vector.shape_cast %331 : vector<1x1x64x64xbf16> to vector<64x64xbf16>
    %cst_222 = arith.constant dense<0.000000e+00> : vector<64x64xf32>
    %333 = tpu.matmul %330, %332, %cst_222 {dimension_numbers = #tpu.dot_dimension_numbers<[1], [0], [0], [1], [0, 0, 1, 1], [], []>} : vector<64x64xbf16>, vector<64x64xbf16>, vector<64x64xf32> -> vector<64x64xf32>
    %334 = arith.addf %325, %333 : vector<64x64xf32>
    %335 = vector.extract_strided_slice %301 {offsets = [9, 0], sizes = [64, 64], strides = [1, 1]} : vector<82x64xbf16> to vector<64x64xbf16>
    %c3_223 = arith.constant 3 : index
    %c4_224 = arith.constant 4 : index
    %c0_225 = arith.constant 0 : index
    %c0_226 = arith.constant 0 : index
    %336 = vector.load %arg5[%c3_223, %c4_224, %c0_225, %c0_226] : memref<4x9x64x64xbf16, #tpu.memory_space<vmem>>, vector<1x1x64x64xbf16>
    %337 = vector.shape_cast %336 : vector<1x1x64x64xbf16> to vector<64x64xbf16>
    %cst_227 = arith.constant dense<0.000000e+00> : vector<64x64xf32>
    %338 = tpu.matmul %335, %337, %cst_227 {dimension_numbers = #tpu.dot_dimension_numbers<[1], [0], [0], [1], [0, 0, 1, 1], [], []>} : vector<64x64xbf16>, vector<64x64xbf16>, vector<64x64xf32> -> vector<64x64xf32>
    %339 = arith.addf %334, %338 : vector<64x64xf32>
    %340 = vector.extract_strided_slice %301 {offsets = [10, 0], sizes = [64, 64], strides = [1, 1]} : vector<82x64xbf16> to vector<64x64xbf16>
    %cst_228 = arith.constant 0.000000e+00 : bf16
    %341 = vector.broadcast %cst_228 : bf16 to vector<64x64xbf16>
    %342 = vector.shape_cast %20 : vector<64x1xi1> to vector<64x1xi1>
    %343 = vector.broadcast %342 : vector<64x1xi1> to vector<64x64xi1>
    %344 = arith.select %343, %340, %341 : vector<64x64xi1>, vector<64x64xbf16>
    %c3_229 = arith.constant 3 : index
    %c5_230 = arith.constant 5 : index
    %c0_231 = arith.constant 0 : index
    %c0_232 = arith.constant 0 : index
    %345 = vector.load %arg5[%c3_229, %c5_230, %c0_231, %c0_232] : memref<4x9x64x64xbf16, #tpu.memory_space<vmem>>, vector<1x1x64x64xbf16>
    %346 = vector.shape_cast %345 : vector<1x1x64x64xbf16> to vector<64x64xbf16>
    %cst_233 = arith.constant dense<0.000000e+00> : vector<64x64xf32>
    %347 = tpu.matmul %344, %346, %cst_233 {dimension_numbers = #tpu.dot_dimension_numbers<[1], [0], [0], [1], [0, 0, 1, 1], [], []>} : vector<64x64xbf16>, vector<64x64xbf16>, vector<64x64xf32> -> vector<64x64xf32>
    %348 = arith.addf %339, %347 : vector<64x64xf32>
    %349 = vector.extract_strided_slice %301 {offsets = [16, 0], sizes = [64, 64], strides = [1, 1]} : vector<82x64xbf16> to vector<64x64xbf16>
    %cst_234 = arith.constant 0.000000e+00 : bf16
    %350 = vector.broadcast %cst_234 : bf16 to vector<64x64xbf16>
    %351 = vector.shape_cast %18 : vector<64x1xi1> to vector<64x1xi1>
    %352 = vector.broadcast %351 : vector<64x1xi1> to vector<64x64xi1>
    %353 = arith.select %352, %349, %350 : vector<64x64xi1>, vector<64x64xbf16>
    %c3_235 = arith.constant 3 : index
    %c6_236 = arith.constant 6 : index
    %c0_237 = arith.constant 0 : index
    %c0_238 = arith.constant 0 : index
    %354 = vector.load %arg5[%c3_235, %c6_236, %c0_237, %c0_238] : memref<4x9x64x64xbf16, #tpu.memory_space<vmem>>, vector<1x1x64x64xbf16>
    %355 = vector.shape_cast %354 : vector<1x1x64x64xbf16> to vector<64x64xbf16>
    %cst_239 = arith.constant dense<0.000000e+00> : vector<64x64xf32>
    %356 = tpu.matmul %353, %355, %cst_239 {dimension_numbers = #tpu.dot_dimension_numbers<[1], [0], [0], [1], [0, 0, 1, 1], [], []>} : vector<64x64xbf16>, vector<64x64xbf16>, vector<64x64xf32> -> vector<64x64xf32>
    %357 = arith.addf %348, %356 : vector<64x64xf32>
    %358 = vector.extract_strided_slice %301 {offsets = [17, 0], sizes = [64, 64], strides = [1, 1]} : vector<82x64xbf16> to vector<64x64xbf16>
    %c3_240 = arith.constant 3 : index
    %c7_241 = arith.constant 7 : index
    %c0_242 = arith.constant 0 : index
    %c0_243 = arith.constant 0 : index
    %359 = vector.load %arg5[%c3_240, %c7_241, %c0_242, %c0_243] : memref<4x9x64x64xbf16, #tpu.memory_space<vmem>>, vector<1x1x64x64xbf16>
    %360 = vector.shape_cast %359 : vector<1x1x64x64xbf16> to vector<64x64xbf16>
    %cst_244 = arith.constant dense<0.000000e+00> : vector<64x64xf32>
    %361 = tpu.matmul %358, %360, %cst_244 {dimension_numbers = #tpu.dot_dimension_numbers<[1], [0], [0], [1], [0, 0, 1, 1], [], []>} : vector<64x64xbf16>, vector<64x64xbf16>, vector<64x64xf32> -> vector<64x64xf32>
    %362 = arith.addf %357, %361 : vector<64x64xf32>
    %363 = vector.extract_strided_slice %301 {offsets = [18, 0], sizes = [64, 64], strides = [1, 1]} : vector<82x64xbf16> to vector<64x64xbf16>
    %cst_245 = arith.constant 0.000000e+00 : bf16
    %364 = vector.broadcast %cst_245 : bf16 to vector<64x64xbf16>
    %365 = vector.shape_cast %20 : vector<64x1xi1> to vector<64x1xi1>
    %366 = vector.broadcast %365 : vector<64x1xi1> to vector<64x64xi1>
    %367 = arith.select %366, %363, %364 : vector<64x64xi1>, vector<64x64xbf16>
    %c3_246 = arith.constant 3 : index
    %c8_247 = arith.constant 8 : index
    %c0_248 = arith.constant 0 : index
    %c0_249 = arith.constant 0 : index
    %368 = vector.load %arg5[%c3_246, %c8_247, %c0_248, %c0_249] : memref<4x9x64x64xbf16, #tpu.memory_space<vmem>>, vector<1x1x64x64xbf16>
    %369 = vector.shape_cast %368 : vector<1x1x64x64xbf16> to vector<64x64xbf16>
    %cst_250 = arith.constant dense<0.000000e+00> : vector<64x64xf32>
    %370 = tpu.matmul %367, %369, %cst_250 {dimension_numbers = #tpu.dot_dimension_numbers<[1], [0], [0], [1], [0, 0, 1, 1], [], []>} : vector<64x64xbf16>, vector<64x64xbf16>, vector<64x64xf32> -> vector<64x64xf32>
    %371 = arith.addf %362, %370 : vector<64x64xf32>
    %c3_251 = arith.constant 3 : index
    %c0_252 = arith.constant 0 : index
    %c0_253 = arith.constant 0 : index
    %372 = vector.load %arg6[%c3_251, %c0_252, %c0_253] : memref<4x1x64xf32, #tpu.memory_space<vmem>>, vector<1x1x64xf32>
    %373 = vector.shape_cast %372 : vector<1x1x64xf32> to vector<1x64xf32>
    %374 = vector.broadcast %373 : vector<1x64xf32> to vector<64x64xf32>
    %375 = arith.addf %371, %374 : vector<64x64xf32>
    %376 = arith.addf %375, %221 : vector<64x64xf32>
    %cst_254 = arith.constant 0.000000e+00 : f32
    %377 = vector.broadcast %cst_254 : f32 to vector<64x64xf32>
    %378 = arith.maximumf %376, %377 : vector<64x64xf32>
    %379 = arith.truncf %378 : vector<64x64xf32> to vector<64x64xbf16>
    %c0_255 = arith.constant 0 : index
    %c0_256 = arith.constant 0 : index
    %380 = vector.load %arg7[%c0_255, %c0_256] : memref<64x8xbf16, #tpu.memory_space<vmem>>, vector<64x8xbf16>
    %cst_257 = arith.constant dense<0.000000e+00> : vector<64x8xf32>
    %381 = tpu.matmul %379, %380, %cst_257 {dimension_numbers = #tpu.dot_dimension_numbers<[1], [0], [0], [1], [0, 0, 1, 1], [], []>} : vector<64x64xbf16>, vector<64x8xbf16>, vector<64x8xf32> -> vector<64x8xf32>
    %c0_258 = arith.constant 0 : index
    %c0_259 = arith.constant 0 : index
    %382 = vector.load %arg8[%c0_258, %c0_259] : memref<1x8xf32, #tpu.memory_space<vmem>>, vector<1x8xf32>
    %383 = vector.broadcast %382 : vector<1x8xf32> to vector<64x8xf32>
    %384 = arith.addf %381, %383 : vector<64x8xf32>
    %385 = tpu.iota {dimensions = array<i32: 1>} : vector<64x8xi32>
    %c1_i32_260 = arith.constant 1 : i32
    %386 = vector.broadcast %c1_i32_260 : i32 to vector<64x8xi32>
    %387 = arith.cmpi slt, %385, %386 : vector<64x8xi32>
    %388 = arith.negf %384 : vector<64x8xf32>
    %389 = math.exp %388 : vector<64x8xf32>
    %cst_261 = arith.constant 1.000000e+00 : f32
    %390 = vector.broadcast %cst_261 : f32 to vector<64x8xf32>
    %391 = arith.addf %390, %389 : vector<64x8xf32>
    %392 = arith.divf %390, %391 : vector<64x8xf32>
    %393 = arith.select %387, %392, %384 : vector<64x8xi1>, vector<64x8xf32>
    %c0_262 = arith.constant 0 : index
    %c0_263 = arith.constant 0 : index
    %c0_264 = arith.constant 0 : index
    %394 = vector.load %arg9[%c0_262, %c0_263, %c0_264] : memref<2x64x8xf32, #tpu.memory_space<vmem>>, vector<1x64x8xf32>
    %395 = vector.shape_cast %394 : vector<1x64x8xf32> to vector<64x8xf32>
    %396 = vector.shape_cast %393 : vector<64x8xf32> to vector<1x64x8xf32>
    tpu.vector_store %arg9[%c0_262, %c0_263, %c0_264], %396 {strides = array<i32>} : memref<2x64x8xf32, #tpu.memory_space<vmem>>, vector<1x64x8xf32>,
    %c1_265 = arith.constant 1 : index
    %c0_266 = arith.constant 0 : index
    %c0_267 = arith.constant 0 : index
    %c0_268 = arith.constant 0 : index
    %397 = vector.load %arg4[%c1_265, %c0_266, %c0_267, %c0_268] : memref<2x8x8x64xbf16, #tpu.memory_space<vmem>>, vector<1x8x8x64xbf16>
    %398 = vector.shape_cast %397 : vector<1x8x8x64xbf16> to vector<8x8x64xbf16>
    %c1_269 = arith.constant 1 : index
    %c0_270 = arith.constant 0 : index
    %c0_271 = arith.constant 0 : index
    %c0_272 = arith.constant 0 : index
    %399 = vector.load %arg1[%c1_269, %c0_270, %c0_271, %c0_272] : memref<2x9x9x64xbf16, #tpu.memory_space<vmem>>, vector<1x8x8x64xbf16>
    %400 = vector.shape_cast %399 : vector<1x8x8x64xbf16> to vector<8x8x64xbf16>
    %401 = arith.maximumf %398, %400 : vector<8x8x64xbf16>
    %c1_273 = arith.constant 1 : index
    %c0_274 = arith.constant 0 : index
    %c1_275 = arith.constant 1 : index
    %c0_276 = arith.constant 0 : index
    %402 = vector.load %arg1[%c1_273, %c0_274, %c1_275, %c0_276] : memref<2x9x9x64xbf16, #tpu.memory_space<vmem>>, vector<1x8x8x64xbf16>
    %403 = vector.shape_cast %402 : vector<1x8x8x64xbf16> to vector<8x8x64xbf16>
    %404 = arith.maximumf %401, %403 : vector<8x8x64xbf16>
    %c1_277 = arith.constant 1 : index
    %c1_278 = arith.constant 1 : index
    %c0_279 = arith.constant 0 : index
    %c0_280 = arith.constant 0 : index
    %405 = vector.load %arg1[%c1_277, %c1_278, %c0_279, %c0_280] : memref<2x9x9x64xbf16, #tpu.memory_space<vmem>>, vector<1x8x8x64xbf16>
    %406 = vector.shape_cast %405 : vector<1x8x8x64xbf16> to vector<8x8x64xbf16>
    %407 = arith.maximumf %404, %406 : vector<8x8x64xbf16>
    %c1_281 = arith.constant 1 : index
    %c1_282 = arith.constant 1 : index
    %c1_283 = arith.constant 1 : index
    %c0_284 = arith.constant 0 : index
    %408 = vector.load %arg1[%c1_281, %c1_282, %c1_283, %c0_284] : memref<2x9x9x64xbf16, #tpu.memory_space<vmem>>, vector<1x8x8x64xbf16>
    %409 = vector.shape_cast %408 : vector<1x8x8x64xbf16> to vector<8x8x64xbf16>
    %410 = arith.maximumf %407, %409 : vector<8x8x64xbf16>
    %c1_285 = arith.constant 1 : index
    %c0_286 = arith.constant 0 : index
    %c0_287 = arith.constant 0 : index
    %c0_288 = arith.constant 0 : index
    %411 = vector.load %arg2[%c1_285, %c0_286, %c0_287, %c0_288] : memref<2x9x8x64xbf16, #tpu.memory_space<vmem>>, vector<1x8x8x64xbf16>
    %412 = vector.shape_cast %411 : vector<1x8x8x64xbf16> to vector<8x8x64xbf16>
    %413 = arith.maximumf %410, %412 : vector<8x8x64xbf16>
    %c1_289 = arith.constant 1 : index
    %c1_290 = arith.constant 1 : index
    %c0_291 = arith.constant 0 : index
    %c0_292 = arith.constant 0 : index
    %414 = vector.load %arg2[%c1_289, %c1_290, %c0_291, %c0_292] : memref<2x9x8x64xbf16, #tpu.memory_space<vmem>>, vector<1x8x8x64xbf16>
    %415 = vector.shape_cast %414 : vector<1x8x8x64xbf16> to vector<8x8x64xbf16>
    %416 = arith.maximumf %413, %415 : vector<8x8x64xbf16>
    %c1_293 = arith.constant 1 : index
    %c0_294 = arith.constant 0 : index
    %c0_295 = arith.constant 0 : index
    %c0_296 = arith.constant 0 : index
    %417 = vector.load %arg3[%c1_293, %c0_294, %c0_295, %c0_296] : memref<2x8x9x64xbf16, #tpu.memory_space<vmem>>, vector<1x8x8x64xbf16>
    %418 = vector.shape_cast %417 : vector<1x8x8x64xbf16> to vector<8x8x64xbf16>
    %419 = arith.maximumf %416, %418 : vector<8x8x64xbf16>
    %c1_297 = arith.constant 1 : index
    %c0_298 = arith.constant 0 : index
    %c1_299 = arith.constant 1 : index
    %c0_300 = arith.constant 0 : index
    %420 = vector.load %arg3[%c1_297, %c0_298, %c1_299, %c0_300] : memref<2x8x9x64xbf16, #tpu.memory_space<vmem>>, vector<1x8x8x64xbf16>
    %421 = vector.shape_cast %420 : vector<1x8x8x64xbf16> to vector<8x8x64xbf16>
    %422 = arith.maximumf %419, %421 : vector<8x8x64xbf16>
    %423 = vector.extract_strided_slice %422 {offsets = [0, 0, 0], sizes = [1, 8, 64], strides = [1, 1, 1]} : vector<8x8x64xbf16> to vector<1x8x64xbf16>
    %424 = vector.shape_cast %423 : vector<1x8x64xbf16> to vector<8x64xbf16>
    %425 = vector.extract_strided_slice %422 {offsets = [1, 0, 0], sizes = [1, 8, 64], strides = [1, 1, 1]} : vector<8x8x64xbf16> to vector<1x8x64xbf16>
    %426 = vector.shape_cast %425 : vector<1x8x64xbf16> to vector<8x64xbf16>
    %427 = vector.extract_strided_slice %422 {offsets = [2, 0, 0], sizes = [1, 8, 64], strides = [1, 1, 1]} : vector<8x8x64xbf16> to vector<1x8x64xbf16>
    %428 = vector.shape_cast %427 : vector<1x8x64xbf16> to vector<8x64xbf16>
    %429 = vector.extract_strided_slice %422 {offsets = [3, 0, 0], sizes = [1, 8, 64], strides = [1, 1, 1]} : vector<8x8x64xbf16> to vector<1x8x64xbf16>
    %430 = vector.shape_cast %429 : vector<1x8x64xbf16> to vector<8x64xbf16>
    %431 = vector.extract_strided_slice %422 {offsets = [4, 0, 0], sizes = [1, 8, 64], strides = [1, 1, 1]} : vector<8x8x64xbf16> to vector<1x8x64xbf16>
    %432 = vector.shape_cast %431 : vector<1x8x64xbf16> to vector<8x64xbf16>
    %433 = vector.extract_strided_slice %422 {offsets = [5, 0, 0], sizes = [1, 8, 64], strides = [1, 1, 1]} : vector<8x8x64xbf16> to vector<1x8x64xbf16>
    %434 = vector.shape_cast %433 : vector<1x8x64xbf16> to vector<8x64xbf16>
    %435 = vector.extract_strided_slice %422 {offsets = [6, 0, 0], sizes = [1, 8, 64], strides = [1, 1, 1]} : vector<8x8x64xbf16> to vector<1x8x64xbf16>
    %436 = vector.shape_cast %435 : vector<1x8x64xbf16> to vector<8x64xbf16>
    %437 = vector.extract_strided_slice %422 {offsets = [7, 0, 0], sizes = [1, 8, 64], strides = [1, 1, 1]} : vector<8x8x64xbf16> to vector<1x8x64xbf16>
    %438 = vector.shape_cast %437 : vector<1x8x64xbf16> to vector<8x64xbf16>
    %439 = tpu.concatenate %424, %426, %428, %430, %432, %434, %436, %438 in 0 : vector<8x64xbf16>, vector<8x64xbf16>, vector<8x64xbf16>, vector<8x64xbf16>, vector<8x64xbf16>, vector<8x64xbf16>, vector<8x64xbf16>, vector<8x64xbf16> -> vector<64x64xbf16>
    %440 = arith.extf %439 : vector<64x64xbf16> to vector<64x64xf32>
    %441 = tpu.concatenate %21, %439, %21 in 0 : vector<9x64xbf16>, vector<64x64xbf16>, vector<9x64xbf16> -> vector<82x64xbf16>
    %cst_301 = arith.constant 0.000000e+00 : f32
    %442 = vector.broadcast %cst_301 : f32 to vector<64x64xf32>
    %443 = vector.extract_strided_slice %441 {offsets = [0, 0], sizes = [64, 64], strides = [1, 1]} : vector<82x64xbf16> to vector<64x64xbf16>
    %cst_302 = arith.constant 0.000000e+00 : bf16
    %444 = vector.broadcast %cst_302 : bf16 to vector<64x64xbf16>
    %445 = vector.shape_cast %18 : vector<64x1xi1> to vector<64x1xi1>
    %446 = vector.broadcast %445 : vector<64x1xi1> to vector<64x64xi1>
    %447 = arith.select %446, %443, %444 : vector<64x64xi1>, vector<64x64xbf16>
    %c0_303 = arith.constant 0 : index
    %c0_304 = arith.constant 0 : index
    %c0_305 = arith.constant 0 : index
    %c0_306 = arith.constant 0 : index
    %448 = vector.load %arg5[%c0_303, %c0_304, %c0_305, %c0_306] : memref<4x9x64x64xbf16, #tpu.memory_space<vmem>>, vector<1x1x64x64xbf16>
    %449 = vector.shape_cast %448 : vector<1x1x64x64xbf16> to vector<64x64xbf16>
    %cst_307 = arith.constant dense<0.000000e+00> : vector<64x64xf32>
    %450 = tpu.matmul %447, %449, %cst_307 {dimension_numbers = #tpu.dot_dimension_numbers<[1], [0], [0], [1], [0, 0, 1, 1], [], []>} : vector<64x64xbf16>, vector<64x64xbf16>, vector<64x64xf32> -> vector<64x64xf32>
    %451 = arith.addf %442, %450 : vector<64x64xf32>
    %452 = vector.extract_strided_slice %441 {offsets = [1, 0], sizes = [64, 64], strides = [1, 1]} : vector<82x64xbf16> to vector<64x64xbf16>
    %c0_308 = arith.constant 0 : index
    %c1_309 = arith.constant 1 : index
    %c0_310 = arith.constant 0 : index
    %c0_311 = arith.constant 0 : index
    %453 = vector.load %arg5[%c0_308, %c1_309, %c0_310, %c0_311] : memref<4x9x64x64xbf16, #tpu.memory_space<vmem>>, vector<1x1x64x64xbf16>
    %454 = vector.shape_cast %453 : vector<1x1x64x64xbf16> to vector<64x64xbf16>
    %cst_312 = arith.constant dense<0.000000e+00> : vector<64x64xf32>
    %455 = tpu.matmul %452, %454, %cst_312 {dimension_numbers = #tpu.dot_dimension_numbers<[1], [0], [0], [1], [0, 0, 1, 1], [], []>} : vector<64x64xbf16>, vector<64x64xbf16>, vector<64x64xf32> -> vector<64x64xf32>
    %456 = arith.addf %451, %455 : vector<64x64xf32>
    %457 = vector.extract_strided_slice %441 {offsets = [2, 0], sizes = [64, 64], strides = [1, 1]} : vector<82x64xbf16> to vector<64x64xbf16>
    %cst_313 = arith.constant 0.000000e+00 : bf16
    %458 = vector.broadcast %cst_313 : bf16 to vector<64x64xbf16>
    %459 = vector.shape_cast %20 : vector<64x1xi1> to vector<64x1xi1>
    %460 = vector.broadcast %459 : vector<64x1xi1> to vector<64x64xi1>
    %461 = arith.select %460, %457, %458 : vector<64x64xi1>, vector<64x64xbf16>
    %c0_314 = arith.constant 0 : index
    %c2_315 = arith.constant 2 : index
    %c0_316 = arith.constant 0 : index
    %c0_317 = arith.constant 0 : index
    %462 = vector.load %arg5[%c0_314, %c2_315, %c0_316, %c0_317] : memref<4x9x64x64xbf16, #tpu.memory_space<vmem>>, vector<1x1x64x64xbf16>
    %463 = vector.shape_cast %462 : vector<1x1x64x64xbf16> to vector<64x64xbf16>
    %cst_318 = arith.constant dense<0.000000e+00> : vector<64x64xf32>
    %464 = tpu.matmul %461, %463, %cst_318 {dimension_numbers = #tpu.dot_dimension_numbers<[1], [0], [0], [1], [0, 0, 1, 1], [], []>} : vector<64x64xbf16>, vector<64x64xbf16>, vector<64x64xf32> -> vector<64x64xf32>
    %465 = arith.addf %456, %464 : vector<64x64xf32>
    %466 = vector.extract_strided_slice %441 {offsets = [8, 0], sizes = [64, 64], strides = [1, 1]} : vector<82x64xbf16> to vector<64x64xbf16>
    %cst_319 = arith.constant 0.000000e+00 : bf16
    %467 = vector.broadcast %cst_319 : bf16 to vector<64x64xbf16>
    %468 = vector.shape_cast %18 : vector<64x1xi1> to vector<64x1xi1>
    %469 = vector.broadcast %468 : vector<64x1xi1> to vector<64x64xi1>
    %470 = arith.select %469, %466, %467 : vector<64x64xi1>, vector<64x64xbf16>
    %c0_320 = arith.constant 0 : index
    %c3_321 = arith.constant 3 : index
    %c0_322 = arith.constant 0 : index
    %c0_323 = arith.constant 0 : index
    %471 = vector.load %arg5[%c0_320, %c3_321, %c0_322, %c0_323] : memref<4x9x64x64xbf16, #tpu.memory_space<vmem>>, vector<1x1x64x64xbf16>
    %472 = vector.shape_cast %471 : vector<1x1x64x64xbf16> to vector<64x64xbf16>
    %cst_324 = arith.constant dense<0.000000e+00> : vector<64x64xf32>
    %473 = tpu.matmul %470, %472, %cst_324 {dimension_numbers = #tpu.dot_dimension_numbers<[1], [0], [0], [1], [0, 0, 1, 1], [], []>} : vector<64x64xbf16>, vector<64x64xbf16>, vector<64x64xf32> -> vector<64x64xf32>
    %474 = arith.addf %465, %473 : vector<64x64xf32>
    %475 = vector.extract_strided_slice %441 {offsets = [9, 0], sizes = [64, 64], strides = [1, 1]} : vector<82x64xbf16> to vector<64x64xbf16>
    %c0_325 = arith.constant 0 : index
    %c4_326 = arith.constant 4 : index
    %c0_327 = arith.constant 0 : index
    %c0_328 = arith.constant 0 : index
    %476 = vector.load %arg5[%c0_325, %c4_326, %c0_327, %c0_328] : memref<4x9x64x64xbf16, #tpu.memory_space<vmem>>, vector<1x1x64x64xbf16>
    %477 = vector.shape_cast %476 : vector<1x1x64x64xbf16> to vector<64x64xbf16>
    %cst_329 = arith.constant dense<0.000000e+00> : vector<64x64xf32>
    %478 = tpu.matmul %475, %477, %cst_329 {dimension_numbers = #tpu.dot_dimension_numbers<[1], [0], [0], [1], [0, 0, 1, 1], [], []>} : vector<64x64xbf16>, vector<64x64xbf16>, vector<64x64xf32> -> vector<64x64xf32>
    %479 = arith.addf %474, %478 : vector<64x64xf32>
    %480 = vector.extract_strided_slice %441 {offsets = [10, 0], sizes = [64, 64], strides = [1, 1]} : vector<82x64xbf16> to vector<64x64xbf16>
    %cst_330 = arith.constant 0.000000e+00 : bf16
    %481 = vector.broadcast %cst_330 : bf16 to vector<64x64xbf16>
    %482 = vector.shape_cast %20 : vector<64x1xi1> to vector<64x1xi1>
    %483 = vector.broadcast %482 : vector<64x1xi1> to vector<64x64xi1>
    %484 = arith.select %483, %480, %481 : vector<64x64xi1>, vector<64x64xbf16>
    %c0_331 = arith.constant 0 : index
    %c5_332 = arith.constant 5 : index
    %c0_333 = arith.constant 0 : index
    %c0_334 = arith.constant 0 : index
    %485 = vector.load %arg5[%c0_331, %c5_332, %c0_333, %c0_334] : memref<4x9x64x64xbf16, #tpu.memory_space<vmem>>, vector<1x1x64x64xbf16>
    %486 = vector.shape_cast %485 : vector<1x1x64x64xbf16> to vector<64x64xbf16>
    %cst_335 = arith.constant dense<0.000000e+00> : vector<64x64xf32>
    %487 = tpu.matmul %484, %486, %cst_335 {dimension_numbers = #tpu.dot_dimension_numbers<[1], [0], [0], [1], [0, 0, 1, 1], [], []>} : vector<64x64xbf16>, vector<64x64xbf16>, vector<64x64xf32> -> vector<64x64xf32>
    %488 = arith.addf %479, %487 : vector<64x64xf32>
    %489 = vector.extract_strided_slice %441 {offsets = [16, 0], sizes = [64, 64], strides = [1, 1]} : vector<82x64xbf16> to vector<64x64xbf16>
    %cst_336 = arith.constant 0.000000e+00 : bf16
    %490 = vector.broadcast %cst_336 : bf16 to vector<64x64xbf16>
    %491 = vector.shape_cast %18 : vector<64x1xi1> to vector<64x1xi1>
    %492 = vector.broadcast %491 : vector<64x1xi1> to vector<64x64xi1>
    %493 = arith.select %492, %489, %490 : vector<64x64xi1>, vector<64x64xbf16>
    %c0_337 = arith.constant 0 : index
    %c6_338 = arith.constant 6 : index
    %c0_339 = arith.constant 0 : index
    %c0_340 = arith.constant 0 : index
    %494 = vector.load %arg5[%c0_337, %c6_338, %c0_339, %c0_340] : memref<4x9x64x64xbf16, #tpu.memory_space<vmem>>, vector<1x1x64x64xbf16>
    %495 = vector.shape_cast %494 : vector<1x1x64x64xbf16> to vector<64x64xbf16>
    %cst_341 = arith.constant dense<0.000000e+00> : vector<64x64xf32>
    %496 = tpu.matmul %493, %495, %cst_341 {dimension_numbers = #tpu.dot_dimension_numbers<[1], [0], [0], [1], [0, 0, 1, 1], [], []>} : vector<64x64xbf16>, vector<64x64xbf16>, vector<64x64xf32> -> vector<64x64xf32>
    %497 = arith.addf %488, %496 : vector<64x64xf32>
    %498 = vector.extract_strided_slice %441 {offsets = [17, 0], sizes = [64, 64], strides = [1, 1]} : vector<82x64xbf16> to vector<64x64xbf16>
    %c0_342 = arith.constant 0 : index
    %c7_343 = arith.constant 7 : index
    %c0_344 = arith.constant 0 : index
    %c0_345 = arith.constant 0 : index
    %499 = vector.load %arg5[%c0_342, %c7_343, %c0_344, %c0_345] : memref<4x9x64x64xbf16, #tpu.memory_space<vmem>>, vector<1x1x64x64xbf16>
    %500 = vector.shape_cast %499 : vector<1x1x64x64xbf16> to vector<64x64xbf16>
    %cst_346 = arith.constant dense<0.000000e+00> : vector<64x64xf32>
    %501 = tpu.matmul %498, %500, %cst_346 {dimension_numbers = #tpu.dot_dimension_numbers<[1], [0], [0], [1], [0, 0, 1, 1], [], []>} : vector<64x64xbf16>, vector<64x64xbf16>, vector<64x64xf32> -> vector<64x64xf32>
    %502 = arith.addf %497, %501 : vector<64x64xf32>
    %503 = vector.extract_strided_slice %441 {offsets = [18, 0], sizes = [64, 64], strides = [1, 1]} : vector<82x64xbf16> to vector<64x64xbf16>
    %cst_347 = arith.constant 0.000000e+00 : bf16
    %504 = vector.broadcast %cst_347 : bf16 to vector<64x64xbf16>
    %505 = vector.shape_cast %20 : vector<64x1xi1> to vector<64x1xi1>
    %506 = vector.broadcast %505 : vector<64x1xi1> to vector<64x64xi1>
    %507 = arith.select %506, %503, %504 : vector<64x64xi1>, vector<64x64xbf16>
    %c0_348 = arith.constant 0 : index
    %c8_349 = arith.constant 8 : index
    %c0_350 = arith.constant 0 : index
    %c0_351 = arith.constant 0 : index
    %508 = vector.load %arg5[%c0_348, %c8_349, %c0_350, %c0_351] : memref<4x9x64x64xbf16, #tpu.memory_space<vmem>>, vector<1x1x64x64xbf16>
    %509 = vector.shape_cast %508 : vector<1x1x64x64xbf16> to vector<64x64xbf16>
    %cst_352 = arith.constant dense<0.000000e+00> : vector<64x64xf32>
    %510 = tpu.matmul %507, %509, %cst_352 {dimension_numbers = #tpu.dot_dimension_numbers<[1], [0], [0], [1], [0, 0, 1, 1], [], []>} : vector<64x64xbf16>, vector<64x64xbf16>, vector<64x64xf32> -> vector<64x64xf32>
    %511 = arith.addf %502, %510 : vector<64x64xf32>
    %c0_353 = arith.constant 0 : index
    %c0_354 = arith.constant 0 : index
    %c0_355 = arith.constant 0 : index
    %512 = vector.load %arg6[%c0_353, %c0_354, %c0_355] : memref<4x1x64xf32, #tpu.memory_space<vmem>>, vector<1x1x64xf32>
    %513 = vector.shape_cast %512 : vector<1x1x64xf32> to vector<1x64xf32>
    %514 = vector.broadcast %513 : vector<1x64xf32> to vector<64x64xf32>
    %515 = arith.addf %511, %514 : vector<64x64xf32>
    %cst_356 = arith.constant 0.000000e+00 : f32
    %516 = vector.broadcast %cst_356 : f32 to vector<64x64xf32>
    %517 = arith.maximumf %515, %516 : vector<64x64xf32>
    %518 = arith.truncf %517 : vector<64x64xf32> to vector<64x64xbf16>
    %519 = tpu.concatenate %21, %518, %21 in 0 : vector<9x64xbf16>, vector<64x64xbf16>, vector<9x64xbf16> -> vector<82x64xbf16>
    %cst_357 = arith.constant 0.000000e+00 : f32
    %520 = vector.broadcast %cst_357 : f32 to vector<64x64xf32>
    %521 = vector.extract_strided_slice %519 {offsets = [0, 0], sizes = [64, 64], strides = [1, 1]} : vector<82x64xbf16> to vector<64x64xbf16>
    %cst_358 = arith.constant 0.000000e+00 : bf16
    %522 = vector.broadcast %cst_358 : bf16 to vector<64x64xbf16>
    %523 = vector.shape_cast %18 : vector<64x1xi1> to vector<64x1xi1>
    %524 = vector.broadcast %523 : vector<64x1xi1> to vector<64x64xi1>
    %525 = arith.select %524, %521, %522 : vector<64x64xi1>, vector<64x64xbf16>
    %c1_359 = arith.constant 1 : index
    %c0_360 = arith.constant 0 : index
    %c0_361 = arith.constant 0 : index
    %c0_362 = arith.constant 0 : index
    %526 = vector.load %arg5[%c1_359, %c0_360, %c0_361, %c0_362] : memref<4x9x64x64xbf16, #tpu.memory_space<vmem>>, vector<1x1x64x64xbf16>
    %527 = vector.shape_cast %526 : vector<1x1x64x64xbf16> to vector<64x64xbf16>
    %cst_363 = arith.constant dense<0.000000e+00> : vector<64x64xf32>
    %528 = tpu.matmul %525, %527, %cst_363 {dimension_numbers = #tpu.dot_dimension_numbers<[1], [0], [0], [1], [0, 0, 1, 1], [], []>} : vector<64x64xbf16>, vector<64x64xbf16>, vector<64x64xf32> -> vector<64x64xf32>
    %529 = arith.addf %520, %528 : vector<64x64xf32>
    %530 = vector.extract_strided_slice %519 {offsets = [1, 0], sizes = [64, 64], strides = [1, 1]} : vector<82x64xbf16> to vector<64x64xbf16>
    %c1_364 = arith.constant 1 : index
    %c1_365 = arith.constant 1 : index
    %c0_366 = arith.constant 0 : index
    %c0_367 = arith.constant 0 : index
    %531 = vector.load %arg5[%c1_364, %c1_365, %c0_366, %c0_367] : memref<4x9x64x64xbf16, #tpu.memory_space<vmem>>, vector<1x1x64x64xbf16>
    %532 = vector.shape_cast %531 : vector<1x1x64x64xbf16> to vector<64x64xbf16>
    %cst_368 = arith.constant dense<0.000000e+00> : vector<64x64xf32>
    %533 = tpu.matmul %530, %532, %cst_368 {dimension_numbers = #tpu.dot_dimension_numbers<[1], [0], [0], [1], [0, 0, 1, 1], [], []>} : vector<64x64xbf16>, vector<64x64xbf16>, vector<64x64xf32> -> vector<64x64xf32>
    %534 = arith.addf %529, %533 : vector<64x64xf32>
    %535 = vector.extract_strided_slice %519 {offsets = [2, 0], sizes = [64, 64], strides = [1, 1]} : vector<82x64xbf16> to vector<64x64xbf16>
    %cst_369 = arith.constant 0.000000e+00 : bf16
    %536 = vector.broadcast %cst_369 : bf16 to vector<64x64xbf16>
    %537 = vector.shape_cast %20 : vector<64x1xi1> to vector<64x1xi1>
    %538 = vector.broadcast %537 : vector<64x1xi1> to vector<64x64xi1>
    %539 = arith.select %538, %535, %536 : vector<64x64xi1>, vector<64x64xbf16>
    %c1_370 = arith.constant 1 : index
    %c2_371 = arith.constant 2 : index
    %c0_372 = arith.constant 0 : index
    %c0_373 = arith.constant 0 : index
    %540 = vector.load %arg5[%c1_370, %c2_371, %c0_372, %c0_373] : memref<4x9x64x64xbf16, #tpu.memory_space<vmem>>, vector<1x1x64x64xbf16>
    %541 = vector.shape_cast %540 : vector<1x1x64x64xbf16> to vector<64x64xbf16>
    %cst_374 = arith.constant dense<0.000000e+00> : vector<64x64xf32>
    %542 = tpu.matmul %539, %541, %cst_374 {dimension_numbers = #tpu.dot_dimension_numbers<[1], [0], [0], [1], [0, 0, 1, 1], [], []>} : vector<64x64xbf16>, vector<64x64xbf16>, vector<64x64xf32> -> vector<64x64xf32>
    %543 = arith.addf %534, %542 : vector<64x64xf32>
    %544 = vector.extract_strided_slice %519 {offsets = [8, 0], sizes = [64, 64], strides = [1, 1]} : vector<82x64xbf16> to vector<64x64xbf16>
    %cst_375 = arith.constant 0.000000e+00 : bf16
    %545 = vector.broadcast %cst_375 : bf16 to vector<64x64xbf16>
    %546 = vector.shape_cast %18 : vector<64x1xi1> to vector<64x1xi1>
    %547 = vector.broadcast %546 : vector<64x1xi1> to vector<64x64xi1>
    %548 = arith.select %547, %544, %545 : vector<64x64xi1>, vector<64x64xbf16>
    %c1_376 = arith.constant 1 : index
    %c3_377 = arith.constant 3 : index
    %c0_378 = arith.constant 0 : index
    %c0_379 = arith.constant 0 : index
    %549 = vector.load %arg5[%c1_376, %c3_377, %c0_378, %c0_379] : memref<4x9x64x64xbf16, #tpu.memory_space<vmem>>, vector<1x1x64x64xbf16>
    %550 = vector.shape_cast %549 : vector<1x1x64x64xbf16> to vector<64x64xbf16>
    %cst_380 = arith.constant dense<0.000000e+00> : vector<64x64xf32>
    %551 = tpu.matmul %548, %550, %cst_380 {dimension_numbers = #tpu.dot_dimension_numbers<[1], [0], [0], [1], [0, 0, 1, 1], [], []>} : vector<64x64xbf16>, vector<64x64xbf16>, vector<64x64xf32> -> vector<64x64xf32>
    %552 = arith.addf %543, %551 : vector<64x64xf32>
    %553 = vector.extract_strided_slice %519 {offsets = [9, 0], sizes = [64, 64], strides = [1, 1]} : vector<82x64xbf16> to vector<64x64xbf16>
    %c1_381 = arith.constant 1 : index
    %c4_382 = arith.constant 4 : index
    %c0_383 = arith.constant 0 : index
    %c0_384 = arith.constant 0 : index
    %554 = vector.load %arg5[%c1_381, %c4_382, %c0_383, %c0_384] : memref<4x9x64x64xbf16, #tpu.memory_space<vmem>>, vector<1x1x64x64xbf16>
    %555 = vector.shape_cast %554 : vector<1x1x64x64xbf16> to vector<64x64xbf16>
    %cst_385 = arith.constant dense<0.000000e+00> : vector<64x64xf32>
    %556 = tpu.matmul %553, %555, %cst_385 {dimension_numbers = #tpu.dot_dimension_numbers<[1], [0], [0], [1], [0, 0, 1, 1], [], []>} : vector<64x64xbf16>, vector<64x64xbf16>, vector<64x64xf32> -> vector<64x64xf32>
    %557 = arith.addf %552, %556 : vector<64x64xf32>
    %558 = vector.extract_strided_slice %519 {offsets = [10, 0], sizes = [64, 64], strides = [1, 1]} : vector<82x64xbf16> to vector<64x64xbf16>
    %cst_386 = arith.constant 0.000000e+00 : bf16
    %559 = vector.broadcast %cst_386 : bf16 to vector<64x64xbf16>
    %560 = vector.shape_cast %20 : vector<64x1xi1> to vector<64x1xi1>
    %561 = vector.broadcast %560 : vector<64x1xi1> to vector<64x64xi1>
    %562 = arith.select %561, %558, %559 : vector<64x64xi1>, vector<64x64xbf16>
    %c1_387 = arith.constant 1 : index
    %c5_388 = arith.constant 5 : index
    %c0_389 = arith.constant 0 : index
    %c0_390 = arith.constant 0 : index
    %563 = vector.load %arg5[%c1_387, %c5_388, %c0_389, %c0_390] : memref<4x9x64x64xbf16, #tpu.memory_space<vmem>>, vector<1x1x64x64xbf16>
    %564 = vector.shape_cast %563 : vector<1x1x64x64xbf16> to vector<64x64xbf16>
    %cst_391 = arith.constant dense<0.000000e+00> : vector<64x64xf32>
    %565 = tpu.matmul %562, %564, %cst_391 {dimension_numbers = #tpu.dot_dimension_numbers<[1], [0], [0], [1], [0, 0, 1, 1], [], []>} : vector<64x64xbf16>, vector<64x64xbf16>, vector<64x64xf32> -> vector<64x64xf32>
    %566 = arith.addf %557, %565 : vector<64x64xf32>
    %567 = vector.extract_strided_slice %519 {offsets = [16, 0], sizes = [64, 64], strides = [1, 1]} : vector<82x64xbf16> to vector<64x64xbf16>
    %cst_392 = arith.constant 0.000000e+00 : bf16
    %568 = vector.broadcast %cst_392 : bf16 to vector<64x64xbf16>
    %569 = vector.shape_cast %18 : vector<64x1xi1> to vector<64x1xi1>
    %570 = vector.broadcast %569 : vector<64x1xi1> to vector<64x64xi1>
    %571 = arith.select %570, %567, %568 : vector<64x64xi1>, vector<64x64xbf16>
    %c1_393 = arith.constant 1 : index
    %c6_394 = arith.constant 6 : index
    %c0_395 = arith.constant 0 : index
    %c0_396 = arith.constant 0 : index
    %572 = vector.load %arg5[%c1_393, %c6_394, %c0_395, %c0_396] : memref<4x9x64x64xbf16, #tpu.memory_space<vmem>>, vector<1x1x64x64xbf16>
    %573 = vector.shape_cast %572 : vector<1x1x64x64xbf16> to vector<64x64xbf16>
    %cst_397 = arith.constant dense<0.000000e+00> : vector<64x64xf32>
    %574 = tpu.matmul %571, %573, %cst_397 {dimension_numbers = #tpu.dot_dimension_numbers<[1], [0], [0], [1], [0, 0, 1, 1], [], []>} : vector<64x64xbf16>, vector<64x64xbf16>, vector<64x64xf32> -> vector<64x64xf32>
    %575 = arith.addf %566, %574 : vector<64x64xf32>
    %576 = vector.extract_strided_slice %519 {offsets = [17, 0], sizes = [64, 64], strides = [1, 1]} : vector<82x64xbf16> to vector<64x64xbf16>
    %c1_398 = arith.constant 1 : index
    %c7_399 = arith.constant 7 : index
    %c0_400 = arith.constant 0 : index
    %c0_401 = arith.constant 0 : index
    %577 = vector.load %arg5[%c1_398, %c7_399, %c0_400, %c0_401] : memref<4x9x64x64xbf16, #tpu.memory_space<vmem>>, vector<1x1x64x64xbf16>
    %578 = vector.shape_cast %577 : vector<1x1x64x64xbf16> to vector<64x64xbf16>
    %cst_402 = arith.constant dense<0.000000e+00> : vector<64x64xf32>
    %579 = tpu.matmul %576, %578, %cst_402 {dimension_numbers = #tpu.dot_dimension_numbers<[1], [0], [0], [1], [0, 0, 1, 1], [], []>} : vector<64x64xbf16>, vector<64x64xbf16>, vector<64x64xf32> -> vector<64x64xf32>
    %580 = arith.addf %575, %579 : vector<64x64xf32>
    %581 = vector.extract_strided_slice %519 {offsets = [18, 0], sizes = [64, 64], strides = [1, 1]} : vector<82x64xbf16> to vector<64x64xbf16>
    %cst_403 = arith.constant 0.000000e+00 : bf16
    %582 = vector.broadcast %cst_403 : bf16 to vector<64x64xbf16>
    %583 = vector.shape_cast %20 : vector<64x1xi1> to vector<64x1xi1>
    %584 = vector.broadcast %583 : vector<64x1xi1> to vector<64x64xi1>
    %585 = arith.select %584, %581, %582 : vector<64x64xi1>, vector<64x64xbf16>
    %c1_404 = arith.constant 1 : index
    %c8_405 = arith.constant 8 : index
    %c0_406 = arith.constant 0 : index
    %c0_407 = arith.constant 0 : index
    %586 = vector.load %arg5[%c1_404, %c8_405, %c0_406, %c0_407] : memref<4x9x64x64xbf16, #tpu.memory_space<vmem>>, vector<1x1x64x64xbf16>
    %587 = vector.shape_cast %586 : vector<1x1x64x64xbf16> to vector<64x64xbf16>
    %cst_408 = arith.constant dense<0.000000e+00> : vector<64x64xf32>
    %588 = tpu.matmul %585, %587, %cst_408 {dimension_numbers = #tpu.dot_dimension_numbers<[1], [0], [0], [1], [0, 0, 1, 1], [], []>} : vector<64x64xbf16>, vector<64x64xbf16>, vector<64x64xf32> -> vector<64x64xf32>
    %589 = arith.addf %580, %588 : vector<64x64xf32>
    %c1_409 = arith.constant 1 : index
    %c0_410 = arith.constant 0 : index
    %c0_411 = arith.constant 0 : index
    %590 = vector.load %arg6[%c1_409, %c0_410, %c0_411] : memref<4x1x64xf32, #tpu.memory_space<vmem>>, vector<1x1x64xf32>
    %591 = vector.shape_cast %590 : vector<1x1x64xf32> to vector<1x64xf32>
    %592 = vector.broadcast %591 : vector<1x64xf32> to vector<64x64xf32>
    %593 = arith.addf %589, %592 : vector<64x64xf32>
    %594 = arith.addf %593, %440 : vector<64x64xf32>
    %cst_412 = arith.constant 0.000000e+00 : f32
    %595 = vector.broadcast %cst_412 : f32 to vector<64x64xf32>
    %596 = arith.maximumf %594, %595 : vector<64x64xf32>
    %597 = arith.truncf %596 : vector<64x64xf32> to vector<64x64xbf16>
    %598 = tpu.concatenate %21, %597, %21 in 0 : vector<9x64xbf16>, vector<64x64xbf16>, vector<9x64xbf16> -> vector<82x64xbf16>
    %cst_413 = arith.constant 0.000000e+00 : f32
    %599 = vector.broadcast %cst_413 : f32 to vector<64x64xf32>
    %600 = vector.extract_strided_slice %598 {offsets = [0, 0], sizes = [64, 64], strides = [1, 1]} : vector<82x64xbf16> to vector<64x64xbf16>
    %cst_414 = arith.constant 0.000000e+00 : bf16
    %601 = vector.broadcast %cst_414 : bf16 to vector<64x64xbf16>
    %602 = vector.shape_cast %18 : vector<64x1xi1> to vector<64x1xi1>
    %603 = vector.broadcast %602 : vector<64x1xi1> to vector<64x64xi1>
    %604 = arith.select %603, %600, %601 : vector<64x64xi1>, vector<64x64xbf16>
    %c2_415 = arith.constant 2 : index
    %c0_416 = arith.constant 0 : index
    %c0_417 = arith.constant 0 : index
    %c0_418 = arith.constant 0 : index
    %605 = vector.load %arg5[%c2_415, %c0_416, %c0_417, %c0_418] : memref<4x9x64x64xbf16, #tpu.memory_space<vmem>>, vector<1x1x64x64xbf16>
    %606 = vector.shape_cast %605 : vector<1x1x64x64xbf16> to vector<64x64xbf16>
    %cst_419 = arith.constant dense<0.000000e+00> : vector<64x64xf32>
    %607 = tpu.matmul %604, %606, %cst_419 {dimension_numbers = #tpu.dot_dimension_numbers<[1], [0], [0], [1], [0, 0, 1, 1], [], []>} : vector<64x64xbf16>, vector<64x64xbf16>, vector<64x64xf32> -> vector<64x64xf32>
    %608 = arith.addf %599, %607 : vector<64x64xf32>
    %609 = vector.extract_strided_slice %598 {offsets = [1, 0], sizes = [64, 64], strides = [1, 1]} : vector<82x64xbf16> to vector<64x64xbf16>
    %c2_420 = arith.constant 2 : index
    %c1_421 = arith.constant 1 : index
    %c0_422 = arith.constant 0 : index
    %c0_423 = arith.constant 0 : index
    %610 = vector.load %arg5[%c2_420, %c1_421, %c0_422, %c0_423] : memref<4x9x64x64xbf16, #tpu.memory_space<vmem>>, vector<1x1x64x64xbf16>
    %611 = vector.shape_cast %610 : vector<1x1x64x64xbf16> to vector<64x64xbf16>
    %cst_424 = arith.constant dense<0.000000e+00> : vector<64x64xf32>
    %612 = tpu.matmul %609, %611, %cst_424 {dimension_numbers = #tpu.dot_dimension_numbers<[1], [0], [0], [1], [0, 0, 1, 1], [], []>} : vector<64x64xbf16>, vector<64x64xbf16>, vector<64x64xf32> -> vector<64x64xf32>
    %613 = arith.addf %608, %612 : vector<64x64xf32>
    %614 = vector.extract_strided_slice %598 {offsets = [2, 0], sizes = [64, 64], strides = [1, 1]} : vector<82x64xbf16> to vector<64x64xbf16>
    %cst_425 = arith.constant 0.000000e+00 : bf16
    %615 = vector.broadcast %cst_425 : bf16 to vector<64x64xbf16>
    %616 = vector.shape_cast %20 : vector<64x1xi1> to vector<64x1xi1>
    %617 = vector.broadcast %616 : vector<64x1xi1> to vector<64x64xi1>
    %618 = arith.select %617, %614, %615 : vector<64x64xi1>, vector<64x64xbf16>
    %c2_426 = arith.constant 2 : index
    %c2_427 = arith.constant 2 : index
    %c0_428 = arith.constant 0 : index
    %c0_429 = arith.constant 0 : index
    %619 = vector.load %arg5[%c2_426, %c2_427, %c0_428, %c0_429] : memref<4x9x64x64xbf16, #tpu.memory_space<vmem>>, vector<1x1x64x64xbf16>
    %620 = vector.shape_cast %619 : vector<1x1x64x64xbf16> to vector<64x64xbf16>
    %cst_430 = arith.constant dense<0.000000e+00> : vector<64x64xf32>
    %621 = tpu.matmul %618, %620, %cst_430 {dimension_numbers = #tpu.dot_dimension_numbers<[1], [0], [0], [1], [0, 0, 1, 1], [], []>} : vector<64x64xbf16>, vector<64x64xbf16>, vector<64x64xf32> -> vector<64x64xf32>
    %622 = arith.addf %613, %621 : vector<64x64xf32>
    %623 = vector.extract_strided_slice %598 {offsets = [8, 0], sizes = [64, 64], strides = [1, 1]} : vector<82x64xbf16> to vector<64x64xbf16>
    %cst_431 = arith.constant 0.000000e+00 : bf16
    %624 = vector.broadcast %cst_431 : bf16 to vector<64x64xbf16>
    %625 = vector.shape_cast %18 : vector<64x1xi1> to vector<64x1xi1>
    %626 = vector.broadcast %625 : vector<64x1xi1> to vector<64x64xi1>
    %627 = arith.select %626, %623, %624 : vector<64x64xi1>, vector<64x64xbf16>
    %c2_432 = arith.constant 2 : index
    %c3_433 = arith.constant 3 : index
    %c0_434 = arith.constant 0 : index
    %c0_435 = arith.constant 0 : index
    %628 = vector.load %arg5[%c2_432, %c3_433, %c0_434, %c0_435] : memref<4x9x64x64xbf16, #tpu.memory_space<vmem>>, vector<1x1x64x64xbf16>
    %629 = vector.shape_cast %628 : vector<1x1x64x64xbf16> to vector<64x64xbf16>
    %cst_436 = arith.constant dense<0.000000e+00> : vector<64x64xf32>
    %630 = tpu.matmul %627, %629, %cst_436 {dimension_numbers = #tpu.dot_dimension_numbers<[1], [0], [0], [1], [0, 0, 1, 1], [], []>} : vector<64x64xbf16>, vector<64x64xbf16>, vector<64x64xf32> -> vector<64x64xf32>
    %631 = arith.addf %622, %630 : vector<64x64xf32>
    %632 = vector.extract_strided_slice %598 {offsets = [9, 0], sizes = [64, 64], strides = [1, 1]} : vector<82x64xbf16> to vector<64x64xbf16>
    %c2_437 = arith.constant 2 : index
    %c4_438 = arith.constant 4 : index
    %c0_439 = arith.constant 0 : index
    %c0_440 = arith.constant 0 : index
    %633 = vector.load %arg5[%c2_437, %c4_438, %c0_439, %c0_440] : memref<4x9x64x64xbf16, #tpu.memory_space<vmem>>, vector<1x1x64x64xbf16>
    %634 = vector.shape_cast %633 : vector<1x1x64x64xbf16> to vector<64x64xbf16>
    %cst_441 = arith.constant dense<0.000000e+00> : vector<64x64xf32>
    %635 = tpu.matmul %632, %634, %cst_441 {dimension_numbers = #tpu.dot_dimension_numbers<[1], [0], [0], [1], [0, 0, 1, 1], [], []>} : vector<64x64xbf16>, vector<64x64xbf16>, vector<64x64xf32> -> vector<64x64xf32>
    %636 = arith.addf %631, %635 : vector<64x64xf32>
    %637 = vector.extract_strided_slice %598 {offsets = [10, 0], sizes = [64, 64], strides = [1, 1]} : vector<82x64xbf16> to vector<64x64xbf16>
    %cst_442 = arith.constant 0.000000e+00 : bf16
    %638 = vector.broadcast %cst_442 : bf16 to vector<64x64xbf16>
    %639 = vector.shape_cast %20 : vector<64x1xi1> to vector<64x1xi1>
    %640 = vector.broadcast %639 : vector<64x1xi1> to vector<64x64xi1>
    %641 = arith.select %640, %637, %638 : vector<64x64xi1>, vector<64x64xbf16>
    %c2_443 = arith.constant 2 : index
    %c5_444 = arith.constant 5 : index
    %c0_445 = arith.constant 0 : index
    %c0_446 = arith.constant 0 : index
    %642 = vector.load %arg5[%c2_443, %c5_444, %c0_445, %c0_446] : memref<4x9x64x64xbf16, #tpu.memory_space<vmem>>, vector<1x1x64x64xbf16>
    %643 = vector.shape_cast %642 : vector<1x1x64x64xbf16> to vector<64x64xbf16>
    %cst_447 = arith.constant dense<0.000000e+00> : vector<64x64xf32>
    %644 = tpu.matmul %641, %643, %cst_447 {dimension_numbers = #tpu.dot_dimension_numbers<[1], [0], [0], [1], [0, 0, 1, 1], [], []>} : vector<64x64xbf16>, vector<64x64xbf16>, vector<64x64xf32> -> vector<64x64xf32>
    %645 = arith.addf %636, %644 : vector<64x64xf32>
    %646 = vector.extract_strided_slice %598 {offsets = [16, 0], sizes = [64, 64], strides = [1, 1]} : vector<82x64xbf16> to vector<64x64xbf16>
    %cst_448 = arith.constant 0.000000e+00 : bf16
    %647 = vector.broadcast %cst_448 : bf16 to vector<64x64xbf16>
    %648 = vector.shape_cast %18 : vector<64x1xi1> to vector<64x1xi1>
    %649 = vector.broadcast %648 : vector<64x1xi1> to vector<64x64xi1>
    %650 = arith.select %649, %646, %647 : vector<64x64xi1>, vector<64x64xbf16>
    %c2_449 = arith.constant 2 : index
    %c6_450 = arith.constant 6 : index
    %c0_451 = arith.constant 0 : index
    %c0_452 = arith.constant 0 : index
    %651 = vector.load %arg5[%c2_449, %c6_450, %c0_451, %c0_452] : memref<4x9x64x64xbf16, #tpu.memory_space<vmem>>, vector<1x1x64x64xbf16>
    %652 = vector.shape_cast %651 : vector<1x1x64x64xbf16> to vector<64x64xbf16>
    %cst_453 = arith.constant dense<0.000000e+00> : vector<64x64xf32>
    %653 = tpu.matmul %650, %652, %cst_453 {dimension_numbers = #tpu.dot_dimension_numbers<[1], [0], [0], [1], [0, 0, 1, 1], [], []>} : vector<64x64xbf16>, vector<64x64xbf16>, vector<64x64xf32> -> vector<64x64xf32>
    %654 = arith.addf %645, %653 : vector<64x64xf32>
    %655 = vector.extract_strided_slice %598 {offsets = [17, 0], sizes = [64, 64], strides = [1, 1]} : vector<82x64xbf16> to vector<64x64xbf16>
    %c2_454 = arith.constant 2 : index
    %c7_455 = arith.constant 7 : index
    %c0_456 = arith.constant 0 : index
    %c0_457 = arith.constant 0 : index
    %656 = vector.load %arg5[%c2_454, %c7_455, %c0_456, %c0_457] : memref<4x9x64x64xbf16, #tpu.memory_space<vmem>>, vector<1x1x64x64xbf16>
    %657 = vector.shape_cast %656 : vector<1x1x64x64xbf16> to vector<64x64xbf16>
    %cst_458 = arith.constant dense<0.000000e+00> : vector<64x64xf32>
    %658 = tpu.matmul %655, %657, %cst_458 {dimension_numbers = #tpu.dot_dimension_numbers<[1], [0], [0], [1], [0, 0, 1, 1], [], []>} : vector<64x64xbf16>, vector<64x64xbf16>, vector<64x64xf32> -> vector<64x64xf32>
    %659 = arith.addf %654, %658 : vector<64x64xf32>
    %660 = vector.extract_strided_slice %598 {offsets = [18, 0], sizes = [64, 64], strides = [1, 1]} : vector<82x64xbf16> to vector<64x64xbf16>
    %cst_459 = arith.constant 0.000000e+00 : bf16
    %661 = vector.broadcast %cst_459 : bf16 to vector<64x64xbf16>
    %662 = vector.shape_cast %20 : vector<64x1xi1> to vector<64x1xi1>
    %663 = vector.broadcast %662 : vector<64x1xi1> to vector<64x64xi1>
    %664 = arith.select %663, %660, %661 : vector<64x64xi1>, vector<64x64xbf16>
    %c2_460 = arith.constant 2 : index
    %c8_461 = arith.constant 8 : index
    %c0_462 = arith.constant 0 : index
    %c0_463 = arith.constant 0 : index
    %665 = vector.load %arg5[%c2_460, %c8_461, %c0_462, %c0_463] : memref<4x9x64x64xbf16, #tpu.memory_space<vmem>>, vector<1x1x64x64xbf16>
    %666 = vector.shape_cast %665 : vector<1x1x64x64xbf16> to vector<64x64xbf16>
    %cst_464 = arith.constant dense<0.000000e+00> : vector<64x64xf32>
    %667 = tpu.matmul %664, %666, %cst_464 {dimension_numbers = #tpu.dot_dimension_numbers<[1], [0], [0], [1], [0, 0, 1, 1], [], []>} : vector<64x64xbf16>, vector<64x64xbf16>, vector<64x64xf32> -> vector<64x64xf32>
    %668 = arith.addf %659, %667 : vector<64x64xf32>
    %c2_465 = arith.constant 2 : index
    %c0_466 = arith.constant 0 : index
    %c0_467 = arith.constant 0 : index
    %669 = vector.load %arg6[%c2_465, %c0_466, %c0_467] : memref<4x1x64xf32, #tpu.memory_space<vmem>>, vector<1x1x64xf32>
    %670 = vector.shape_cast %669 : vector<1x1x64xf32> to vector<1x64xf32>
    %671 = vector.broadcast %670 : vector<1x64xf32> to vector<64x64xf32>
    %672 = arith.addf %668, %671 : vector<64x64xf32>
    %cst_468 = arith.constant 0.000000e+00 : f32
    %673 = vector.broadcast %cst_468 : f32 to vector<64x64xf32>
    %674 = arith.maximumf %672, %673 : vector<64x64xf32>
    %675 = arith.truncf %674 : vector<64x64xf32> to vector<64x64xbf16>
    %676 = tpu.concatenate %21, %675, %21 in 0 : vector<9x64xbf16>, vector<64x64xbf16>, vector<9x64xbf16> -> vector<82x64xbf16>
    %cst_469 = arith.constant 0.000000e+00 : f32
    %677 = vector.broadcast %cst_469 : f32 to vector<64x64xf32>
    %678 = vector.extract_strided_slice %676 {offsets = [0, 0], sizes = [64, 64], strides = [1, 1]} : vector<82x64xbf16> to vector<64x64xbf16>
    %cst_470 = arith.constant 0.000000e+00 : bf16
    %679 = vector.broadcast %cst_470 : bf16 to vector<64x64xbf16>
    %680 = vector.shape_cast %18 : vector<64x1xi1> to vector<64x1xi1>
    %681 = vector.broadcast %680 : vector<64x1xi1> to vector<64x64xi1>
    %682 = arith.select %681, %678, %679 : vector<64x64xi1>, vector<64x64xbf16>
    %c3_471 = arith.constant 3 : index
    %c0_472 = arith.constant 0 : index
    %c0_473 = arith.constant 0 : index
    %c0_474 = arith.constant 0 : index
    %683 = vector.load %arg5[%c3_471, %c0_472, %c0_473, %c0_474] : memref<4x9x64x64xbf16, #tpu.memory_space<vmem>>, vector<1x1x64x64xbf16>
    %684 = vector.shape_cast %683 : vector<1x1x64x64xbf16> to vector<64x64xbf16>
    %cst_475 = arith.constant dense<0.000000e+00> : vector<64x64xf32>
    %685 = tpu.matmul %682, %684, %cst_475 {dimension_numbers = #tpu.dot_dimension_numbers<[1], [0], [0], [1], [0, 0, 1, 1], [], []>} : vector<64x64xbf16>, vector<64x64xbf16>, vector<64x64xf32> -> vector<64x64xf32>
    %686 = arith.addf %677, %685 : vector<64x64xf32>
    %687 = vector.extract_strided_slice %676 {offsets = [1, 0], sizes = [64, 64], strides = [1, 1]} : vector<82x64xbf16> to vector<64x64xbf16>
    %c3_476 = arith.constant 3 : index
    %c1_477 = arith.constant 1 : index
    %c0_478 = arith.constant 0 : index
    %c0_479 = arith.constant 0 : index
    %688 = vector.load %arg5[%c3_476, %c1_477, %c0_478, %c0_479] : memref<4x9x64x64xbf16, #tpu.memory_space<vmem>>, vector<1x1x64x64xbf16>
    %689 = vector.shape_cast %688 : vector<1x1x64x64xbf16> to vector<64x64xbf16>
    %cst_480 = arith.constant dense<0.000000e+00> : vector<64x64xf32>
    %690 = tpu.matmul %687, %689, %cst_480 {dimension_numbers = #tpu.dot_dimension_numbers<[1], [0], [0], [1], [0, 0, 1, 1], [], []>} : vector<64x64xbf16>, vector<64x64xbf16>, vector<64x64xf32> -> vector<64x64xf32>
    %691 = arith.addf %686, %690 : vector<64x64xf32>
    %692 = vector.extract_strided_slice %676 {offsets = [2, 0], sizes = [64, 64], strides = [1, 1]} : vector<82x64xbf16> to vector<64x64xbf16>
    %cst_481 = arith.constant 0.000000e+00 : bf16
    %693 = vector.broadcast %cst_481 : bf16 to vector<64x64xbf16>
    %694 = vector.shape_cast %20 : vector<64x1xi1> to vector<64x1xi1>
    %695 = vector.broadcast %694 : vector<64x1xi1> to vector<64x64xi1>
    %696 = arith.select %695, %692, %693 : vector<64x64xi1>, vector<64x64xbf16>
    %c3_482 = arith.constant 3 : index
    %c2_483 = arith.constant 2 : index
    %c0_484 = arith.constant 0 : index
    %c0_485 = arith.constant 0 : index
    %697 = vector.load %arg5[%c3_482, %c2_483, %c0_484, %c0_485] : memref<4x9x64x64xbf16, #tpu.memory_space<vmem>>, vector<1x1x64x64xbf16>
    %698 = vector.shape_cast %697 : vector<1x1x64x64xbf16> to vector<64x64xbf16>
    %cst_486 = arith.constant dense<0.000000e+00> : vector<64x64xf32>
    %699 = tpu.matmul %696, %698, %cst_486 {dimension_numbers = #tpu.dot_dimension_numbers<[1], [0], [0], [1], [0, 0, 1, 1], [], []>} : vector<64x64xbf16>, vector<64x64xbf16>, vector<64x64xf32> -> vector<64x64xf32>
    %700 = arith.addf %691, %699 : vector<64x64xf32>
    %701 = vector.extract_strided_slice %676 {offsets = [8, 0], sizes = [64, 64], strides = [1, 1]} : vector<82x64xbf16> to vector<64x64xbf16>
    %cst_487 = arith.constant 0.000000e+00 : bf16
    %702 = vector.broadcast %cst_487 : bf16 to vector<64x64xbf16>
    %703 = vector.shape_cast %18 : vector<64x1xi1> to vector<64x1xi1>
    %704 = vector.broadcast %703 : vector<64x1xi1> to vector<64x64xi1>
    %705 = arith.select %704, %701, %702 : vector<64x64xi1>, vector<64x64xbf16>
    %c3_488 = arith.constant 3 : index
    %c3_489 = arith.constant 3 : index
    %c0_490 = arith.constant 0 : index
    %c0_491 = arith.constant 0 : index
    %706 = vector.load %arg5[%c3_488, %c3_489, %c0_490, %c0_491] : memref<4x9x64x64xbf16, #tpu.memory_space<vmem>>, vector<1x1x64x64xbf16>
    %707 = vector.shape_cast %706 : vector<1x1x64x64xbf16> to vector<64x64xbf16>
    %cst_492 = arith.constant dense<0.000000e+00> : vector<64x64xf32>
    %708 = tpu.matmul %705, %707, %cst_492 {dimension_numbers = #tpu.dot_dimension_numbers<[1], [0], [0], [1], [0, 0, 1, 1], [], []>} : vector<64x64xbf16>, vector<64x64xbf16>, vector<64x64xf32> -> vector<64x64xf32>
    %709 = arith.addf %700, %708 : vector<64x64xf32>
    %710 = vector.extract_strided_slice %676 {offsets = [9, 0], sizes = [64, 64], strides = [1, 1]} : vector<82x64xbf16> to vector<64x64xbf16>
    %c3_493 = arith.constant 3 : index
    %c4_494 = arith.constant 4 : index
    %c0_495 = arith.constant 0 : index
    %c0_496 = arith.constant 0 : index
    %711 = vector.load %arg5[%c3_493, %c4_494, %c0_495, %c0_496] : memref<4x9x64x64xbf16, #tpu.memory_space<vmem>>, vector<1x1x64x64xbf16>
    %712 = vector.shape_cast %711 : vector<1x1x64x64xbf16> to vector<64x64xbf16>
    %cst_497 = arith.constant dense<0.000000e+00> : vector<64x64xf32>
    %713 = tpu.matmul %710, %712, %cst_497 {dimension_numbers = #tpu.dot_dimension_numbers<[1], [0], [0], [1], [0, 0, 1, 1], [], []>} : vector<64x64xbf16>, vector<64x64xbf16>, vector<64x64xf32> -> vector<64x64xf32>
    %714 = arith.addf %709, %713 : vector<64x64xf32>
    %715 = vector.extract_strided_slice %676 {offsets = [10, 0], sizes = [64, 64], strides = [1, 1]} : vector<82x64xbf16> to vector<64x64xbf16>
    %cst_498 = arith.constant 0.000000e+00 : bf16
    %716 = vector.broadcast %cst_498 : bf16 to vector<64x64xbf16>
    %717 = vector.shape_cast %20 : vector<64x1xi1> to vector<64x1xi1>
    %718 = vector.broadcast %717 : vector<64x1xi1> to vector<64x64xi1>
    %719 = arith.select %718, %715, %716 : vector<64x64xi1>, vector<64x64xbf16>
    %c3_499 = arith.constant 3 : index
    %c5_500 = arith.constant 5 : index
    %c0_501 = arith.constant 0 : index
    %c0_502 = arith.constant 0 : index
    %720 = vector.load %arg5[%c3_499, %c5_500, %c0_501, %c0_502] : memref<4x9x64x64xbf16, #tpu.memory_space<vmem>>, vector<1x1x64x64xbf16>
    %721 = vector.shape_cast %720 : vector<1x1x64x64xbf16> to vector<64x64xbf16>
    %cst_503 = arith.constant dense<0.000000e+00> : vector<64x64xf32>
    %722 = tpu.matmul %719, %721, %cst_503 {dimension_numbers = #tpu.dot_dimension_numbers<[1], [0], [0], [1], [0, 0, 1, 1], [], []>} : vector<64x64xbf16>, vector<64x64xbf16>, vector<64x64xf32> -> vector<64x64xf32>
    %723 = arith.addf %714, %722 : vector<64x64xf32>
    %724 = vector.extract_strided_slice %676 {offsets = [16, 0], sizes = [64, 64], strides = [1, 1]} : vector<82x64xbf16> to vector<64x64xbf16>
    %cst_504 = arith.constant 0.000000e+00 : bf16
    %725 = vector.broadcast %cst_504 : bf16 to vector<64x64xbf16>
    %726 = vector.shape_cast %18 : vector<64x1xi1> to vector<64x1xi1>
    %727 = vector.broadcast %726 : vector<64x1xi1> to vector<64x64xi1>
    %728 = arith.select %727, %724, %725 : vector<64x64xi1>, vector<64x64xbf16>
    %c3_505 = arith.constant 3 : index
    %c6_506 = arith.constant 6 : index
    %c0_507 = arith.constant 0 : index
    %c0_508 = arith.constant 0 : index
    %729 = vector.load %arg5[%c3_505, %c6_506, %c0_507, %c0_508] : memref<4x9x64x64xbf16, #tpu.memory_space<vmem>>, vector<1x1x64x64xbf16>
    %730 = vector.shape_cast %729 : vector<1x1x64x64xbf16> to vector<64x64xbf16>
    %cst_509 = arith.constant dense<0.000000e+00> : vector<64x64xf32>
    %731 = tpu.matmul %728, %730, %cst_509 {dimension_numbers = #tpu.dot_dimension_numbers<[1], [0], [0], [1], [0, 0, 1, 1], [], []>} : vector<64x64xbf16>, vector<64x64xbf16>, vector<64x64xf32> -> vector<64x64xf32>
    %732 = arith.addf %723, %731 : vector<64x64xf32>
    %733 = vector.extract_strided_slice %676 {offsets = [17, 0], sizes = [64, 64], strides = [1, 1]} : vector<82x64xbf16> to vector<64x64xbf16>
    %c3_510 = arith.constant 3 : index
    %c7_511 = arith.constant 7 : index
    %c0_512 = arith.constant 0 : index
    %c0_513 = arith.constant 0 : index
    %734 = vector.load %arg5[%c3_510, %c7_511, %c0_512, %c0_513] : memref<4x9x64x64xbf16, #tpu.memory_space<vmem>>, vector<1x1x64x64xbf16>
    %735 = vector.shape_cast %734 : vector<1x1x64x64xbf16> to vector<64x64xbf16>
    %cst_514 = arith.constant dense<0.000000e+00> : vector<64x64xf32>
    %736 = tpu.matmul %733, %735, %cst_514 {dimension_numbers = #tpu.dot_dimension_numbers<[1], [0], [0], [1], [0, 0, 1, 1], [], []>} : vector<64x64xbf16>, vector<64x64xbf16>, vector<64x64xf32> -> vector<64x64xf32>
    %737 = arith.addf %732, %736 : vector<64x64xf32>
    %738 = vector.extract_strided_slice %676 {offsets = [18, 0], sizes = [64, 64], strides = [1, 1]} : vector<82x64xbf16> to vector<64x64xbf16>
    %cst_515 = arith.constant 0.000000e+00 : bf16
    %739 = vector.broadcast %cst_515 : bf16 to vector<64x64xbf16>
    %740 = vector.shape_cast %20 : vector<64x1xi1> to vector<64x1xi1>
    %741 = vector.broadcast %740 : vector<64x1xi1> to vector<64x64xi1>
    %742 = arith.select %741, %738, %739 : vector<64x64xi1>, vector<64x64xbf16>
    %c3_516 = arith.constant 3 : index
    %c8_517 = arith.constant 8 : index
    %c0_518 = arith.constant 0 : index
    %c0_519 = arith.constant 0 : index
    %743 = vector.load %arg5[%c3_516, %c8_517, %c0_518, %c0_519] : memref<4x9x64x64xbf16, #tpu.memory_space<vmem>>, vector<1x1x64x64xbf16>
    %744 = vector.shape_cast %743 : vector<1x1x64x64xbf16> to vector<64x64xbf16>
    %cst_520 = arith.constant dense<0.000000e+00> : vector<64x64xf32>
    %745 = tpu.matmul %742, %744, %cst_520 {dimension_numbers = #tpu.dot_dimension_numbers<[1], [0], [0], [1], [0, 0, 1, 1], [], []>} : vector<64x64xbf16>, vector<64x64xbf16>, vector<64x64xf32> -> vector<64x64xf32>
    %746 = arith.addf %737, %745 : vector<64x64xf32>
    %c3_521 = arith.constant 3 : index
    %c0_522 = arith.constant 0 : index
    %c0_523 = arith.constant 0 : index
    %747 = vector.load %arg6[%c3_521, %c0_522, %c0_523] : memref<4x1x64xf32, #tpu.memory_space<vmem>>, vector<1x1x64xf32>
    %748 = vector.shape_cast %747 : vector<1x1x64xf32> to vector<1x64xf32>
    %749 = vector.broadcast %748 : vector<1x64xf32> to vector<64x64xf32>
    %750 = arith.addf %746, %749 : vector<64x64xf32>
    %751 = arith.addf %750, %596 : vector<64x64xf32>
    %cst_524 = arith.constant 0.000000e+00 : f32
    %752 = vector.broadcast %cst_524 : f32 to vector<64x64xf32>
    %753 = arith.maximumf %751, %752 : vector<64x64xf32>
    %754 = arith.truncf %753 : vector<64x64xf32> to vector<64x64xbf16>
    %c0_525 = arith.constant 0 : index
    %c0_526 = arith.constant 0 : index
    %755 = vector.load %arg7[%c0_525, %c0_526] : memref<64x8xbf16, #tpu.memory_space<vmem>>, vector<64x8xbf16>
    %cst_527 = arith.constant dense<0.000000e+00> : vector<64x8xf32>
    %756 = tpu.matmul %754, %755, %cst_527 {dimension_numbers = #tpu.dot_dimension_numbers<[1], [0], [0], [1], [0, 0, 1, 1], [], []>} : vector<64x64xbf16>, vector<64x8xbf16>, vector<64x8xf32> -> vector<64x8xf32>
    %c0_528 = arith.constant 0 : index
    %c0_529 = arith.constant 0 : index
    %757 = vector.load %arg8[%c0_528, %c0_529] : memref<1x8xf32, #tpu.memory_space<vmem>>, vector<1x8xf32>
    %758 = vector.broadcast %757 : vector<1x8xf32> to vector<64x8xf32>
    %759 = arith.addf %756, %758 : vector<64x8xf32>
    %760 = tpu.iota {dimensions = array<i32: 1>} : vector<64x8xi32>
    %c1_i32_530 = arith.constant 1 : i32
    %761 = vector.broadcast %c1_i32_530 : i32 to vector<64x8xi32>
    %762 = arith.cmpi slt, %760, %761 : vector<64x8xi32>
    %763 = arith.negf %759 : vector<64x8xf32>
    %764 = math.exp %763 : vector<64x8xf32>
    %cst_531 = arith.constant 1.000000e+00 : f32
    %765 = vector.broadcast %cst_531 : f32 to vector<64x8xf32>
    %766 = arith.addf %765, %764 : vector<64x8xf32>
    %767 = arith.divf %765, %766 : vector<64x8xf32>
    %768 = arith.select %762, %767, %759 : vector<64x8xi1>, vector<64x8xf32>
    %c1_532 = arith.constant 1 : index
    %c0_533 = arith.constant 0 : index
    %c0_534 = arith.constant 0 : index
    %769 = vector.load %arg9[%c1_532, %c0_533, %c0_534] : memref<2x64x8xf32, #tpu.memory_space<vmem>>, vector<1x64x8xf32>
    %770 = vector.shape_cast %769 : vector<1x64x8xf32> to vector<64x8xf32>
    %771 = vector.shape_cast %768 : vector<64x8xf32> to vector<1x64x8xf32>
    tpu.vector_store %arg9[%c1_532, %c0_533, %c0_534], %771 {strides = array<i32>} : memref<2x64x8xf32, #tpu.memory_space<vmem>>, vector<1x64x8xf32>,
    return
  }
  func.func @transform_0(%arg0: i32) -> (i32, i32, i32, i32) {
    %c0_i32 = arith.constant 0 : i32
    %c0_i32_0 = arith.constant 0 : i32
    %c0_i32_1 = arith.constant 0 : i32
    %c0_i32_2 = arith.constant 0 : i32
    return %arg0, %c0_i32, %c0_i32_0, %c0_i32_1 : i32, i32, i32, i32
  }
  func.func @transform_1(%arg0: i32) -> (i32, i32, i32, i32) {
    %c0_i32 = arith.constant 0 : i32
    %c0_i32_0 = arith.constant 0 : i32
    %c0_i32_1 = arith.constant 0 : i32
    %c0_i32_2 = arith.constant 0 : i32
    return %arg0, %c0_i32, %c0_i32_0, %c0_i32_1 : i32, i32, i32, i32
  }
  func.func @transform_2(%arg0: i32) -> (i32, i32, i32, i32) {
    %c0_i32 = arith.constant 0 : i32
    %c0_i32_0 = arith.constant 0 : i32
    %c0_i32_1 = arith.constant 0 : i32
    %c0_i32_2 = arith.constant 0 : i32
    return %arg0, %c0_i32, %c0_i32_0, %c0_i32_1 : i32, i32, i32, i32
  }
  func.func @transform_3(%arg0: i32) -> (i32, i32, i32, i32) {
    %c0_i32 = arith.constant 0 : i32
    %c0_i32_0 = arith.constant 0 : i32
    %c0_i32_1 = arith.constant 0 : i32
    %c0_i32_2 = arith.constant 0 : i32
    return %arg0, %c0_i32, %c0_i32_0, %c0_i32_1 : i32, i32, i32, i32
  }
  func.func @transform_4(%arg0: i32) -> (i32, i32, i32, i32) {
    %c0_i32 = arith.constant 0 : i32
    %c0_i32_0 = arith.constant 0 : i32
    %c0_i32_1 = arith.constant 0 : i32
    %c0_i32_2 = arith.constant 0 : i32
    %c0_i32_3 = arith.constant 0 : i32
    return %c0_i32, %c0_i32_0, %c0_i32_1, %c0_i32_2 : i32, i32, i32, i32
  }
  func.func @transform_5(%arg0: i32) -> (i32, i32, i32) {
    %c0_i32 = arith.constant 0 : i32
    %c0_i32_0 = arith.constant 0 : i32
    %c0_i32_1 = arith.constant 0 : i32
    %c0_i32_2 = arith.constant 0 : i32
    return %c0_i32, %c0_i32_0, %c0_i32_1 : i32, i32, i32
  }
  func.func @transform_6(%arg0: i32) -> (i32, i32) {
    %c0_i32 = arith.constant 0 : i32
    %c0_i32_0 = arith.constant 0 : i32
    %c0_i32_1 = arith.constant 0 : i32
    return %c0_i32, %c0_i32_0 : i32, i32
  }
  func.func @transform_7(%arg0: i32) -> (i32, i32) {
    %c0_i32 = arith.constant 0 : i32
    %c0_i32_0 = arith.constant 0 : i32
    %c0_i32_1 = arith.constant 0 : i32
    return %c0_i32, %c0_i32_0 : i32, i32
  }
  func.func @transform_8(%arg0: i32) -> (i32, i32, i32) {
    %c0_i32 = arith.constant 0 : i32
    %c0_i32_0 = arith.constant 0 : i32
    %c0_i32_1 = arith.constant 0 : i32
    return %arg0, %c0_i32, %c0_i32_0 : i32, i32, i32
  }
}

</mosaic_0001>

<bundles_post_ra>
// kernel: centernet_forward.2
= control target key start
LH: loop header
LB: loop body
LE: loop exit
PB: predicated region body
PF: predicated region fallthrough
CT: control target
= control target key end

     0   :  { %v1595_v0 = vmov 0   ;;  %vm450_vm0 = vcmask 154624   ;;  %vm547_vm1 = vcmask 1040384   ;;  %vm548_vm2 = vcmask 1041408   ;;  %s2196_s1 = inlined_call_operand.vmem [shape: bf16[147,64], index: 1, kind: input, shape index: {}]   ;;  %s2197_s0 = inlined_call_operand.vmem [shape: bf16[512,147], index: 0, kind: input, shape index: {}]   ;;  %s2198_s2 = inlined_call_operand.vmem [shape: f32[1,64], index: 2, kind: input, shape index: {}]   ;;  %s2199_s3 = inlined_call_operand.vmem [shape: bf16[512,64], index: 3, kind: output, shape index: {}]  }
   0x1   :  { %554 = vmatprep.subr.bf16.mxu0 %v1595_v0  ;;  %1467 = vmatprep.subr.bf16.mxu1 %v1595_v0  ;;  %v1489_v1 = vld [vmem:[%s2196_s1 + $0x38] sm:$0xff]   ;;  %v1490_v2 = vld [vmem:[%s2196_s1 + $0x30] sm:$0xff]   ;;  %v1491_v3 = vld [vmem:[%s2196_s1 + $0x28] sm:$0xff]   ;;  %v1596_v10 = vmov 65535   ;;  %vm1163_vm3 = vcmask 519168  }
   0x2   :  { %555 = vmatpush1.bf16.msra.mxu0 %v1489_v1  ;;  %1477 = vmatpush1.bf16.msra.mxu1 %v1489_v1  ;;  %v1492_v4 = vld [vmem:[%s2196_s1 + $0x20] sm:$0xff]   ;;  %v1493_v7 = vld [vmem:[%s2196_s1 + $0x18] sm:$0xff]   ;;  %v1494_v8 = vld [vmem:[%s2196_s1 + $0x10] sm:$0xff]   ;;  %v549_v11 = vsel %vm547_vm1, 4294967295, %v1596_v10 }
   0x3   :  { %556 = vmatprep.subr.bf16.mxu0 %v1595_v0  ;;  %1468 = vmatprep.subr.bf16.mxu1 %v1595_v0  ;;  %v1501_v5 = vld [vmem:[%s2197_s0 + $0x4] ss:$8 sps:$4 sm:$0xff]   ;;  %v1497_v13 = vld [vmem:[%s2196_s1 + $0x48] ss:$0 sps:$4 sm:$0x33]   ;;  %v550_v14 = vsel %vm548_vm2, %v549_v11, 0 }
   0x4   :  { %1307 = vmatprep.mubr.msk.bf16.mxu0 %vm450_vm0, %v1501_v5  ;;  %v1504_v6 = vld [vmem:[%s2197_s0 + $0x104] ss:$8 sps:$4 sm:$0xff]   ;;  %v552_v15 = vand.u32 %v1497_v13, %v550_v14  ;;  %v1499_v17 = vld [vmem:[%s2197_s0] ss:$8 sps:$4 sm:$0xff]   ;;  %v1505_v19 = vld [vmem:[%s2197_s0 + $0x14] ss:$8 sps:$4 sm:$0xff]  }
   0x5   :  { %1323 = vmatprep.mubr.msk.bf16.mxu1 %vm450_vm0, %v1504_v6  ;;  %v1495_v9 = vld [vmem:[%s2196_s1 + $0x8] sm:$0xff]   ;;  %v1496_v12 = vld [vmem:[%s2196_s1] sm:$0xff]   ;;  %v1507_v20 = vld [vmem:[%s2197_s0 + $0x114] ss:$8 sps:$4 sm:$0xff]  }
   0x6   :  { %557 = vmatpush1.bf16.msra.mxu0 %v1490_v2  ;;  %1478 = vmatpush1.bf16.msra.mxu1 %v1490_v2  ;;  %v1498_v16 = vld [vmem:[%s2196_s1 + $0x40] sm:$0xff]   ;;  %v1509_v21 = vld [vmem:[%s2197_s0 + $0x10] ss:$8 sps:$4 sm:$0xff]   ;;  %v1517_v27 = vld [vmem:[%s2197_s0 + $0x34] ss:$8 sps:$4 sm:$0xff]  }
   0x7   :  { %558 = vmatprep.subr.bf16.mxu0 %v1595_v0  ;;  %1469 = vmatprep.subr.bf16.mxu1 %v1595_v0  ;;  %v1502_v18 = vld [vmem:[%s2197_s0 + $0x100] ss:$8 sps:$4 sm:$0xff]   ;;  %v1510_v22 = vld [vmem:[%s2197_s0 + $0x110] ss:$8 sps:$4 sm:$0xff]   ;;  %v1511_v23 = vld [vmem:[%s2197_s0 + $0x24] ss:$8 sps:$4 sm:$0xff]  }
   0x8   :  { %v1513_v24 = vld [vmem:[%s2197_s0 + $0x124] ss:$8 sps:$4 sm:$0xff]   ;;  %v1515_v25 = vld [vmem:[%s2197_s0 + $0x20] ss:$8 sps:$4 sm:$0xff]   ;;  %v1519_v28 = vld [vmem:[%s2197_s0 + $0x134] ss:$8 sps:$4 sm:$0xff]  }
   0x9   :  { %v1516_v26 = vld [vmem:[%s2197_s0 + $0x120] ss:$8 sps:$4 sm:$0xff]   ;;  %v1521_v29 = vld [vmem:[%s2197_s0 + $0x30] ss:$8 sps:$4 sm:$0xff]   ;;  %v1523_v31 = vld [vmem:[%s2197_s0 + $0x44] ss:$8 sps:$4 sm:$0xff]  }
   0xa   :  { %559 = vmatpush1.bf16.msra.mxu0 %v1491_v3  ;;  %1479 = vmatpush1.bf16.msra.mxu1 %v1491_v3  ;;  %v1522_v30 = vld [vmem:[%s2197_s0 + $0x130] ss:$8 sps:$4 sm:$0xff]   ;;  %v1525_v32 = vld [vmem:[%s2197_s0 + $0x144] ss:$8 sps:$4 sm:$0xff]   ;;  %v1527_v33 = vld [vmem:[%s2197_s0 + $0x40] ss:$8 sps:$4 sm:$0xff]  }
   0xb   :  { %560 = vmatprep.subr.bf16.mxu0 %v1595_v0  ;;  %1470 = vmatprep.subr.bf16.mxu1 %v1595_v0  ;;  %v1528_v34 = vld [vmem:[%s2197_s0 + $0x140] ss:$8 sps:$4 sm:$0xff]   ;;  %v1529_v35 = vld [vmem:[%s2197_s0 + $0x54] ss:$8 sps:$4 sm:$0xff]   ;;  %v1533_v37 = vld [vmem:[%s2197_s0 + $0x50] ss:$8 sps:$4 sm:$0xff]  }
   0xc   :  { %v1531_v36 = vld [vmem:[%s2197_s0 + $0x154] ss:$8 sps:$4 sm:$0xff]   ;;  %v1534_v38 = vld [vmem:[%s2197_s0 + $0x150] ss:$8 sps:$4 sm:$0xff]   ;;  %v1535_v39 = vld [vmem:[%s2197_s0 + $0x64] ss:$8 sps:$4 sm:$0xff]  }
   0xd   :  { %v1537_v40 = vld [vmem:[%s2197_s0 + $0x164] ss:$8 sps:$4 sm:$0xff]   ;;  %v1539_v41 = vld [vmem:[%s2197_s0 + $0x60] ss:$8 sps:$4 sm:$0xff]   ;;  %v1541_v43 = vld [vmem:[%s2197_s0 + $0x74] ss:$8 sps:$4 sm:$0xff]  }
   0xe   :  { %561 = vmatpush1.bf16.msra.mxu0 %v1492_v4  ;;  %1480 = vmatpush1.bf16.msra.mxu1 %v1492_v4  ;;  %v1540_v42 = vld [vmem:[%s2197_s0 + $0x160] ss:$8 sps:$4 sm:$0xff]   ;;  %v1543_v44 = vld [vmem:[%s2197_s0 + $0x174] ss:$8 sps:$4 sm:$0xff]   ;;  %v1545_v45 = vld [vmem:[%s2197_s0 + $0x70] ss:$8 sps:$4 sm:$0xff]  }
   0xf   :  { %562 = vmatprep.subr.bf16.mxu0 %v1595_v0  ;;  %1471 = vmatprep.subr.bf16.mxu1 %v1595_v0  ;;  %v1546_v46 = vld [vmem:[%s2197_s0 + $0x170] ss:$8 sps:$4 sm:$0xff]   ;;  %v1547_v47 = vld [vmem:[%s2197_s0 + $0x84] ss:$8 sps:$4 sm:$0xff]   ;;  %v1551_v49 = vld [vmem:[%s2197_s0 + $0x80] ss:$8 sps:$4 sm:$0xff]  }
  0x10   :  { %v1549_v48 = vld [vmem:[%s2197_s0 + $0x184] ss:$8 sps:$4 sm:$0xff]   ;;  %v1552_v50 = vld [vmem:[%s2197_s0 + $0x180] ss:$8 sps:$4 sm:$0xff]   ;;  %v1553_v51 = vld [vmem:[%s2197_s0 + $0x94] ss:$8 sps:$4 sm:$0xff]  }
  0x11   :  { %v1555_v52 = vld [vmem:[%s2197_s0 + $0x194] ss:$8 sps:$4 sm:$0xff]   ;;  %v1557_v53 = vld [vmem:[%s2197_s0 + $0x90] ss:$8 sps:$4 sm:$0xff]   ;;  %v1559_v55 = vld [vmem:[%s2197_s0 + $0xa4] ss:$8 sps:$4 sm:$0xff]  }
  0x12   :  { %563 = vmatpush1.bf16.msra.mxu0 %v1493_v7  ;;  %1481 = vmatpush1.bf16.msra.mxu1 %v1493_v7  ;;  %v1558_v54 = vld [vmem:[%s2197_s0 + $0x190] ss:$8 sps:$4 sm:$0xff]   ;;  %v1561_v56 = vld [vmem:[%s2197_s0 + $0x1a4] ss:$8 sps:$4 sm:$0xff]   ;;  %v1563_v57 = vld [vmem:[%s2197_s0 + $0xa0] ss:$8 sps:$4 sm:$0xff]  }
  0x13   :  { %564 = vmatprep.subr.bf16.mxu0 %v1595_v0  ;;  %1472 = vmatprep.subr.bf16.mxu1 %v1595_v0  ;;  %v1564_v58 = vld [vmem:[%s2197_s0 + $0x1a0] ss:$8 sps:$4 sm:$0xff]   ;;  %v1565_v59 = vld [vmem:[%s2197_s0 + $0xb4] ss:$8 sps:$4 sm:$0xff]   ;;  %v1569_v61 = vld [vmem:[%s2197_s0 + $0xb0] ss:$8 sps:$4 sm:$0xff]  }
  0x14   :  { %v1567_v60 = vld [vmem:[%s2197_s0 + $0x1b4] ss:$8 sps:$4 sm:$0xff]   ;;  %v1570_v62 = vld [vmem:[%s2197_s0 + $0x1b0] ss:$8 sps:$4 sm:$0xff]   ;;  %v1571_v63 = vld [vmem:[%s2197_s0 + $0xc4] ss:$8 sps:$4 sm:$0xff]  }
  0x15   :  { %v1575_v1 = vld [vmem:[%s2197_s0 + $0xc0] ss:$8 sps:$4 sm:$0xff]   ;;  %v1577_v3 = vld [vmem:[%s2197_s0 + $0xd4] ss:$8 sps:$4 sm:$0xff]   ;;  %v1581_v5 = vld [vmem:[%s2197_s0 + $0xd0] ss:$8 sps:$4 sm:$0xff]  }
  0x16   :  { %565 = vmatpush1.bf16.msra.mxu0 %v1494_v8  ;;  %1482 = vmatpush1.bf16.msra.mxu1 %v1494_v8  ;;  %v1576_v2 = vld [vmem:[%s2197_s0 + $0x1c0] ss:$8 sps:$4 sm:$0xff]   ;;  %v1579_v4 = vld [vmem:[%s2197_s0 + $0x1d4] ss:$8 sps:$4 sm:$0xff]   ;;  %v1582_v6 = vld [vmem:[%s2197_s0 + $0x1d0] ss:$8 sps:$4 sm:$0xff]  }
  0x17   :  { %566 = vmatprep.subr.bf16.mxu0 %v1595_v0  ;;  %1473 = vmatprep.subr.bf16.mxu1 %v1595_v0  ;;  %v1583_v7 = vld [vmem:[%s2197_s0 + $0xe4] ss:$8 sps:$4 sm:$0xff]   ;;  %v1588_v10 = vld [vmem:[%s2197_s0 + $0x1e0] ss:$8 sps:$4 sm:$0xff]   ;;  %v1589_v11 = vld [vmem:[%s2197_s0 + $0xf4] ss:$8 sps:$4 sm:$0xff]  }
  0x18   :  { %v1585_v8 = vld [vmem:[%s2197_s0 + $0x1e4] ss:$8 sps:$4 sm:$0xff]   ;;  %v1593_v13 = vld [vmem:[%s2197_s0 + $0xf0] ss:$8 sps:$4 sm:$0xff]  }
  0x19   :  { %v1594_v14 = vld [vmem:[%s2197_s0 + $0x1f0] ss:$8 sps:$4 sm:$0xff]  }
  0x1a   :  { %567 = vmatpush1.bf16.msra.mxu0 %v1495_v9  ;;  %1483 = vmatpush1.bf16.msra.mxu1 %v1495_v9  ;;  %v1587_v9 = vld [vmem:[%s2197_s0 + $0xe0] ss:$8 sps:$4 sm:$0xff]  }
  0x1b   :  { %568 = vmatprep.subr.bf16.mxu0 %v1595_v0  ;;  %1474 = vmatprep.subr.bf16.mxu1 %v1595_v0 }
  0x1e   :  { %569 = vmatpush1.bf16.msra.mxu0 %v1496_v12  ;;  %1484 = vmatpush1.bf16.msra.mxu1 %v1496_v12  ;;  %v1591_v12 = vld [vmem:[%s2197_s0 + $0x1f4] ss:$8 sps:$4 sm:$0xff]  }
  0x1f   :  { %582 = vmatprep.subr.bf16.mxu0 %v1595_v0  ;;  %1475 = vmatprep.subr.bf16.mxu1 %v1595_v0 }
  0x22   :  { %583 = vmatpush2.bf16.msra.mxu0 %v552_v15  ;;  %1485 = vmatpush2.bf16.msra.mxu1 %v552_v15  ;;  %v1874_v15 = vld [vmem:[%s2198_s2] ss:$0 sm:$0xff] }
  0x23   :  { %584 = vmatprep.subr.bf16.mxu0 %v1595_v0  ;;  %1476 = vmatprep.subr.bf16.mxu1 %v1595_v0  ;;  %v1573_v0 = vld [vmem:[%s2197_s0 + $0x1c4] ss:$8 sps:$4 sm:$0xff]  }
  0x26   :  { %585 = vmatpush2.bf16.msra.mxu0 %v1498_v16  ;;  %1486 = vmatpush2.bf16.msra.mxu1 %v1498_v16 }
  0x29   :  { %587 = vmatmul.mubr.bf16.vlgmr.msra.gmra.mxu0 %v1499_v17  ;;  %715 = vmatmul.mubr.bf16.vlgmr.msra.gmra.mxu1 %v1502_v18 }
  0x2a   :  { %1308 = vmatprep.mubr.msk.bf16.mxu0 %vm450_vm0, %v1505_v19  ;;  %1324 = vmatprep.mubr.msk.bf16.mxu1 %vm450_vm0, %v1507_v20 }
  0x31   :  { %595 = vmatmul.mubr.bf16.gmra.mxu0 %v1509_v21  ;;  %723 = vmatmul.mubr.bf16.gmra.mxu1 %v1510_v22 }
  0x32   :  { %1309 = vmatprep.mubr.msk.bf16.mxu0 %vm450_vm0, %v1511_v23  ;;  %1325 = vmatprep.mubr.msk.bf16.mxu1 %vm450_vm0, %v1513_v24 }
  0x39   :  { %603 = vmatmul.mubr.bf16.gmra.mxu0 %v1515_v25  ;;  %731 = vmatmul.mubr.bf16.gmra.mxu1 %v1516_v26 }
  0x3a   :  { %1310 = vmatprep.mubr.msk.bf16.mxu0 %vm450_vm0, %v1517_v27  ;;  %1326 = vmatprep.mubr.msk.bf16.mxu1 %vm450_vm0, %v1519_v28 }
  0x41   :  { %611 = vmatmul.mubr.bf16.gmra.mxu0 %v1521_v29  ;;  %739 = vmatmul.mubr.bf16.gmra.mxu1 %v1522_v30 }
  0x42   :  { %1311 = vmatprep.mubr.msk.bf16.mxu0 %vm450_vm0, %v1523_v31  ;;  %1327 = vmatprep.mubr.msk.bf16.mxu1 %vm450_vm0, %v1525_v32 }
  0x49   :  { %619 = vmatmul.mubr.bf16.gmra.mxu0 %v1527_v33  ;;  %747 = vmatmul.mubr.bf16.gmra.mxu1 %v1528_v34 }
  0x4a   :  { %1312 = vmatprep.mubr.msk.bf16.mxu0 %vm450_vm0, %v1529_v35  ;;  %1328 = vmatprep.mubr.msk.bf16.mxu1 %vm450_vm0, %v1531_v36 }
  0x51   :  { %627 = vmatmul.mubr.bf16.gmra.mxu0 %v1533_v37  ;;  %755 = vmatmul.mubr.bf16.gmra.mxu1 %v1534_v38 }
  0x52   :  { %1313 = vmatprep.mubr.msk.bf16.mxu0 %vm450_vm0, %v1535_v39  ;;  %1329 = vmatprep.mubr.msk.bf16.mxu1 %vm450_vm0, %v1537_v40 }
  0x59   :  { %635 = vmatmul.mubr.bf16.gmra.mxu0 %v1539_v41  ;;  %763 = vmatmul.mubr.bf16.gmra.mxu1 %v1540_v42 }
  0x5a   :  { %1314 = vmatprep.mubr.msk.bf16.mxu0 %vm450_vm0, %v1541_v43  ;;  %1330 = vmatprep.mubr.msk.bf16.mxu1 %vm450_vm0, %v1543_v44 }
  0x61   :  { %643 = vmatmul.mubr.bf16.gmra.mxu0 %v1545_v45  ;;  %771 = vmatmul.mubr.bf16.gmra.mxu1 %v1546_v46 }
  0x62   :  { %1315 = vmatprep.mubr.msk.bf16.mxu0 %vm450_vm0, %v1547_v47  ;;  %1331 = vmatprep.mubr.msk.bf16.mxu1 %vm450_vm0, %v1549_v48 }
  0x69   :  { %651 = vmatmul.mubr.bf16.gmra.mxu0 %v1551_v49  ;;  %779 = vmatmul.mubr.bf16.gmra.mxu1 %v1552_v50 }
  0x6a   :  { %1316 = vmatprep.mubr.msk.bf16.mxu0 %vm450_vm0, %v1553_v51  ;;  %1332 = vmatprep.mubr.msk.bf16.mxu1 %vm450_vm0, %v1555_v52 }
  0x71   :  { %659 = vmatmul.mubr.bf16.gmra.mxu0 %v1557_v53  ;;  %787 = vmatmul.mubr.bf16.gmra.mxu1 %v1558_v54 }
  0x72   :  { %1317 = vmatprep.mubr.msk.bf16.mxu0 %vm450_vm0, %v1559_v55  ;;  %1333 = vmatprep.mubr.msk.bf16.mxu1 %vm450_vm0, %v1561_v56 }
  0x79   :  { %667 = vmatmul.mubr.bf16.gmra.mxu0 %v1563_v57  ;;  %795 = vmatmul.mubr.bf16.gmra.mxu1 %v1564_v58 }
  0x7a   :  { %1318 = vmatprep.mubr.msk.bf16.mxu0 %vm450_vm0, %v1565_v59  ;;  %1334 = vmatprep.mubr.msk.bf16.mxu1 %vm450_vm0, %v1567_v60 }
  0x81   :  { %675 = vmatmul.mubr.bf16.gmra.mxu0 %v1569_v61  ;;  %803 = vmatmul.mubr.bf16.gmra.mxu1 %v1570_v62 }
  0x82   :  { %1319 = vmatprep.mubr.msk.bf16.mxu0 %vm450_vm0, %v1571_v63  ;;  %1335 = vmatprep.mubr.msk.bf16.mxu1 %vm450_vm0, %v1573_v0 }
  0x89   :  { %683 = vmatmul.mubr.bf16.gmra.mxu0 %v1575_v1  ;;  %811 = vmatmul.mubr.bf16.gmra.mxu1 %v1576_v2 }
  0x8a   :  { %1320 = vmatprep.mubr.msk.bf16.mxu0 %vm450_vm0, %v1577_v3  ;;  %1336 = vmatprep.mubr.msk.bf16.mxu1 %vm450_vm0, %v1579_v4 }
  0x91   :  { %691 = vmatmul.mubr.bf16.gmra.mxu0 %v1581_v5  ;;  %819 = vmatmul.mubr.bf16.gmra.mxu1 %v1582_v6 }
  0x92   :  { %1321 = vmatprep.mubr.msk.bf16.mxu0 %vm450_vm0, %v1583_v7  ;;  %1337 = vmatprep.mubr.msk.bf16.mxu1 %vm450_vm0, %v1585_v8 }
  0x99   :  { %699 = vmatmul.mubr.bf16.gmra.mxu0 %v1587_v9  ;;  %827 = vmatmul.mubr.bf16.gmra.mxu1 %v1588_v10 }
  0x9a   :  { %1322 = vmatprep.mubr.msk.bf16.mxu0 %vm450_vm0, %v1589_v11  ;;  %1338 = vmatprep.mubr.msk.bf16.mxu1 %vm450_vm0, %v1591_v12 }
  0xa1   :  { %707 = vmatmul.mubr.bf16.gmra.mxu0 %v1593_v13  ;;  %835 = vmatmul.mubr.bf16.gmra.mxu1 %v1594_v14 }
  0xe9   :  { %v588_v16 = vpop.f32.mrf.mxu0  ;;  %v716_v17 = vpop.f32.mrf.mxu1 }
  0xea   :  { %v589_v18 = vadd.f32 %v1874_v15, %v588_v16  ;;  %v717_v19 = vadd.f32 %v1874_v15, %v716_v17 }
  0xeb   :  { %v590_v20 = vpop.f32.mrf.mxu0  ;;  %v718_v21 = vpop.f32.mrf.mxu1 }
  0xec   :  { %v843_v22 = vmax.f32 %v589_v18, 0.0  ;;  %v875_v23 = vmax.f32 %v717_v19, 0.0 }
  0xed   :  { %v591_v24 = vpop.f32.mrf.mxu0  ;;  %v719_v25 = vpop.f32.mrf.mxu1 }
  0xee   :  { %v1403_v26 = vpack.c.bf16 %v843_v22, %v843_v22  ;;  %v1435_v27 = vpack.c.bf16 %v875_v23, %v875_v23  ;;  %v592_v28 = vadd.f32 %v1874_v15, %v591_v24  ;;  %v720_v29 = vadd.f32 %v1874_v15, %v719_v25 }
  0xef   :  { %v593_v30 = vpop.f32.mrf.mxu0  ;;  %v721_v31 = vpop.f32.mrf.mxu1 }
  0xf0   :  { %1164 = vst.msk [vmem:[%s2199_s3] sm:$0xf] %vm1163_vm3, %v1403_v26  ;;  %1196 = vst.msk [vmem:[%s2199_s3 + $0x80] sm:$0xf] %vm1163_vm3, %v1435_v27  ;;  %v844_v32 = vmax.f32 %v592_v28, 0.0  ;;  %v876_v33 = vmax.f32 %v720_v29, 0.0 }
  0xf1   :  { %v596_v34 = vpop.f32.mrf.mxu0  ;;  %v724_v35 = vpop.f32.mrf.mxu1 }
  0xf2   :  { %v1404_v36 = vpack.c.bf16 %v844_v32, %v844_v32  ;;  %v1436_v37 = vpack.c.bf16 %v876_v33, %v876_v33  ;;  %v597_v38 = vadd.f32 %v1874_v15, %v596_v34  ;;  %v725_v39 = vadd.f32 %v1874_v15, %v724_v35 }
  0xf3   :  { %v598_v40 = vpop.f32.mrf.mxu0  ;;  %v726_v41 = vpop.f32.mrf.mxu1 }
  0xf4   :  { %1165 = vst.msk [vmem:[%s2199_s3 + $0x4] sm:$0xf] %vm1163_vm3, %v1404_v36  ;;  %1197 = vst.msk [vmem:[%s2199_s3 + $0x84] sm:$0xf] %vm1163_vm3, %v1436_v37  ;;  %v845_v42 = vmax.f32 %v597_v38, 0.0  ;;  %v877_v43 = vmax.f32 %v725_v39, 0.0 }
  0xf5   :  { %v599_v44 = vpop.f32.mrf.mxu0  ;;  %v727_v45 = vpop.f32.mrf.mxu1 }
  0xf6   :  { %v1405_v46 = vpack.c.bf16 %v845_v42, %v845_v42  ;;  %v1437_v47 = vpack.c.bf16 %v877_v43, %v877_v43  ;;  %v600_v48 = vadd.f32 %v1874_v15, %v599_v44  ;;  %v728_v49 = vadd.f32 %v1874_v15, %v727_v45 }
  0xf7   :  { %v601_v50 = vpop.f32.mrf.mxu0  ;;  %v729_v51 = vpop.f32.mrf.mxu1 }
  0xf8   :  { %1166 = vst.msk [vmem:[%s2199_s3 + $0x8] sm:$0xf] %vm1163_vm3, %v1405_v46  ;;  %1198 = vst.msk [vmem:[%s2199_s3 + $0x88] sm:$0xf] %vm1163_vm3, %v1437_v47  ;;  %v846_v52 = vmax.f32 %v600_v48, 0.0  ;;  %v878_v53 = vmax.f32 %v728_v49, 0.0 }
  0xf9   :  { %v604_v54 = vpop.f32.mrf.mxu0  ;;  %v732_v55 = vpop.f32.mrf.mxu1 }
  0xfa   :  { %v1406_v56 = vpack.c.bf16 %v846_v52, %v846_v52  ;;  %v1438_v57 = vpack.c.bf16 %v878_v53, %v878_v53  ;;  %v605_v58 = vadd.f32 %v1874_v15, %v604_v54  ;;  %v733_v59 = vadd.f32 %v1874_v15, %v732_v55 }
  0xfb   :  { %v606_v60 = vpop.f32.mrf.mxu0  ;;  %v734_v61 = vpop.f32.mrf.mxu1 }
  0xfc   :  { %1167 = vst.msk [vmem:[%s2199_s3 + $0xc] sm:$0xf] %vm1163_vm3, %v1406_v56  ;;  %1199 = vst.msk [vmem:[%s2199_s3 + $0x8c] sm:$0xf] %vm1163_vm3, %v1438_v57  ;;  %v847_v62 = vmax.f32 %v605_v58, 0.0  ;;  %v879_v63 = vmax.f32 %v733_v59, 0.0 }
  0xfd   :  { %v607_v0 = vpop.f32.mrf.mxu0  ;;  %v735_v1 = vpop.f32.mrf.mxu1 }
  0xfe   :  { %v1407_v2 = vpack.c.bf16 %v847_v62, %v847_v62  ;;  %v1439_v3 = vpack.c.bf16 %v879_v63, %v879_v63  ;;  %v608_v4 = vadd.f32 %v1874_v15, %v607_v0  ;;  %v736_v5 = vadd.f32 %v1874_v15, %v735_v1 }
  0xff   :  { %v609_v6 = vpop.f32.mrf.mxu0  ;;  %v737_v7 = vpop.f32.mrf.mxu1 }
 0x100   :  { %1168 = vst.msk [vmem:[%s2199_s3 + $0x10] sm:$0xf] %vm1163_vm3, %v1407_v2  ;;  %1200 = vst.msk [vmem:[%s2199_s3 + $0x90] sm:$0xf] %vm1163_vm3, %v1439_v3  ;;  %v848_v8 = vmax.f32 %v608_v4, 0.0  ;;  %v880_v9 = vmax.f32 %v736_v5, 0.0 }
 0x101   :  { %v612_v10 = vpop.f32.mrf.mxu0  ;;  %v740_v11 = vpop.f32.mrf.mxu1 }
 0x102   :  { %v1408_v12 = vpack.c.bf16 %v848_v8, %v848_v8  ;;  %v1440_v13 = vpack.c.bf16 %v880_v9, %v880_v9  ;;  %v613_v14 = vadd.f32 %v1874_v15, %v612_v10  ;;  %v741_v16 = vadd.f32 %v1874_v15, %v740_v11 }
 0x103   :  { %v614_v17 = vpop.f32.mrf.mxu0  ;;  %v742_v18 = vpop.f32.mrf.mxu1 }
 0x104   :  { %1169 = vst.msk [vmem:[%s2199_s3 + $0x14] sm:$0xf] %vm1163_vm3, %v1408_v12  ;;  %1201 = vst.msk [vmem:[%s2199_s3 + $0x94] sm:$0xf] %vm1163_vm3, %v1440_v13  ;;  %v849_v19 = vmax.f32 %v613_v14, 0.0  ;;  %v881_v20 = vmax.f32 %v741_v16, 0.0 }
 0x105   :  { %v615_v21 = vpop.f32.mrf.mxu0  ;;  %v743_v22 = vpop.f32.mrf.mxu1 }
 0x106   :  { %v1409_v23 = vpack.c.bf16 %v849_v19, %v849_v19  ;;  %v1441_v24 = vpack.c.bf16 %v881_v20, %v881_v20  ;;  %v616_v25 = vadd.f32 %v1874_v15, %v615_v21  ;;  %v744_v26 = vadd.f32 %v1874_v15, %v743_v22 }
 0x107   :  { %v617_v27 = vpop.f32.mrf.mxu0  ;;  %v745_v28 = vpop.f32.mrf.mxu1 }
 0x108   :  { %1170 = vst.msk [vmem:[%s2199_s3 + $0x18] sm:$0xf] %vm1163_vm3, %v1409_v23  ;;  %1202 = vst.msk [vmem:[%s2199_s3 + $0x98] sm:$0xf] %vm1163_vm3, %v1441_v24  ;;  %v850_v29 = vmax.f32 %v616_v25, 0.0  ;;  %v882_v30 = vmax.f32 %v744_v26, 0.0 }
 0x109   :  { %v620_v31 = vpop.f32.mrf.mxu0  ;;  %v748_v32 = vpop.f32.mrf.mxu1 }
 0x10a   :  { %v1410_v33 = vpack.c.bf16 %v850_v29, %v850_v29  ;;  %v1442_v34 = vpack.c.bf16 %v882_v30, %v882_v30  ;;  %v621_v35 = vadd.f32 %v1874_v15, %v620_v31  ;;  %v749_v36 = vadd.f32 %v1874_v15, %v748_v32 }
 0x10b   :  { %v622_v37 = vpop.f32.mrf.mxu0  ;;  %v750_v38 = vpop.f32.mrf.mxu1 }
 0x10c   :  { %1171 = vst.msk [vmem:[%s2199_s3 + $0x1c] sm:$0xf] %vm1163_vm3, %v1410_v33  ;;  %1203 = vst.msk [vmem:[%s2199_s3 + $0x9c] sm:$0xf] %vm1163_vm3, %v1442_v34  ;;  %v851_v39 = vmax.f32 %v621_v35, 0.0  ;;  %v883_v40 = vmax.f32 %v749_v36, 0.0 }
 0x10d   :  { %v623_v41 = vpop.f32.mrf.mxu0  ;;  %v751_v42 = vpop.f32.mrf.mxu1 }
 0x10e   :  { %v1411_v43 = vpack.c.bf16 %v851_v39, %v851_v39  ;;  %v1443_v44 = vpack.c.bf16 %v883_v40, %v883_v40  ;;  %v624_v45 = vadd.f32 %v1874_v15, %v623_v41  ;;  %v752_v46 = vadd.f32 %v1874_v15, %v751_v42 }
 0x10f   :  { %v625_v47 = vpop.f32.mrf.mxu0  ;;  %v753_v48 = vpop.f32.mrf.mxu1 }
 0x110   :  { %1172 = vst.msk [vmem:[%s2199_s3 + $0x20] sm:$0xf] %vm1163_vm3, %v1411_v43  ;;  %1204 = vst.msk [vmem:[%s2199_s3 + $0xa0] sm:$0xf] %vm1163_vm3, %v1443_v44  ;;  %v852_v49 = vmax.f32 %v624_v45, 0.0  ;;  %v884_v50 = vmax.f32 %v752_v46, 0.0 }
 0x111   :  { %v628_v51 = vpop.f32.mrf.mxu0  ;;  %v756_v52 = vpop.f32.mrf.mxu1 }
 0x112   :  { %v1412_v53 = vpack.c.bf16 %v852_v49, %v852_v49  ;;  %v1444_v54 = vpack.c.bf16 %v884_v50, %v884_v50  ;;  %v629_v55 = vadd.f32 %v1874_v15, %v628_v51  ;;  %v757_v56 = vadd.f32 %v1874_v15, %v756_v52 }
 0x113   :  { %v630_v57 = vpop.f32.mrf.mxu0  ;;  %v758_v58 = vpop.f32.mrf.mxu1 }
 0x114   :  { %1173 = vst.msk [vmem:[%s2199_s3 + $0x24] sm:$0xf] %vm1163_vm3, %v1412_v53  ;;  %1205 = vst.msk [vmem:[%s2199_s3 + $0xa4] sm:$0xf] %vm1163_vm3, %v1444_v54  ;;  %v853_v59 = vmax.f32 %v629_v55, 0.0  ;;  %v885_v60 = vmax.f32 %v757_v56, 0.0 }
 0x115   :  { %v631_v61 = vpop.f32.mrf.mxu0  ;;  %v759_v62 = vpop.f32.mrf.mxu1 }
 0x116   :  { %v1413_v63 = vpack.c.bf16 %v853_v59, %v853_v59  ;;  %v1445_v0 = vpack.c.bf16 %v885_v60, %v885_v60  ;;  %v632_v1 = vadd.f32 %v1874_v15, %v631_v61  ;;  %v760_v2 = vadd.f32 %v1874_v15, %v759_v62 }
 0x117   :  { %v633_v3 = vpop.f32.mrf.mxu0  ;;  %v761_v4 = vpop.f32.mrf.mxu1 }
 0x118   :  { %1174 = vst.msk [vmem:[%s2199_s3 + $0x28] sm:$0xf] %vm1163_vm3, %v1413_v63  ;;  %1206 = vst.msk [vmem:[%s2199_s3 + $0xa8] sm:$0xf] %vm1163_vm3, %v1445_v0  ;;  %v854_v5 = vmax.f32 %v632_v1, 0.0  ;;  %v886_v6 = vmax.f32 %v760_v2, 0.0 }
 0x119   :  { %v636_v7 = vpop.f32.mrf.mxu0  ;;  %v764_v8 = vpop.f32.mrf.mxu1 }
 0x11a   :  { %v1414_v9 = vpack.c.bf16 %v854_v5, %v854_v5  ;;  %v1446_v10 = vpack.c.bf16 %v886_v6, %v886_v6  ;;  %v637_v11 = vadd.f32 %v1874_v15, %v636_v7  ;;  %v765_v12 = vadd.f32 %v1874_v15, %v764_v8 }
 0x11b   :  { %v638_v13 = vpop.f32.mrf.mxu0  ;;  %v766_v14 = vpop.f32.mrf.mxu1 }
 0x11c   :  { %1175 = vst.msk [vmem:[%s2199_s3 + $0x2c] sm:$0xf] %vm1163_vm3, %v1414_v9  ;;  %1207 = vst.msk [vmem:[%s2199_s3 + $0xac] sm:$0xf] %vm1163_vm3, %v1446_v10  ;;  %v855_v16 = vmax.f32 %v637_v11, 0.0  ;;  %v887_v17 = vmax.f32 %v765_v12, 0.0 }
 0x11d   :  { %v639_v18 = vpop.f32.mrf.mxu0  ;;  %v767_v19 = vpop.f32.mrf.mxu1 }
 0x11e   :  { %v1415_v20 = vpack.c.bf16 %v855_v16, %v855_v16  ;;  %v1447_v21 = vpack.c.bf16 %v887_v17, %v887_v17  ;;  %v640_v22 = vadd.f32 %v1874_v15, %v639_v18  ;;  %v768_v23 = vadd.f32 %v1874_v15, %v767_v19 }
 0x11f   :  { %v641_v24 = vpop.f32.mrf.mxu0  ;;  %v769_v25 = vpop.f32.mrf.mxu1 }
 0x120   :  { %1176 = vst.msk [vmem:[%s2199_s3 + $0x30] sm:$0xf] %vm1163_vm3, %v1415_v20  ;;  %1208 = vst.msk [vmem:[%s2199_s3 + $0xb0] sm:$0xf] %vm1163_vm3, %v1447_v21  ;;  %v856_v26 = vmax.f32 %v640_v22, 0.0  ;;  %v888_v27 = vmax.f32 %v768_v23, 0.0 }
 0x121   :  { %v644_v28 = vpop.f32.mrf.mxu0  ;;  %v772_v29 = vpop.f32.mrf.mxu1 }
 0x122   :  { %v1416_v30 = vpack.c.bf16 %v856_v26, %v856_v26  ;;  %v1448_v31 = vpack.c.bf16 %v888_v27, %v888_v27  ;;  %v645_v32 = vadd.f32 %v1874_v15, %v644_v28  ;;  %v773_v33 = vadd.f32 %v1874_v15, %v772_v29 }
 0x123   :  { %v646_v34 = vpop.f32.mrf.mxu0  ;;  %v774_v35 = vpop.f32.mrf.mxu1 }
 0x124   :  { %1177 = vst.msk [vmem:[%s2199_s3 + $0x34] sm:$0xf] %vm1163_vm3, %v1416_v30  ;;  %1209 = vst.msk [vmem:[%s2199_s3 + $0xb4] sm:$0xf] %vm1163_vm3, %v1448_v31  ;;  %v857_v36 = vmax.f32 %v645_v32, 0.0  ;;  %v889_v37 = vmax.f32 %v773_v33, 0.0 }
 0x125   :  { %v647_v38 = vpop.f32.mrf.mxu0  ;;  %v775_v39 = vpop.f32.mrf.mxu1 }
 0x126   :  { %v1417_v40 = vpack.c.bf16 %v857_v36, %v857_v36  ;;  %v1449_v41 = vpack.c.bf16 %v889_v37, %v889_v37  ;;  %v648_v42 = vadd.f32 %v1874_v15, %v647_v38  ;;  %v776_v43 = vadd.f32 %v1874_v15, %v775_v39 }
 0x127   :  { %v649_v44 = vpop.f32.mrf.mxu0  ;;  %v777_v45 = vpop.f32.mrf.mxu1 }
 0x128   :  { %1178 = vst.msk [vmem:[%s2199_s3 + $0x38] sm:$0xf] %vm1163_vm3, %v1417_v40  ;;  %1210 = vst.msk [vmem:[%s2199_s3 + $0xb8] sm:$0xf] %vm1163_vm3, %v1449_v41  ;;  %v858_v46 = vmax.f32 %v648_v42, 0.0  ;;  %v890_v47 = vmax.f32 %v776_v43, 0.0 }
 0x129   :  { %v652_v48 = vpop.f32.mrf.mxu0  ;;  %v780_v49 = vpop.f32.mrf.mxu1 }
 0x12a   :  { %v1418_v50 = vpack.c.bf16 %v858_v46, %v858_v46  ;;  %v1450_v51 = vpack.c.bf16 %v890_v47, %v890_v47  ;;  %v653_v52 = vadd.f32 %v1874_v15, %v652_v48  ;;  %v781_v53 = vadd.f32 %v1874_v15, %v780_v49 }
 0x12b   :  { %v654_v54 = vpop.f32.mrf.mxu0  ;;  %v782_v55 = vpop.f32.mrf.mxu1 }
 0x12c   :  { %1179 = vst.msk [vmem:[%s2199_s3 + $0x3c] sm:$0xf] %vm1163_vm3, %v1418_v50  ;;  %1211 = vst.msk [vmem:[%s2199_s3 + $0xbc] sm:$0xf] %vm1163_vm3, %v1450_v51  ;;  %v859_v56 = vmax.f32 %v653_v52, 0.0  ;;  %v891_v57 = vmax.f32 %v781_v53, 0.0 }
 0x12d   :  { %v655_v58 = vpop.f32.mrf.mxu0  ;;  %v783_v59 = vpop.f32.mrf.mxu1 }
 0x12e   :  { %v1419_v60 = vpack.c.bf16 %v859_v56, %v859_v56  ;;  %v1451_v61 = vpack.c.bf16 %v891_v57, %v891_v57  ;;  %v656_v62 = vadd.f32 %v1874_v15, %v655_v58  ;;  %v784_v63 = vadd.f32 %v1874_v15, %v783_v59 }
 0x12f   :  { %v657_v0 = vpop.f32.mrf.mxu0  ;;  %v785_v1 = vpop.f32.mrf.mxu1 }
 0x130   :  { %1180 = vst.msk [vmem:[%s2199_s3 + $0x40] sm:$0xf] %vm1163_vm3, %v1419_v60  ;;  %1212 = vst.msk [vmem:[%s2199_s3 + $0xc0] sm:$0xf] %vm1163_vm3, %v1451_v61  ;;  %v860_v2 = vmax.f32 %v656_v62, 0.0  ;;  %v892_v3 = vmax.f32 %v784_v63, 0.0 }
 0x131   :  { %v660_v4 = vpop.f32.mrf.mxu0  ;;  %v788_v5 = vpop.f32.mrf.mxu1 }
 0x132   :  { %v1420_v6 = vpack.c.bf16 %v860_v2, %v860_v2  ;;  %v1452_v7 = vpack.c.bf16 %v892_v3, %v892_v3  ;;  %v661_v8 = vadd.f32 %v1874_v15, %v660_v4  ;;  %v789_v9 = vadd.f32 %v1874_v15, %v788_v5 }
 0x133   :  { %v662_v10 = vpop.f32.mrf.mxu0  ;;  %v790_v11 = vpop.f32.mrf.mxu1 }
 0x134   :  { %1181 = vst.msk [vmem:[%s2199_s3 + $0x44] sm:$0xf] %vm1163_vm3, %v1420_v6  ;;  %1213 = vst.msk [vmem:[%s2199_s3 + $0xc4] sm:$0xf] %vm1163_vm3, %v1452_v7  ;;  %v861_v12 = vmax.f32 %v661_v8, 0.0  ;;  %v893_v13 = vmax.f32 %v789_v9, 0.0 }
 0x135   :  { %v663_v14 = vpop.f32.mrf.mxu0  ;;  %v791_v16 = vpop.f32.mrf.mxu1 }
 0x136   :  { %v1421_v17 = vpack.c.bf16 %v861_v12, %v861_v12  ;;  %v1453_v18 = vpack.c.bf16 %v893_v13, %v893_v13  ;;  %v664_v19 = vadd.f32 %v1874_v15, %v663_v14  ;;  %v792_v20 = vadd.f32 %v1874_v15, %v791_v16 }
 0x137   :  { %v665_v21 = vpop.f32.mrf.mxu0  ;;  %v793_v22 = vpop.f32.mrf.mxu1 }
 0x138   :  { %1182 = vst.msk [vmem:[%s2199_s3 + $0x48] sm:$0xf] %vm1163_vm3, %v1421_v17  ;;  %1214 = vst.msk [vmem:[%s2199_s3 + $0xc8] sm:$0xf] %vm1163_vm3, %v1453_v18  ;;  %v862_v23 = vmax.f32 %v664_v19, 0.0  ;;  %v894_v24 = vmax.f32 %v792_v20, 0.0 }
 0x139   :  { %v668_v25 = vpop.f32.mrf.mxu0  ;;  %v796_v26 = vpop.f32.mrf.mxu1 }
 0x13a   :  { %v1422_v27 = vpack.c.bf16 %v862_v23, %v862_v23  ;;  %v1454_v28 = vpack.c.bf16 %v894_v24, %v894_v24  ;;  %v669_v29 = vadd.f32 %v1874_v15, %v668_v25  ;;  %v797_v30 = vadd.f32 %v1874_v15, %v796_v26 }
 0x13b   :  { %v670_v31 = vpop.f32.mrf.mxu0  ;;  %v798_v32 = vpop.f32.mrf.mxu1 }
 0x13c   :  { %1183 = vst.msk [vmem:[%s2199_s3 + $0x4c] sm:$0xf] %vm1163_vm3, %v1422_v27  ;;  %1215 = vst.msk [vmem:[%s2199_s3 + $0xcc] sm:$0xf] %vm1163_vm3, %v1454_v28  ;;  %v863_v33 = vmax.f32 %v669_v29, 0.0  ;;  %v895_v34 = vmax.f32 %v797_v30, 0.0 }
 0x13d   :  { %v671_v35 = vpop.f32.mrf.mxu0  ;;  %v799_v36 = vpop.f32.mrf.mxu1 }
 0x13e   :  { %v1423_v37 = vpack.c.bf16 %v863_v33, %v863_v33  ;;  %v1455_v38 = vpack.c.bf16 %v895_v34, %v895_v34  ;;  %v672_v39 = vadd.f32 %v1874_v15, %v671_v35  ;;  %v800_v40 = vadd.f32 %v1874_v15, %v799_v36 }
 0x13f   :  { %v673_v41 = vpop.f32.mrf.mxu0  ;;  %v801_v42 = vpop.f32.mrf.mxu1 }
 0x140   :  { %1184 = vst.msk [vmem:[%s2199_s3 + $0x50] sm:$0xf] %vm1163_vm3, %v1423_v37  ;;  %1216 = vst.msk [vmem:[%s2199_s3 + $0xd0] sm:$0xf] %vm1163_vm3, %v1455_v38  ;;  %v864_v43 = vmax.f32 %v672_v39, 0.0  ;;  %v896_v44 = vmax.f32 %v800_v40, 0.0 }
 0x141   :  { %v676_v45 = vpop.f32.mrf.mxu0  ;;  %v804_v46 = vpop.f32.mrf.mxu1 }
 0x142   :  { %v1424_v47 = vpack.c.bf16 %v864_v43, %v864_v43  ;;  %v1456_v48 = vpack.c.bf16 %v896_v44, %v896_v44  ;;  %v677_v49 = vadd.f32 %v1874_v15, %v676_v45  ;;  %v805_v50 = vadd.f32 %v1874_v15, %v804_v46 }
 0x143   :  { %v678_v51 = vpop.f32.mrf.mxu0  ;;  %v806_v52 = vpop.f32.mrf.mxu1 }
 0x144   :  { %1185 = vst.msk [vmem:[%s2199_s3 + $0x54] sm:$0xf] %vm1163_vm3, %v1424_v47  ;;  %1217 = vst.msk [vmem:[%s2199_s3 + $0xd4] sm:$0xf] %vm1163_vm3, %v1456_v48  ;;  %v865_v53 = vmax.f32 %v677_v49, 0.0  ;;  %v897_v54 = vmax.f32 %v805_v50, 0.0 }
 0x145   :  { %v679_v55 = vpop.f32.mrf.mxu0  ;;  %v807_v56 = vpop.f32.mrf.mxu1 }
 0x146   :  { %v1425_v57 = vpack.c.bf16 %v865_v53, %v865_v53  ;;  %v1457_v58 = vpack.c.bf16 %v897_v54, %v897_v54  ;;  %v680_v59 = vadd.f32 %v1874_v15, %v679_v55  ;;  %v808_v60 = vadd.f32 %v1874_v15, %v807_v56 }
 0x147   :  { %v681_v61 = vpop.f32.mrf.mxu0  ;;  %v809_v62 = vpop.f32.mrf.mxu1 }
 0x148   :  { %1186 = vst.msk [vmem:[%s2199_s3 + $0x58] sm:$0xf] %vm1163_vm3, %v1425_v57  ;;  %1218 = vst.msk [vmem:[%s2199_s3 + $0xd8] sm:$0xf] %vm1163_vm3, %v1457_v58  ;;  %v866_v63 = vmax.f32 %v680_v59, 0.0  ;;  %v898_v0 = vmax.f32 %v808_v60, 0.0 }
 0x149   :  { %v684_v1 = vpop.f32.mrf.mxu0  ;;  %v812_v2 = vpop.f32.mrf.mxu1 }
 0x14a   :  { %v1426_v3 = vpack.c.bf16 %v866_v63, %v866_v63  ;;  %v1458_v4 = vpack.c.bf16 %v898_v0, %v898_v0  ;;  %v685_v5 = vadd.f32 %v1874_v15, %v684_v1  ;;  %v813_v6 = vadd.f32 %v1874_v15, %v812_v2 }
 0x14b   :  { %v686_v7 = vpop.f32.mrf.mxu0  ;;  %v814_v8 = vpop.f32.mrf.mxu1 }
 0x14c   :  { %1187 = vst.msk [vmem:[%s2199_s3 + $0x5c] sm:$0xf] %vm1163_vm3, %v1426_v3  ;;  %1219 = vst.msk [vmem:[%s2199_s3 + $0xdc] sm:$0xf] %vm1163_vm3, %v1458_v4  ;;  %v867_v9 = vmax.f32 %v685_v5, 0.0  ;;  %v899_v10 = vmax.f32 %v813_v6, 0.0 }
 0x14d   :  { %v687_v11 = vpop.f32.mrf.mxu0  ;;  %v815_v12 = vpop.f32.mrf.mxu1 }
 0x14e   :  { %v1427_v13 = vpack.c.bf16 %v867_v9, %v867_v9  ;;  %v1459_v14 = vpack.c.bf16 %v899_v10, %v899_v10  ;;  %v688_v16 = vadd.f32 %v1874_v15, %v687_v11  ;;  %v816_v17 = vadd.f32 %v1874_v15, %v815_v12 }
 0x14f   :  { %v689_v18 = vpop.f32.mrf.mxu0  ;;  %v817_v19 = vpop.f32.mrf.mxu1 }
 0x150   :  { %1188 = vst.msk [vmem:[%s2199_s3 + $0x60] sm:$0xf] %vm1163_vm3, %v1427_v13  ;;  %1220 = vst.msk [vmem:[%s2199_s3 + $0xe0] sm:$0xf] %vm1163_vm3, %v1459_v14  ;;  %v868_v20 = vmax.f32 %v688_v16, 0.0  ;;  %v900_v21 = vmax.f32 %v816_v17, 0.0 }
 0x151   :  { %v692_v22 = vpop.f32.mrf.mxu0  ;;  %v820_v23 = vpop.f32.mrf.mxu1 }
 0x152   :  { %v1428_v24 = vpack.c.bf16 %v868_v20, %v868_v20  ;;  %v1460_v25 = vpack.c.bf16 %v900_v21, %v900_v21  ;;  %v693_v26 = vadd.f32 %v1874_v15, %v692_v22  ;;  %v821_v27 = vadd.f32 %v1874_v15, %v820_v23 }
 0x153   :  { %v694_v28 = vpop.f32.mrf.mxu0  ;;  %v822_v29 = vpop.f32.mrf.mxu1 }
 0x154   :  { %1189 = vst.msk [vmem:[%s2199_s3 + $0x64] sm:$0xf] %vm1163_vm3, %v1428_v24  ;;  %1221 = vst.msk [vmem:[%s2199_s3 + $0xe4] sm:$0xf] %vm1163_vm3, %v1460_v25  ;;  %v869_v30 = vmax.f32 %v693_v26, 0.0  ;;  %v901_v31 = vmax.f32 %v821_v27, 0.0 }
 0x155   :  { %v695_v32 = vpop.f32.mrf.mxu0  ;;  %v823_v33 = vpop.f32.mrf.mxu1 }
 0x156   :  { %v1429_v34 = vpack.c.bf16 %v869_v30, %v869_v30  ;;  %v1461_v35 = vpack.c.bf16 %v901_v31, %v901_v31  ;;  %v696_v36 = vadd.f32 %v1874_v15, %v695_v32  ;;  %v824_v37 = vadd.f32 %v1874_v15, %v823_v33 }
 0x157   :  { %v697_v38 = vpop.f32.mrf.mxu0  ;;  %v825_v39 = vpop.f32.mrf.mxu1 }
 0x158   :  { %1190 = vst.msk [vmem:[%s2199_s3 + $0x68] sm:$0xf] %vm1163_vm3, %v1429_v34  ;;  %1222 = vst.msk [vmem:[%s2199_s3 + $0xe8] sm:$0xf] %vm1163_vm3, %v1461_v35  ;;  %v870_v40 = vmax.f32 %v696_v36, 0.0  ;;  %v902_v41 = vmax.f32 %v824_v37, 0.0 }
 0x159   :  { %v700_v42 = vpop.f32.mrf.mxu0  ;;  %v828_v43 = vpop.f32.mrf.mxu1 }
 0x15a   :  { %v1430_v44 = vpack.c.bf16 %v870_v40, %v870_v40  ;;  %v1462_v45 = vpack.c.bf16 %v902_v41, %v902_v41  ;;  %v701_v46 = vadd.f32 %v1874_v15, %v700_v42  ;;  %v829_v47 = vadd.f32 %v1874_v15, %v828_v43 }
 0x15b   :  { %v702_v48 = vpop.f32.mrf.mxu0  ;;  %v830_v49 = vpop.f32.mrf.mxu1 }
 0x15c   :  { %1191 = vst.msk [vmem:[%s2199_s3 + $0x6c] sm:$0xf] %vm1163_vm3, %v1430_v44  ;;  %1223 = vst.msk [vmem:[%s2199_s3 + $0xec] sm:$0xf] %vm1163_vm3, %v1462_v45  ;;  %v871_v50 = vmax.f32 %v701_v46, 0.0  ;;  %v903_v51 = vmax.f32 %v829_v47, 0.0 }
 0x15d   :  { %v703_v52 = vpop.f32.mrf.mxu0  ;;  %v831_v53 = vpop.f32.mrf.mxu1 }
 0x15e   :  { %v1431_v54 = vpack.c.bf16 %v871_v50, %v871_v50  ;;  %v1463_v55 = vpack.c.bf16 %v903_v51, %v903_v51  ;;  %v704_v56 = vadd.f32 %v1874_v15, %v703_v52  ;;  %v832_v57 = vadd.f32 %v1874_v15, %v831_v53 }
 0x15f   :  { %v705_v58 = vpop.f32.mrf.mxu0  ;;  %v833_v59 = vpop.f32.mrf.mxu1 }
 0x160   :  { %1192 = vst.msk [vmem:[%s2199_s3 + $0x70] sm:$0xf] %vm1163_vm3, %v1431_v54  ;;  %1224 = vst.msk [vmem:[%s2199_s3 + $0xf0] sm:$0xf] %vm1163_vm3, %v1463_v55  ;;  %v872_v60 = vmax.f32 %v704_v56, 0.0  ;;  %v904_v61 = vmax.f32 %v832_v57, 0.0 }
 0x161   :  { %v708_v62 = vpop.f32.mrf.mxu0  ;;  %v836_v63 = vpop.f32.mrf.mxu1 }
 0x162   :  { %v1432_v0 = vpack.c.bf16 %v872_v60, %v872_v60  ;;  %v1464_v1 = vpack.c.bf16 %v904_v61, %v904_v61  ;;  %v709_v2 = vadd.f32 %v1874_v15, %v708_v62  ;;  %v837_v3 = vadd.f32 %v1874_v15, %v836_v63 }
 0x163   :  { %v710_v4 = vpop.f32.mrf.mxu0  ;;  %v838_v5 = vpop.f32.mrf.mxu1 }
 0x164   :  { %1193 = vst.msk [vmem:[%s2199_s3 + $0x74] sm:$0xf] %vm1163_vm3, %v1432_v0  ;;  %1225 = vst.msk [vmem:[%s2199_s3 + $0xf4] sm:$0xf] %vm1163_vm3, %v1464_v1  ;;  %v873_v6 = vmax.f32 %v709_v2, 0.0  ;;  %v905_v7 = vmax.f32 %v837_v3, 0.0 }
 0x165   :  { %v711_v8 = vpop.f32.mrf.mxu0  ;;  %v839_v9 = vpop.f32.mrf.mxu1 }
 0x166   :  { %v1433_v10 = vpack.c.bf16 %v873_v6, %v873_v6  ;;  %v1465_v11 = vpack.c.bf16 %v905_v7, %v905_v7  ;;  %v712_v12 = vadd.f32 %v1874_v15, %v711_v8  ;;  %v840_v13 = vadd.f32 %v1874_v15, %v839_v9 }
 0x167   :  { %v713_v14 = vpop.f32.mrf.mxu0  ;;  %v841_v16 = vpop.f32.mrf.mxu1 }
 0x168   :  { %1194 = vst.msk [vmem:[%s2199_s3 + $0x78] sm:$0xf] %vm1163_vm3, %v1433_v10  ;;  %1226 = vst.msk [vmem:[%s2199_s3 + $0xf8] sm:$0xf] %vm1163_vm3, %v1465_v11  ;;  %v874_v17 = vmax.f32 %v712_v12, 0.0  ;;  %v906_v18 = vmax.f32 %v840_v13, 0.0 }
 0x16a   :  { %v1434_v19 = vpack.c.bf16 %v874_v17, %v874_v17  ;;  %v1466_v20 = vpack.c.bf16 %v906_v18, %v906_v18 }
 0x16c   :  { %1195 = vst.msk [vmem:[%s2199_s3 + $0x7c] sm:$0xf] %vm1163_vm3, %v1434_v19  ;;  %1227 = vst.msk [vmem:[%s2199_s3 + $0xfc] sm:$0xf] %vm1163_vm3, %v1466_v20 }

// kernel: centernet_forward.3
= control target key start
LH: loop header
LB: loop body
LE: loop exit
PB: predicated region body
PF: predicated region fallthrough
CT: control target
= control target key end

     0   :  { %v19962_v1 = vlaneseq  ;;  %vm19943_vm0 = vsmask.f32 3328  ;;  %vm186_vm1 = vsmask.f32 7440  ;;  %v20163_v56 = vmov 0  ;;  %s19933_s4 = inlined_call_operand.vmem [shape: bf16[4,9,64,64], index: 4, kind: input, shape index: {}]   ;;  %s19934_s3 = inlined_call_operand.vmem [shape: bf16[2,8,8,64], index: 3, kind: input, shape index: {}]   ;;  %s19935_s0 = inlined_call_operand.vmem [shape: bf16[2,9,9,64], index: 0, kind: input, shape index: {}]   ;;  %s19936_s2 = inlined_call_operand.vmem [shape: bf16[2,8,9,64], index: 2, kind: input, shape index: {}]   ;;  %s19937_s1 = inlined_call_operand.vmem [shape: bf16[2,9,8,64], index: 1, kind: input, shape index: {}]   ;;  %s19938_s5 = inlined_call_operand.vmem [shape: f32[4,1,64], index: 5, kind: input, shape index: {}]   ;;  %s19939_s6 = inlined_call_operand.vmem [shape: bf16[64,8], index: 6, kind: input, shape index: {}]   ;;  %s19940_s7 = inlined_call_operand.vmem [shape: f32[1,8], index: 7, kind: input, shape index: {}]   ;;  %s19941_s8 = inlined_call_operand.vmem [shape: f32[2,64,8], index: 8, kind: output, shape index: {}]  }
   0x1   :  { %v14783_v0 = vld [vmem:[%s19933_s4 + $0x38] sm:$0xff]   ;;  %v14785_v3 = vld [vmem:[%s19933_s4 + $0x30] sm:$0xff]   ;;  %v14787_v6 = vld [vmem:[%s19933_s4 + $0x28] sm:$0xff]   ;;  %vm19946_vm4 = vcmask 1043456   ;;  %vm19942_vm6 = vcmask 1044480   ;;  %vm19950_vm8 = vcmask 523264  }
   0x2   :  { %v14784_v2 = vld [vmem:[%s19933_s4 + $0x18] sm:$0xff]   ;;  %13598 = vmatprep.subr.bf16.mxu0 %v14783_v0  ;;  %v15200_v4 = vshrl.u32 %v19962_v1, 7  ;;  %v14786_v5 = vld [vmem:[%s19933_s4 + $0x10] sm:$0xff]   ;;  %v14788_v8 = vld [vmem:[%s19933_s4 + $0x8] sm:$0xff]   ;;  %vm19945_vm10 = vsmask.f32 4352 }
   0x3   :  { %13599 = vmatpush3.bf16.msra.mxu0 %v14783_v0  ;;  %13614 = vmatprep.subr.bf16.mxu1 %v14784_v2  ;;  %v14789_v9 = vld [vmem:[%s19933_s4 + $0x20] sm:$0xff]   ;;  %v15235_v15 = vld [vmem:[%s19934_s3 + $0x8] sm:$0xf]  ;;  %v15240_v16 = vld [vmem:[%s19934_s3 + $0xc] sm:$0xf] }
   0x4   :  { %13615 = vmatpush3.bf16.msra.mxu1 %v14784_v2  ;;  %13600 = vmatprep.subr.bf16.mxu0 %v14785_v3  ;;  %v15209_v7 = vadd.s32 8, %v15200_v4  ;;  %v45_v10 = vand.u32 7, %v15200_v4  ;;  %v14790_v11 = vld [vmem:[%s19933_s4] sm:$0xff]   ;;  %v15250_v18 = vld [vmem:[%s19935_s0 + $0x8] sm:$0xf]  ;;  %v15298_v50 = vld [vmem:[%s19933_s4 + $0x58] sm:$0xff]  }
   0x5   :  { %13616 = vmatprep.subr.bf16.mxu1 %v14786_v5  ;;  %v15225_v13 = vld [vmem:[%s19934_s3] sm:$0xf]  ;;  %v15230_v14 = vld [vmem:[%s19934_s3 + $0x4] sm:$0xf]  ;;  %v15255_v19 = vld [vmem:[%s19935_s0 + $0x10] sm:$0xf] }
   0x6   :  { %v52_v12 = vand.u32 7, %v15209_v7  ;;  %v15245_v17 = vld [vmem:[%s19935_s0] sm:$0xf]  ;;  %v15260_v20 = vld [vmem:[%s19935_s0 + $0x18] sm:$0xf]  ;;  %v170_v23 = vmax.bf16 %v15250_v18, %v15230_v14  ;;  %v171_v24 = vmax.bf16 %v15255_v19, %v15235_v15  ;;  %v203_v31 = vshrl.u32 %v15250_v18, 16  ;;  %vm15306_vm2 = vmor %vm19943_vm0, %vm186_vm1 }
   0x7   :  { %13601 = vmatpush3.bf16.msra.mxu0 %v14785_v3  ;;  %v177_v21 = vld [vmem:[%s19935_s0 + $0x4] sm:$0x1]  ;;  %v169_v22 = vmax.bf16 %v15245_v17, %v15225_v13  ;;  %v172_v25 = vmax.bf16 %v15260_v20, %v15240_v16  ;;  %v178_v26 = vld [vmem:[%s19935_s0 + $0xc] sm:$0x1]  ;;  %v179_v27 = vld [vmem:[%s19935_s0 + $0x14] sm:$0x1] }
   0x8   :  { %13617 = vmatpush3.bf16.msra.mxu1 %v14786_v5  ;;  %13602 = vmatprep.subr.bf16.mxu0 %v14787_v6  ;;  %v189_v28 = vshrl.u32 %v15245_v17, 16  ;;  %v192_v29 = vshll.u32 %v15245_v17, 16  ;;  %v198_v30 = vshll.u32 %v177_v21, 16  ;;  %v180_v32 = vld [vmem:[%s19935_s0 + $0x1c] sm:$0x1]  ;;  %v206_v33 = vshll.u32 %v15250_v18, 16  ;;  %vm15514_vm12 = vmand %vm19942_vm6, %vm19945_vm10 }
   0x9   :  { %13618 = vmatprep.subr.bf16.mxu1 %v14788_v8  ;;  %v212_v34 = vshll.u32 %v178_v26, 16  ;;  %v217_v35 = vshrl.u32 %v15255_v19, 16  ;;  %v220_v36 = vshll.u32 %v15255_v19, 16  ;;  %v205_v40 = vrot.slane %v203_v31, 4  ;;  %v15291_v41 = vld [vmem:[%s19935_s0 + $0x8] sm:$0xf] }
   0xa   :  { %v191_v37 = vrot.slane %v189_v28, 4  ;;  %v194_v38 = vrot.slane %v192_v29, 5  ;;  %v200_v39 = vrot.slane %v198_v30, 5  ;;  %v208_v42 = vrot.slane %v206_v33, 5  ;;  %v11705_v54 = vld [vmem:[%s19935_s0 + $0xc] sm:$0x1] }
   0xb   :  { %13603 = vmatpush3.bf16.msra.mxu0 %v14787_v6  ;;  %v214_v43 = vrot.slane %v212_v34, 5  ;;  %v219_v44 = vrot.slane %v217_v35, 4  ;;  %v222_v45 = vrot.slane %v220_v36, 5  ;;  %v226_v47 = vshll.u32 %v179_v27, 16  ;;  %v15313_v61 = vld [vmem:[%s19935_s0 + $0x10] sm:$0xf] }
   0xc   :  { %13619 = vmatpush3.bf16.msra.mxu1 %v14788_v8  ;;  %13604 = vmatprep.subr.bf16.mxu0 %v14789_v9  ;;  %v195_v46 = vor.u32 %v194_v38, %v191_v37  ;;  %v231_v48 = vshrl.u32 %v15260_v20, 16  ;;  %v234_v49 = vshll.u32 %v15260_v20, 16  ;;  %v209_v51 = vor.u32 %v208_v42, %v205_v40  ;;  %v15327_v15 = vld [vmem:[%s19933_s4 + $0x78] sm:$0xff]   ;;  %v11706_v21 = vld [vmem:[%s19935_s0 + $0x14] sm:$0x1] }
   0xd   :  { %13620 = vmatprep.subr.bf16.mxu1 %v14790_v11  ;;  %v223_v52 = vor.u32 %v222_v45, %v219_v44  ;;  %v240_v53 = vshll.u32 %v180_v32, 16  ;;  %v342_v55 = vshrl.u32 %v15291_v41, 16  ;;  %v20164_v56 = vsel %vm15306_vm2, 4294967295, %v20163_v56  ;;  %v15332_v19 = vld [vmem:[%s19935_s0 + $0x18] sm:$0xf] }
   0xe   :  { %20165 = vst [vmem:[#allocation2_spill] sm:$0xff] %v20164_v56  ;;  %v196_v57 = vrot.slane %v195_v46, 4  ;;  %v228_v58 = vrot.slane %v226_v47, 5  ;;  %v233_v59 = vrot.slane %v231_v48, 4  ;;  %v236_v60 = vrot.slane %v234_v49, 5 }
   0xf   :  { %13605 = vmatpush3.bf16.msra.mxu0 %v14789_v9  ;;  %v210_v62 = vrot.slane %v209_v51, 4  ;;  %v224_v63 = vrot.slane %v223_v52, 4  ;;  %v242_v0 = vrot.slane %v240_v53, 5  ;;  %v344_v2 = vrot.slane %v342_v55, 4  ;;  %v15342_v27 = vld [vmem:[%s19935_s0 + $0x20] sm:$0xf] }
  0x10   :  { %13621 = vmatpush3.bf16.msra.mxu1 %v14790_v11  ;;  %13630 = vmatprep.subr.bf16.mxu0 %v15298_v50  ;;  %v201_v3 = vsel %vm15306_vm2, %v196_v57, %v200_v39  ;;  %v237_v5 = vor.u32 %v236_v60, %v233_v59  ;;  %v345_v6 = vshll.u32 %v15291_v41, 16  ;;  %v351_v8 = vshll.u32 %v11705_v54, 16  ;;  %v11708_v38 = vld [vmem:[%s19935_s0 + $0x24] sm:$0x1]  ;;  %v469_v44 = vld [vmem:[%s19937_s1] sm:$0xf] }
  0x11   :  { %v215_v9 = vsel %vm15306_vm2, %v210_v62, %v214_v43  ;;  %v229_v11 = vsel %vm15306_vm2, %v224_v63, %v228_v58  ;;  %v308_v13 = vmax.bf16 %v201_v3, %v169_v22  ;;  %v356_v14 = vshrl.u32 %v15313_v61, 16  ;;  %13646 = vmatprep.subr.bf16.mxu1 %v15327_v15  ;;  %v15372_v45 = vld [vmem:[%s19936_s2] sm:$0xf]  ;;  %v11713_v51 = vld [vmem:[%s19937_s1 + $0x4] sm:$0xf] }
  0x12   :  { %v238_v17 = vrot.slane %v237_v5, 4  ;;  %v309_v18 = vmax.bf16 %v215_v9, %v170_v23  ;;  %v347_v26 = vrot.slane %v345_v6, 5  ;;  %v15337_v22 = vmax.bf16 %v229_v11, %v171_v24  ;;  %v11707_v23 = vld [vmem:[%s19935_s0 + $0x1c] sm:$0x1]  ;;  %v15384_v52 = vld [vmem:[%s19936_s2 + $0x8] sm:$0xf] }
  0x13   :  { %v325_v28 = vmax.bf16 %v15291_v41, %v308_v13  ;;  %v358_v29 = vrot.slane %v356_v14, 4  ;;  %v359_v30 = vshll.u32 %v15313_v61, 16  ;;  %v353_v33 = vrot.slane %v351_v8, 5  ;;  %v518_v53 = vld [vmem:[%s19936_s2 + $0x4] sm:$0x1] }
  0x14   :  { %v243_v24 = vsel %vm15306_vm2, %v238_v17, %v242_v0  ;;  %v326_v31 = vmax.bf16 %v15313_v61, %v309_v18  ;;  %v348_v32 = vor.u32 %v347_v26, %v344_v2  ;;  %v365_v36 = vshll.u32 %v11706_v21, 16  ;;  %v470_v2 = vld [vmem:[%s19937_s1 + $0x4] sm:$0xf]  ;;  %v11714_v18 = vld [vmem:[%s19937_s1 + $0x8] sm:$0xf] }
  0x15   :  { %v15356_v34 = vmax.bf16 %v243_v24, %v172_v25  ;;  %v361_v35 = vrot.slane %v359_v30, 5  ;;  %v370_v37 = vshrl.u32 %v15332_v19, 16  ;;  %v373_v40 = vshll.u32 %v15332_v19, 16  ;;  %v519_v21 = vld [vmem:[%s19936_s2 + $0xc] sm:$0x1] }
  0x16   :  { %v349_v39 = vrot.slane %v348_v32, 4  ;;  %v379_v41 = vshll.u32 %v11707_v23, 16  ;;  %v384_v42 = vshrl.u32 %v15342_v27, 16  ;;  %v327_v43 = vmax.bf16 %v15332_v19, %v15337_v22  ;;  %v15418_v23 = vld [vmem:[%s19936_s2 + $0x10] sm:$0xf] }
  0x17   :  { %v362_v16 = vor.u32 %v361_v35, %v358_v29  ;;  %v367_v20 = vrot.slane %v365_v36, 5  ;;  %v372_v25 = vrot.slane %v370_v37, 4  ;;  %v328_v46 = vmax.bf16 %v15342_v27, %v15356_v34  ;;  %v472_v32 = vld [vmem:[%s19937_s1 + $0xc] sm:$0xf] }
  0x18   :  { %v354_v47 = vsel %vm15306_vm2, %v349_v39, %v353_v33  ;;  %v375_v48 = vrot.slane %v373_v40, 5  ;;  %v386_v49 = vrot.slane %v384_v42, 4  ;;  %v387_v55 = vshll.u32 %v15342_v27, 16  ;;  %v471_v27 = vld [vmem:[%s19937_s1 + $0x8] sm:$0xf] }
  0x19   :  { %v363_v54 = vrot.slane %v362_v16, 4  ;;  %v393_v57 = vshll.u32 %v11708_v38, 16  ;;  %v461_v58 = vmax.bf16 %v354_v47, %v325_v28  ;;  %v381_v60 = vrot.slane %v379_v41, 5  ;;  %v11715_v35 = vld [vmem:[%s19937_s1 + $0xc] sm:$0xf] }
  0x1a   :  { %v376_v59 = vor.u32 %v375_v48, %v372_v25  ;;  %v527_v61 = vshrl.u32 %v15372_v45, 16  ;;  %v530_v62 = vshll.u32 %v15372_v45, 16  ;;  %v389_v0 = vrot.slane %v387_v55, 5  ;;  %v505_v42 = vld [vmem:[%s19936_s2 + $0x18] sm:$0xf] }
  0x1b   :  { %v368_v63 = vsel %vm15306_vm2, %v363_v54, %v367_v20  ;;  %v477_v3 = vmax.bf16 %v469_v44, %v461_v58  ;;  %v536_v5 = vshll.u32 %v518_v53, 16  ;;  %vm15399_vm3 = vcmp.ge.s32.totalorder %v45_v10, 1  ;;  %v521_v48 = vld [vmem:[%s19936_s2 + $0x1c] sm:$0x1] }
  0x1c   :  { %v377_v6 = vrot.slane %v376_v59, 4  ;;  %v462_v8 = vmax.bf16 %v368_v63, %v326_v31  ;;  %v529_v9 = vrot.slane %v527_v61, 4  ;;  %v532_v11 = vrot.slane %v530_v62, 5  ;;  %vm748_vm5 = vmpackc.low %vm15399_vm3, %vm15399_vm3 }
  0x1d   :  { %v390_v14 = vor.u32 %v389_v0, %v386_v49  ;;  %v395_v17 = vrot.slane %v393_v57, 5  ;;  %v494_v19 = vmax.bf16 %v11713_v51, %v477_v3  ;;  %v541_v26 = vshrl.u32 %v15384_v52, 16  ;;  %v11716_v51 = vld [vmem:[%s19937_s1 + $0x10] sm:$0xf] }
  0x1e   :  { %v382_v22 = vsel %vm15306_vm2, %v377_v6, %v381_v60  ;;  %v478_v28 = vmax.bf16 %v470_v2, %v462_v8  ;;  %v533_v29 = vor.u32 %v532_v11, %v529_v9  ;;  %v544_v30 = vshll.u32 %v15384_v52, 16 }
  0x1f   :  { %v391_v24 = vrot.slane %v390_v14, 4  ;;  %v463_v31 = vmax.bf16 %v382_v22, %v327_v43  ;;  %v538_v33 = vrot.slane %v536_v5, 5  ;;  %v543_v34 = vrot.slane %v541_v26, 4  ;;  %v520_v43 = vld [vmem:[%s19936_s2 + $0x14] sm:$0x1] }
  0x20   :  { %v495_v36 = vmax.bf16 %v11714_v18, %v478_v28  ;;  %v534_v37 = vrot.slane %v533_v29, 4  ;;  %v546_v38 = vrot.slane %v544_v30, 5  ;;  %v550_v39 = vshll.u32 %v519_v21, 16  ;;  %v15476_v29 = vld [vmem:[%s19934_s3 + $0x14] sm:$0xf] }
  0x21   :  { %v396_v40 = vsel %vm15306_vm2, %v391_v24, %v395_v17  ;;  %v479_v41 = vmax.bf16 %v471_v27, %v463_v31  ;;  %v555_v16 = vshrl.u32 %v15418_v23, 16  ;;  %v558_v20 = vshll.u32 %v15418_v23, 16  ;;  %v181_v31 = vld [vmem:[%s19935_s0 + $0x24] sm:$0x1] }
  0x22   :  { %v464_v25 = vmax.bf16 %v396_v40, %v328_v46  ;;  %v510_v44 = vmax.bf16 %v15372_v45, %v494_v19  ;;  %v511_v47 = vmax.bf16 %v15384_v52, %v495_v36  ;;  %v547_v49 = vor.u32 %v546_v38, %v543_v34  ;;  %v15460_v19 = vld [vmem:[%s19935_s0 + $0x20] sm:$0xf]  ;;  %v182_v38 = vld [vmem:[%s19935_s0 + $0x2c] sm:$0x1] }
  0x23   :  { %v496_v53 = vmax.bf16 %v11715_v35, %v479_v41  ;;  %v552_v54 = vrot.slane %v550_v39, 5  ;;  %v557_v55 = vrot.slane %v555_v16, 4  ;;  %v560_v57 = vrot.slane %v558_v20, 5 }
  0x24   :  { %v480_v58 = vmax.bf16 %v472_v32, %v464_v25  ;;  %v548_v59 = vrot.slane %v547_v49, 4  ;;  %v564_v46 = vshll.u32 %v520_v43, 16  ;;  %v569_v60 = vshrl.u32 %v505_v42, 16 }
  0x25   :  { %v539_v45 = vsel %vm15306_vm2, %v534_v37, %v538_v33  ;;  %v561_v52 = vor.u32 %v560_v57, %v557_v55  ;;  %v572_v61 = vshll.u32 %v505_v42, 16  ;;  %v578_v62 = vshll.u32 %v521_v48, 16  ;;  %v166_v37 = vld [vmem:[%s19935_s0 + $0x28] sm:$0xf] }
  0x26   :  { %v497_v63 = vmax.bf16 %v11716_v51, %v480_v58  ;;  %v553_v0 = vsel %vm15306_vm2, %v548_v59, %v552_v54  ;;  %v566_v2 = vrot.slane %v564_v46, 5  ;;  %v571_v3 = vrot.slane %v569_v60, 4 }
  0x27   :  { %v562_v5 = vrot.slane %v561_v52, 4  ;;  %v574_v6 = vrot.slane %v572_v61, 5  ;;  %v512_v8 = vmax.bf16 %v15418_v23, %v496_v53  ;;  %v646_v9 = vmax.bf16 %v539_v45, %v510_v44  ;;  %v15471_v23 = vld [vmem:[%s19934_s3 + $0x10] sm:$0xf] }
  0x28   :  { %v647_v11 = vmax.bf16 %v553_v0, %v511_v47  ;;  %v580_v18 = vrot.slane %v578_v62, 5  ;;  %vm138_vm7 = vcmp.ge.s32.totalorder %v52_v12, 1  ;;  %v513_v13 = vmax.bf16 %v505_v42, %v497_v63  ;;  %v15510_v47 = vld [vmem:[%s19935_s0 + $0x28] sm:$0xf]  ;;  %v15535_v0 = vld [vmem:[%s19935_s0 + $0x30] sm:$0xf] }
  0x29   :  { %v567_v14 = vsel %vm15306_vm2, %v562_v5, %v566_v2  ;;  %v575_v17 = vor.u32 %v574_v6, %v571_v3  ;;  %vm749_vm9 = vmpackc.low %vm138_vm7, %vm138_vm7  ;;  %v15144_v26 = vmov 0   ;;  %v245_v32 = vshrl.u32 %v15460_v19, 16 }
  0x2a   :  { %v11721_v21 = vcombine.low %v647_v11, %v647_v11  ;;  %v15463_v22 = vsel %vm748_vm5, 65537, %v15144_v26  ;;  %v15466_v28 = vsel %vm749_vm9, 65537, %v15144_v26  ;;  %v648_v30 = vmax.bf16 %v567_v14, %v512_v8  ;;  %v11709_v8 = vld [vmem:[%s19935_s0 + $0x2c] sm:$0x1] }
  0x2b   :  { %v576_v27 = vrot.slane %v575_v17, 4  ;;  %v11725_v36 = vcombine.low %v15463_v22, %v15466_v28  ;;  %vm15499_vm11 = vcmp.le.s32.totalorder %v45_v10, 6  ;;  %v173_v41 = vmax.bf16 %v15460_v19, %v15471_v23  ;;  %v15555_v23 = vld [vmem:[%s19936_s2 + $0x20] sm:$0xf] }
  0x2c   :  { %v15479_v24 = vsel %vm19946_vm4, %v646_v9, %v11721_v21  ;;  %v174_v42 = vmax.bf16 %v166_v37, %v15476_v29  ;;  %v247_v43 = vrot.slane %v245_v32, 4  ;;  %v248_v25 = vshll.u32 %v15460_v19, 16  ;;  %vm1057_vm1 = vmpackc.low %vm15499_vm11, %vm15499_vm11 }
  0x2d   :  { %20168 = vst [vmem:[#allocation3_spill] sm:$0xff] %v15479_v24  ;;  %v581_v33 = vsel %vm15306_vm2, %v576_v27, %v580_v18  ;;  %v692_v34 = vshrl.u32 %v15479_v24, 16  ;;  %v695_v35 = vshll.u32 %v15479_v24, 16  ;;  %v254_v44 = vshll.u32 %v181_v31, 16 }
  0x2e   :  { %v649_v39 = vmax.bf16 %v581_v33, %v513_v13  ;;  %v20171_v48 = vmov 0  ;;  %v259_v49 = vshrl.u32 %v166_v37, 16  ;;  %v262_v51 = vshll.u32 %v166_v37, 16  ;;  %v11710_v13 = vld [vmem:[%s19935_s0 + $0x34] sm:$0x1] }
  0x2f   :  { %v694_v16 = vrot.slane %v692_v34, 3  ;;  %v697_v20 = vrot.slane %v695_v35, 4  ;;  %v20172_v48 = vsel %vm15514_vm12, 4294967295, %v20171_v48  ;;  %v268_v53 = vshll.u32 %v182_v38, 16  ;;  %v15633_v37 = vld [vmem:[%s19935_s0 + $0x30] sm:$0xf] }
  0x30   :  { %v11722_v10 = vcombine.low %v649_v39, %v649_v39  ;;  %20173 = vst [vmem:[#allocation4_spill] sm:$0xff] %v20172_v48  ;;  %vm15518_vm13 = vcmp.ne.s16.totalorder %v11725_v36, 0  ;;  %v20174_v55 = vmov 0  ;;  %v250_v57 = vrot.slane %v248_v25, 5 }
  0x31   :  { %v698_v54 = vor.u32 %v697_v20, %v694_v16  ;;  %v20175_v55 = vsel %vm15518_vm13, 4294967295, %v20174_v55  ;;  %v256_v58 = vrot.slane %v254_v44, 5  ;;  %v261_v46 = vrot.slane %v259_v49, 4  ;;  %v15586_v20 = vld [vmem:[%s19936_s2 + $0x28] sm:$0xf] }
  0x32   :  { %20176 = vst [vmem:[#allocation5_spill] sm:$0xff] %v20175_v55  ;;  %v15523_v59 = vsel %vm19946_vm4, %v648_v30, %v11722_v10  ;;  %v264_v60 = vrot.slane %v262_v51, 5  ;;  %v398_v45 = vshrl.u32 %v15510_v47, 16  ;;  %vm19944_vm14 = vsmask.f32 7424 }
  0x33   :  { %20177 = vst [vmem:[#allocation6_spill] sm:$0xff] %v15523_v59  ;;  %v699_v52 = vshrl.u32 %v15523_v59, 16  ;;  %v702_v61 = vshll.u32 %v15523_v59, 16  ;;  %v15530_v62 = vsel %vm15514_vm12, 0, %v698_v54  ;;  %v251_v63 = vor.u32 %v250_v57, %v247_v43  ;;  %v523_v44 = vld [vmem:[%s19936_s2 + $0x2c] sm:$0x1] }
  0x34   :  { %v805_v2 = vshll.u32 %v15530_v62, 16  ;;  %v780_v3 = vsel %vm15518_vm13, %v15530_v62, 0  ;;  %v265_v5 = vor.u32 %v264_v60, %v261_v46  ;;  %v270_v6 = vrot.slane %v268_v53, 5 }
  0x35   :  { %v701_v9 = vrot.slane %v699_v52, 3  ;;  %v704_v11 = vrot.slane %v702_v61, 4  ;;  %v803_v14 = vshrl.u32 %v15530_v62, 16  ;;  %13622 = vmatprep.mubr.msk.bf16.mxu1 %vm19950_vm8, %v780_v3  ;;  %v252_v17 = vrot.slane %v251_v63, 4  ;;  %v11717_v61 = vld [vmem:[%s19937_s1 + $0x14] sm:$0xf] }
  0x36   :  { %v807_v18 = vrot.slane %v805_v2, 1  ;;  %v266_v19 = vrot.slane %v265_v5, 4  ;;  %v400_v21 = vrot.slane %v398_v45, 4  ;;  %v401_v27 = vshll.u32 %v15510_v47, 16 }
  0x37   :  { %v15557_v29 = vor.u32 %v704_v11, %v701_v9  ;;  %v257_v30 = vsel %vm15306_vm2, %v252_v17, %v256_v58  ;;  %v407_v31 = vshll.u32 %v11709_v8, 16  ;;  %v412_v32 = vshrl.u32 %v15535_v0, 16 }
  0x38   :  { %v271_v33 = vsel %vm15306_vm2, %v266_v19, %v270_v6  ;;  %v312_v34 = vmax.bf16 %v257_v30, %v173_v41  ;;  %v403_v35 = vrot.slane %v401_v27, 5  ;;  %vm15570_vm15 = vcmp.le.s32.totalorder %v52_v12, 6  ;;  %v522_v41 = vld [vmem:[%s19936_s2 + $0x24] sm:$0x1]  ;;  %v15621_v19 = vld [vmem:[%s19934_s3 + $0x18] sm:$0xf] }
  0x39   :  { %v15566_v36 = vsel %vm19945_vm10, %v698_v54, %v15557_v29  ;;  %v313_v38 = vmax.bf16 %v271_v33, %v174_v42  ;;  %v409_v39 = vrot.slane %v407_v31, 5  ;;  %v808_v43 = vor.u32 %v807_v18, %v803_v14  ;;  %vm1058_vm3 = vmpackc.low %vm15570_vm15, %vm15570_vm15 }
  0x3a   :  { %v810_v16 = vshll.u32 %v15566_v36, 16  ;;  %v404_v7 = vor.u32 %v403_v35, %v400_v21  ;;  %v414_v12 = vrot.slane %v412_v32, 4  ;;  %v329_v40 = vmax.bf16 %v15510_v47, %v312_v34  ;;  %v473_v47 = vld [vmem:[%s19937_s1 + $0x10] sm:$0xf]  ;;  %v474_v21 = vld [vmem:[%s19937_s1 + $0x14] sm:$0xf] }
  0x3b   :  { %v415_v42 = vshll.u32 %v15535_v0, 16  ;;  %v421_v25 = vshll.u32 %v11710_v13, 16  ;;  %v583_v10 = vshrl.u32 %v15555_v23, 16  ;;  %v15597_v51 = vsel %vm1057_vm1, 65537, %v15144_v26 }
  0x3c   :  { %v812_v49 = vrot.slane %v810_v16, 1  ;;  %v405_v53 = vrot.slane %v404_v7, 4  ;;  %v586_v54 = vshll.u32 %v15555_v23, 16  ;;  %v814_v57 = vshrl.u32 %v15566_v36, 16 }
  0x3d   :  { %v330_v58 = vmax.bf16 %v15535_v0, %v313_v38  ;;  %v417_v46 = vrot.slane %v415_v42, 5  ;;  %v585_v60 = vrot.slane %v583_v10, 4  ;;  %v592_v3 = vshll.u32 %v522_v41, 16 }
  0x3e   :  { %v813_v45 = vsel %vm19944_vm14, %v808_v43, %v812_v49  ;;  %v410_v52 = vsel %vm15306_vm2, %v405_v53, %v409_v39  ;;  %v588_v63 = vrot.slane %v586_v54, 5  ;;  %v423_v5 = vrot.slane %v421_v25, 5  ;;  %v11718_v39 = vld [vmem:[%s19937_s1 + $0x18] sm:$0xf]  ;;  %v183_v54 = vld [vmem:[%s19935_s0 + $0x34] sm:$0x1] }
  0x3f   :  { %13606 = vmatprep.mubr.msk.bf16.mxu0 %vm19950_vm8, %v813_v45  ;;  %v418_v0 = vor.u32 %v417_v46, %v414_v12  ;;  %v465_v6 = vmax.bf16 %v410_v52, %v329_v40  ;;  %v597_v8 = vshrl.u32 %v15586_v20, 16  ;;  %v600_v11 = vshll.u32 %v15586_v20, 16  ;;  %v15643_v12 = vld [vmem:[%s19934_s3 + $0x1c] sm:$0xf]  ;;  %v15656_v53 = vld [vmem:[%s19935_s0 + $0x38] sm:$0xf] }
  0x40   :  { %v589_v9 = vor.u32 %v588_v63, %v585_v60  ;;  %v606_v17 = vshll.u32 %v523_v44, 16  ;;  %v35_v18 = vadd.s32 16, %v15200_v4  ;;  %v36_v31 = vadd.s32 24, %v15200_v4 }
  0x41   :  { %v419_v13 = vrot.slane %v418_v0, 4  ;;  %v481_v27 = vmax.bf16 %v473_v47, %v465_v6  ;;  %v599_v30 = vrot.slane %v597_v8, 4  ;;  %v15628_v32 = vsel %vm1058_vm3, 65537, %v15144_v26  ;;  %v14794_v8 = vld [vmem:[%s19933_s4 + $0x70] sm:$0xff]  }
  0x42   :  { %v594_v33 = vrot.slane %v592_v3, 5  ;;  %v602_v34 = vrot.slane %v600_v11, 5  ;;  %v59_v35 = vand.u32 7, %v35_v18  ;;  %v590_v43 = vrot.slane %v589_v9, 4  ;;  %v15683_v3 = vld [vmem:[%s19935_s0 + $0x38] sm:$0xf] }
  0x43   :  { %v424_v38 = vsel %vm15306_vm2, %v419_v13, %v423_v5  ;;  %v498_v41 = vmax.bf16 %v11717_v61, %v481_v27  ;;  %v66_v7 = vand.u32 7, %v36_v31  ;;  %v608_v25 = vrot.slane %v606_v17, 5  ;;  %v184_v61 = vld [vmem:[%s19935_s0 + $0x3c] sm:$0x1]  ;;  %v15707_v27 = vld [vmem:[%s19935_s0 + $0x40] sm:$0xf] }
  0x44   :  { %v466_v40 = vmax.bf16 %v424_v38, %v330_v58  ;;  %v603_v42 = vor.u32 %v602_v34, %v599_v30  ;;  %vm139_vm5 = vcmp.ge.s32.totalorder %v59_v35, 1  ;;  %v15647_v44 = vor.u32 %v814_v57, %v812_v49  ;;  %v11711_v11 = vld [vmem:[%s19935_s0 + $0x3c] sm:$0x1] }
  0x45   :  { %vm140_vm7 = vcmp.ge.s32.totalorder %v66_v7, 1  ;;  %vm15649_vm9 = vcmp.le.s32.totalorder %v59_v35, 6  ;;  %vm750_vm11 = vmpackc.low %vm139_vm5, %vm139_vm5  ;;  %v175_v47 = vmax.bf16 %v15633_v37, %v15621_v19  ;;  %v514_v58 = vmax.bf16 %v15555_v23, %v498_v41 }
  0x46   :  { %v482_v49 = vmax.bf16 %v474_v21, %v466_v40  ;;  %v604_v46 = vrot.slane %v603_v42, 4  ;;  %vm751_vm15 = vmpackc.low %vm140_vm7, %vm140_vm7  ;;  %v15665_v60 = vsel %vm750_vm11, 65537, %v15144_v26  ;;  %v595_v45 = vsel %vm15306_vm2, %v590_v43, %v594_v33  ;;  %v11712_v42 = vld [vmem:[%s19935_s0 + $0x44] sm:$0x1] }
  0x47   :  { %v15670_v52 = vsel %vm751_vm15, 65537, %v15144_v26  ;;  %vm1059_vm1 = vmpackc.low %vm15649_vm9, %vm15649_vm9  ;;  %v273_v23 = vshrl.u32 %v15633_v37, 16  ;;  %v276_v63 = vshll.u32 %v15633_v37, 16  ;;  %v176_v9 = vmax.bf16 %v15656_v53, %v15643_v12 }
  0x48   :  { %v499_v0 = vmax.bf16 %v11718_v39, %v482_v49  ;;  %v609_v5 = vsel %vm15306_vm2, %v604_v46, %v608_v25  ;;  %v11726_v6 = vcombine.low %v15665_v60, %v15670_v52  ;;  %vm15697_vm3 = vcmp.le.s32.totalorder %v66_v7, 6  ;;  %v14796_v46 = vld [vmem:[%s19933_s4 + $0x68] sm:$0xff]  }
  0x49   :  { %v15702_v18 = vsel %vm1059_vm1, 65537, %v15144_v26  ;;  %v275_v19 = vrot.slane %v273_v23, 4  ;;  %v278_v13 = vrot.slane %v276_v63, 5  ;;  %v282_v21 = vshll.u32 %v183_v54, 16  ;;  %vm1060_vm7 = vmpackc.low %vm15697_vm3, %vm15697_vm3 }
  0x4a   :  { %v515_v30 = vmax.bf16 %v15586_v20, %v499_v0  ;;  %v650_v31 = vmax.bf16 %v595_v45, %v514_v58  ;;  %vm15710_vm5 = vcmp.ne.s16.totalorder %v11726_v6, 0  ;;  %v20184_v33 = vmov 0 }
  0x4b   :  { %v20185_v33 = vsel %vm15710_vm5, 4294967295, %v20184_v33  ;;  %v287_v34 = vshrl.u32 %v15656_v53, 16  ;;  %v781_v35 = vsel %vm15710_vm5, %v15566_v36, 0  ;;  %v279_v37 = vor.u32 %v278_v13, %v275_v19  ;;  %v524_v19 = vld [vmem:[%s19936_s2 + $0x34] sm:$0x1] }
  0x4c   :  { %20186 = vst [vmem:[#allocation7_spill] sm:$0xff] %v20185_v33  ;;  %v284_v38 = vrot.slane %v282_v21, 5  ;;  %v290_v39 = vshll.u32 %v15656_v53, 16  ;;  %v651_v41 = vmax.bf16 %v609_v5, %v515_v30  ;;  %13623 = vmatmul.mubr.msk.bf16.vlgmr.msra.gmra.mxu1 %vm19950_vm8, %v781_v35  ;;  %v296_v20 = vshll.u32 %v184_v61, 16  ;;  %v15729_v53 = vld [vmem:[%s19936_s2 + $0x30] sm:$0xf] }
  0x4d   :  { %v289_v43 = vrot.slane %v287_v34, 4  ;;  %v426_v7 = vshrl.u32 %v15683_v3, 16  ;;  %13647 = vmatpush3.bf16.msra.mxu1 %v15327_v15  ;;  %v280_v12 = vrot.slane %v279_v37, 4  ;;  %v429_v25 = vshll.u32 %v15683_v3, 16  ;;  %v15749_v35 = vld [vmem:[%s19936_s2 + $0x38] sm:$0xf] }
  0x4e   :  { %v292_v40 = vrot.slane %v290_v39, 5  ;;  %v435_v10 = vshll.u32 %v11711_v11, 16  ;;  %v11723_v54 = vcombine.low %v651_v41, %v651_v41  ;;  %13648 = vmatprep.subr.bf16.mxu1 %v14794_v8  ;;  %v298_v49 = vrot.slane %v296_v20, 5  ;;  %v14798_v39 = vld [vmem:[%s19933_s4 + $0x60] sm:$0xff]  }
  0x4f   :  { %v428_v58 = vrot.slane %v426_v7, 4  ;;  %v440_v15 = vshrl.u32 %v15707_v27, 16  ;;  %v285_v45 = vsel %vm15306_vm2, %v280_v12, %v284_v38  ;;  %v431_v23 = vrot.slane %v429_v25, 5 }
  0x50   :  { %v293_v61 = vor.u32 %v292_v40, %v289_v43  ;;  %v437_v63 = vrot.slane %v435_v10, 5  ;;  %v15738_v0 = vsel %vm19946_vm4, %v650_v31, %v11723_v54  ;;  %v314_v5 = vmax.bf16 %v285_v45, %v175_v47  ;;  %v15770_v10 = vld [vmem:[%s19933_s4 + $0xb8] sm:$0xff]  }
  0x51   :  { %20187 = vst [vmem:[#allocation8_spill] sm:$0xff] %v15738_v0  ;;  %v442_v6 = vrot.slane %v440_v15, 4  ;;  %v443_v11 = vshll.u32 %v15707_v27, 16  ;;  %v707_v13 = vshrl.u32 %v15738_v0, 16  ;;  %v710_v21 = vshll.u32 %v15738_v0, 16  ;;  %13649 = vmatpush3.bf16.msra.mxu1 %v14794_v8 }
  0x52   :  { %v294_v30 = vrot.slane %v293_v61, 4  ;;  %v432_v34 = vor.u32 %v431_v23, %v428_v58  ;;  %v331_v47 = vmax.bf16 %v15683_v3, %v314_v5  ;;  %v449_v37 = vshll.u32 %v11712_v42, 16  ;;  %13650 = vmatprep.subr.bf16.mxu1 %v14796_v46  ;;  %v475_v8 = vld [vmem:[%s19937_s1 + $0x18] sm:$0xf]  ;;  %v525_v42 = vld [vmem:[%s19936_s2 + $0x3c] sm:$0x1] }
  0x53   :  { %v445_v31 = vrot.slane %v443_v11, 5  ;;  %v611_v38 = vshrl.u32 %v15729_v53, 16  ;;  %v709_v41 = vrot.slane %v707_v13, 3  ;;  %v712_v43 = vrot.slane %v710_v21, 4  ;;  %v476_v5 = vld [vmem:[%s19937_s1 + $0x1c] sm:$0xf] }
  0x54   :  { %v299_v20 = vsel %vm15306_vm2, %v294_v30, %v298_v49  ;;  %v433_v7 = vrot.slane %v432_v34, 4  ;;  %v451_v40 = vrot.slane %v449_v37, 5  ;;  %v614_v58 = vshll.u32 %v15729_v53, 16 }
  0x55   :  { %v315_v3 = vmax.bf16 %v299_v20, %v176_v9  ;;  %v446_v12 = vor.u32 %v445_v31, %v442_v6  ;;  %v613_v25 = vrot.slane %v611_v38, 4  ;;  %v15772_v54 = vor.u32 %v712_v43, %v709_v41  ;;  %v11719_v9 = vld [vmem:[%s19937_s1 + $0x1c] sm:$0xf]  ;;  %13651 = vmatpush3.bf16.msra.mxu1 %v14796_v46  ;;  %v11720_v41 = vld [vmem:[%s19937_s1 + $0x20] sm:$0xf] }
  0x56   :  { %v438_v49 = vsel %vm15306_vm2, %v433_v7, %v437_v63  ;;  %v620_v15 = vshll.u32 %v524_v19, 16  ;;  %v625_v6 = vshrl.u32 %v15749_v35, 16  ;;  %13652 = vmatprep.subr.bf16.mxu1 %v14798_v39  ;;  %v616_v46 = vrot.slane %v614_v58, 5 }
  0x57   :  { %v332_v45 = vmax.bf16 %v15707_v27, %v315_v3  ;;  %v447_v61 = vrot.slane %v446_v12, 4  ;;  %v467_v23 = vmax.bf16 %v438_v49, %v331_v47  ;;  %v15788_v63 = vsel %vm19945_vm10, %v15557_v29, %v15772_v54  ;;  %v14793_v29 = vld [vmem:[%s19933_s4 + $0x50] sm:$0xff]  }
  0x58   :  { %v1068_v27 = vsel %vm1060_vm7, 65537, %v15144_v26  ;;  %v628_v11 = vshll.u32 %v15749_v35, 16  ;;  %v818_v19 = vshll.u32 %v15788_v63, 16  ;;  %v627_v30 = vrot.slane %v625_v6, 4 }
  0x59   :  { %v452_v13 = vsel %vm15306_vm2, %v447_v61, %v451_v40  ;;  %v483_v21 = vmax.bf16 %v475_v8, %v467_v23  ;;  %v617_v47 = vor.u32 %v616_v46, %v613_v25  ;;  %v634_v17 = vshll.u32 %v525_v42, 16  ;;  %13653 = vmatpush3.bf16.msra.mxu1 %v14798_v39 }
  0x5a   :  { %v468_v34 = vmax.bf16 %v452_v13, %v332_v45  ;;  %v630_v31 = vrot.slane %v628_v11, 5  ;;  %vm1085_vm9 = vcmask 1040384   ;;  %v15805_v37 = vcombine.low %v15597_v51, %v15628_v32  ;;  %13678 = vmatprep.subr.bf16.mxu1 %v15770_v10 }
  0x5b   :  { %v820_v38 = vrot.slane %v818_v19, 1  ;;  %v500_v43 = vmax.bf16 %v11719_v9, %v483_v21  ;;  %v622_v20 = vrot.slane %v620_v15, 5  ;;  %v618_v8 = vrot.slane %v617_v47, 4 }
  0x5c   :  { %v484_v7 = vmax.bf16 %v476_v5, %v468_v34  ;;  %v631_v3 = vor.u32 %v630_v31, %v627_v30  ;;  %v636_v12 = vrot.slane %v634_v17, 5  ;;  %v15815_v39 = vrot.slane %v803_v14, 4  ;;  %v14797_v31 = vld [vmem:[%s19933_s4 + $0x40] sm:$0xff]  }
  0x5d   :  { %v15819_v51 = vsel %vm19944_vm14, %v15647_v44, %v820_v38  ;;  %v15822_v32 = vcombine.low %v15702_v18, %v1068_v27  ;;  %v822_v40 = vshrl.u32 %v15788_v63, 16  ;;  %v516_v25 = vmax.bf16 %v15729_v53, %v500_v43  ;;  %v14795_v18 = vld [vmem:[%s19933_s4 + $0x48] sm:$0xff]  }
  0x5e   :  { %13607 = vmatmul.mubr.msk.bf16.vlgmr.msra.gmra.mxu0 %vm19950_vm8, %v15819_v51  ;;  %v501_v42 = vmax.bf16 %v11720_v41, %v484_v7  ;;  %v632_v49 = vrot.slane %v631_v3, 4  ;;  %v37_v9 = vadd.s32 32, %v15200_v4  ;;  %v623_v14 = vsel %vm15306_vm2, %v618_v8, %v622_v20 }
  0x5f   :  { %13631 = vmatpush3.bf16.msra.mxu0 %v15298_v50  ;;  %v38_v44 = vadd.s32 40, %v15200_v4  ;;  %v39_v58 = vadd.s32 48, %v15200_v4  ;;  %v40_v15 = vadd.s32 56, %v15200_v4  ;;  %v1086_v61 = vrot.slane %v15805_v37, 7 }
  0x60   :  { %13632 = vmatprep.subr.bf16.mxu0 %v14793_v29  ;;  %v517_v53 = vmax.bf16 %v15749_v35, %v501_v42  ;;  %v637_v45 = vsel %vm15306_vm2, %v632_v49, %v636_v12  ;;  %v73_v50 = vand.u32 7, %v37_v9  ;;  %v1087_v27 = vrot.slane %v15822_v32, 7 }
  0x61   :  { %v80_v23 = vand.u32 7, %v38_v44  ;;  %v87_v5 = vand.u32 7, %v39_v58  ;;  %v94_v6 = vand.u32 7, %v40_v15  ;;  %v652_v46 = vmax.bf16 %v623_v14, %v516_v25 }
  0x62   :  { %v653_v11 = vmax.bf16 %v637_v45, %v517_v53  ;;  %vm141_vm11 = vcmp.ge.s32.totalorder %v73_v50, 1  ;;  %vm15843_vm15 = vcmp.le.s32.totalorder %v73_v50, 6  ;;  %v15849_v4 = vor.u32 %v822_v40, %v820_v38 }
  0x63   :  { %13633 = vmatpush3.bf16.msra.mxu0 %v14793_v29  ;;  %vm142_vm1 = vcmp.ge.s32.totalorder %v80_v23, 1  ;;  %vm15851_vm3 = vcmp.le.s32.totalorder %v80_v23, 6  ;;  %vm752_vm7 = vmpackc.low %vm141_vm11, %vm141_vm11  ;;  %vm15855_vm6 = vcmp.ne.s16.totalorder %v1086_v61, 0  ;;  %v20192_v21 = vmov 0 }
  0x64   :  { %v20193_v21 = vsel %vm15855_vm6, 4294967295, %v20192_v21  ;;  %v11724_v30 = vcombine.low %v653_v11, %v653_v11  ;;  %vm753_vm0 = vmpackc.low %vm142_vm1, %vm142_vm1  ;;  %v15860_v34 = vsel %vm752_vm7, 65537, %v15144_v26  ;;  %13634 = vmatprep.subr.bf16.mxu0 %v14795_v18  ;;  %vm15862_vm14 = vcmp.ge.s32.totalorder %v87_v5, 1 }
  0x65   :  { %20194 = vst [vmem:[#allocation9_spill] sm:$0xff] %v20193_v21  ;;  %vm15866_vm10 = vcmp.ge.s32.totalorder %v94_v6, 1  ;;  %v15874_v17 = vsel %vm753_vm0, 65537, %v15144_v26  ;;  %vm1061_vm11 = vmpackc.low %vm15843_vm15, %vm15843_vm15  ;;  %vm15879_vm1 = vcmp.le.s32.totalorder %v87_v5, 6  ;;  %vm15883_vm7 = vcmp.le.s32.totalorder %v94_v6, 6 }
  0x66   :  { %v15888_v43 = vsel %vm1085_vm9, %v1086_v61, %v1087_v27  ;;  %v15891_v20 = vsel %vm19946_vm4, %v652_v46, %v11724_v30  ;;  %v11727_v7 = vcombine.low %v15860_v34, %v15874_v17  ;;  %vm1062_vm0 = vmpackc.low %vm15851_vm3, %vm15851_vm3  ;;  %v1069_v8 = vsel %vm1061_vm11, 65537, %v15144_v26 }
  0x67   :  { %20203 = vst [vmem:[#allocation10_spill] sm:$0xff] %v15888_v43  ;;  %20204 = vst [vmem:[#allocation11_spill] sm:$0xff] %v15891_v20  ;;  %vm19948_vm15 = vcmp.ne.s16.totalorder %v15888_v43, 0  ;;  %v715_v3 = vshrl.u32 %v15891_v20, 16  ;;  %v718_v12 = vshll.u32 %v15891_v20, 16  ;;  %v1070_v42 = vsel %vm1062_vm0, 65537, %v15144_v26  ;;  %13635 = vmatpush3.bf16.msra.mxu0 %v14795_v18 }
  0x68   :  { %vm754_vm4 = vmpackc.low %vm15862_vm14, %vm15862_vm14  ;;  %v1098_v25 = vsel %vm15855_vm6, %v15530_v62, 0  ;;  %vm15909_vm3 = vcmp.ne.s16.totalorder %v11727_v7, 0  ;;  %v20205_v49 = vmov 0  ;;  %v15913_v9 = vcombine.low %v1069_v8, %v1070_v42  ;;  %13636 = vmatprep.subr.bf16.mxu0 %v14797_v31  ;;  %v15929_v18 = vld [vmem:[%s19933_s4 + $0x98] sm:$0xff]  }
  0x69   :  { %v20206_v49 = vsel %vm15909_vm3, 4294967295, %v20205_v49  ;;  %vm755_vm11 = vmpackc.low %vm15866_vm10, %vm15866_vm10  ;;  %v15919_v14 = vsel %vm754_vm4, 65537, %v15144_v26  ;;  %v15924_v44 = vsel %vm19948_vm15, %v15566_v36, 0  ;;  %v717_v58 = vrot.slane %v715_v3, 3 }
  0x6a   :  { %20207 = vst [vmem:[#allocation12_spill] sm:$0xff] %v20206_v49  ;;  %v720_v15 = vrot.slane %v718_v12, 4  ;;  %v782_v53 = vsel %vm15909_vm3, %v15788_v63, 0  ;;  %v15935_v45 = vsel %vm755_vm11, 65537, %v15144_v26  ;;  %vm1063_vm4 = vmpackc.low %vm15879_vm1, %vm15879_vm1  ;;  %v1089_v50 = vrot.slane %v15913_v9, 7 }
  0x6b   :  { %13626 = vmatprep.mubr.msk.bf16.mxu1 %vm19950_vm8, %v782_v53  ;;  %v11728_v61 = vcombine.low %v15919_v14, %v15935_v45  ;;  %vm1064_vm10 = vmpackc.low %vm15883_vm7, %vm15883_vm7  ;;  %v1071_v23 = vsel %vm1063_vm4, 65537, %v15144_v26  ;;  %v1118_v5 = vrot.slane %v1098_v25, 1  ;;  %13637 = vmatpush3.bf16.msra.mxu0 %v14797_v31  ;;  %v11773_v11 = vcombine.low %v15463_v22, %v15463_v22 }
  0x6c   :  { %v721_v6 = vor.u32 %v720_v15, %v717_v58  ;;  %v1072_v46 = vsel %vm1064_vm10, 65537, %v15144_v26  ;;  %v11774_v13 = vcombine.low %v15466_v28, %v15665_v60  ;;  %v20208_v35 = vmov 0  ;;  %13662 = vmatprep.subr.bf16.mxu0 %v15929_v18 }
  0x6d   :  { %vm15953_vm14 = vcmp.ne.s16.totalorder %v11728_v61, 0  ;;  %v15957_v30 = vcombine.low %v1071_v23, %v1072_v46  ;;  %v15960_v29 = vsel %vm1085_vm9, %v1087_v27, %v1089_v50  ;;  %v1119_v47 = vrot.slane %v15924_v44, 1 }
  0x6e   :  { %v20209_v35 = vsel %vm15953_vm14, 4294967295, %v20208_v35  ;;  %20211 = vst [vmem:[#allocation14_spill] sm:$0xff] %v15960_v29  ;;  %vm20212_vm1 = vsmask.f32 4352  ;;  %v15970_v22 = vsel %vm15514_vm12, %v721_v6, 0  ;;  %vm19947_vm7 = vcmp.ne.s16.totalorder %v15960_v29, 0 }
  0x6f   :  { %20210 = vst [vmem:[#allocation13_spill] sm:$0xff] %v20209_v35  ;;  %v15966_v31 = vsel %vm20212_vm1, %v15772_v54, %v721_v6  ;;  %vm15973_vm0 = vcmp.ne.s16.totalorder %v11773_v11, 0  ;;  %v20213_v28 = vmov 0  ;;  %v834_v38 = vshll.u32 %v15970_v22, 16 }
  0x70   :  { %v20214_v28 = vsel %vm15973_vm0, 4294967295, %v20213_v28  ;;  %v826_v60 = vshll.u32 %v15966_v31, 16  ;;  %v830_v27 = vshrl.u32 %v15966_v31, 16  ;;  %v783_v54 = vsel %vm15953_vm14, %v15966_v31, 0 }
  0x71   :  { %20215 = vst [vmem:[#allocation15_spill] sm:$0xff] %v20214_v28  ;;  %13627 = vmatmul.mubr.msk.bf16.gmra.mxu1 %vm19950_vm8, %v783_v54  ;;  %vm19959_vm11 = vcmask 1046528   ;;  %vm15984_vm4 = vcmp.ne.s16.totalorder %v11774_v13, 0  ;;  %v20216_v41 = vmov 0  ;;  %v1246_v7 = vsel %vm15973_vm0, %v15530_v62, 0 }
  0x72   :  { %v20217_v41 = vsel %vm15984_vm4, 4294967295, %v20216_v41  ;;  %v11775_v8 = vcombine.low %v15670_v52, %v15860_v34  ;;  %v828_v3 = vrot.slane %v826_v60, 1  ;;  %v15997_v12 = vrot.slane %v834_v38, 1 }
  0x73   :  { %20218 = vst [vmem:[#allocation16_spill] sm:$0xff] %v20217_v41  ;;  %v1100_v42 = vsel %vm19947_vm7, %v15788_v63, 0  ;;  %v1247_v25 = vsel %vm15984_vm4, %v15566_v36, 0  ;;  %v1266_v44 = vrot.slane %v1246_v7, 4  ;;  %v20219_v15 = vmov 0 }
  0x74   :  { %v1267_v58 = vrot.slane %v1247_v25, 4  ;;  %vm16005_vm10 = vcmp.ne.s16.totalorder %v11775_v8, 0  ;;  %v1091_v52 = vrot.slane %v15957_v30, 7  ;;  %vm20222_vm1 = vsmask.f32 7424 }
  0x75   :  { %v20220_v15 = vsel %vm16005_vm10, 4294967295, %v20219_v15  ;;  %v16012_v34 = vsel %vm20222_vm1, %v15849_v4, %v828_v3  ;;  %v832_v53 = vor.u32 %v830_v27, %v828_v3  ;;  %v1120_v61 = vsel %vm19959_vm11, %v1118_v5, %v1119_v47  ;;  %v14802_v4 = vld [vmem:[%s19933_s4 + $0xb0] sm:$0xff]  }
  0x76   :  { %20221 = vst [vmem:[#allocation17_spill] sm:$0xff] %v20220_v15  ;;  %v1248_v23 = vsel %vm16005_vm10, %v15788_v63, 0  ;;  %13610 = vmatprep.mubr.msk.bf16.mxu0 %vm19950_vm8, %v16012_v34  ;;  %vm20223_vm7 = vcmask 1043456   ;;  %v16027_v11 = vsel %vm1085_vm9, %v1089_v50, %v1091_v52  ;;  %vm16029_vm1 = vcmp.ne.s16.totalorder %v1091_v52, 0  ;;  %v14804_v52 = vld [vmem:[%s19933_s4 + $0xa8] sm:$0xff]  }
  0x77   :  { %v1268_v6 = vsel %vm20223_vm7, %v1266_v44, %v1267_v58  ;;  %v1269_v46 = vrot.slane %v1248_v23, 4  ;;  %20224 = vst [vmem:[#allocation18_spill] sm:$0xff] %v16027_v11  ;;  %v20225_v13 = vmov 0  ;;  %vm20228_vm15 = vsmask.f32 7424 }
  0x78   :  { %v20226_v13 = vsel %vm16029_vm1, 4294967295, %v20225_v13  ;;  %v16035_v5 = vsel %vm20228_vm15, %v832_v53, %v15997_v12  ;;  %v1121_v54 = vrot.slane %v1100_v42, 1  ;;  %13654 = vmatprep.mubr.msk.bf16.mxu1 %vm19950_vm8, %v1268_v6  ;;  %vm19949_vm7 = vcmp.ne.s16.totalorder %v16027_v11, 0 }
  0x79   :  { %20227 = vst [vmem:[#allocation19_spill] sm:$0xff] %v20226_v13  ;;  %v11776_v7 = vcombine.low %v15874_v17, %v15919_v14  ;;  %v1397_v50 = vrot.slane %v810_v16, 5  ;;  %13611 = vmatmul.mubr.msk.bf16.gmra.mxu0 %vm19950_vm8, %v16035_v5  ;;  %vm20229_vm9 = vcmask 1043456   ;;  %v1101_v3 = vsel %vm19949_vm7, %v15966_v31, 0 }
  0x7a   :  { %v1270_v8 = vsel %vm20229_vm9, %v1267_v58, %v1269_v46  ;;  %v11777_v42 = vcombine.low %v15935_v45, %v15935_v45  ;;  %13638 = vmatprep.mubr.msk.bf16.mxu0 %vm19950_vm8, %v1120_v61  ;;  %v1102_v17 = vsel %vm16029_vm1, %v15970_v22, 0  ;;  %v20230_v16 = vmov 0 }
  0x7b   :  { %vm16055_vm15 = vcmp.ne.s16.totalorder %v11776_v7, 0  ;;  %v1394_v14 = vrot.slane %v805_v2, 5  ;;  %v1396_v25 = vrot.slane %v814_v57, 4  ;;  %13655 = vmatmul.mubr.msk.bf16.vlgmr.msra.gmra.mxu1 %vm19950_vm8, %v1270_v8  ;;  %v1123_v44 = vrot.slane %v1101_v3, 1 }
  0x7c   :  { %v20231_v16 = vsel %vm16055_vm15, 4294967295, %v20230_v16  ;;  %v1249_v45 = vsel %vm16055_vm15, %v15966_v31, 0  ;;  %vm16067_vm9 = vcmp.ne.s16.totalorder %v11777_v42, 0  ;;  %v20233_v58 = vmov 0  ;;  %13679 = vmatpush3.bf16.msra.mxu1 %v15770_v10 }
  0x7d   :  { %20232 = vst [vmem:[#allocation20_spill] sm:$0xff] %v20231_v16  ;;  %v20234_v58 = vsel %vm16067_vm9, 4294967295, %v20233_v58  ;;  %v1523_v2 = vrot.slane %v15805_v37, 3  ;;  %v1122_v53 = vsel %vm19959_vm11, %v1119_v47, %v1121_v54  ;;  %v1271_v57 = vrot.slane %v1249_v45, 4  ;;  %13680 = vmatprep.subr.bf16.mxu1 %v14802_v4  ;;  %v14801_v37 = vld [vmem:[%s19933_s4 + $0x90] sm:$0xff]  }
  0x7e   :  { %20235 = vst [vmem:[#allocation21_spill] sm:$0xff] %v20234_v58  ;;  %v1250_v61 = vsel %vm16067_vm9, %v15970_v22, 0  ;;  %v1395_v6 = vor.u32 %v1394_v14, %v15815_v39  ;;  %v16081_v7 = vor.u32 %v1397_v50, %v1396_v25  ;;  %v1524_v8 = vrot.slane %v15822_v32, 3 }
  0x7f   :  { %v1273_v23 = vrot.slane %v1250_v61, 4  ;;  %v1125_v47 = vrot.slane %v1102_v17, 1  ;;  %vm20236_vm7 = vcmask 1043456   ;;  %vm16088_vm8 = vcmp.ne.s16.totalorder %v1523_v2, 0 }
  0x80   :  { %v1272_v10 = vsel %vm20236_vm7, %v1269_v46, %v1271_v57  ;;  %v20237_v3 = vmov 0  ;;  %v1526_v42 = vrot.slane %v15913_v9, 3  ;;  %v1124_v45 = vsel %vm19959_vm11, %v1121_v54, %v1123_v44  ;;  %13681 = vmatpush3.bf16.msra.mxu1 %v14802_v4  ;;  %vm20244_vm15 = vmmov %vm20236_vm7  ;;  %v14806_v46 = vld [vmem:[%s19933_s4 + $0xa0] sm:$0xff]  }
  0x81   :  { %v20238_v3 = vsel %vm16088_vm8, 4294967295, %v20237_v3  ;;  %vm20240_vm2 = vcmask 523264   ;;  %vm20241_vm1 = vsmask.f32 3328  ;;  %vm20242_vm9 = vcmask 1044480   ;;  %13682 = vmatprep.subr.bf16.mxu1 %v14804_v52 }
  0x82   :  { %20239 = vst [vmem:[#allocation22_spill] sm:$0xff] %v20238_v3  ;;  %13658 = vmatprep.mubr.msk.bf16.mxu1 %vm20240_vm2, %v1272_v10  ;;  %v1399_v39 = vsel %vm20241_vm1, %v1395_v6, %v16081_v7  ;;  %v16098_v32 = vsel %vm20242_vm9, %v1523_v2, %v1524_v8  ;;  %v1274_v50 = vsel %vm20244_vm15, %v1271_v57, %v1273_v23  ;;  %v1535_v9 = vsel %vm16088_vm8, %v15530_v62, 0  ;;  %vm20245_vm2 = vmmov %vm20242_vm9 }
  0x83   :  { %20243 = vst [vmem:[#allocation23_spill] sm:$0xff] %v16098_v32  ;;  %vm19963_vm7 = vcmp.ne.s16.totalorder %v16098_v32, 0  ;;  %v16109_v54 = vsel %vm20245_vm2, %v1524_v8, %v1526_v42  ;;  %vm20247_vm1 = vcmask 523264   ;;  %vm19964_vm15 = vcmask 1042432  }
  0x84   :  { %20246 = vst [vmem:[#allocation24_spill] sm:$0xff] %v16109_v54  ;;  %13639 = vmatmul.mubr.msk.bf16.vlgmr.msra.gmra.mxu0 %vm20247_vm1, %v1122_v53  ;;  %v1536_v4 = vsel %vm19963_vm7, %v15566_v36, 0  ;;  %v1555_v17 = vrot.slane %v1535_v9, 5  ;;  %vm19960_vm9 = vcmp.ne.s16.totalorder %v16109_v54, 0  ;;  %vm20248_vm11 = vmmov %vm20247_vm1  ;;  %v1408_v25 = vshrl.u32 %v15970_v22, 16  ;;  %v14803_v53 = vld [vmem:[%s19933_s4 + $0x88] sm:$0xff]   ;;  %13683 = vmatpush3.bf16.msra.mxu1 %v14804_v52 }
  0x85   :  { %13663 = vmatpush3.bf16.msra.mxu0 %v15929_v18  ;;  %13642 = vmatprep.mubr.msk.bf16.mxu0 %vm20248_vm11, %v1124_v45  ;;  %v1556_v14 = vrot.slane %v1536_v4, 5  ;;  %v1537_v62 = vsel %vm19960_vm9, %v15788_v63, 0  ;;  %v1401_v2 = vrot.slane %v818_v19, 5  ;;  %vm20249_vm2 = vmmov %vm20247_vm1  ;;  %v1528_v57 = vrot.slane %v15957_v30, 3  ;;  %v14808_v19 = vld [vmem:[%s19933_s4 + $0xf8] sm:$0xff]   ;;  %v14805_v30 = vld [vmem:[%s19933_s4 + $0x80] sm:$0xff]  }
  0x86   :  { %13664 = vmatprep.subr.bf16.mxu0 %v14801_v37  ;;  %13659 = vmatmul.mubr.msk.bf16.gmra.mxu1 %vm20249_vm2, %v1274_v50  ;;  %v1558_v18 = vrot.slane %v1537_v62, 5  ;;  %v1400_v61 = vrot.slane %v822_v40, 4  ;;  %v1404_v6 = vrot.slane %v830_v27, 4  ;;  %v1405_v8 = vrot.slane %v826_v60, 5 }
  0x87   :  { %v1557_v23 = vsel %vm19964_vm15, %v1555_v17, %v1556_v14  ;;  %vm20250_vm11 = vcmask 1046528   ;;  %13684 = vmatprep.subr.bf16.mxu1 %v14806_v46  ;;  %v16146_v40 = vrot.slane %v834_v38, 5  ;;  %vm20251_vm2 = vcmask 1044480  }
  0x88   :  { %v1126_v10 = vsel %vm20250_vm11, %v1123_v44, %v1125_v47  ;;  %13686 = vmatprep.mubr.msk.bf16.mxu1 %vm20247_vm1, %v1557_v23  ;;  %v16149_v52 = vsel %vm20251_vm2, %v1526_v42, %v1528_v57  ;;  %vm16151_vm9 = vcmp.ne.s16.totalorder %v1528_v57, 0  ;;  %v20253_v27 = vmov 0  ;;  %13685 = vmatpush3.bf16.msra.mxu1 %v14806_v46  ;;  %v14807_v46 = vld [vmem:[%s19933_s4 + $0xd8] sm:$0xff]  }
  0x89   :  { %20252 = vst [vmem:[#allocation25_spill] sm:$0xff] %v16149_v52  ;;  %v20254_v27 = vsel %vm16151_vm9, 4294967295, %v20253_v27  ;;  %13665 = vmatpush3.bf16.msra.mxu0 %v14801_v37  ;;  %v1410_v60 = vrot.slane %v1408_v25, 4  ;;  %vm19961_vm11 = vcmp.ne.s16.totalorder %v16149_v52, 0  ;;  %v1539_v44 = vsel %vm16151_vm9, %v15970_v22, 0  ;;  %v14810_v37 = vld [vmem:[%s19933_s4 + $0xf0] sm:$0xff]   ;;  %13710 = vmatprep.subr.bf16.mxu1 %v14808_v19 }
  0x8a   :  { %20255 = vst [vmem:[#allocation26_spill] sm:$0xff] %v20254_v27  ;;  %v1673_v38 = vsel %vm15518_vm13, %v15566_v36, 0  ;;  %13666 = vmatprep.subr.bf16.mxu0 %v14803_v53  ;;  %v1559_v47 = vsel %vm19964_vm15, %v1556_v14, %v1558_v18  ;;  %v1538_v42 = vsel %vm19961_vm11, %v15966_v31, 0  ;;  %v1674_v45 = vsel %vm15710_vm5, %v15788_v63, 0 }
  0x8b   :  { %v1675_v50 = vsel %vm15909_vm3, %v15966_v31, 0  ;;  %v1560_v9 = vrot.slane %v1538_v42, 5  ;;  %v1676_v4 = vsel %vm15953_vm14, %v15970_v22, 0  ;;  %v1910_v17 = vsel %vm15855_vm6, %v15566_v36, 0 }
  0x8c   :  { %vm20256_vm1 = vcmp.ne.s16.totalorder %v15888_v43, 0  ;;  %vm20257_vm2 = vcmask 523264   ;;  %v1562_v62 = vrot.slane %v1539_v44, 5  ;;  %v16193_v57 = vrot.slane %v15144_v26, 1 }
  0x8d   :  { %v16186_v14 = vsel %vm20256_vm1, %v15788_v63, 0  ;;  %13643 = vmatmul.mubr.msk.bf16.gmra.mxu0 %vm20257_vm2, %v1126_v10  ;;  %v16195_v23 = vrot.slane %v1910_v17, 1  ;;  %vm20259_vm11 = vcmp.ne.s16.totalorder %v15960_v29, 0  ;;  %vm20260_vm1 = vmmov %vm20257_vm2  ;;  %v1402_v10 = vor.u32 %v1401_v2, %v1400_v61  ;;  %v14818_v63 = vld [vmem:[%s19933_s4 + $0x100] sm:$0xff]   ;;  %v16314_v17 = vld [vmem:[%s19933_s4 + $0x198] sm:$0xff]  }
  0x8e   :  { %20258 = vst [vmem:[#allocation27_spill] sm:$0xff] %v16193_v57  ;;  %v16200_v36 = vsel %vm20259_vm11, %v15966_v31, 0  ;;  %13667 = vmatpush3.bf16.msra.mxu0 %v14803_v53  ;;  %13670 = vmatprep.mubr.msk.bf16.mxu0 %vm20260_vm1, %v1399_v39  ;;  %v1561_v42 = vsel %vm19964_vm15, %v1558_v18, %v1560_v9  ;;  %v1929_v1 = vrot.slane %v16186_v14, 1  ;;  %vm20261_vm2 = vcmp.ne.s16.totalorder %v16027_v11, 0  ;;  %vm20262_vm7 = vmmov %vm20260_vm1  ;;  %v14812_v53 = vld [vmem:[%s19933_s4 + $0xe8] sm:$0xff]   ;;  %v14809_v18 = vld [vmem:[%s19933_s4 + $0xd0] sm:$0xff]  }
  0x8f   :  { %v16208_v26 = vsel %vm20261_vm2, %v15970_v22, 0  ;;  %13668 = vmatprep.subr.bf16.mxu0 %v14805_v30  ;;  %13687 = vmatmul.mubr.msk.bf16.vlgmr.msra.gmra.mxu1 %vm20262_vm7, %v1559_v47  ;;  %v1406_v44 = vor.u32 %v1405_v8, %v1404_v6  ;;  %v1931_v39 = vrot.slane %v16200_v36, 1  ;;  %vm20263_vm11 = vmmov %vm20260_vm1  ;;  %vm20264_vm7 = vsmask.f32 3328  ;;  %v14814_v8 = vld [vmem:[%s19933_s4 + $0xe0] sm:$0xff]   ;;  %v14811_v47 = vld [vmem:[%s19933_s4 + $0xc8] sm:$0xff]  }
  0x90   :  { %v1933_v2 = vrot.slane %v16208_v26, 1  ;;  %13711 = vmatpush3.bf16.msra.mxu1 %v14808_v19  ;;  %13690 = vmatprep.mubr.msk.bf16.mxu1 %vm20263_vm11, %v1561_v42  ;;  %v1403_v61 = vsel %vm20264_vm7, %v16081_v7, %v1402_v10  ;;  %vm20265_vm1 = vmmov %vm20264_vm7  ;;  %v1563_v19 = vsel %vm19964_vm15, %v1560_v9, %v1562_v62  ;;  %v1412_v7 = vor.u32 %v16146_v40, %v1410_v60  ;;  %v14815_v40 = vld [vmem:[%s19933_s4 + $0x118] sm:$0xff]   ;;  %v14816_v60 = vld [vmem:[%s19933_s4 + $0x110] sm:$0xff]  }
  0x91   :  { %13712 = vmatprep.subr.bf16.mxu1 %v14810_v37  ;;  %v1407_v6 = vsel %vm20265_vm1, %v1402_v10, %v1406_v44  ;;  %vm20266_vm2 = vmmov %vm20263_vm11  ;;  %v14823_v9 = vld [vmem:[%s19933_s4 + $0x120] sm:$0xff]   ;;  %20287 = vst [vmem:[#allocation28_spill] sm:$0xff] %v16314_v17  ;;  %v14826_v14 = vld [vmem:[%s19933_s4 + $0x148] sm:$0xff]  }
  0x92   :  { %13669 = vmatpush3.bf16.msra.mxu0 %v14805_v30  ;;  %vm20267_vm11 = vmmov %vm20266_vm2  ;;  %v14813_v30 = vld [vmem:[%s19933_s4 + $0xc0] sm:$0xff]   ;;  %v16326_v62 = vld [vmem:[%s19933_s4 + $0x178] sm:$0xff]  }
  0x93   :  { %13694 = vmatprep.subr.bf16.mxu0 %v14807_v46  ;;  %vm20268_vm7 = vmmov %vm20266_vm2  ;;  %20288 = vst [vmem:[#allocation29_spill] sm:$0xff] %v16326_v62 }
  0x94   :  { %13713 = vmatpush3.bf16.msra.mxu1 %v14810_v37  ;;  %vm20269_vm1 = vmmov %vm20266_vm2 }
  0x95   :  { %13671 = vmatmul.mubr.msk.bf16.vlgmr.msra.gmra.mxu0 %vm20266_vm2, %v1403_v61  ;;  %13714 = vmatprep.subr.bf16.mxu1 %v14812_v53  ;;  %vm20270_vm2 = vsmask.f32 3328  ;;  %vm20273_vm15 = vmmov %vm20269_vm1 }
  0x96   :  { %13695 = vmatpush3.bf16.msra.mxu0 %v14807_v46  ;;  %13674 = vmatprep.mubr.msk.bf16.mxu0 %vm20267_vm11, %v1407_v6  ;;  %v1413_v37 = vsel %vm20270_vm2, %v1406_v44, %v1412_v7  ;;  %vm20271_vm11 = vmmov %vm20269_vm1  ;;  %vm20274_vm2 = vsmask.f32 7424  ;;  %v14828_v46 = vld [vmem:[%s19933_s4 + $0x140] sm:$0xff]  }
  0x97   :  { %13696 = vmatprep.subr.bf16.mxu0 %v14809_v18  ;;  %13691 = vmatmul.mubr.msk.bf16.gmra.mxu1 %vm20268_vm7, %v1563_v19  ;;  %vm20272_vm7 = vmmov %vm20269_vm1 }
  0x98   :  { %13715 = vmatpush3.bf16.msra.mxu1 %v14812_v53  ;;  %13718 = vmatprep.mubr.msk.bf16.mxu1 %vm20269_vm1, %v15819_v51  ;;  %v1804_v51 = vor.u32 %v1408_v25, %v15997_v12  ;;  %v14819_v25 = vld [vmem:[%s19933_s4 + $0x138] sm:$0xff]  }
  0x99   :  { %13716 = vmatprep.subr.bf16.mxu1 %v14814_v8 }
  0x9a   :  { %13697 = vmatpush3.bf16.msra.mxu0 %v14809_v18 }
  0x9b   :  { %13698 = vmatprep.subr.bf16.mxu0 %v14811_v47 }
  0x9c   :  { %13717 = vmatpush3.bf16.msra.mxu1 %v14814_v8 }
  0x9d   :  { %13675 = vmatmul.mubr.msk.bf16.gmra.mxu0 %vm20271_vm11, %v1413_v37  ;;  %vm20275_vm11 = vmmov %vm20269_vm1 }
  0x9e   :  { %13699 = vmatpush3.bf16.msra.mxu0 %v14811_v47  ;;  %13702 = vmatprep.mubr.msk.bf16.mxu0 %vm20272_vm7, %v1673_v38  ;;  %v1809_v38 = vsel %vm20274_vm2, %v1804_v51, %v16193_v57  ;;  %vm20277_vm7 = vmmov %vm20269_vm1 }
  0x9f   :  { %13700 = vmatprep.subr.bf16.mxu0 %v14813_v30  ;;  %13719 = vmatmul.mubr.msk.bf16.vlgmr.msra.gmra.mxu1 %vm20269_vm1, %v16012_v34  ;;  %v14817_v34 = vld [vmem:[%s19933_s4 + $0x108] sm:$0xff]   ;;  %vm20279_vm2 = vmmov %vm20277_vm7 }
  0xa0   :  { %13722 = vmatprep.mubr.msk.bf16.mxu1 %vm20273_vm15, %v16035_v5  ;;  %vm20276_vm15 = vmmov %vm20269_vm1  ;;  %vm20278_vm1 = vcmask 1046528  }
  0xa1   :  { %v1930_v12 = vsel %vm20278_vm1, %v16195_v23, %v1929_v1  ;;  %vm20283_vm9 = vmmov %vm20279_vm2 }
  0xa2   :  { %13701 = vmatpush3.bf16.msra.mxu0 %v14813_v30 }
  0xa3   :  { %13726 = vmatprep.subr.bf16.mxu0 %v14815_v40 }
  0xa5   :  { %13703 = vmatmul.mubr.msk.bf16.vlgmr.msra.gmra.mxu0 %vm20275_vm11, %v1674_v45  ;;  %vm20280_vm11 = vmmov %vm20279_vm2  ;;  %v14821_v45 = vld [vmem:[%s19933_s4 + $0x128] sm:$0xff]  }
  0xa6   :  { %13727 = vmatpush3.bf16.msra.mxu0 %v14815_v40  ;;  %13706 = vmatprep.mubr.msk.bf16.mxu0 %vm20276_vm15, %v1675_v50  ;;  %vm20281_vm15 = vmmov %vm20278_vm1  ;;  %v14822_v50 = vld [vmem:[%s19933_s4 + $0x158] sm:$0xff]  }
  0xa7   :  { %13728 = vmatprep.subr.bf16.mxu0 %v14816_v60  ;;  %13723 = vmatmul.mubr.msk.bf16.gmra.mxu1 %vm20277_vm7, %v1809_v38  ;;  %v1932_v31 = vsel %vm20281_vm15, %v1929_v1, %v1931_v39  ;;  %vm20282_vm7 = vmmov %vm20278_vm1  ;;  %v14820_v1 = vld [vmem:[%s19933_s4 + $0x130] sm:$0xff]  }
  0xa8   :  { %v1934_v5 = vsel %vm20282_vm7, %v1931_v39, %v1933_v2  ;;  %vm20284_vm1 = vmmov %vm20279_vm2  ;;  %13742 = vmatprep.subr.bf16.mxu1 %v14822_v50 }
  0xa9   :  { %vm20285_vm8 = vmmov %vm20282_vm7  ;;  %13743 = vmatpush3.bf16.msra.mxu1 %v14822_v50 }
  0xaa   :  { %13729 = vmatpush3.bf16.msra.mxu0 %v14816_v60  ;;  %v1936_v22 = vsel %vm20285_vm8, %v1933_v2, %v16193_v57  ;;  %vm20286_vm6 = vmmov %vm20284_vm1 }
  0xab   :  { %13730 = vmatprep.subr.bf16.mxu0 %v14817_v34  ;;  %vm20298_vm8 = vmmov %vm20284_vm1 }
  0xac   :  { %vm20307_vm7 = vmmov %vm20284_vm1 }
  0xad   :  { %13707 = vmatmul.mubr.msk.bf16.gmra.mxu0 %vm20279_vm2, %v1676_v4  ;;  %v14824_v4 = vld [vmem:[%s19933_s4 + $0x150] sm:$0xff]   ;;  %vm20304_vm2 = vsmask.f32 7424 }
  0xae   :  { %13731 = vmatpush3.bf16.msra.mxu0 %v14817_v34  ;;  %13734 = vmatprep.mubr.msk.bf16.mxu0 %vm20280_vm11, %v1930_v12 }
  0xaf   :  { %13732 = vmatprep.subr.bf16.mxu0 %v14818_v63  ;;  %13744 = vmatprep.subr.bf16.mxu1 %v14824_v4 }
  0xb0   :  { %13745 = vmatpush3.bf16.msra.mxu1 %v14824_v4 }
  0xb1   :  { %13746 = vmatprep.subr.bf16.mxu1 %v14826_v14 }
  0xb2   :  { %13733 = vmatpush3.bf16.msra.mxu0 %v14818_v63 }
  0xb3   :  { %13758 = vmatprep.subr.bf16.mxu0 %v14819_v25 }
  0xb4   :  { %13747 = vmatpush3.bf16.msra.mxu1 %v14826_v14 }
  0xb5   :  { %13735 = vmatmul.mubr.msk.bf16.vlgmr.msra.gmra.mxu0 %vm20283_vm9, %v1932_v31  ;;  %13748 = vmatprep.subr.bf16.mxu1 %v14828_v46  ;;  %vm20300_vm9 = vmmov %vm20284_vm1 }
  0xb6   :  { %13738 = vmatprep.mubr.msk.bf16.mxu0 %vm20284_vm1, %v1934_v5  ;;  %13759 = vmatpush3.bf16.msra.mxu0 %v14819_v25 }
  0xb7   :  { %13760 = vmatprep.subr.bf16.mxu0 %v14820_v1 }
  0xb8   :  { %13749 = vmatpush3.bf16.msra.mxu1 %v14828_v46 }
  0xb9   :  { %13774 = vmatprep.subr.bf16.mxu1 %v16326_v62 }
  0xba   :  { %13761 = vmatpush3.bf16.msra.mxu0 %v14820_v1 }
  0xbb   :  { %13762 = vmatprep.subr.bf16.mxu0 %v14821_v45 }
  0xbd   :  { %13739 = vmatmul.mubr.msk.bf16.gmra.mxu0 %vm20286_vm6, %v1936_v22  ;;  %vm20295_vm6 = vsmask.f32 4352 }
  0xbe   :  { %13763 = vmatpush3.bf16.msra.mxu0 %v14821_v45  ;;  %vm20305_vm11 = vmmov %vm20295_vm6 }
  0xbf   :  { %13764 = vmatprep.subr.bf16.mxu0 %v14823_v9  ;;  %vm20306_vm15 = vmmov %vm20295_vm6 }
  0xc2   :  { %13765 = vmatpush3.bf16.msra.mxu0 %v14823_v9 }
  0xc3   :  { %13790 = vmatprep.subr.bf16.mxu0 %v16314_v17 }
 0x10c   :  { %v13624_v23 = vpop.f32.mrf.mxu1 }
 0x10e   :  { %v1010_v36 = vpop.f32.mrf.mxu1 }
 0x110   :  { %v13625_v42 = vpop.f32.mrf.mxu1 }
 0x112   :  { %v1013_v44 = vpop.f32.mrf.mxu1 }
 0x11e   :  { %v13608_v10 = vpop.f32.mrf.mxu0 }
 0x11f   :  { %v1019_v29 = vadd.f32 %v13624_v23, %v13608_v10 }
 0x120   :  { %v909_v26 = vpop.f32.mrf.mxu0 }
 0x121   :  { %v1011_v32 = vadd.f32 %v1010_v36, %v909_v26 }
 0x122   :  { %v13609_v53 = vpop.f32.mrf.mxu0 }
 0x123   :  { %v1022_v21 = vadd.f32 %v13625_v42, %v13609_v53 }
 0x124   :  { %v912_v2 = vpop.f32.mrf.mxu0 }
 0x125   :  { %v1014_v35 = vadd.f32 %v1013_v44, %v912_v2 }
 0x131   :  { %v13628_v39 = vpop.f32.mrf.mxu1 }
 0x133   :  { %v1026_v18 = vpop.f32.mrf.mxu1 }
 0x135   :  { %v16329_v61 = vpop.f32.mrf.mxu1 }
 0x137   :  { %v16331_v8 = vpop.f32.mrf.mxu1 }
 0x139   :  { %v13612_v6 = vpop.f32.mrf.mxu0 }
 0x13b   :  { %v925_v19 = vpop.f32.mrf.mxu0  ;;  %v13656_v47 = vpop.f32.mrf.mxu1 }
 0x13c   :  { %v1027_v36 = vadd.f32 %v1026_v18, %v925_v19 }
 0x13d   :  { %v13613_v7 = vpop.f32.mrf.mxu0  ;;  %v1345_v30 = vpop.f32.mrf.mxu1 }
 0x13e   :  { %v1038_v44 = vadd.f32 %v16329_v61, %v13613_v7 }
 0x13f   :  { %v16333_v37 = vpop.f32.mrf.mxu0  ;;  %v13657_v40 = vpop.f32.mrf.mxu1 }
 0x141   :  { %v1348_v60 = vpop.f32.mrf.mxu1 }
 0x144   :  { %v13640_v51 = vpop.f32.mrf.mxu0 }
 0x145   :  { %v1230_v3 = vadd.f32 %v13640_v51, %v1019_v29 }
 0x146   :  { %v1197_v38 = vpop.f32.mrf.mxu0  ;;  %v13660_v34 = vpop.f32.mrf.mxu1 }
 0x147   :  { %v1228_v16 = vadd.f32 %v1197_v38, %v1011_v32  ;;  %v1378_v49 = vadd.f32 %v13656_v47, %v1230_v3 }
 0x148   :  { %v13641_v63 = vpop.f32.mrf.mxu0  ;;  %v16335_v12 = vpop.f32.mrf.mxu1 }
 0x149   :  { %v1231_v41 = vadd.f32 %v13641_v63, %v1022_v21  ;;  %v1376_v33 = vadd.f32 %v1345_v30, %v1228_v16 }
 0x14a   :  { %v1200_v31 = vpop.f32.mrf.mxu0  ;;  %v16337_v5 = vpop.f32.mrf.mxu1 }
 0x14b   :  { %v1229_v55 = vadd.f32 %v1200_v31, %v1014_v35  ;;  %v1379_v23 = vadd.f32 %v13657_v40, %v1231_v41 }
 0x14c   :  { %v16339_v25 = vpop.f32.mrf.mxu1 }
 0x14d   :  { %v13644_v22 = vpop.f32.mrf.mxu0  ;;  %v1377_v51 = vadd.f32 %v1348_v60, %v1229_v55 }
 0x14f   :  { %v1213_v1 = vpop.f32.mrf.mxu0  ;;  %v13688_v45 = vpop.f32.mrf.mxu1 }
 0x150   :  { %v1232_v3 = vadd.f32 %v1213_v1, %v1027_v36 }
 0x151   :  { %v13645_v50 = vpop.f32.mrf.mxu0  ;;  %v1634_v9 = vpop.f32.mrf.mxu1 }
 0x152   :  { %v1380_v55 = vadd.f32 %v16335_v12, %v1232_v3 }
 0x153   :  { %v1216_v4 = vpop.f32.mrf.mxu0  ;;  %v13689_v14 = vpop.f32.mrf.mxu1 }
 0x155   :  { %v13672_v46 = vpop.f32.mrf.mxu0  ;;  %v1637_v56 = vpop.f32.mrf.mxu1 }
 0x156   :  { %v1517_v48 = vadd.f32 %v13672_v46, %v1378_v49  ;;  %v1030_v49 = vadd.f32 %v16331_v8, %v16333_v37 }
 0x157   :  { %v1484_v0 = vpop.f32.mrf.mxu0  ;;  %v16341_v20 = vpop.f32.mrf.mxu1 }
 0x158   :  { %v1515_v10 = vadd.f32 %v1484_v0, %v1376_v33  ;;  %v1667_v42 = vadd.f32 %v13688_v45, %v1517_v48  ;;  %v1235_v33 = vadd.f32 %v13645_v50, %v1038_v44  ;;  %v1233_v48 = vadd.f32 %v1216_v4, %v1030_v49 }
 0x159   :  { %v13673_v24 = vpop.f32.mrf.mxu0  ;;  %v16343_v59 = vpop.f32.mrf.mxu1 }
 0x15a   :  { %v1518_v32 = vadd.f32 %v13673_v24, %v1379_v23  ;;  %v1665_v53 = vadd.f32 %v1634_v9, %v1515_v10  ;;  %v1381_v40 = vadd.f32 %v16339_v25, %v1233_v48 }
 0x15b   :  { %v1487_v57 = vpop.f32.mrf.mxu0  ;;  %v16345_v27 = vpop.f32.mrf.mxu1 }
 0x15c   :  { %20289 = vst [vmem:[#allocation30_spill] sm:$0xff] %v16345_v27  ;;  %v1516_v2 = vadd.f32 %v1487_v57, %v1377_v51 }
 0x15d   :  { %v13676_v13 = vpop.f32.mrf.mxu0  ;;  %v16347_v54 = vpop.f32.mrf.mxu1 }
 0x15e   :  { %20290 = vst [vmem:[#allocation31_spill] sm:$0xff] %v16347_v54  ;;  %v1035_v54 = vadd.f32 %v13628_v39, %v13612_v6  ;;  %v1668_v39 = vadd.f32 %v13689_v14, %v1518_v32  ;;  %v1666_v61 = vadd.f32 %v1637_v56, %v1516_v2 }
 0x15f   :  { %v1500_v52 = vpop.f32.mrf.mxu0  ;;  %v13720_v62 = vpop.f32.mrf.mxu1 }
 0x160   :  { %v1234_v29 = vadd.f32 %v13644_v22, %v1035_v54  ;;  %v1519_v57 = vadd.f32 %v1500_v52, %v1380_v55 }
 0x161   :  { %v13677_v11 = vpop.f32.mrf.mxu0  ;;  %v1871_v28 = vpop.f32.mrf.mxu1 }
 0x162   :  { %v1382_v41 = vadd.f32 %v13660_v34, %v1234_v29  ;;  %v1669_v34 = vadd.f32 %v16343_v59, %v1519_v57 }
 0x163   :  { %v16349_v58 = vpop.f32.mrf.mxu0  ;;  %v20293_v22 = vld [vmem:[#allocation30_spill] sm:$0xff] }
 0x164   :  { %20291 = vst [vmem:[#allocation32_spill] sm:$0xff] %v16349_v58  ;;  %v13721_v58 = vpop.f32.mrf.mxu1  ;;  %v1521_v24 = vadd.f32 %v13676_v13, %v1382_v41  ;;  %v11874_v13 = vld [vmem:[%s19938_s5] ss:$0 sm:$0xff] }
 0x165   :  { %v13704_v43 = vpop.f32.mrf.mxu0 }
 0x166   :  { %v1789_v16 = vadd.f32 %v13704_v43, %v1667_v42  ;;  %v1874_v35 = vpop.f32.mrf.mxu1  ;;  %v1383_v43 = vadd.f32 %v16337_v5, %v1235_v33 }
 0x167   :  { %v1756_v15 = vpop.f32.mrf.mxu0 }
 0x168   :  { %v1787_v54 = vadd.f32 %v1756_v15, %v1665_v53  ;;  %v1904_v6 = vadd.f32 %v13720_v62, %v1789_v16  ;;  %v13724_v47 = vpop.f32.mrf.mxu1  ;;  %v1671_v15 = vadd.f32 %v16341_v20, %v1521_v24  ;;  %v1522_v60 = vadd.f32 %v13677_v11, %v1383_v43 }
 0x169   :  { %v13705_v17 = vpop.f32.mrf.mxu0 }
 0x16a   :  { %v1790_v19 = vadd.f32 %v13705_v17, %v1668_v39  ;;  %v1902_v30 = vadd.f32 %v1871_v28, %v1787_v54  ;;  %v1887_v17 = vpop.f32.mrf.mxu1  ;;  %v1672_v20 = vadd.f32 %v20293_v22, %v1522_v60 }
 0x16b   :  { %v1759_v27 = vpop.f32.mrf.mxu0  ;;  %v20292_v52 = vld [vmem:[#allocation32_spill] sm:$0xff] }
 0x16c   :  { %v1788_v8 = vadd.f32 %v1759_v27, %v1666_v61  ;;  %v1905_v62 = vadd.f32 %v13721_v58, %v1790_v19  ;;  %v1520_v63 = vadd.f32 %v20292_v52, %v1381_v40  ;;  %v13725_v1 = vpop.f32.mrf.mxu1  ;;  %v20294_v58 = vld [vmem:[#allocation31_spill] sm:$0xff] }
 0x16d   :  { %v13708_v26 = vpop.f32.mrf.mxu0 }
 0x16e   :  { %v1793_v28 = vadd.f32 %v13708_v26, %v1671_v15  ;;  %v1903_v12 = vadd.f32 %v1874_v35, %v1788_v8  ;;  %v1670_v4 = vadd.f32 %v20294_v58, %v1520_v63  ;;  %v1890_v32 = vpop.f32.mrf.mxu1 }
 0x16f   :  { %v1772_v21 = vpop.f32.mrf.mxu0 }
 0x170   :  { %v1791_v11 = vadd.f32 %v1772_v21, %v1669_v34  ;;  %v1908_v14 = vadd.f32 %v13724_v47, %v1793_v28 }
 0x171   :  { %v13709_v0 = vpop.f32.mrf.mxu0 }
 0x172   :  { %v1794_v46 = vadd.f32 %v13709_v0, %v1672_v20  ;;  %v1906_v29 = vadd.f32 %v1887_v17, %v1791_v11 }
 0x173   :  { %v1775_v18 = vpop.f32.mrf.mxu0 }
 0x174   :  { %v1792_v26 = vadd.f32 %v1775_v18, %v1670_v4  ;;  %v1909_v53 = vadd.f32 %v13725_v1, %v1794_v46  ;;  %v20301_v1 = vld [vmem:[#allocation28_spill] sm:$0xff]  ;;  %v14829_v4 = vld [vmem:[%s19933_s4 + $0x188] sm:$0xff]  }
 0x175   :  { %v13736_v7 = vpop.f32.mrf.mxu0 }
 0x176   :  { %v2040_v37 = vadd.f32 %v13736_v7, %v1904_v6  ;;  %v1907_v33 = vadd.f32 %v1890_v32, %v1792_v26 }
 0x177   :  { %v2007_v56 = vpop.f32.mrf.mxu0 }
 0x178   :  { %v2038_v38 = vadd.f32 %v2007_v56, %v1902_v30  ;;  %v2055_v31 = vadd.f32 %v11874_v13, %v2040_v37 }
 0x179   :  { %v13737_v27 = vpop.f32.mrf.mxu0 }
 0x17a   :  { %v2041_v5 = vadd.f32 %v13737_v27, %v1905_v62  ;;  %v2053_v45 = vadd.f32 %v11874_v13, %v2038_v38  ;;  %v2063_v23 = vmax.f32 %v2055_v31, 0.0 }
 0x17b   :  { %v2010_v25 = vpop.f32.mrf.mxu0 }
 0x17c   :  { %v2056_v50 = vadd.f32 %v11874_v13, %v2041_v5  ;;  %v2039_v9 = vadd.f32 %v2010_v25, %v1903_v12  ;;  %v2061_v44 = vmax.f32 %v2053_v45, 0.0 }
 0x17d   :  { %v13740_v59 = vpop.f32.mrf.mxu0 }
 0x17e   :  { %v2064_v10 = vmax.f32 %v2056_v50, 0.0  ;;  %v2054_v36 = vadd.f32 %v11874_v13, %v2039_v9  ;;  %v2044_v51 = vadd.f32 %v13740_v59, %v1908_v14 }
 0x17f   :  { %v2023_v42 = vpop.f32.mrf.mxu0 }
 0x180   :  { %v2070_v3 = vpack.c.bf16 %v2064_v10, %v2063_v23  ;;  %v2062_v21 = vmax.f32 %v2054_v36, 0.0  ;;  %v2042_v2 = vadd.f32 %v2023_v42, %v1906_v29  ;;  %v2059_v0 = vadd.f32 %v11874_v13, %v2044_v51 }
 0x181   :  { %v13741_v16 = vpop.f32.mrf.mxu0 }
 0x182   :  { %v2082_v35 = vshrl.u32 %v2070_v3, 16  ;;  %v2085_v49 = vshll.u32 %v2070_v3, 16  ;;  %v2069_v41 = vpack.c.bf16 %v2062_v21, %v2061_v44  ;;  %v2045_v39 = vadd.f32 %v13741_v16, %v1909_v53 }
 0x183   :  { %v2026_v54 = vpop.f32.mrf.mxu0  ;;  %v2057_v61 = vadd.f32 %v11874_v13, %v2042_v2  ;;  %v2067_v57 = vmax.f32 %v2059_v0, 0.0 }
 0x184   :  { %v2084_v55 = vrot.slane %v2082_v35, 3  ;;  %v2087_v48 = vrot.slane %v2085_v49, 4  ;;  %v2074_v24 = vshrl.u32 %v2069_v41, 16  ;;  %v2077_v18 = vshll.u32 %v2069_v41, 16  ;;  %v14831_v41 = vld [vmem:[%s19933_s4 + $0x180] sm:$0xff]  }
 0x185   :  { %v2060_v6 = vadd.f32 %v11874_v13, %v2045_v39  ;;  %v2043_v19 = vadd.f32 %v2026_v54, %v1907_v33  ;;  %v2065_v40 = vmax.f32 %v2057_v61, 0.0  ;;  %v20314_v61 = vld [vmem:[#allocation20_spill] sm:$0xff] }
 0x186   :  { %v2076_v47 = vrot.slane %v2074_v24, 3  ;;  %v2079_v43 = vrot.slane %v2077_v18, 4  ;;  %v2088_v8 = vor.u32 %v2087_v48, %v2084_v55 }
 0x187   :  { %v2068_v7 = vmax.f32 %v2060_v6, 0.0  ;;  %v2058_v30 = vadd.f32 %v11874_v13, %v2043_v19  ;;  %v14827_v13 = vld [vmem:[%s19933_s4 + $0x190] sm:$0xff]  }
 0x188   :  { %v2080_v37 = vor.u32 %v2079_v43, %v2076_v47 }
 0x189   :  { %v2072_v15 = vpack.c.bf16 %v2068_v7, %v2067_v57  ;;  %v2066_v60 = vmax.f32 %v2058_v30, 0.0  ;;  %v14832_v57 = vld [vmem:[%s19933_s4 + $0x170] sm:$0xff]   ;;  %v14833_v7 = vld [vmem:[%s19933_s4 + $0x1d8] sm:$0xff]  }
 0x18a   :  { %v16366_v56 = vsel %vm20295_vm6, %v2080_v37, %v2088_v8  ;;  %v16370_v17 = vsel %vm15514_vm12, 0, %v2080_v37  ;;  %vm20310_vm6 = vmmov %vm20284_vm1 }
 0x18b   :  { %v2100_v38 = vshrl.u32 %v2072_v15, 16  ;;  %v2103_v34 = vshll.u32 %v2072_v15, 16  ;;  %v2071_v52 = vpack.c.bf16 %v2066_v60, %v2065_v40  ;;  %v2115_v28 = vsel %vm15518_vm13, %v16370_v17, 0  ;;  %v20320_v40 = vld [vmem:[#allocation10_spill] sm:$0xff]  ;;  %v20322_v60 = vld [vmem:[#allocation29_spill] sm:$0xff] }
 0x18c   :  { %13766 = vmatprep.mubr.msk.bf16.mxu0 %vm20298_vm8, %v2115_v28  ;;  %v2116_v12 = vsel %vm15710_vm5, %v16366_v56, 0  ;;  %v2140_v31 = vshll.u32 %v16370_v17, 16  ;;  %v2145_v5 = vshll.u32 %v16366_v56, 16  ;;  %v2138_v45 = vshrl.u32 %v16370_v17, 16 }
 0x18d   :  { %v2102_v22 = vrot.slane %v2100_v38, 3  ;;  %v2105_v20 = vrot.slane %v2103_v34, 4  ;;  %v2091_v11 = vshrl.u32 %v2071_v52, 16  ;;  %v2094_v25 = vshll.u32 %v2071_v52, 16  ;;  %13767 = vmatmul.mubr.msk.bf16.vlgmr.msra.gmra.mxu0 %vm20300_vm9, %v2116_v12  ;;  %vm20313_vm9 = vmmov %vm20284_vm1 }
 0x18e   :  { %13791 = vmatpush3.bf16.msra.mxu0 %v20301_v1  ;;  %v2142_v50 = vrot.slane %v2140_v31, 1  ;;  %v2512_v46 = vsel %vm15973_vm0, %v16370_v17, 0  ;;  %v2513_v23 = vsel %vm15984_vm4, %v16366_v56, 0  ;;  %v2147_v36 = vrot.slane %v2145_v5, 1 }
 0x18f   :  { %v2093_v9 = vrot.slane %v2091_v11, 3  ;;  %v2096_v58 = vrot.slane %v2094_v25, 4  ;;  %13792 = vmatprep.subr.bf16.mxu0 %v14827_v13  ;;  %v2106_v29 = vor.u32 %v2105_v20, %v2102_v22  ;;  %v2531_v42 = vrot.slane %v2512_v46, 4  ;;  %v14835_v22 = vld [vmem:[%s19933_s4 + $0x1d0] sm:$0xff]   ;;  %v20331_v46 = vld [vmem:[#allocation23_spill] sm:$0xff] }
 0x190   :  { %v2143_v10 = vor.u32 %v2142_v50, %v2138_v45  ;;  %v2532_v32 = vrot.slane %v2513_v23, 4  ;;  %v2149_v21 = vshrl.u32 %v16366_v56, 16  ;;  %vm20311_vm8 = vcmask 1043456  }
 0x191   :  { %v2097_v26 = vor.u32 %v2096_v58, %v2093_v9  ;;  %v16435_v18 = vsel %vm15514_vm12, %v2106_v29, 0  ;;  %v14836_v9 = vld [vmem:[%s19933_s4 + $0x160] sm:$0xff]  }
 0x192   :  { %v2148_v51 = vsel %vm20304_vm2, %v2143_v10, %v2147_v36  ;;  %13793 = vmatpush3.bf16.msra.mxu0 %v14827_v13  ;;  %v2151_v33 = vor.u32 %v2149_v21, %v2147_v36  ;;  %v2533_v39 = vsel %vm20311_vm8, %v2531_v42, %v2532_v32  ;;  %vm20315_vm2 = vnez %v20314_v61  ;;  %vm20324_vm8 = vmmov %vm20313_vm9  ;;  %v14834_v13 = vld [vmem:[%s19933_s4 + $0x168] sm:$0xff]   ;;  %v20329_v58 = vld [vmem:[#allocation22_spill] sm:$0xff] }
 0x193   :  { %v16404_v44 = vsel %vm20305_vm11, %v2088_v8, %v2097_v26  ;;  %v16407_v3 = vsel %vm20306_vm15, %v2097_v26, %v2106_v29  ;;  %13750 = vmatprep.mubr.msk.bf16.mxu1 %vm20307_vm7, %v2148_v51  ;;  %13794 = vmatprep.subr.bf16.mxu0 %v14829_v4  ;;  %vm20316_vm11 = vsmask.f32 7424  ;;  %vm20317_vm15 = vmmov %vm20284_vm1  ;;  %v20318_v8 = vld [vmem:[#allocation9_spill] sm:$0xff]  ;;  %v2169_v28 = vshll.u32 %v16435_v18, 16  ;;  %v14837_v26 = vld [vmem:[%s19933_s4 + $0x1c8] sm:$0xff]  }
 0x194   :  { %v2117_v2 = vsel %vm15909_vm3, %v16404_v44, 0  ;;  %v2118_v35 = vsel %vm15953_vm14, %v16407_v3, 0  ;;  %v2153_v49 = vshll.u32 %v16404_v44, 16  ;;  %v2161_v0 = vshll.u32 %v16407_v3, 16  ;;  %v20334_v36 = vld [vmem:[#allocation21_spill] sm:$0xff]  ;;  %v20338_v42 = vld [vmem:[#allocation14_spill] sm:$0xff] }
 0x195   :  { %13770 = vmatprep.mubr.msk.bf16.mxu0 %vm20284_vm1, %v2117_v2  ;;  %v2157_v55 = vshrl.u32 %v16404_v44, 16  ;;  %v2514_v24 = vsel %vm16005_vm10, %v16404_v44, 0  ;;  %v2515_v6 = vsel %vm20315_vm2, %v16407_v3, 0  ;;  %vm20319_vm7 = vnez %v20318_v8 }
 0x196   :  { %13771 = vmatmul.mubr.msk.bf16.gmra.mxu0 %vm20310_vm6, %v2118_v35  ;;  %v2155_v54 = vrot.slane %v2153_v49, 1  ;;  %v2163_v43 = vrot.slane %v2161_v0, 1  ;;  %v2534_v30 = vrot.slane %v2514_v24, 4  ;;  %v2375_v37 = vsel %vm20319_vm7, %v16370_v17, 0  ;;  %vm20323_vm6 = vmmov %vm20316_vm11 }
 0x197   :  { %13795 = vmatpush3.bf16.msra.mxu0 %v14829_v4  ;;  %13798 = vmatprep.mubr.msk.bf16.mxu0 %vm20313_vm9, %v2533_v39  ;;  %vm20321_vm1 = vcmp.ne.s16.totalorder %v20320_v40, 0  ;;  %v2536_v34 = vrot.slane %v2515_v6, 4  ;;  %v2165_v52 = vshrl.u32 %v16407_v3, 16  ;;  %vm20325_vm9 = vcmask 1043456   ;;  %v14839_v6 = vld [vmem:[%s19933_s4 + $0x1c0] sm:$0xff]  }
 0x198   :  { %v16442_v19 = vsel %vm20316_vm11, %v2151_v33, %v2155_v54  ;;  %13796 = vmatprep.subr.bf16.mxu0 %v14831_v41  ;;  %v2159_v47 = vor.u32 %v2157_v55, %v2155_v54  ;;  %v2376_v15 = vsel %vm20321_vm1, %v16366_v56, 0  ;;  %v2535_v20 = vsel %vm20325_vm9, %v2532_v32, %v2534_v30  ;;  %vm20326_vm11 = vmmov %vm20324_vm8  ;;  %v14838_v54 = vld [vmem:[%s19933_s4 + $0x1b8] sm:$0xff]  }
 0x199   :  { %13751 = vmatmul.mubr.msk.bf16.vlgmr.msra.gmra.mxu1 %vm20317_vm15, %v16442_v19  ;;  %v2167_v12 = vor.u32 %v2165_v52, %v2163_v43  ;;  %v2394_v11 = vrot.slane %v2375_v37, 1  ;;  %v2395_v25 = vrot.slane %v2376_v15, 1  ;;  %vm20327_vm15 = vmmov %vm20325_vm9  ;;  %v16483_v50 = vrot.slane %v2169_v28, 1  ;;  %v14840_v37 = vld [vmem:[%s19933_s4 + $0x1b0] sm:$0xff]   ;;  %v20348_v15 = vld [vmem:[#allocation25_spill] sm:$0xff] }
 0x19a   :  { %13775 = vmatpush3.bf16.msra.mxu1 %v20322_v60  ;;  %v16464_v38 = vsel %vm20323_vm6, %v2159_v47, %v2163_v43  ;;  %v2537_v1 = vsel %vm20327_vm15, %v2534_v30, %v2536_v34  ;;  %vm20328_vm1 = vmmov %vm20324_vm8  ;;  %vm20330_vm6 = vnez %v20329_v58  ;;  %vm20333_vm9 = vsmask.f32 7424 }
 0x19b   :  { %13754 = vmatprep.mubr.msk.bf16.mxu1 %vm20324_vm8, %v16464_v38  ;;  %13797 = vmatpush3.bf16.msra.mxu0 %v14831_v41  ;;  %v2788_v4 = vsel %vm20330_vm6, %v16370_v17, 0  ;;  %vm20332_vm8 = vcmp.ne.s16.totalorder %v20331_v46, 0  ;;  %v16497_v10 = vsel %vm20333_vm9, %v2167_v12, %v16483_v50  ;;  %vm20336_vm15 = vmmov %vm20328_vm1  ;;  %v20341_v41 = vld [vmem:[#allocation18_spill] sm:$0xff]  ;;  %vm20350_vm6 = vcmask 1046528   ;;  %v14841_v12 = vld [vmem:[%s19933_s4 + $0x218] sm:$0xff]  }
 0x19c   :  { %13776 = vmatprep.subr.bf16.mxu1 %v14832_v57  ;;  %13822 = vmatprep.subr.bf16.mxu0 %v14833_v7  ;;  %v2789_v23 = vsel %vm20332_vm8, %v16366_v56, 0  ;;  %vm20339_vm8 = vcmp.ne.s16.totalorder %v20338_v42, 0  ;;  %vm20340_vm9 = vmmov %vm20336_vm15  ;;  %v2807_v2 = vrot.slane %v2788_v4, 5  ;;  %v14842_v17 = vld [vmem:[%s19933_s4 + $0x1a8] sm:$0xff]  }
 0x19d   :  { %v2377_v32 = vsel %vm20339_vm8, %v16404_v44, 0  ;;  %v2808_v35 = vrot.slane %v2789_v23, 5  ;;  %vm20347_vm8 = vcmask 1042432  }
 0x19e   :  { %13777 = vmatpush3.bf16.msra.mxu1 %v14832_v57  ;;  %13799 = vmatmul.mubr.msk.bf16.vlgmr.msra.gmra.mxu0 %vm20326_vm11, %v2535_v20  ;;  %vm20335_vm11 = vnez %v20334_v36  ;;  %v2397_v24 = vrot.slane %v2377_v32, 1  ;;  %v20344_v57 = vld [vmem:[#allocation24_spill] sm:$0xff]  ;;  %v2665_v32 = vrot.slane %v2157_v55, 4  ;;  %v2669_v55 = vrot.slane %v2165_v52, 4 }
 0x19f   :  { %13802 = vmatprep.mubr.msk.bf16.mxu0 %vm20328_vm1, %v2537_v1  ;;  %13823 = vmatpush3.bf16.msra.mxu0 %v14833_v7  ;;  %v2516_v29 = vsel %vm20335_vm11, %v16435_v18, 0  ;;  %vm20337_vm1 = vcmask 1046528   ;;  %vm20342_vm11 = vcmp.ne.s16.totalorder %v20341_v41, 0  ;;  %v2809_v30 = vsel %vm20347_vm8, %v2807_v2, %v2808_v35 }
 0x1a0   :  { %13778 = vmatprep.subr.bf16.mxu1 %v14834_v13  ;;  %13824 = vmatprep.subr.bf16.mxu0 %v14835_v22  ;;  %v2396_v51 = vsel %vm20337_vm1, %v2394_v11, %v2395_v25  ;;  %v2378_v33 = vsel %vm20342_vm11, %v16407_v3, 0  ;;  %v2538_v39 = vrot.slane %v2516_v29, 4  ;;  %vm20345_vm1 = vcmp.ne.s16.totalorder %v20344_v57, 0  ;;  %vm20346_vm11 = vmmov %vm20340_vm9 }
 0x1a1   :  { %13755 = vmatmul.mubr.msk.bf16.gmra.mxu1 %vm20336_vm15, %v16497_v10  ;;  %vm20343_vm15 = vcmask 1043456   ;;  %v2399_v43 = vrot.slane %v2378_v33, 1  ;;  %v2790_v7 = vsel %vm20345_vm1, %v16404_v44, 0  ;;  %vm20351_vm1 = vmmov %vm20340_vm9  ;;  %v2659_v11 = vrot.slane %v2140_v31, 5  ;;  %v14843_v31 = vld [vmem:[%s19933_s4 + $0x210] sm:$0xff]  }
 0x1a2   :  { %13779 = vmatpush3.bf16.msra.mxu1 %v14834_v13  ;;  %13782 = vmatprep.mubr.msk.bf16.mxu1 %vm20340_vm9, %v2396_v51  ;;  %v2539_v47 = vsel %vm20343_vm15, %v2536_v34, %v2538_v39  ;;  %vm20349_vm15 = vcmp.ne.s16.totalorder %v20348_v15, 0  ;;  %v2398_v34 = vsel %vm20350_vm6, %v2395_v25, %v2397_v24  ;;  %v2810_v13 = vrot.slane %v2790_v7, 5  ;;  %v14844_v51 = vld [vmem:[%s19933_s4 + $0x1a0] sm:$0xff]   ;;  %v14845_v39 = vld [vmem:[%s19933_s4 + $0x208] sm:$0xff]  }
 0x1a3   :  { %13825 = vmatpush3.bf16.msra.mxu0 %v14835_v22  ;;  %13780 = vmatprep.subr.bf16.mxu1 %v14836_v9  ;;  %v2791_v60 = vsel %vm20349_vm15, %v16407_v3, 0  ;;  %v2658_v22 = vrot.slane %v2138_v45, 4  ;;  %v2661_v1 = vrot.slane %v2149_v21, 4  ;;  %v2662_v25 = vrot.slane %v2145_v5, 5  ;;  %v20354_v45 = vld [vmem:[#allocation19_spill] sm:$0xff]  ;;  %vm20357_vm15 = vmmov %vm20351_vm1  ;;  %v14847_v7 = vld [vmem:[%s19933_s4 + $0x200] sm:$0xff]  }
 0x1a4   :  { %13826 = vmatprep.subr.bf16.mxu0 %v14837_v26  ;;  %vm20355_vm8 = vnez %v20354_v45 }
 0x1a5   :  { %v2379_v4 = vsel %vm20355_vm8, %v16435_v18, 0  ;;  %v2660_v21 = vor.u32 %v2659_v11, %v2658_v22  ;;  %v2663_v23 = vor.u32 %v2662_v25, %v2661_v1  ;;  %v2925_v11 = vsel %vm15518_vm13, %v16366_v56, 0 }
 0x1a6   :  { %13781 = vmatpush3.bf16.msra.mxu1 %v14836_v9  ;;  %13803 = vmatmul.mubr.msk.bf16.gmra.mxu0 %vm20346_vm11, %v2539_v47  ;;  %vm20352_vm11 = vmmov %vm20350_vm6  ;;  %v2812_v9 = vrot.slane %v2791_v60, 5 }
 0x1a7   :  { %13827 = vmatpush3.bf16.msra.mxu0 %v14837_v26  ;;  %13830 = vmatprep.mubr.msk.bf16.mxu0 %vm20340_vm9, %v2809_v30  ;;  %v2400_v20 = vsel %vm20352_vm11, %v2397_v24, %v2399_v43  ;;  %vm20353_vm6 = vmmov %vm20351_vm1  ;;  %vm20356_vm9 = vcmask 1042432   ;;  %v2401_v26 = vrot.slane %v2379_v4, 1  ;;  %v2927_v4 = vsel %vm15909_vm3, %v16407_v3, 0 }
 0x1a8   :  { %13806 = vmatprep.subr.bf16.mxu1 %v14838_v54  ;;  %13828 = vmatprep.subr.bf16.mxu0 %v14839_v6  ;;  %v2811_v5 = vsel %vm20356_vm9, %v2808_v35, %v2810_v13  ;;  %vm20359_vm11 = vmmov %vm20353_vm6  ;;  %v20361_v35 = vld [vmem:[#allocation26_spill] sm:$0xff] }
 0x1a9   :  { %13783 = vmatmul.mubr.msk.bf16.vlgmr.msra.gmra.mxu1 %vm20351_vm1, %v2398_v34  ;;  %vm20358_vm1 = vmmov %vm20356_vm9  ;;  %vm20362_vm9 = vnez %v20361_v35 }
 0x1aa   :  { %13807 = vmatpush3.bf16.msra.mxu1 %v14838_v54  ;;  %13786 = vmatprep.mubr.msk.bf16.mxu1 %vm20353_vm6, %v2400_v20  ;;  %v2813_v29 = vsel %vm20358_vm1, %v2810_v13, %v2812_v9  ;;  %vm20360_vm6 = vcmask 1046528   ;;  %v2792_v33 = vsel %vm20362_vm9, %v16435_v18, 0  ;;  %v2666_v54 = vrot.slane %v2153_v49, 5  ;;  %v14846_v49 = vld [vmem:[%s19933_s4 + $0x1f8] sm:$0xff]   ;;  %v14850_v20 = vld [vmem:[%s19933_s4 + $0x1e0] sm:$0xff]  }
 0x1ab   :  { %13829 = vmatpush3.bf16.msra.mxu0 %v14839_v6  ;;  %13808 = vmatprep.subr.bf16.mxu1 %v14840_v37  ;;  %v2402_v2 = vsel %vm20360_vm6, %v2399_v43, %v2401_v26  ;;  %vm20364_vm1 = vsmask.f32 3328  ;;  %v2670_v6 = vrot.slane %v2161_v0, 5  ;;  %v2814_v47 = vrot.slane %v2792_v33, 5 }
 0x1ac   :  { %13854 = vmatprep.subr.bf16.mxu0 %v14841_v12  ;;  %v2664_v24 = vsel %vm20364_vm1, %v2660_v21, %v2663_v23  ;;  %v2667_v43 = vor.u32 %v2666_v54, %v2665_v32  ;;  %vm20365_vm6 = vcmask 1042432   ;;  %v2673_v0 = vshrl.u32 %v16435_v18, 16  ;;  %vm20367_vm1 = vmmov %vm20359_vm11  ;;  %v14855_v54 = vld [vmem:[%s19933_s4 + $0x258] sm:$0xff]  }
 0x1ad   :  { %v2815_v52 = vsel %vm20365_vm6, %v2812_v9, %v2814_v47  ;;  %v2671_v30 = vor.u32 %v2670_v6, %v2669_v55  ;;  %vm20369_vm9 = vmmov %vm20367_vm1  ;;  %v14852_v9 = vld [vmem:[%s19933_s4 + $0x230] sm:$0xff]   ;;  %v14858_v55 = vld [vmem:[%s19933_s4 + $0x278] sm:$0xff]  }
 0x1ae   :  { %13809 = vmatpush3.bf16.msra.mxu1 %v14840_v37  ;;  %13831 = vmatmul.mubr.msk.bf16.vlgmr.msra.gmra.mxu0 %vm20357_vm15, %v2811_v5  ;;  %vm20363_vm15 = vmmov %vm20359_vm11  ;;  %v14848_v37 = vld [vmem:[%s19933_s4 + $0x1f0] sm:$0xff]   ;;  %v2675_v13 = vrot.slane %v2673_v0, 4  ;;  %v3056_v1 = vor.u32 %v2673_v0, %v16483_v50  ;;  %v2926_v50 = vsel %vm15710_vm5, %v16404_v44, 0  ;;  %v3158_v5 = vsel %vm20319_vm7, %v16366_v56, 0  ;;  %v14859_v47 = vld [vmem:[%s19933_s4 + $0x240] sm:$0xff]  }
 0x1af   :  { %13834 = vmatprep.mubr.msk.bf16.mxu0 %vm20359_vm11, %v2813_v29  ;;  %13855 = vmatpush3.bf16.msra.mxu0 %v14841_v12  ;;  %v2676_v12 = vrot.slane %v2169_v28, 5  ;;  %v14854_v29 = vld [vmem:[%s19933_s4 + $0x220] sm:$0xff]   ;;  %v14860_v6 = vld [vmem:[%s19933_s4 + $0x270] sm:$0xff]  }
 0x1b0   :  { %13810 = vmatprep.subr.bf16.mxu1 %v14842_v17  ;;  %13856 = vmatprep.subr.bf16.mxu0 %v14843_v31 }
 0x1b1   :  { %13787 = vmatmul.mubr.msk.bf16.gmra.mxu1 %vm20363_vm15, %v2402_v2  ;;  %vm20366_vm15 = vmmov %vm20359_vm11  ;;  %v2677_v22 = vor.u32 %v2676_v12, %v2675_v13 }
 0x1b2   :  { %13811 = vmatpush3.bf16.msra.mxu1 %v14842_v17  ;;  %13814 = vmatprep.mubr.msk.bf16.mxu1 %vm20359_vm11, %v2664_v24  ;;  %vm20368_vm11 = vsmask.f32 3328  ;;  %v14857_v24 = vld [vmem:[%s19933_s4 + $0x248] sm:$0xff]  }
 0x1b3   :  { %13857 = vmatpush3.bf16.msra.mxu0 %v14843_v31  ;;  %13812 = vmatprep.subr.bf16.mxu1 %v14844_v51  ;;  %v2668_v60 = vsel %vm20368_vm11, %v2663_v23, %v2667_v43  ;;  %vm20370_vm6 = vmmov %vm20368_vm11  ;;  %v14853_v31 = vld [vmem:[%s19933_s4 + $0x228] sm:$0xff]   ;;  %v3175_v23 = vrot.slane %v3158_v5, 1 }
 0x1b4   :  { %13858 = vmatprep.subr.bf16.mxu0 %v14845_v39  ;;  %v2672_v34 = vsel %vm20370_vm6, %v2667_v43, %v2671_v30  ;;  %vm20373_vm11 = vmmov %vm20370_vm6  ;;  %v16692_v43 = vld [vmem:[%s19933_s4 + $0x2b8] sm:$0xff]  }
 0x1b5   :  { %v2678_v28 = vsel %vm20373_vm11, %v2671_v30, %v2677_v22  ;;  %vm20374_vm6 = vmmov %vm20367_vm1  ;;  %20391 = vst [vmem:[#allocation32_spill] sm:$0xff] %v16692_v43 }
 0x1b6   :  { %13813 = vmatpush3.bf16.msra.mxu1 %v14844_v51  ;;  %13835 = vmatmul.mubr.msk.bf16.gmra.mxu0 %vm20366_vm15, %v2815_v52  ;;  %vm20371_vm15 = vmmov %vm20367_vm1  ;;  %v16701_v52 = vld [vmem:[%s19933_s4 + $0x298] sm:$0xff]  }
 0x1b7   :  { %13859 = vmatpush3.bf16.msra.mxu0 %v14845_v39  ;;  %13862 = vmatprep.mubr.msk.bf16.mxu0 %vm20367_vm1, %v16442_v19  ;;  %v14849_v19 = vld [vmem:[%s19933_s4 + $0x1e8] sm:$0xff]   ;;  %vm20379_vm11 = vmmov %vm20374_vm6  ;;  %20392 = vst [vmem:[#allocation30_spill] sm:$0xff] %v16701_v52 }
 0x1b8   :  { %13838 = vmatprep.subr.bf16.mxu1 %v14846_v49  ;;  %13860 = vmatprep.subr.bf16.mxu0 %v14847_v7 }
 0x1b9   :  { %13815 = vmatmul.mubr.msk.bf16.vlgmr.msra.gmra.mxu1 %vm20369_vm9, %v2668_v60  ;;  %vm20372_vm9 = vmmov %vm20367_vm1 }
 0x1ba   :  { %13839 = vmatpush3.bf16.msra.mxu1 %v14846_v49  ;;  %13818 = vmatprep.mubr.msk.bf16.mxu1 %vm20371_vm15, %v2672_v34  ;;  %vm20375_vm15 = vmmov %vm20367_vm1  ;;  %v14862_v49 = vld [vmem:[%s19933_s4 + $0x268] sm:$0xff]  }
 0x1bb   :  { %13861 = vmatpush3.bf16.msra.mxu0 %v14847_v7  ;;  %13840 = vmatprep.subr.bf16.mxu1 %v14848_v37  ;;  %v14864_v7 = vld [vmem:[%s19933_s4 + $0x260] sm:$0xff]  }
 0x1bc   :  { %13886 = vmatprep.subr.bf16.mxu0 %v14858_v55 }
 0x1be   :  { %13841 = vmatpush3.bf16.msra.mxu1 %v14848_v37  ;;  %13863 = vmatmul.mubr.msk.bf16.vlgmr.msra.gmra.mxu0 %vm20367_vm1, %v16464_v38  ;;  %v14851_v38 = vld [vmem:[%s19933_s4 + $0x238] sm:$0xff]   ;;  %vm20377_vm1 = vsmask.f32 7424 }
 0x1bf   :  { %13866 = vmatprep.mubr.msk.bf16.mxu0 %vm20372_vm9, %v16497_v10  ;;  %13842 = vmatprep.subr.bf16.mxu1 %v14849_v19  ;;  %v20376_v10 = vld [vmem:[#allocation27_spill] sm:$0xff]  ;;  %vm20378_vm9 = vmmov %vm20374_vm6 }
 0x1c0   :  { %v3057_v25 = vsel %vm20377_vm1, %v3056_v1, %v20376_v10  ;;  %vm20381_vm1 = vmmov %vm20374_vm6  ;;  %13887 = vmatpush3.bf16.msra.mxu0 %v14858_v55 }
 0x1c1   :  { %13819 = vmatmul.mubr.msk.bf16.gmra.mxu1 %vm20374_vm6, %v2678_v28  ;;  %vm20388_vm7 = vmmov %vm20381_vm1  ;;  %13888 = vmatprep.subr.bf16.mxu0 %v14860_v6 }
 0x1c2   :  { %13843 = vmatpush3.bf16.msra.mxu1 %v14849_v19  ;;  %13846 = vmatprep.mubr.msk.bf16.mxu1 %vm20375_vm15, %v2925_v11  ;;  %vm20380_vm15 = vcmp.ne.s16.totalorder %v20320_v40, 0 }
 0x1c3   :  { %13844 = vmatprep.subr.bf16.mxu1 %v14850_v20  ;;  %v3159_v17 = vsel %vm20380_vm15, %v16404_v44, 0  ;;  %v2928_v44 = vsel %vm15953_vm14, %v16435_v18, 0  ;;  %vm20385_vm15 = vcmp.ne.s16.totalorder %v20341_v41, 0 }
 0x1c4   :  { %v3176_v21 = vrot.slane %v3159_v17, 1  ;;  %v3161_v32 = vsel %vm20385_vm15, %v16435_v18, 0  ;;  %v14856_v18 = vld [vmem:[%s19933_s4 + $0x250] sm:$0xff]   ;;  %13889 = vmatpush3.bf16.msra.mxu0 %v14860_v6  ;;  %vm20416_vm15 = vmmov %vm20381_vm1 }
 0x1c5   :  { %v3180_v2 = vrot.slane %v3161_v32, 1  ;;  %13890 = vmatprep.subr.bf16.mxu0 %v14862_v49 }
 0x1c6   :  { %13845 = vmatpush3.bf16.msra.mxu1 %v14850_v20  ;;  %13867 = vmatmul.mubr.msk.bf16.gmra.mxu0 %vm20378_vm9, %v3057_v25  ;;  %vm20382_vm9 = vcmask 1046528  }
 0x1c7   :  { %13870 = vmatprep.subr.bf16.mxu1 %v14851_v38  ;;  %v3177_v26 = vsel %vm20382_vm9, %v3175_v23, %v3176_v21  ;;  %vm20386_vm8 = vmmov %vm20382_vm9 }
 0x1c8   :  { %vm20387_vm9 = vmmov %vm20386_vm8  ;;  %13891 = vmatpush3.bf16.msra.mxu0 %v14862_v49 }
 0x1c9   :  { %13847 = vmatmul.mubr.msk.bf16.vlgmr.msra.gmra.mxu1 %vm20379_vm11, %v2926_v50  ;;  %vm20383_vm11 = vcmp.ne.s16.totalorder %v20338_v42, 0  ;;  %13892 = vmatprep.subr.bf16.mxu0 %v14864_v7 }
 0x1ca   :  { %13871 = vmatpush3.bf16.msra.mxu1 %v14851_v38  ;;  %13850 = vmatprep.mubr.msk.bf16.mxu1 %vm20374_vm6, %v2927_v4  ;;  %v3160_v56 = vsel %vm20383_vm11, %v16407_v3, 0  ;;  %vm20384_vm6 = vmmov %vm20381_vm1 }
 0x1cb   :  { %13872 = vmatprep.subr.bf16.mxu1 %v14852_v9  ;;  %v3178_v51 = vrot.slane %v3160_v56, 1  ;;  %vm20389_vm11 = vmmov %vm20386_vm8 }
 0x1cc   :  { %v3182_v3 = vsel %vm20389_vm11, %v3180_v2, %v20376_v10  ;;  %13893 = vmatpush3.bf16.msra.mxu0 %v14864_v7 }
 0x1cd   :  { %v3179_v33 = vsel %vm20386_vm8, %v3176_v21, %v3178_v51  ;;  %v3181_v39 = vsel %vm20387_vm9, %v3178_v51, %v3180_v2  ;;  %13918 = vmatprep.subr.bf16.mxu0 %v16701_v52  ;;  %vm20414_vm8 = vmmov %vm20381_vm1 }
 0x1ce   :  { %13873 = vmatpush3.bf16.msra.mxu1 %v14852_v9 }
 0x1cf   :  { %13874 = vmatprep.subr.bf16.mxu1 %v14853_v31 }
 0x1d1   :  { %13851 = vmatmul.mubr.msk.bf16.gmra.mxu1 %vm20381_vm1, %v2928_v44 }
 0x1d2   :  { %13875 = vmatpush3.bf16.msra.mxu1 %v14853_v31  ;;  %13878 = vmatprep.mubr.msk.bf16.mxu1 %vm20384_vm6, %v3177_v26  ;;  %vm20390_vm6 = vmmov %vm20381_vm1 }
 0x1d3   :  { %13876 = vmatprep.subr.bf16.mxu1 %v14854_v29 }
 0x1d6   :  { %13877 = vmatpush3.bf16.msra.mxu1 %v14854_v29 }
 0x1d7   :  { %13902 = vmatprep.subr.bf16.mxu1 %v14855_v54 }
 0x1d9   :  { %13879 = vmatmul.mubr.msk.bf16.vlgmr.msra.gmra.mxu1 %vm20381_vm1, %v3179_v33  ;;  %vm20420_vm1 = vsmask.f32 7424 }
 0x1da   :  { %13882 = vmatprep.mubr.msk.bf16.mxu1 %vm20388_vm7, %v3181_v39  ;;  %13903 = vmatpush3.bf16.msra.mxu1 %v14855_v54  ;;  %vm20411_vm7 = vsmask.f32 4352 }
 0x1db   :  { %13904 = vmatprep.subr.bf16.mxu1 %v14856_v18  ;;  %vm20421_vm9 = vmmov %vm20411_vm7 }
 0x1dc   :  { %vm20422_vm11 = vmmov %vm20411_vm7 }
 0x1de   :  { %13905 = vmatpush3.bf16.msra.mxu1 %v14856_v18 }
 0x1df   :  { %13906 = vmatprep.subr.bf16.mxu1 %v14857_v24 }
 0x1e1   :  { %13883 = vmatmul.mubr.msk.bf16.gmra.mxu1 %vm20390_vm6, %v3182_v3 }
 0x1e2   :  { %13907 = vmatpush3.bf16.msra.mxu1 %v14857_v24 }
 0x1e3   :  { %13908 = vmatprep.subr.bf16.mxu1 %v14859_v47 }
 0x1e6   :  { %13909 = vmatpush3.bf16.msra.mxu1 %v14859_v47 }
 0x1e7   :  { %13934 = vmatprep.subr.bf16.mxu1 %v16692_v43 }
 0x24d   :  { %v13768_v30 = vpop.f32.mrf.mxu0 }
 0x24f   :  { %v2344_v0 = vpop.f32.mrf.mxu0 }
 0x251   :  { %v13769_v37 = vpop.f32.mrf.mxu0 }
 0x253   :  { %v2347_v60 = vpop.f32.mrf.mxu0 }
 0x256   :  { %v13772_v34 = vpop.f32.mrf.mxu0 }
 0x258   :  { %v2360_v13 = vpop.f32.mrf.mxu0 }
 0x259   :  { %v13752_v12 = vpop.f32.mrf.mxu1 }
 0x25a   :  { %v16704_v19 = vpop.f32.mrf.mxu0  ;;  %v2353_v41 = vadd.f32 %v13768_v30, %v13752_v12 }
 0x25b   :  { %v2243_v22 = vpop.f32.mrf.mxu1 }
 0x25c   :  { %v16706_v20 = vpop.f32.mrf.mxu0  ;;  %v2345_v46 = vadd.f32 %v2344_v0, %v2243_v22 }
 0x25d   :  { %v13753_v28 = vpop.f32.mrf.mxu1 }
 0x25e   :  { %v13800_v11 = vpop.f32.mrf.mxu0  ;;  %v2356_v40 = vadd.f32 %v13769_v37, %v13753_v28 }
 0x25f   :  { %v2246_v1 = vpop.f32.mrf.mxu1 }
 0x260   :  { %v2610_v38 = vpop.f32.mrf.mxu0  ;;  %v2348_v16 = vadd.f32 %v2347_v60, %v2246_v1 }
 0x261   :  { %v13756_v25 = vpop.f32.mrf.mxu1 }
 0x262   :  { %v13801_v9 = vpop.f32.mrf.mxu0  ;;  %v2369_v43 = vadd.f32 %v13772_v34, %v13756_v25 }
 0x263   :  { %v2259_v50 = vpop.f32.mrf.mxu1 }
 0x264   :  { %v2613_v4 = vpop.f32.mrf.mxu0  ;;  %v2361_v12 = vadd.f32 %v2360_v13, %v2259_v50 }
 0x265   :  { %v13757_v17 = vpop.f32.mrf.mxu1 }
 0x266   :  { %v13804_v31 = vpop.f32.mrf.mxu0 }
 0x267   :  { %v2262_v5 = vpop.f32.mrf.mxu1 }
 0x268   :  { %v16708_v21 = vpop.f32.mrf.mxu0 }
 0x269   :  { %v13784_v23 = vpop.f32.mrf.mxu1 }
 0x26a   :  { %v16710_v29 = vpop.f32.mrf.mxu0  ;;  %v2506_v58 = vadd.f32 %v13784_v23, %v2353_v41 }
 0x26b   :  { %v2473_v44 = vpop.f32.mrf.mxu1 }
 0x26c   :  { %v16712_v26 = vpop.f32.mrf.mxu0  ;;  %v2504_v8 = vadd.f32 %v2473_v44, %v2345_v46  ;;  %v2643_v59 = vadd.f32 %v13800_v11, %v2506_v58 }
 0x26d   :  { %v13785_v56 = vpop.f32.mrf.mxu1 }
 0x26e   :  { %v13832_v51 = vpop.f32.mrf.mxu0  ;;  %v2507_v53 = vadd.f32 %v13785_v56, %v2356_v40  ;;  %v2641_v62 = vadd.f32 %v2610_v38, %v2504_v8  ;;  %v2372_v40 = vadd.f32 %v16704_v19, %v13757_v17  ;;  %v2364_v8 = vadd.f32 %v16706_v20, %v2262_v5 }
 0x26f   :  { %v2476_v32 = vpop.f32.mrf.mxu1 }
 0x270   :  { %v2886_v2 = vpop.f32.mrf.mxu0  ;;  %v2505_v27 = vadd.f32 %v2476_v32, %v2348_v16  ;;  %v2644_v0 = vadd.f32 %v13801_v9, %v2507_v53 }
 0x271   :  { %v13788_v33 = vpop.f32.mrf.mxu1 }
 0x272   :  { %v13833_v39 = vpop.f32.mrf.mxu0  ;;  %v2642_v46 = vadd.f32 %v2613_v4, %v2505_v27 }
 0x273   :  { %v2489_v3 = vpop.f32.mrf.mxu1 }
 0x274   :  { %v2889_v18 = vpop.f32.mrf.mxu0  ;;  %v2508_v41 = vadd.f32 %v2489_v3, %v2361_v12 }
 0x275   :  { %v13789_v54 = vpop.f32.mrf.mxu1 }
 0x276   :  { %v16714_v6 = vpop.f32.mrf.mxu0  ;;  %v2511_v13 = vadd.f32 %v13789_v54, %v2372_v40 }
 0x277   :  { %v2492_v24 = vpop.f32.mrf.mxu1 }
 0x278   :  { %v16716_v7 = vpop.f32.mrf.mxu0  ;;  %v2509_v27 = vadd.f32 %v2492_v24, %v2364_v8 }
 0x279   :  { %v13816_v55 = vpop.f32.mrf.mxu1 }
 0x27a   :  { %v16718_v45 = vpop.f32.mrf.mxu0  ;;  %v2782_v63 = vadd.f32 %v13816_v55, %v2643_v59 }
 0x27b   :  { %v2749_v47 = vpop.f32.mrf.mxu1  ;;  %20393 = vst [vmem:[#allocation31_spill] sm:$0xff] %v16718_v45  ;;  %v2510_v45 = vadd.f32 %v13788_v33, %v2369_v43  ;;  %v2645_v43 = vadd.f32 %v16708_v21, %v2508_v41 }
 0x27c   :  { %v16720_v42 = vpop.f32.mrf.mxu0  ;;  %v2919_v23 = vadd.f32 %v13832_v51, %v2782_v63 }
 0x27d   :  { %v13817_v49 = vpop.f32.mrf.mxu1  ;;  %20394 = vst [vmem:[#allocation28_spill] sm:$0xff] %v16720_v42  ;;  %v2647_v34 = vadd.f32 %v13804_v31, %v2510_v45  ;;  %v2648_v45 = vadd.f32 %v16710_v29, %v2511_v13 }
 0x27e   :  { %v13864_v61 = vpop.f32.mrf.mxu0  ;;  %v2783_v37 = vadd.f32 %v13817_v49, %v2644_v0 }
 0x27f   :  { %v2752_v10 = vpop.f32.mrf.mxu1 }
 0x280   :  { %v3119_v30 = vpop.f32.mrf.mxu0  ;;  %v2781_v60 = vadd.f32 %v2752_v10, %v2642_v46  ;;  %v2920_v38 = vadd.f32 %v13833_v39, %v2783_v37 }
 0x281   :  { %v13820_v35 = vpop.f32.mrf.mxu1 }
 0x282   :  { %v13865_v28 = vpop.f32.mrf.mxu0  ;;  %v2786_v53 = vadd.f32 %v13820_v35, %v2647_v34  ;;  %v2918_v19 = vadd.f32 %v2889_v18, %v2781_v60  ;;  %v20399_v24 = vld [vmem:[#allocation31_spill] sm:$0xff] }
 0x283   :  { %v2765_v15 = vpop.f32.mrf.mxu1 }
 0x284   :  { %v3122_v11 = vpop.f32.mrf.mxu0  ;;  %v2784_v25 = vadd.f32 %v2765_v15, %v2645_v43  ;;  %v2923_v35 = vadd.f32 %v16714_v6, %v2786_v53  ;;  %v2646_v15 = vadd.f32 %v16712_v26, %v2509_v27  ;;  %v20401_v41 = vld [vmem:[#allocation28_spill] sm:$0xff] }
 0x285   :  { %v13821_v57 = vpop.f32.mrf.mxu1 }
 0x286   :  { %v2787_v17 = vadd.f32 %v13821_v57, %v2648_v45 }
 0x287   :  { %v16722_v36 = vpop.f32.mrf.mxu1 }
 0x288   :  { %20395 = vst [vmem:[#allocation29_spill] sm:$0xff] %v16722_v36  ;;  %v2780_v36 = vadd.f32 %v2749_v47, %v2641_v62  ;;  %v2924_v55 = vadd.f32 %v20399_v24, %v2787_v17 }
 0x289   :  { %v13848_v52 = vpop.f32.mrf.mxu1 }
 0x28a   :  { %v3041_v16 = vadd.f32 %v13848_v52, %v2919_v23  ;;  %v2917_v59 = vadd.f32 %v2886_v2, %v2780_v36  ;;  %v16731_v36 = vld [vmem:[%s19938_s5 + $0x1] ss:$0 sm:$0xff]  ;;  %v13868_v52 = vpop.f32.mrf.mxu0  ;;  %v20398_v2 = vld [vmem:[#allocation3_spill] sm:$0xff] }
 0x28b   :  { %v3008_v48 = vpop.f32.mrf.mxu1  ;;  %v683_v33 = vunpack.c.l.bf16 %v20398_v2  ;;  %v684_v6 = vunpack.c.h.bf16 %v20398_v2 }
 0x28c   :  { %v3039_v1 = vadd.f32 %v3008_v48, %v2917_v59  ;;  %v3152_v50 = vadd.f32 %v13864_v61, %v3041_v16  ;;  %v20396_v61 = vld [vmem:[#allocation6_spill] sm:$0xff]  ;;  %v3135_v3 = vpop.f32.mrf.mxu0 }
 0x28d   :  { %v13849_v14 = vpop.f32.mrf.mxu1  ;;  %v685_v31 = vunpack.c.l.bf16 %v20396_v61  ;;  %v686_v26 = vunpack.c.h.bf16 %v20396_v61 }
 0x28e   :  { %v3042_v9 = vadd.f32 %v13849_v14, %v2920_v38  ;;  %v3150_v4 = vadd.f32 %v3119_v30, %v3039_v1  ;;  %v2921_v14 = vadd.f32 %v16716_v7, %v2784_v25 }
 0x28f   :  { %v3011_v42 = vpop.f32.mrf.mxu1  ;;  %v20397_v51 = vld [vmem:[#allocation29_spill] sm:$0xff] }
 0x290   :  { %v3040_v20 = vadd.f32 %v3011_v42, %v2918_v19  ;;  %v3153_v56 = vadd.f32 %v13865_v28, %v3042_v9  ;;  %v2785_v32 = vadd.f32 %v20397_v51, %v2646_v15  ;;  %v13869_v28 = vpop.f32.mrf.mxu0  ;;  %v20406_v19 = vld [vmem:[#allocation8_spill] sm:$0xff] }
 0x291   :  { %v13852_v22 = vpop.f32.mrf.mxu1  ;;  %v688_v61 = vunpack.c.h.bf16 %v20406_v19 }
 0x292   :  { %v3045_v21 = vadd.f32 %v13852_v22, %v2923_v35  ;;  %v3151_v18 = vadd.f32 %v3122_v11, %v3040_v20  ;;  %v2922_v22 = vadd.f32 %v20401_v41, %v2785_v32  ;;  %v3138_v27 = vpop.f32.mrf.mxu0  ;;  %v14863_v41 = vld [vmem:[%s19933_s4 + $0x2b0] sm:$0xff]  }
 0x293   :  { %v3024_v58 = vpop.f32.mrf.mxu1 }
 0x294   :  { %v3043_v42 = vadd.f32 %v3024_v58, %v2921_v14  ;;  %v3156_v12 = vadd.f32 %v13868_v52, %v3045_v21 }
 0x295   :  { %v13853_v62 = vpop.f32.mrf.mxu1 }
 0x296   :  { %v3046_v0 = vadd.f32 %v13853_v62, %v2924_v55  ;;  %v3154_v46 = vadd.f32 %v3135_v3, %v3043_v42  ;;  %v20405_v62 = vld [vmem:[#allocation11_spill] sm:$0xff] }
 0x297   :  { %v3027_v63 = vpop.f32.mrf.mxu1  ;;  %v689_v53 = vunpack.c.l.bf16 %v20405_v62 }
 0x298   :  { %v3044_v34 = vadd.f32 %v3027_v63, %v2922_v22  ;;  %v3157_v1 = vadd.f32 %v13869_v28, %v3046_v0 }
 0x299   :  { %v13880_v10 = vpop.f32.mrf.mxu1 }
 0x29a   :  { %v3286_v48 = vadd.f32 %v13880_v10, %v3152_v50  ;;  %v687_v50 = vunpack.c.l.bf16 %v20406_v19  ;;  %v690_v10 = vunpack.c.h.bf16 %v20405_v62  ;;  %v3155_v20 = vadd.f32 %v3138_v27, %v3044_v34 }
 0x29b   :  { %v3253_v5 = vpop.f32.mrf.mxu1 }
 0x29c   :  { %v3302_v29 = vadd.f32 %v16731_v36, %v3286_v48  ;;  %v3284_v44 = vadd.f32 %v3253_v5, %v3150_v4 }
 0x29d   :  { %v13881_v39 = vpop.f32.mrf.mxu1 }
 0x29e   :  { %v3300_v57 = vadd.f32 %v16731_v36, %v3284_v44  ;;  %v3287_v54 = vadd.f32 %v13881_v39, %v3153_v56  ;;  %v16744_v49 = vadd.f32 %v3302_v29, %v685_v31 }
 0x29f   :  { %v3256_v47 = vpop.f32.mrf.mxu1 }
 0x2a0   :  { %20400 = vst [vmem:[#allocation6_spill] sm:$0xff] %v16744_v49  ;;  %v3303_v7 = vadd.f32 %v16731_v36, %v3287_v54  ;;  %v3285_v30 = vadd.f32 %v3256_v47, %v3151_v18  ;;  %v16748_v23 = vadd.f32 %v3300_v57, %v683_v33  ;;  %v20044_v59 = vmax.f32 %v16744_v49, 0.0 }
 0x2a1   :  { %v13884_v37 = vpop.f32.mrf.mxu1 }
 0x2a2   :  { %20402 = vst [vmem:[#allocation29_spill] sm:$0xff] %v16748_v23  ;;  %v16750_v40 = vadd.f32 %v3303_v7, %v686_v26  ;;  %v3301_v58 = vadd.f32 %v16731_v36, %v3285_v30  ;;  %v3290_v60 = vadd.f32 %v13884_v37, %v3156_v12  ;;  %v20046_v25 = vmax.f32 %v16748_v23, 0.0 }
 0x2a3   :  { %v3269_v16 = vpop.f32.mrf.mxu1 }
 0x2a4   :  { %20403 = vst [vmem:[#allocation3_spill] sm:$0xff] %v16750_v40  ;;  %v20045_v8 = vmax.f32 %v16750_v40, 0.0  ;;  %v16755_v13 = vadd.f32 %v3301_v58, %v684_v6  ;;  %v3288_v43 = vadd.f32 %v3269_v16, %v3154_v46  ;;  %v3306_v11 = vadd.f32 %v16731_v36, %v3290_v60 }
 0x2a5   :  { %v13885_v38 = vpop.f32.mrf.mxu1 }
 0x2a6   :  { %20404 = vst [vmem:[#allocation31_spill] sm:$0xff] %v16755_v13  ;;  %v3325_v63 = vpack.c.bf16 %v20045_v8, %v20044_v59  ;;  %v20043_v9 = vmax.f32 %v16755_v13, 0.0  ;;  %v3304_v45 = vadd.f32 %v16731_v36, %v3288_v43  ;;  %v3291_v52 = vadd.f32 %v13885_v38, %v3157_v1  ;;  %v20417_v43 = vld [vmem:[#allocation32_spill] sm:$0xff]  ;;  %v14865_v38 = vld [vmem:[%s19933_s4 + $0x2a8] sm:$0xff]  }
 0x2a7   :  { %v3272_v35 = vpop.f32.mrf.mxu1  ;;  %v16772_v15 = vadd.f32 %v3306_v11, %v689_v53 }
 0x2a8   :  { %v3337_v48 = vshrl.u32 %v3325_v63, 16  ;;  %v3340_v4 = vshll.u32 %v3325_v63, 16  ;;  %v3324_v17 = vpack.c.bf16 %v20043_v9, %v20046_v25  ;;  %v3307_v14 = vadd.f32 %v16731_v36, %v3291_v52 }
 0x2a9   :  { %20407 = vst [vmem:[#allocation28_spill] sm:$0xff] %v16772_v15  ;;  %v3289_v31 = vadd.f32 %v3272_v35, %v3155_v20  ;;  %v16776_v56 = vadd.f32 %v3304_v45, %v687_v50  ;;  %v20040_v33 = vmax.f32 %v16772_v15, 0.0 }
 0x2aa   :  { %v3339_v5 = vrot.slane %v3337_v48, 3  ;;  %v3342_v21 = vrot.slane %v3340_v4, 4  ;;  %v3329_v29 = vshrl.u32 %v3324_v17, 16  ;;  %v3332_v44 = vshll.u32 %v3324_v17, 16 }
 0x2ab   :  { %20408 = vst [vmem:[#allocation11_spill] sm:$0xff] %v16776_v56  ;;  %v16778_v51 = vadd.f32 %v3307_v14, %v690_v10  ;;  %v3305_v32 = vadd.f32 %v16731_v36, %v3289_v31  ;;  %v20041_v54 = vmax.f32 %v16776_v56, 0.0 }
 0x2ac   :  { %v3331_v42 = vrot.slane %v3329_v29, 3  ;;  %v3334_v2 = vrot.slane %v3332_v44, 4  ;;  %v3343_v57 = vor.u32 %v3342_v21, %v3339_v5 }
 0x2ad   :  { %20409 = vst [vmem:[#allocation8_spill] sm:$0xff] %v16778_v51  ;;  %v20039_v39 = vmax.f32 %v16778_v51, 0.0  ;;  %v16783_v3 = vadd.f32 %v3305_v32, %v688_v61  ;;  %v14867_v32 = vld [vmem:[%s19933_s4 + $0x2a0] sm:$0xff]  }
 0x2ae   :  { %v3335_v26 = vor.u32 %v3334_v2, %v3331_v42 }
 0x2af   :  { %20410 = vst [vmem:[#allocation33_spill] sm:$0xff] %v16783_v3  ;;  %v3327_v18 = vpack.c.bf16 %v20039_v39, %v20040_v33  ;;  %v20038_v24 = vmax.f32 %v16783_v3, 0.0 }
 0x2b0   :  { %v16792_v36 = vsel %vm20411_vm7, %v3335_v26, %v3343_v57  ;;  %v16796_v6 = vsel %vm15514_vm12, 0, %v3335_v26  ;;  %vm20425_vm7 = vmmov %vm20390_vm6 }
 0x2b1   :  { %v3355_v47 = vshrl.u32 %v3327_v18, 16  ;;  %v3358_v7 = vshll.u32 %v3327_v18, 16  ;;  %v3326_v30 = vpack.c.bf16 %v20038_v24, %v20041_v54  ;;  %v3370_v0 = vsel %vm15518_vm13, %v16796_v6, 0 }
 0x2b2   :  { %13910 = vmatprep.mubr.msk.bf16.mxu1 %vm20414_vm8, %v3370_v0  ;;  %v3371_v37 = vsel %vm15710_vm5, %v16792_v36, 0  ;;  %v3395_v46 = vshll.u32 %v16796_v6, 16  ;;  %v3400_v28 = vshll.u32 %v16792_v36, 16  ;;  %v3393_v62 = vshrl.u32 %v16796_v6, 16  ;;  %vm20426_vm8 = vmmov %vm20390_vm6 }
 0x2b3   :  { %v3357_v58 = vrot.slane %v3355_v47, 3  ;;  %v3360_v60 = vrot.slane %v3358_v7, 4  ;;  %v3346_v34 = vshrl.u32 %v3326_v30, 16  ;;  %v3349_v16 = vshll.u32 %v3326_v30, 16  ;;  %13911 = vmatmul.mubr.msk.bf16.vlgmr.msra.gmra.mxu1 %vm20416_vm15, %v3371_v37 }
 0x2b4   :  { %13935 = vmatpush3.bf16.msra.mxu1 %v20417_v43  ;;  %v3397_v53 = vrot.slane %v3395_v46, 1  ;;  %v3767_v63 = vsel %vm15973_vm0, %v16796_v6, 0  ;;  %v3768_v50 = vsel %vm15984_vm4, %v16792_v36, 0  ;;  %v3402_v10 = vrot.slane %v3400_v28, 1 }
 0x2b5   :  { %v3348_v11 = vrot.slane %v3346_v34, 3  ;;  %v3351_v1 = vrot.slane %v3349_v16, 4  ;;  %13936 = vmatprep.subr.bf16.mxu1 %v14863_v41  ;;  %v3361_v52 = vor.u32 %v3360_v60, %v3357_v58  ;;  %v3786_v48 = vrot.slane %v3767_v63, 4  ;;  %v14868_v34 = vld [vmem:[%s19933_s4 + $0x290] sm:$0xff]   ;;  %v14869_v16 = vld [vmem:[%s19933_s4 + $0x2f8] sm:$0xff]   ;;  %v20437_v63 = vld [vmem:[#allocation30_spill] sm:$0xff] }
 0x2b6   :  { %v3398_v45 = vor.u32 %v3397_v53, %v3393_v62  ;;  %v3787_v4 = vrot.slane %v3768_v50, 4  ;;  %v3404_v61 = vshrl.u32 %v16792_v36, 16  ;;  %vm20427_vm15 = vcmask 1043456   ;;  %v20433_v53 = vld [vmem:[#allocation9_spill] sm:$0xff] }
 0x2b7   :  { %v3352_v20 = vor.u32 %v3351_v1, %v3348_v11  ;;  %v16865_v30 = vsel %vm15514_vm12, %v3361_v52, 0  ;;  %v20435_v1 = vld [vmem:[#allocation10_spill] sm:$0xff] }
 0x2b8   :  { %v3403_v35 = vsel %vm20420_vm1, %v3398_v45, %v3402_v10  ;;  %13937 = vmatpush3.bf16.msra.mxu1 %v14863_v41  ;;  %v3406_v42 = vor.u32 %v3404_v61, %v3402_v10  ;;  %vm20429_vm1 = vmmov %vm20390_vm6 }
 0x2b9   :  { %v16834_v17 = vsel %vm20421_vm9, %v3343_v57, %v3352_v20  ;;  %v16837_v14 = vsel %vm20422_vm11, %v3352_v20, %v3361_v52  ;;  %13894 = vmatprep.mubr.msk.bf16.mxu0 %vm20390_vm6, %v3403_v35  ;;  %13938 = vmatprep.subr.bf16.mxu1 %v14865_v38  ;;  %v3788_v57 = vsel %vm20427_vm15, %v3786_v48, %v3787_v4  ;;  %vm20431_vm9 = vsmask.f32 7424  ;;  %vm20432_vm11 = vmmov %vm20429_vm1  ;;  %v14870_v20 = vld [vmem:[%s19933_s4 + $0x288] sm:$0xff]   ;;  %v14871_v48 = vld [vmem:[%s19933_s4 + $0x2f0] sm:$0xff]  }
 0x2ba   :  { %v3372_v5 = vsel %vm15909_vm3, %v16834_v17, 0  ;;  %v3373_v29 = vsel %vm15953_vm14, %v16837_v14, 0  ;;  %v3408_v44 = vshll.u32 %v16834_v17, 16  ;;  %v3416_v2 = vshll.u32 %v16837_v14, 16  ;;  %vm20439_vm15 = vmmov %vm20429_vm1 }
 0x2bb   :  { %13914 = vmatprep.mubr.msk.bf16.mxu1 %vm20425_vm7, %v3372_v5  ;;  %v3412_v18 = vshrl.u32 %v16834_v17, 16  ;;  %v3769_v7 = vsel %vm16005_vm10, %v16834_v17, 0  ;;  %v3770_v41 = vsel %vm20315_vm2, %v16837_v14, 0  ;;  %vm20434_vm6 = vnez %v20433_v53 }
 0x2bc   :  { %13915 = vmatmul.mubr.msk.bf16.gmra.mxu1 %vm20426_vm8, %v3373_v29  ;;  %v3410_v26 = vrot.slane %v3408_v44, 1  ;;  %v3418_v60 = vrot.slane %v3416_v2, 1  ;;  %v3789_v43 = vrot.slane %v3769_v7, 4  ;;  %v3630_v11 = vsel %vm20434_vm6, %v16796_v6, 0  ;;  %vm20438_vm8 = vmmov %vm20431_vm9 }
 0x2bd   :  { %13939 = vmatpush3.bf16.msra.mxu1 %v14865_v38  ;;  %13942 = vmatprep.mubr.msk.bf16.mxu1 %vm20429_vm1, %v3788_v57  ;;  %vm20436_vm7 = vcmp.ne.s16.totalorder %v20435_v1, 0  ;;  %v3791_v45 = vrot.slane %v3770_v41, 4  ;;  %v3420_v10 = vshrl.u32 %v16837_v14, 16  ;;  %v3424_v52 = vshll.u32 %v16865_v30, 16  ;;  %v20446_v41 = vld [vmem:[#allocation23_spill] sm:$0xff] }
 0x2be   :  { %v16872_v37 = vsel %vm20431_vm9, %v3406_v42, %v3410_v26  ;;  %13940 = vmatprep.subr.bf16.mxu1 %v14867_v32  ;;  %v3414_v58 = vor.u32 %v3412_v18, %v3410_v26  ;;  %v3631_v38 = vsel %vm20436_vm7, %v16792_v36, 0  ;;  %vm20440_vm1 = vcmask 1043456   ;;  %vm20441_vm9 = vmmov %vm20432_vm11  ;;  %v14872_v26 = vld [vmem:[%s19933_s4 + $0x280] sm:$0xff]  }
 0x2bf   :  { %13895 = vmatmul.mubr.msk.bf16.vlgmr.msra.gmra.mxu0 %vm20432_vm11, %v16872_v37  ;;  %v3422_v35 = vor.u32 %v3420_v10, %v3418_v60  ;;  %v3790_v5 = vsel %vm20440_vm1, %v3787_v4, %v3789_v43  ;;  %v3649_v29 = vrot.slane %v3630_v11, 1  ;;  %v3650_v42 = vrot.slane %v3631_v38, 1  ;;  %vm20442_vm11 = vmmov %vm20440_vm1  ;;  %v20444_v4 = vld [vmem:[#allocation22_spill] sm:$0xff] }
 0x2c0   :  { %13919 = vmatpush3.bf16.msra.mxu0 %v20437_v63  ;;  %v16894_v50 = vsel %vm20438_vm8, %v3414_v58, %v3418_v60  ;;  %v16913_v57 = vrot.slane %v3424_v52, 1  ;;  %vm20443_vm7 = vmmov %vm20441_vm9  ;;  %vm20445_vm8 = vnez %v20444_v4  ;;  %vm20448_vm1 = vsmask.f32 7424  ;;  %v20453_v38 = vld [vmem:[#allocation14_spill] sm:$0xff] }
 0x2c1   :  { %13898 = vmatprep.mubr.msk.bf16.mxu0 %vm20439_vm15, %v16894_v50  ;;  %13941 = vmatpush3.bf16.msra.mxu1 %v14867_v32  ;;  %v3792_v32 = vsel %vm20442_vm11, %v3789_v43, %v3791_v45  ;;  %v4043_v7 = vsel %vm20445_vm8, %v16796_v6, 0  ;;  %vm20447_vm15 = vcmp.ne.s16.totalorder %v20446_v41, 0  ;;  %v14873_v43 = vld [vmem:[%s19933_s4 + $0x2e8] sm:$0xff]   ;;  %vm20451_vm11 = vmmov %vm20443_vm7  ;;  %vm20465_vm8 = vcmask 1046528   ;;  %v14879_v6 = vld [vmem:[%s19933_s4 + $0x330] sm:$0xff]  }
 0x2c2   :  { %13920 = vmatprep.subr.bf16.mxu0 %v14868_v34  ;;  %13966 = vmatprep.subr.bf16.mxu1 %v14869_v16  ;;  %v4044_v58 = vsel %vm20447_vm15, %v16792_v36, 0  ;;  %v16927_v60 = vsel %vm20448_vm1, %v3422_v35, %v16913_v57  ;;  %vm20454_vm15 = vcmp.ne.s16.totalorder %v20453_v38, 0  ;;  %vm20455_vm1 = vmmov %vm20451_vm11  ;;  %v4062_v35 = vrot.slane %v4043_v7, 5 }
 0x2c3   :  { %v3632_v63 = vsel %vm20454_vm15, %v16834_v17, 0  ;;  %vm20462_vm15 = vcmask 1042432  }
 0x2c4   :  { %13921 = vmatpush3.bf16.msra.mxu0 %v14868_v34  ;;  %13943 = vmatmul.mubr.msk.bf16.vlgmr.msra.gmra.mxu1 %vm20441_vm9, %v3790_v5  ;;  %v20449_v34 = vld [vmem:[#allocation21_spill] sm:$0xff]  ;;  %v4063_v5 = vrot.slane %v4044_v58, 5  ;;  %v3652_v33 = vrot.slane %v3632_v63, 1 }
 0x2c5   :  { %13946 = vmatprep.mubr.msk.bf16.mxu1 %vm20443_vm7, %v3792_v32  ;;  %13967 = vmatpush3.bf16.msra.mxu1 %v14869_v16  ;;  %vm20450_vm9 = vnez %v20449_v34  ;;  %vm20452_vm7 = vcmask 1046528   ;;  %v20456_v32 = vld [vmem:[#allocation18_spill] sm:$0xff]  ;;  %v20463_v63 = vld [vmem:[#allocation25_spill] sm:$0xff] }
 0x2c6   :  { %13922 = vmatprep.subr.bf16.mxu0 %v14870_v20  ;;  %13968 = vmatprep.subr.bf16.mxu1 %v14871_v48  ;;  %v3771_v16 = vsel %vm20450_vm9, %v16865_v30, 0  ;;  %v3651_v11 = vsel %vm20452_vm7, %v3649_v29, %v3650_v42  ;;  %vm20457_vm9 = vcmp.ne.s16.totalorder %v20456_v32, 0  ;;  %v14874_v29 = vld [vmem:[%s19933_s4 + $0x2d8] sm:$0xff]  }
 0x2c7   :  { %13899 = vmatmul.mubr.msk.bf16.gmra.mxu0 %vm20451_vm11, %v16927_v60  ;;  %v3633_v24 = vsel %vm20457_vm9, %v16837_v14, 0  ;;  %v3793_v39 = vrot.slane %v3771_v16, 4  ;;  %vm20458_vm11 = vcmask 1043456   ;;  %vm20461_vm9 = vmmov %vm20455_vm1  ;;  %v14876_v16 = vld [vmem:[%s19933_s4 + $0x2d0] sm:$0xff]  }
 0x2c8   :  { %13923 = vmatpush3.bf16.msra.mxu0 %v14870_v20  ;;  %13926 = vmatprep.mubr.msk.bf16.mxu0 %vm20455_vm1, %v3651_v11  ;;  %v14875_v20 = vld [vmem:[%s19933_s4 + $0x2e0] sm:$0xff]   ;;  %v3654_v58 = vrot.slane %v3633_v24, 1  ;;  %v20459_v11 = vld [vmem:[#allocation24_spill] sm:$0xff]  ;;  %v3653_v24 = vsel %vm20465_vm8, %v3650_v42, %v3652_v33 }
 0x2c9   :  { %13969 = vmatpush3.bf16.msra.mxu1 %v14871_v48  ;;  %13924 = vmatprep.subr.bf16.mxu0 %v14872_v26  ;;  %v3794_v7 = vsel %vm20458_vm11, %v3791_v45, %v3793_v39  ;;  %vm20460_vm7 = vcmp.ne.s16.totalorder %v20459_v11, 0  ;;  %v4064_v48 = vsel %vm20462_vm15, %v4062_v35, %v4063_v5  ;;  %vm20464_vm11 = vcmp.ne.s16.totalorder %v20463_v63, 0 }
 0x2ca   :  { %13970 = vmatprep.subr.bf16.mxu1 %v14873_v43  ;;  %v4045_v54 = vsel %vm20460_vm7, %v16834_v17, 0  ;;  %v4046_v39 = vsel %vm20464_vm11, %v16837_v14, 0  ;;  %vm20466_vm7 = vmmov %vm20455_vm1 }
 0x2cb   :  { %v4065_v45 = vrot.slane %v4045_v54, 5  ;;  %v3917_v54 = vrot.slane %v3400_v28, 5  ;;  %v4067_v42 = vrot.slane %v4046_v39, 5  ;;  %vm20472_vm11 = vmmov %vm20466_vm7  ;;  %v14880_v39 = vld [vmem:[%s19933_s4 + $0x2c0] sm:$0xff]  }
 0x2cc   :  { %13925 = vmatpush3.bf16.msra.mxu0 %v14872_v26  ;;  %13947 = vmatmul.mubr.msk.bf16.gmra.mxu1 %vm20461_vm9, %v3794_v7  ;;  %v14877_v26 = vld [vmem:[%s19933_s4 + $0x338] sm:$0xff]   ;;  %vm20467_vm9 = vmmov %vm20465_vm8  ;;  %v3914_v7 = vrot.slane %v3395_v46, 5 }
 0x2cd   :  { %13971 = vmatpush3.bf16.msra.mxu1 %v14873_v43  ;;  %13974 = vmatprep.mubr.msk.bf16.mxu1 %vm20455_vm1, %v4064_v48  ;;  %v3913_v43 = vrot.slane %v3393_v62, 4  ;;  %v3655_v35 = vsel %vm20467_vm9, %v3652_v33, %v3654_v58  ;;  %v3916_v48 = vrot.slane %v3404_v61, 4  ;;  %vm20468_vm8 = vmmov %vm20455_vm1  ;;  %v20469_v62 = vld [vmem:[#allocation19_spill] sm:$0xff]  ;;  %vm20471_vm1 = vcmask 1042432  }
 0x2ce   :  { %13950 = vmatprep.subr.bf16.mxu0 %v14874_v29  ;;  %13972 = vmatprep.subr.bf16.mxu1 %v14875_v20  ;;  %vm20470_vm15 = vnez %v20469_v62  ;;  %v14878_v33 = vld [vmem:[%s19933_s4 + $0x2c8] sm:$0xff]   ;;  %v4066_v46 = vsel %vm20471_vm1, %v4063_v5, %v4065_v45  ;;  %vm20474_vm9 = vmmov %vm20468_vm8 }
 0x2cf   :  { %13927 = vmatmul.mubr.msk.bf16.vlgmr.msra.gmra.mxu0 %vm20466_vm7, %v3653_v24  ;;  %v3634_v24 = vsel %vm20470_vm15, %v16865_v30, 0  ;;  %v3915_v28 = vor.u32 %v3914_v7, %v3913_v43  ;;  %v3918_v61 = vor.u32 %v3917_v54, %v3916_v48  ;;  %vm20473_vm7 = vmmov %vm20471_vm1 }
 0x2d0   :  { %13951 = vmatpush3.bf16.msra.mxu0 %v14874_v29  ;;  %13930 = vmatprep.mubr.msk.bf16.mxu0 %vm20468_vm8, %v3655_v35  ;;  %v4068_v29 = vsel %vm20473_vm7, %v4065_v45, %v4067_v42  ;;  %v3920_v35 = vrot.slane %v3412_v18, 4  ;;  %vm20475_vm8 = vcmask 1046528   ;;  %v14881_v45 = vld [vmem:[%s19933_s4 + $0x328] sm:$0xff]   ;;  %vm20479_vm7 = vsmask.f32 3328 }
 0x2d1   :  { %13973 = vmatpush3.bf16.msra.mxu1 %v14875_v20  ;;  %13952 = vmatprep.subr.bf16.mxu0 %v14876_v16  ;;  %v3656_v20 = vrot.slane %v3634_v24, 1  ;;  %v3919_v7 = vsel %vm20479_vm7, %v3915_v28, %v3918_v61  ;;  %v3924_v18 = vrot.slane %v3420_v10, 4  ;;  %v14883_v24 = vld [vmem:[%s19933_s4 + $0x320] sm:$0xff]   ;;  %vm20482_vm7 = vmmov %vm20474_vm9 }
 0x2d2   :  { %13998 = vmatprep.subr.bf16.mxu1 %v14877_v26 }
 0x2d3   :  { %v3657_v5 = vsel %vm20475_vm8, %v3654_v58, %v3656_v20  ;;  %v3925_v58 = vrot.slane %v3416_v2, 5  ;;  %vm20480_vm8 = vcmask 1042432   ;;  %v3928_v2 = vshrl.u32 %v16865_v30, 16  ;;  %v14886_v20 = vld [vmem:[%s19933_s4 + $0x300] sm:$0xff]  }
 0x2d4   :  { %13953 = vmatpush3.bf16.msra.mxu0 %v14876_v16  ;;  %13975 = vmatmul.mubr.msk.bf16.vlgmr.msra.gmra.mxu1 %vm20472_vm11, %v4066_v46  ;;  %v20476_v16 = vld [vmem:[#allocation26_spill] sm:$0xff]  ;;  %vm20478_vm11 = vmmov %vm20474_vm9 }
 0x2d5   :  { %13978 = vmatprep.mubr.msk.bf16.mxu1 %vm20474_vm9, %v4068_v29  ;;  %13999 = vmatpush3.bf16.msra.mxu1 %v14877_v26  ;;  %vm20477_vm1 = vnez %v20476_v16  ;;  %v3921_v26 = vrot.slane %v3408_v44, 5  ;;  %v14882_v44 = vld [vmem:[%s19933_s4 + $0x318] sm:$0xff]   ;;  %v3926_v46 = vor.u32 %v3925_v58, %v3924_v18  ;;  %v3930_v28 = vrot.slane %v3928_v2, 4 }
 0x2d6   :  { %13954 = vmatprep.subr.bf16.mxu0 %v14878_v33  ;;  %14000 = vmatprep.subr.bf16.mxu1 %v14879_v6  ;;  %v4047_v43 = vsel %vm20477_vm1, %v16865_v30, 0  ;;  %vm20484_vm1 = vmmov %vm20482_vm7  ;;  %v3931_v29 = vrot.slane %v3424_v52, 5  ;;  %v4413_v18 = vsel %vm20434_vm6, %v16792_v36, 0 }
 0x2d7   :  { %13931 = vmatmul.mubr.msk.bf16.gmra.mxu0 %vm20478_vm11, %v3657_v5  ;;  %v4069_v48 = vrot.slane %v4047_v43, 5  ;;  %v3922_v54 = vor.u32 %v3921_v26, %v3920_v35  ;;  %vm20481_vm11 = vmmov %vm20474_vm9  ;;  %v4311_v35 = vor.u32 %v3928_v2, %v16913_v57  ;;  %v14888_v43 = vld [vmem:[%s19933_s4 + $0x350] sm:$0xff]   ;;  %v4181_v57 = vsel %vm15710_vm5, %v16834_v17, 0 }
 0x2d8   :  { %13955 = vmatpush3.bf16.msra.mxu0 %v14878_v33  ;;  %13958 = vmatprep.mubr.msk.bf16.mxu0 %vm20474_vm9, %v3919_v7  ;;  %v14884_v33 = vld [vmem:[%s19933_s4 + $0x310] sm:$0xff]   ;;  %vm20483_vm9 = vsmask.f32 3328  ;;  %v14889_v7 = vld [vmem:[%s19933_s4 + $0x348] sm:$0xff]  }
 0x2d9   :  { %14001 = vmatpush3.bf16.msra.mxu1 %v14879_v6  ;;  %13956 = vmatprep.subr.bf16.mxu0 %v14880_v39  ;;  %v4070_v10 = vsel %vm20480_vm8, %v4067_v42, %v4069_v48  ;;  %v3923_v6 = vsel %vm20483_vm9, %v3918_v61, %v3922_v54  ;;  %vm20485_vm8 = vmmov %vm20483_vm9  ;;  %v3932_v61 = vor.u32 %v3931_v29, %v3930_v28  ;;  %v4430_v48 = vrot.slane %v4413_v18, 1  ;;  %v14894_v28 = vld [vmem:[%s19933_s4 + $0x398] sm:$0xff]   ;;  %v14896_v29 = vld [vmem:[%s19933_s4 + $0x390] sm:$0xff]  }
 0x2da   :  { %14002 = vmatprep.subr.bf16.mxu1 %v14881_v45  ;;  %v3927_v42 = vsel %vm20485_vm8, %v3922_v54, %v3926_v46  ;;  %vm20488_vm9 = vmmov %vm20485_vm8 }
 0x2db   :  { %v3933_v52 = vsel %vm20488_vm9, %v3926_v46, %v3932_v61  ;;  %vm20489_vm8 = vmmov %vm20484_vm1  ;;  %v14898_v61 = vld [vmem:[%s19933_s4 + $0x388] sm:$0xff]  }
 0x2dc   :  { %13957 = vmatpush3.bf16.msra.mxu0 %v14880_v39  ;;  %13979 = vmatmul.mubr.msk.bf16.gmra.mxu1 %vm20481_vm11, %v4070_v10  ;;  %vm20486_vm11 = vmmov %vm20484_vm1  ;;  %v4180_v39 = vsel %vm15518_vm13, %v16792_v36, 0 }
 0x2dd   :  { %14003 = vmatpush3.bf16.msra.mxu1 %v14881_v45  ;;  %14006 = vmatprep.mubr.msk.bf16.mxu1 %vm20482_vm7, %v16872_v37  ;;  %v14885_v37 = vld [vmem:[%s19933_s4 + $0x308] sm:$0xff]   ;;  %vm20487_vm7 = vmmov %vm20484_vm1  ;;  %v4182_v45 = vsel %vm15909_vm3, %v16837_v14, 0 }
 0x2de   :  { %13982 = vmatprep.subr.bf16.mxu0 %v14882_v44  ;;  %14004 = vmatprep.subr.bf16.mxu1 %v14883_v24  ;;  %vm20493_vm9 = vmmov %vm20484_vm1 }
 0x2df   :  { %13959 = vmatmul.mubr.msk.bf16.vlgmr.msra.gmra.mxu0 %vm20484_vm1, %v3923_v6  ;;  %v14891_v6 = vld [vmem:[%s19933_s4 + $0x378] sm:$0xff]  }
 0x2e0   :  { %13983 = vmatpush3.bf16.msra.mxu0 %v14882_v44  ;;  %13962 = vmatprep.mubr.msk.bf16.mxu0 %vm20486_vm11, %v3927_v42  ;;  %vm20490_vm11 = vmmov %vm20484_vm1  ;;  %v14890_v44 = vld [vmem:[%s19933_s4 + $0x340] sm:$0xff]   ;;  %v14893_v42 = vld [vmem:[%s19933_s4 + $0x368] sm:$0xff]  }
 0x2e1   :  { %14005 = vmatpush3.bf16.msra.mxu1 %v14883_v24  ;;  %13984 = vmatprep.subr.bf16.mxu0 %v14884_v33 }
 0x2e2   :  { %14030 = vmatprep.subr.bf16.mxu1 %v14894_v28 }
 0x2e4   :  { %13985 = vmatpush3.bf16.msra.mxu0 %v14884_v33  ;;  %14007 = vmatmul.mubr.msk.bf16.vlgmr.msra.gmra.mxu1 %vm20487_vm7, %v16894_v50  ;;  %v14887_v50 = vld [vmem:[%s19933_s4 + $0x358] sm:$0xff]   ;;  %vm20492_vm7 = vsmask.f32 7424 }
 0x2e5   :  { %14010 = vmatprep.mubr.msk.bf16.mxu1 %vm20484_vm1, %v16927_v60  ;;  %13986 = vmatprep.subr.bf16.mxu0 %v14885_v37  ;;  %v20491_v60 = vld [vmem:[#allocation27_spill] sm:$0xff] }
 0x2e6   :  { %v4312_v5 = vsel %vm20492_vm7, %v4311_v35, %v20491_v60  ;;  %vm20496_vm7 = vmmov %vm20484_vm1  ;;  %14031 = vmatpush3.bf16.msra.mxu1 %v14894_v28 }
 0x2e7   :  { %13963 = vmatmul.mubr.msk.bf16.gmra.mxu0 %vm20489_vm8, %v3933_v52  ;;  %vm20494_vm8 = vmmov %vm20484_vm1  ;;  %14032 = vmatprep.subr.bf16.mxu1 %v14896_v29  ;;  %v14900_v52 = vld [vmem:[%s19933_s4 + $0x380] sm:$0xff]  }
 0x2e8   :  { %13987 = vmatpush3.bf16.msra.mxu0 %v14885_v37  ;;  %13990 = vmatprep.mubr.msk.bf16.mxu0 %vm20490_vm11, %v4180_v39  ;;  %vm20495_vm11 = vcmp.ne.s16.totalorder %v20435_v1, 0  ;;  %vm20502_vm6 = vmmov %vm20496_vm7  ;;  %v14895_v37 = vld [vmem:[%s19933_s4 + $0x360] sm:$0xff]   ;;  %v17131_v39 = vld [vmem:[%s19933_s4 + $0x3b8] sm:$0xff]  }
 0x2e9   :  { %13988 = vmatprep.subr.bf16.mxu0 %v14886_v20  ;;  %v4414_v26 = vsel %vm20495_vm11, %v16834_v17, 0  ;;  %v4183_v17 = vsel %vm15953_vm14, %v16865_v30, 0  ;;  %vm20500_vm11 = vcmp.ne.s16.totalorder %v20456_v32, 0  ;;  %20506 = vst [vmem:[#allocation30_spill] sm:$0xff] %v17131_v39 }
 0x2ea   :  { %v4431_v58 = vrot.slane %v4414_v26, 1  ;;  %v4416_v10 = vsel %vm20500_vm11, %v16865_v30, 0  ;;  %v14892_v30 = vld [vmem:[%s19933_s4 + $0x370] sm:$0xff]   ;;  %14033 = vmatpush3.bf16.msra.mxu1 %v14896_v29  ;;  %vm20516_vm11 = vmmov %vm20496_vm7 }
 0x2eb   :  { %v4435_v46 = vrot.slane %v4416_v10, 1  ;;  %14034 = vmatprep.subr.bf16.mxu1 %v14898_v61 }
 0x2ec   :  { %13989 = vmatpush3.bf16.msra.mxu0 %v14886_v20  ;;  %14011 = vmatmul.mubr.msk.bf16.gmra.mxu1 %vm20484_vm1, %v4312_v5  ;;  %vm20497_vm1 = vcmask 1046528   ;;  %v17122_v20 = vld [vmem:[%s19933_s4 + $0x3d8] sm:$0xff]  }
 0x2ed   :  { %14014 = vmatprep.subr.bf16.mxu0 %v14887_v50  ;;  %v4432_v54 = vsel %vm20497_vm1, %v4430_v48, %v4431_v58  ;;  %vm20501_vm15 = vmmov %vm20497_vm1  ;;  %20505 = vst [vmem:[#allocation32_spill] sm:$0xff] %v17122_v20 }
 0x2ee   :  { %14035 = vmatpush3.bf16.msra.mxu1 %v14898_v61 }
 0x2ef   :  { %13991 = vmatmul.mubr.msk.bf16.vlgmr.msra.gmra.mxu0 %vm20493_vm9, %v4181_v57  ;;  %vm20498_vm9 = vcmp.ne.s16.totalorder %v20453_v38, 0  ;;  %14036 = vmatprep.subr.bf16.mxu1 %v14900_v52 }
 0x2f0   :  { %14015 = vmatpush3.bf16.msra.mxu0 %v14887_v50  ;;  %13994 = vmatprep.mubr.msk.bf16.mxu0 %vm20494_vm8, %v4182_v45  ;;  %v4415_v36 = vsel %vm20498_vm9, %v16837_v14, 0  ;;  %vm20499_vm8 = vmmov %vm20496_vm7 }
 0x2f1   :  { %14016 = vmatprep.subr.bf16.mxu0 %v14888_v43  ;;  %v4433_v24 = vrot.slane %v4415_v36, 1  ;;  %vm20503_vm9 = vmmov %vm20497_vm1 }
 0x2f2   :  { %v4437_v14 = vsel %vm20503_vm9, %v4435_v46, %v20491_v60  ;;  %14037 = vmatpush3.bf16.msra.mxu1 %v14900_v52 }
 0x2f3   :  { %v4434_v2 = vsel %vm20501_vm15, %v4431_v58, %v4433_v24  ;;  %v4436_v33 = vsel %vm20497_vm1, %v4433_v24, %v4435_v46  ;;  %14062 = vmatprep.subr.bf16.mxu1 %v17131_v39  ;;  %vm20514_vm15 = vmmov %vm20496_vm7 }
 0x2f4   :  { %14017 = vmatpush3.bf16.msra.mxu0 %v14888_v43 }
 0x2f5   :  { %14018 = vmatprep.subr.bf16.mxu0 %v14889_v7 }
 0x2f7   :  { %13995 = vmatmul.mubr.msk.bf16.gmra.mxu0 %vm20496_vm7, %v4183_v17 }
 0x2f8   :  { %14019 = vmatpush3.bf16.msra.mxu0 %v14889_v7  ;;  %14022 = vmatprep.mubr.msk.bf16.mxu0 %vm20499_vm8, %v4432_v54  ;;  %vm20504_vm8 = vmmov %vm20502_vm6 }
 0x2f9   :  { %14020 = vmatprep.subr.bf16.mxu0 %v14890_v44 }
 0x2fc   :  { %14021 = vmatpush3.bf16.msra.mxu0 %v14890_v44 }
 0x2fd   :  { %14046 = vmatprep.subr.bf16.mxu0 %v14891_v6 }
 0x2ff   :  { %14023 = vmatmul.mubr.msk.bf16.vlgmr.msra.gmra.mxu0 %vm20496_vm7, %v4434_v2  ;;  %vm20520_vm7 = vsmask.f32 7424 }
 0x300   :  { %14026 = vmatprep.mubr.msk.bf16.mxu0 %vm20502_vm6, %v4436_v33  ;;  %14047 = vmatpush3.bf16.msra.mxu0 %v14891_v6  ;;  %vm20511_vm6 = vsmask.f32 4352 }
 0x301   :  { %14048 = vmatprep.subr.bf16.mxu0 %v14892_v30  ;;  %vm20521_vm1 = vmmov %vm20511_vm6 }
 0x302   :  { %vm20522_vm9 = vmmov %vm20521_vm1 }
 0x304   :  { %14049 = vmatpush3.bf16.msra.mxu0 %v14892_v30 }
 0x305   :  { %14050 = vmatprep.subr.bf16.mxu0 %v14893_v42 }
 0x307   :  { %14027 = vmatmul.mubr.msk.bf16.gmra.mxu0 %vm20504_vm8, %v4437_v14 }
 0x308   :  { %14051 = vmatpush3.bf16.msra.mxu0 %v14893_v42 }
 0x309   :  { %14052 = vmatprep.subr.bf16.mxu0 %v14895_v37 }
 0x30c   :  { %14053 = vmatpush3.bf16.msra.mxu0 %v14895_v37 }
 0x30d   :  { %14078 = vmatprep.subr.bf16.mxu0 %v17122_v20 }
 0x373   :  { %v13912_v35 = vpop.f32.mrf.mxu1 }
 0x375   :  { %v3599_v50 = vpop.f32.mrf.mxu1 }
 0x377   :  { %v13913_v5 = vpop.f32.mrf.mxu1 }
 0x379   :  { %v3602_v43 = vpop.f32.mrf.mxu1 }
 0x37c   :  { %v13916_v57 = vpop.f32.mrf.mxu1 }
 0x37e   :  { %v17134_v45 = vpop.f32.mrf.mxu1 }
 0x37f   :  { %v13896_v26 = vpop.f32.mrf.mxu0 }
 0x380   :  { %v17136_v7 = vpop.f32.mrf.mxu1  ;;  %v3608_v32 = vadd.f32 %v13912_v35, %v13896_v26 }
 0x381   :  { %v3498_v18 = vpop.f32.mrf.mxu0 }
 0x382   :  { %v17138_v58 = vpop.f32.mrf.mxu1  ;;  %v3600_v41 = vadd.f32 %v3599_v50, %v3498_v18 }
 0x383   :  { %v13897_v48 = vpop.f32.mrf.mxu0 }
 0x384   :  { %v13944_v44 = vpop.f32.mrf.mxu1  ;;  %v3611_v1 = vadd.f32 %v13913_v5, %v13897_v48 }
 0x385   :  { %v3501_v17 = vpop.f32.mrf.mxu0 }
 0x386   :  { %v3865_v54 = vpop.f32.mrf.mxu1  ;;  %v3603_v21 = vadd.f32 %v3602_v43, %v3501_v17 }
 0x387   :  { %v13900_v36 = vpop.f32.mrf.mxu0 }
 0x388   :  { %v13945_v24 = vpop.f32.mrf.mxu1 }
 0x389   :  { %v3514_v10 = vpop.f32.mrf.mxu0 }
 0x38a   :  { %v3868_v46 = vpop.f32.mrf.mxu1  ;;  %v3616_v50 = vadd.f32 %v17134_v45, %v3514_v10 }
 0x38b   :  { %v13901_v2 = vpop.f32.mrf.mxu0 }
 0x38c   :  { %v17140_v33 = vpop.f32.mrf.mxu1 }
 0x38d   :  { %v3517_v14 = vpop.f32.mrf.mxu0 }
 0x38e   :  { %v17142_v6 = vpop.f32.mrf.mxu1 }
 0x38f   :  { %v13928_v30 = vpop.f32.mrf.mxu0 }
 0x390   :  { %v17144_v42 = vpop.f32.mrf.mxu1  ;;  %v3761_v4 = vadd.f32 %v13928_v30, %v3608_v32 }
 0x391   :  { %v3728_v28 = vpop.f32.mrf.mxu0 }
 0x392   :  { %v17146_v29 = vpop.f32.mrf.mxu1  ;;  %v3759_v53 = vadd.f32 %v3728_v28, %v3600_v41  ;;  %v3898_v19 = vadd.f32 %v13944_v44, %v3761_v4 }
 0x393   :  { %v13929_v37 = vpop.f32.mrf.mxu0 }
 0x394   :  { %v13976_v61 = vpop.f32.mrf.mxu1  ;;  %v3762_v31 = vadd.f32 %v13929_v37, %v3611_v1  ;;  %v3896_v12 = vadd.f32 %v3865_v54, %v3759_v53  ;;  %v3627_v1 = vadd.f32 %v17136_v7, %v13901_v2  ;;  %v3619_v53 = vadd.f32 %v17138_v58, %v3517_v14 }
 0x395   :  { %v3731_v52 = vpop.f32.mrf.mxu0 }
 0x396   :  { %v4141_v9 = vpop.f32.mrf.mxu1  ;;  %v3760_v20 = vadd.f32 %v3731_v52, %v3603_v21 }
 0x397   :  { %v13932_v59 = vpop.f32.mrf.mxu0 }
 0x398   :  { %v13977_v8 = vpop.f32.mrf.mxu1  ;;  %v3897_v41 = vadd.f32 %v3868_v46, %v3760_v20 }
 0x399   :  { %v3744_v25 = vpop.f32.mrf.mxu0 }
 0x39a   :  { %v4144_v51 = vpop.f32.mrf.mxu1  ;;  %v3763_v4 = vadd.f32 %v3744_v25, %v3616_v50 }
 0x39b   :  { %v13933_v3 = vpop.f32.mrf.mxu0 }
 0x39c   :  { %v17148_v13 = vpop.f32.mrf.mxu1 }
 0x39d   :  { %v3747_v15 = vpop.f32.mrf.mxu0 }
 0x39e   :  { %v17150_v23 = vpop.f32.mrf.mxu1 }
 0x39f   :  { %v13960_v56 = vpop.f32.mrf.mxu0 }
 0x3a0   :  { %v17152_v62 = vpop.f32.mrf.mxu1  ;;  %v4037_v22 = vadd.f32 %v13960_v56, %v3898_v19 }
 0x3a1   :  { %v4004_v49 = vpop.f32.mrf.mxu0  ;;  %20507 = vst [vmem:[#allocation34_spill] sm:$0xff] %v17152_v62  ;;  %v3624_v62 = vadd.f32 %v13916_v57, %v13900_v36  ;;  %v3766_v57 = vadd.f32 %v13933_v3, %v3627_v1 }
 0x3a2   :  { %v17154_v38 = vpop.f32.mrf.mxu1  ;;  %v4035_v26 = vadd.f32 %v4004_v49, %v3896_v12  ;;  %v4174_v30 = vadd.f32 %v13976_v61, %v4037_v22  ;;  %v3900_v22 = vadd.f32 %v17142_v6, %v3763_v4 }
 0x3a3   :  { %v13961_v40 = vpop.f32.mrf.mxu0  ;;  %20508 = vst [vmem:[#allocation35_spill] sm:$0xff] %v17154_v38  ;;  %v3899_v38 = vadd.f32 %v13945_v24, %v3762_v31  ;;  %v3765_v32 = vadd.f32 %v13932_v59, %v3624_v62 }
 0x3a4   :  { %v14008_v0 = vpop.f32.mrf.mxu1  ;;  %v4172_v19 = vadd.f32 %v4141_v9, %v4035_v26  ;;  %v3903_v9 = vadd.f32 %v17144_v42, %v3766_v57 }
 0x3a5   :  { %v4007_v60 = vpop.f32.mrf.mxu0  ;;  %v4038_v5 = vadd.f32 %v13961_v40, %v3899_v38  ;;  %v3902_v49 = vadd.f32 %v17140_v33, %v3765_v32  ;;  %v3764_v40 = vadd.f32 %v3747_v15, %v3619_v53  ;;  %v12166_v15 = vld [vmem:[%s19938_s5 + $0x2] ss:$0 sm:$0xff] }
 0x3a6   :  { %v4374_v55 = vpop.f32.mrf.mxu1  ;;  %v4036_v21 = vadd.f32 %v4007_v60, %v3897_v41 }
 0x3a7   :  { %v13964_v16 = vpop.f32.mrf.mxu0  ;;  %v4175_v62 = vadd.f32 %v13977_v8, %v4038_v5 }
 0x3a8   :  { %v14009_v48 = vpop.f32.mrf.mxu1  ;;  %v4041_v38 = vadd.f32 %v13964_v16, %v3902_v49  ;;  %v4173_v25 = vadd.f32 %v4144_v51, %v4036_v21  ;;  %v20509_v33 = vld [vmem:[#allocation34_spill] sm:$0xff] }
 0x3a9   :  { %v4020_v63 = vpop.f32.mrf.mxu0 }
 0x3aa   :  { %v4377_v31 = vpop.f32.mrf.mxu1  ;;  %v4039_v60 = vadd.f32 %v4020_v63, %v3900_v22  ;;  %v4178_v8 = vadd.f32 %v17148_v13, %v4041_v38  ;;  %v20510_v37 = vld [vmem:[#allocation35_spill] sm:$0xff] }
 0x3ab   :  { %v13965_v11 = vpop.f32.mrf.mxu0 }
 0x3ac   :  { %v14012_v58 = vpop.f32.mrf.mxu1  ;;  %v4042_v54 = vadd.f32 %v13965_v11, %v3903_v9  ;;  %v4176_v36 = vadd.f32 %v17150_v23, %v4039_v60 }
 0x3ad   :  { %v4023_v34 = vpop.f32.mrf.mxu0 }
 0x3ae   :  { %v4390_v10 = vpop.f32.mrf.mxu1  ;;  %v4179_v14 = vadd.f32 %v20509_v33, %v4042_v54 }
 0x3af   :  { %v13992_v39 = vpop.f32.mrf.mxu0 }
 0x3b0   :  { %v4296_v56 = vadd.f32 %v13992_v39, %v4174_v30 }
 0x3b1   :  { %v4263_v47 = vpop.f32.mrf.mxu0 }
 0x3b2   :  { %v4294_v59 = vadd.f32 %v4263_v47, %v4172_v19  ;;  %v4407_v7 = vadd.f32 %v14008_v0, %v4296_v56  ;;  %v3901_v47 = vadd.f32 %v17146_v29, %v3764_v40 }
 0x3b3   :  { %v13993_v27 = vpop.f32.mrf.mxu0 }
 0x3b4   :  { %v4297_v45 = vadd.f32 %v13993_v27, %v4175_v62  ;;  %v4405_v17 = vadd.f32 %v4374_v55, %v4294_v59  ;;  %v4040_v63 = vadd.f32 %v4023_v34, %v3901_v47 }
 0x3b5   :  { %v4266_v35 = vpop.f32.mrf.mxu0 }
 0x3b6   :  { %v4295_v3 = vadd.f32 %v4266_v35, %v4173_v25  ;;  %v4408_v0 = vadd.f32 %v14009_v48, %v4297_v45  ;;  %v4177_v61 = vadd.f32 %v20510_v37, %v4040_v63  ;;  %v14013_v35 = vpop.f32.mrf.mxu1 }
 0x3b7   :  { %v13996_v18 = vpop.f32.mrf.mxu0 }
 0x3b8   :  { %v4300_v16 = vadd.f32 %v13996_v18, %v4178_v8  ;;  %v4406_v11 = vadd.f32 %v4377_v31, %v4295_v3  ;;  %v4393_v56 = vpop.f32.mrf.mxu1 }
 0x3b9   :  { %v4279_v43 = vpop.f32.mrf.mxu0 }
 0x3ba   :  { %v4298_v2 = vadd.f32 %v4279_v43, %v4176_v36  ;;  %v4411_v52 = vadd.f32 %v14012_v58, %v4300_v16 }
 0x3bb   :  { %v13997_v12 = vpop.f32.mrf.mxu0 }
 0x3bc   :  { %v4301_v29 = vadd.f32 %v13997_v12, %v4179_v14  ;;  %v4409_v5 = vadd.f32 %v4390_v10, %v4298_v2 }
 0x3bd   :  { %v4282_v20 = vpop.f32.mrf.mxu0 }
 0x3be   :  { %v4299_v32 = vadd.f32 %v4282_v20, %v4177_v61  ;;  %v4412_v43 = vadd.f32 %v14013_v35, %v4301_v29  ;;  %v14901_v61 = vld [vmem:[%s19933_s4 + $0x3c8] sm:$0xff]  }
 0x3bf   :  { %v14024_v39 = vpop.f32.mrf.mxu0 }
 0x3c0   :  { %v4541_v44 = vadd.f32 %v14024_v39, %v4407_v7  ;;  %v4410_v31 = vadd.f32 %v4393_v56, %v4299_v32  ;;  %v12369_v56 = vld [vmem:[%s19935_s0 + $0x8c] sm:$0x1] }
 0x3c1   :  { %v4508_v27 = vpop.f32.mrf.mxu0 }
 0x3c2   :  { %v4539_v51 = vadd.f32 %v4508_v27, %v4405_v17  ;;  %v4557_v46 = vadd.f32 %v12166_v15, %v4541_v44 }
 0x3c3   :  { %v14025_v24 = vpop.f32.mrf.mxu0 }
 0x3c4   :  { %v4542_v55 = vadd.f32 %v14025_v24, %v4408_v0  ;;  %v4555_v6 = vadd.f32 %v12166_v15, %v4539_v51  ;;  %v4565_v26 = vmax.f32 %v4557_v46, 0.0 }
 0x3c5   :  { %v4511_v13 = vpop.f32.mrf.mxu0 }
 0x3c6   :  { %v4558_v42 = vadd.f32 %v12166_v15, %v4542_v55  ;;  %v4540_v28 = vadd.f32 %v4511_v13, %v4406_v11  ;;  %v4563_v48 = vmax.f32 %v4555_v6, 0.0  ;;  %v20517_v6 = vld [vmem:[#allocation32_spill] sm:$0xff] }
 0x3c7   :  { %v14028_v34 = vpop.f32.mrf.mxu0 }
 0x3c8   :  { %v4566_v23 = vmax.f32 %v4558_v42, 0.0  ;;  %v4556_v50 = vadd.f32 %v12166_v15, %v4540_v28  ;;  %v4545_v18 = vadd.f32 %v14028_v34, %v4411_v52 }
 0x3c9   :  { %v4524_v41 = vpop.f32.mrf.mxu0 }
 0x3ca   :  { %v4572_v30 = vpack.c.bf16 %v4566_v23, %v4565_v26  ;;  %v4564_v1 = vmax.f32 %v4556_v50, 0.0  ;;  %v4543_v4 = vadd.f32 %v4524_v41, %v4409_v5  ;;  %v4561_v49 = vadd.f32 %v12166_v15, %v4545_v18 }
 0x3cb   :  { %v14029_v21 = vpop.f32.mrf.mxu0 }
 0x3cc   :  { %v4584_v19 = vshrl.u32 %v4572_v30, 16  ;;  %v4587_v53 = vshll.u32 %v4572_v30, 16  ;;  %v4571_v57 = vpack.c.bf16 %v4564_v1, %v4563_v48  ;;  %v4546_v12 = vadd.f32 %v14029_v21, %v4412_v43 }
 0x3cd   :  { %v4527_v59 = vpop.f32.mrf.mxu0  ;;  %v4559_v20 = vadd.f32 %v12166_v15, %v4543_v4  ;;  %v4569_v9 = vmax.f32 %v4561_v49, 0.0 }
 0x3ce   :  { %v4586_v62 = vrot.slane %v4584_v19, 3  ;;  %v4589_v40 = vrot.slane %v4587_v53, 4  ;;  %v4576_v38 = vshrl.u32 %v4571_v57, 16  ;;  %v4579_v22 = vshll.u32 %v4571_v57, 16  ;;  %v14903_v57 = vld [vmem:[%s19933_s4 + $0x3c0] sm:$0xff]  }
 0x3cf   :  { %v4562_v45 = vadd.f32 %v12166_v15, %v4546_v12  ;;  %v4544_v25 = vadd.f32 %v4527_v59, %v4410_v31  ;;  %v4567_v17 = vmax.f32 %v4559_v20, 0.0  ;;  %v20530_v20 = vld [vmem:[#allocation20_spill] sm:$0xff] }
 0x3d0   :  { %v4578_v7 = vrot.slane %v4576_v38, 3  ;;  %v4581_v60 = vrot.slane %v4579_v22, 4  ;;  %v4590_v3 = vor.u32 %v4589_v40, %v4586_v62 }
 0x3d1   :  { %v4570_v39 = vmax.f32 %v4562_v45, 0.0  ;;  %v4560_v58 = vadd.f32 %v12166_v15, %v4544_v25  ;;  %v14899_v15 = vld [vmem:[%s19933_s4 + $0x3d0] sm:$0xff]  }
 0x3d2   :  { %v4582_v44 = vor.u32 %v4581_v60, %v4578_v7 }
 0x3d3   :  { %v4574_v54 = vpack.c.bf16 %v4570_v39, %v4569_v9  ;;  %v4568_v47 = vmax.f32 %v4560_v58, 0.0  ;;  %v14904_v9 = vld [vmem:[%s19933_s4 + $0x3b0] sm:$0xff]   ;;  %v14905_v39 = vld [vmem:[%s19933_s4 + $0x418] sm:$0xff]  }
 0x3d4   :  { %v17171_v8 = vsel %vm20511_vm6, %v4582_v44, %v4590_v3  ;;  %v17175_v51 = vsel %vm15514_vm12, 0, %v4582_v44  ;;  %vm20525_vm6 = vmmov %vm20504_vm8 }
 0x3d5   :  { %v4602_v0 = vshrl.u32 %v4574_v54, 16  ;;  %v4605_v63 = vshll.u32 %v4574_v54, 16  ;;  %v4573_v16 = vpack.c.bf16 %v4568_v47, %v4567_v17  ;;  %v4617_v24 = vsel %vm15518_vm13, %v17175_v51, 0  ;;  %v20535_v17 = vld [vmem:[#allocation10_spill] sm:$0xff] }
 0x3d6   :  { %14054 = vmatprep.mubr.msk.bf16.mxu0 %vm20514_vm15, %v4617_v24  ;;  %v4618_v46 = vsel %vm15710_vm5, %v17171_v8, 0  ;;  %v4642_v55 = vshll.u32 %v17175_v51, 16  ;;  %v4647_v11 = vshll.u32 %v17171_v8, 16  ;;  %v4640_v42 = vshrl.u32 %v17175_v51, 16  ;;  %vm20526_vm15 = vmmov %vm20525_vm6  ;;  %v20537_v47 = vld [vmem:[#allocation30_spill] sm:$0xff] }
 0x3d7   :  { %v4604_v2 = vrot.slane %v4602_v0, 3  ;;  %v4607_v33 = vrot.slane %v4605_v63, 4  ;;  %v4593_v14 = vshrl.u32 %v4573_v16, 16  ;;  %v4596_v13 = vshll.u32 %v4573_v16, 16  ;;  %14055 = vmatmul.mubr.msk.bf16.vlgmr.msra.gmra.mxu0 %vm20516_vm11, %v4618_v46 }
 0x3d8   :  { %14079 = vmatpush3.bf16.msra.mxu0 %v20517_v6  ;;  %v4644_v28 = vrot.slane %v4642_v55, 1  ;;  %v5014_v34 = vsel %vm15973_vm0, %v17175_v51, 0  ;;  %v5015_v26 = vsel %vm15984_vm4, %v17171_v8, 0  ;;  %v4649_v50 = vrot.slane %v4647_v11, 1 }
 0x3d9   :  { %v4595_v29 = vrot.slane %v4593_v14, 3  ;;  %v4598_v37 = vrot.slane %v4596_v13, 4  ;;  %14080 = vmatprep.subr.bf16.mxu0 %v14899_v15  ;;  %v4608_v32 = vor.u32 %v4607_v33, %v4604_v2  ;;  %v5033_v41 = vrot.slane %v5014_v34, 4  ;;  %v14907_v2 = vld [vmem:[%s19933_s4 + $0x410] sm:$0xff]   ;;  %v20546_v34 = vld [vmem:[#allocation23_spill] sm:$0xff] }
 0x3da   :  { %v4645_v23 = vor.u32 %v4644_v28, %v4640_v42  ;;  %v5034_v48 = vrot.slane %v5015_v26, 4  ;;  %v4651_v4 = vshrl.u32 %v17171_v8, 16  ;;  %vm20527_vm11 = vcmask 1043456  }
 0x3db   :  { %v4599_v18 = vor.u32 %v4598_v37, %v4595_v29  ;;  %v17240_v22 = vsel %vm15514_vm12, %v4608_v32, 0  ;;  %v14908_v29 = vld [vmem:[%s19933_s4 + $0x3a0] sm:$0xff]  }
 0x3dc   :  { %v4650_v5 = vsel %vm20520_vm7, %v4645_v23, %v4649_v50  ;;  %14081 = vmatpush3.bf16.msra.mxu0 %v14899_v15  ;;  %v4653_v49 = vor.u32 %v4651_v4, %v4649_v50  ;;  %v5035_v31 = vsel %vm20527_vm11, %v5033_v41, %v5034_v48  ;;  %vm20529_vm7 = vmmov %vm20525_vm6  ;;  %v4671_v24 = vshll.u32 %v17240_v22, 16  ;;  %v14906_v15 = vld [vmem:[%s19933_s4 + $0x3a8] sm:$0xff]   ;;  %v20544_v37 = vld [vmem:[#allocation22_spill] sm:$0xff] }
 0x3dd   :  { %v17209_v30 = vsel %vm20521_vm1, %v4590_v3, %v4599_v18  ;;  %v17212_v1 = vsel %vm20522_vm9, %v4599_v18, %v4608_v32  ;;  %14038 = vmatprep.mubr.msk.bf16.mxu1 %vm20504_vm8, %v4650_v5  ;;  %14082 = vmatprep.subr.bf16.mxu0 %v14901_v61  ;;  %vm20531_vm1 = vsmask.f32 7424  ;;  %vm20532_vm9 = vmmov %vm20525_vm6  ;;  %v20533_v3 = vld [vmem:[#allocation9_spill] sm:$0xff]  ;;  %v14909_v18 = vld [vmem:[%s19933_s4 + $0x408] sm:$0xff]  }
 0x3de   :  { %v4619_v21 = vsel %vm15909_vm3, %v17209_v30, 0  ;;  %v4620_v19 = vsel %vm15953_vm14, %v17212_v1, 0  ;;  %v4655_v53 = vshll.u32 %v17209_v30, 16  ;;  %v4663_v12 = vshll.u32 %v17212_v1, 16  ;;  %vm20539_vm11 = vmmov %vm20529_vm7  ;;  %v20549_v50 = vld [vmem:[#allocation21_spill] sm:$0xff]  ;;  %v20553_v41 = vld [vmem:[#allocation14_spill] sm:$0xff] }
 0x3df   :  { %14058 = vmatprep.mubr.msk.bf16.mxu0 %vm20525_vm6, %v4619_v21  ;;  %v4659_v62 = vshrl.u32 %v17209_v30, 16  ;;  %v5016_v38 = vsel %vm16005_vm10, %v17209_v30, 0  ;;  %v5017_v45 = vsel %vm20315_vm2, %v17212_v1, 0  ;;  %vm20534_vm8 = vnez %v20533_v3 }
 0x3e0   :  { %14059 = vmatmul.mubr.msk.bf16.gmra.mxu0 %vm20526_vm15, %v4620_v19  ;;  %v4657_v59 = vrot.slane %v4655_v53, 1  ;;  %v4665_v60 = vrot.slane %v4663_v12, 1  ;;  %v5036_v58 = vrot.slane %v5016_v38, 4  ;;  %v4877_v44 = vsel %vm20534_vm8, %v17175_v51, 0  ;;  %vm20538_vm15 = vmmov %vm20531_vm1 }
 0x3e1   :  { %14083 = vmatpush3.bf16.msra.mxu0 %v14901_v61  ;;  %14086 = vmatprep.mubr.msk.bf16.mxu0 %vm20529_vm7, %v5035_v31  ;;  %vm20536_vm6 = vcmp.ne.s16.totalorder %v20535_v17, 0  ;;  %v5038_v63 = vrot.slane %v5017_v45, 4  ;;  %v4667_v16 = vshrl.u32 %v17212_v1, 16  ;;  %vm20540_vm7 = vcmask 1043456   ;;  %v14911_v45 = vld [vmem:[%s19933_s4 + $0x400] sm:$0xff]  }
 0x3e2   :  { %v17247_v25 = vsel %vm20531_vm1, %v4653_v49, %v4657_v59  ;;  %14084 = vmatprep.subr.bf16.mxu0 %v14903_v57  ;;  %v4661_v7 = vor.u32 %v4659_v62, %v4657_v59  ;;  %v4878_v54 = vsel %vm20536_vm6, %v17171_v8, 0  ;;  %v5037_v33 = vsel %vm20540_vm7, %v5034_v48, %v5036_v58  ;;  %vm20541_vm1 = vmmov %vm20532_vm9  ;;  %v14910_v59 = vld [vmem:[%s19933_s4 + $0x3f8] sm:$0xff]  }
 0x3e3   :  { %14039 = vmatmul.mubr.msk.bf16.vlgmr.msra.gmra.mxu1 %vm20532_vm9, %v17247_v25  ;;  %v4669_v46 = vor.u32 %v4667_v16, %v4665_v60  ;;  %v4896_v14 = vrot.slane %v4877_v44, 1  ;;  %v4897_v13 = vrot.slane %v4878_v54, 1  ;;  %vm20542_vm9 = vmmov %vm20540_vm7  ;;  %v17288_v28 = vrot.slane %v4671_v24, 1  ;;  %v14912_v44 = vld [vmem:[%s19933_s4 + $0x3f0] sm:$0xff]   ;;  %v20564_v54 = vld [vmem:[#allocation25_spill] sm:$0xff] }
 0x3e4   :  { %14063 = vmatpush3.bf16.msra.mxu1 %v20537_v47  ;;  %v17269_v0 = vsel %vm20538_vm15, %v4661_v7, %v4665_v60  ;;  %v5039_v6 = vsel %vm20542_vm9, %v5036_v58, %v5038_v63  ;;  %vm20543_vm6 = vmmov %vm20541_vm1  ;;  %vm20545_vm15 = vnez %v20544_v37  ;;  %vm20548_vm7 = vsmask.f32 7424 }
 0x3e5   :  { %14042 = vmatprep.mubr.msk.bf16.mxu1 %vm20539_vm11, %v17269_v0  ;;  %14085 = vmatpush3.bf16.msra.mxu0 %v14903_v57  ;;  %v5290_v61 = vsel %vm20545_vm15, %v17175_v51, 0  ;;  %vm20547_vm11 = vcmp.ne.s16.totalorder %v20546_v34, 0  ;;  %v17302_v23 = vsel %vm20548_vm7, %v4669_v46, %v17288_v28  ;;  %vm20551_vm9 = vmmov %vm20543_vm6  ;;  %v20556_v57 = vld [vmem:[#allocation18_spill] sm:$0xff]  ;;  %vm20566_vm2 = vcmask 1046528   ;;  %v14913_v46 = vld [vmem:[%s19933_s4 + $0x458] sm:$0xff]  }
 0x3e6   :  { %14064 = vmatprep.subr.bf16.mxu1 %v14904_v9  ;;  %14110 = vmatprep.subr.bf16.mxu0 %v14905_v39  ;;  %v5291_v26 = vsel %vm20547_vm11, %v17171_v8, 0  ;;  %vm20554_vm11 = vcmp.ne.s16.totalorder %v20553_v41, 0  ;;  %vm20555_vm7 = vmmov %vm20551_vm9  ;;  %v5309_v21 = vrot.slane %v5290_v61, 5  ;;  %v14914_v51 = vld [vmem:[%s19933_s4 + $0x3e8] sm:$0xff]  }
 0x3e7   :  { %v4879_v48 = vsel %vm20554_vm11, %v17209_v30, 0  ;;  %v5310_v19 = vrot.slane %v5291_v26, 5  ;;  %vm20562_vm11 = vcmask 1042432  }
 0x3e8   :  { %14065 = vmatpush3.bf16.msra.mxu1 %v14904_v9  ;;  %14087 = vmatmul.mubr.msk.bf16.vlgmr.msra.gmra.mxu0 %vm20541_vm1, %v5037_v33  ;;  %vm20550_vm1 = vnez %v20549_v50  ;;  %v4899_v38 = vrot.slane %v4879_v48, 1  ;;  %v20559_v9 = vld [vmem:[#allocation24_spill] sm:$0xff]  ;;  %v5167_v48 = vrot.slane %v4659_v62, 4  ;;  %v5171_v62 = vrot.slane %v4667_v16, 4 }
 0x3e9   :  { %14090 = vmatprep.mubr.msk.bf16.mxu0 %vm20543_vm6, %v5039_v6  ;;  %14111 = vmatpush3.bf16.msra.mxu0 %v14905_v39  ;;  %v5018_v32 = vsel %vm20550_vm1, %v17240_v22, 0  ;;  %vm20552_vm6 = vcmask 1046528   ;;  %vm20557_vm1 = vcmp.ne.s16.totalorder %v20556_v57, 0  ;;  %v5311_v58 = vsel %vm20562_vm11, %v5309_v21, %v5310_v19 }
 0x3ea   :  { %14066 = vmatprep.subr.bf16.mxu1 %v14906_v15  ;;  %14112 = vmatprep.subr.bf16.mxu0 %v14907_v2  ;;  %v4898_v5 = vsel %vm20552_vm6, %v4896_v14, %v4897_v13  ;;  %v4880_v49 = vsel %vm20557_vm1, %v17212_v1, 0  ;;  %v5040_v31 = vrot.slane %v5018_v32, 4  ;;  %vm20560_vm6 = vcmp.ne.s16.totalorder %v20559_v9, 0  ;;  %vm20561_vm1 = vmmov %vm20555_vm7 }
 0x3eb   :  { %14043 = vmatmul.mubr.msk.bf16.gmra.mxu1 %vm20551_vm9, %v17302_v23  ;;  %vm20558_vm9 = vcmask 1043456   ;;  %v4901_v60 = vrot.slane %v4880_v49, 1  ;;  %v5292_v39 = vsel %vm20560_vm6, %v17209_v30, 0  ;;  %vm20567_vm6 = vmmov %vm20561_vm1  ;;  %v5161_v14 = vrot.slane %v4642_v55, 5  ;;  %v14915_v55 = vld [vmem:[%s19933_s4 + $0x450] sm:$0xff]   ;;  %v20577_v49 = vld [vmem:[#allocation26_spill] sm:$0xff] }
 0x3ec   :  { %14067 = vmatpush3.bf16.msra.mxu1 %v14906_v15  ;;  %14070 = vmatprep.mubr.msk.bf16.mxu1 %vm20555_vm7, %v4898_v5  ;;  %v5041_v7 = vsel %vm20558_vm9, %v5038_v63, %v5040_v31  ;;  %vm20563_vm7 = vmmov %vm20561_vm1  ;;  %vm20565_vm9 = vcmp.ne.s16.totalorder %v20564_v54, 0  ;;  %v4900_v63 = vsel %vm20566_vm2, %v4897_v13, %v4899_v38  ;;  %v5312_v15 = vrot.slane %v5292_v39, 5  ;;  %v14916_v5 = vld [vmem:[%s19933_s4 + $0x3e0] sm:$0xff]  }
 0x3ed   :  { %14113 = vmatpush3.bf16.msra.mxu0 %v14907_v2  ;;  %14068 = vmatprep.subr.bf16.mxu1 %v14908_v29  ;;  %v5293_v47 = vsel %vm20565_vm9, %v17212_v1, 0  ;;  %v5160_v2 = vrot.slane %v4640_v42, 4  ;;  %v5163_v6 = vrot.slane %v4651_v4, 4  ;;  %v5164_v13 = vrot.slane %v4647_v11, 5  ;;  %v20570_v42 = vld [vmem:[#allocation19_spill] sm:$0xff]  ;;  %v14919_v39 = vld [vmem:[%s19933_s4 + $0x440] sm:$0xff]  }
 0x3ee   :  { %14114 = vmatprep.subr.bf16.mxu0 %v14909_v18  ;;  %vm20571_vm11 = vnez %v20570_v42  ;;  %v5168_v21 = vrot.slane %v4655_v53, 5  ;;  %v5172_v53 = vrot.slane %v4663_v12, 5  ;;  %v5175_v12 = vshrl.u32 %v17240_v22, 16 }
 0x3ef   :  { %v4881_v61 = vsel %vm20571_vm11, %v17240_v22, 0  ;;  %v5162_v4 = vor.u32 %v5161_v14, %v5160_v2  ;;  %v5165_v26 = vor.u32 %v5164_v13, %v5163_v6  ;;  %v5427_v6 = vsel %vm15518_vm13, %v17171_v8, 0 }
 0x3f0   :  { %14069 = vmatpush3.bf16.msra.mxu1 %v14908_v29  ;;  %14091 = vmatmul.mubr.msk.bf16.gmra.mxu0 %vm20561_vm1, %v5041_v7  ;;  %vm20568_vm1 = vmmov %vm20566_vm2  ;;  %v5314_v29 = vrot.slane %v5293_v47, 5  ;;  %v5169_v7 = vor.u32 %v5168_v21, %v5167_v48  ;;  %v5558_v14 = vor.u32 %v5175_v12, %v17288_v28  ;;  %v14924_v28 = vld [vmem:[%s19933_s4 + $0x470] sm:$0xff]  }
 0x3f1   :  { %14115 = vmatpush3.bf16.msra.mxu0 %v14909_v18  ;;  %14118 = vmatprep.mubr.msk.bf16.mxu0 %vm20563_vm7, %v5311_v58  ;;  %v4902_v33 = vsel %vm20568_vm1, %v4899_v38, %v4901_v60  ;;  %vm20569_vm2 = vmmov %vm20567_vm6  ;;  %vm20572_vm7 = vcmask 1042432   ;;  %v4903_v18 = vrot.slane %v4881_v61, 1  ;;  %v5173_v58 = vor.u32 %v5172_v53, %v5171_v62  ;;  %v14927_v53 = vld [vmem:[%s19933_s4 + $0x38] sm:$0xff]  }
 0x3f2   :  { %14094 = vmatprep.subr.bf16.mxu1 %v14910_v59  ;;  %14116 = vmatprep.subr.bf16.mxu0 %v14911_v45  ;;  %v5313_v11 = vsel %vm20572_vm7, %v5310_v19, %v5312_v15  ;;  %vm20573_vm9 = vmmov %vm20569_vm2  ;;  %v5429_v61 = vsel %vm15909_vm3, %v17212_v1, 0 }
 0x3f3   :  { %14071 = vmatmul.mubr.msk.bf16.vlgmr.msra.gmra.mxu1 %vm20567_vm6, %v4900_v63  ;;  %vm20574_vm6 = vmmov %vm20572_vm7  ;;  %vm20578_vm7 = vnez %v20577_v49 }
 0x3f4   :  { %14095 = vmatpush3.bf16.msra.mxu1 %v14910_v59  ;;  %14074 = vmatprep.mubr.msk.bf16.mxu1 %vm20569_vm2, %v4902_v33  ;;  %v5315_v32 = vsel %vm20574_vm6, %v5312_v15, %v5314_v29  ;;  %vm20575_vm1 = vmmov %vm20569_vm2  ;;  %vm20576_vm2 = vcmask 1046528   ;;  %v5294_v31 = vsel %vm20578_vm7, %v17240_v22, 0  ;;  %v14917_v59 = vld [vmem:[%s19933_s4 + $0x448] sm:$0xff]   ;;  %vm20580_vm6 = vsmask.f32 3328 }
 0x3f5   :  { %14117 = vmatpush3.bf16.msra.mxu0 %v14911_v45  ;;  %14096 = vmatprep.subr.bf16.mxu1 %v14912_v44  ;;  %v4904_v19 = vsel %vm20576_vm2, %v4901_v60, %v4903_v18  ;;  %v5166_v38 = vsel %vm20580_vm6, %v5162_v4, %v5165_v26  ;;  %v5316_v45 = vrot.slane %v5294_v31, 5  ;;  %v14918_v60 = vld [vmem:[%s19933_s4 + $0x438] sm:$0xff]   ;;  %vm20581_vm2 = vcmask 1042432   ;;  %vm20583_vm6 = vmmov %vm20575_vm1 }
 0x3f6   :  { %14142 = vmatprep.subr.bf16.mxu0 %v14913_v46  ;;  %vm20585_vm7 = vmmov %vm20583_vm6  ;;  %v5178_v15 = vrot.slane %v4671_v24, 5  ;;  %v14922_v24 = vld [vmem:[%s19933_s4 + $0x420] sm:$0xff]  }
 0x3f7   :  { %v5317_v16 = vsel %vm20581_vm2, %v5314_v29, %v5316_v45  ;;  %v5428_v29 = vsel %vm15710_vm5, %v17209_v30, 0  ;;  %v12338_v45 = vld [vmem:[%s19935_s0 + $0x48] sm:$0xf] }
 0x3f8   :  { %14097 = vmatpush3.bf16.msra.mxu1 %v14912_v44  ;;  %14119 = vmatmul.mubr.msk.bf16.vlgmr.msra.gmra.mxu0 %vm20573_vm9, %v5313_v11  ;;  %vm20579_vm9 = vmmov %vm20575_vm1  ;;  %v14920_v44 = vld [vmem:[%s19933_s4 + $0x430] sm:$0xff]   ;;  %v5660_v11 = vsel %vm20534_vm8, %v17171_v8, 0 }
 0x3f9   :  { %14122 = vmatprep.mubr.msk.bf16.mxu0 %vm20575_vm1, %v5315_v32  ;;  %14143 = vmatpush3.bf16.msra.mxu0 %v14913_v46  ;;  %v5177_v46 = vrot.slane %v5175_v12, 4  ;;  %v14926_v32 = vld [vmem:[%s19933_s4 + $0x460] sm:$0xff]  }
 0x3fa   :  { %14098 = vmatprep.subr.bf16.mxu1 %v14914_v51  ;;  %14144 = vmatprep.subr.bf16.mxu0 %v14915_v55 }
 0x3fb   :  { %14075 = vmatmul.mubr.msk.bf16.gmra.mxu1 %vm20579_vm9, %v4904_v19  ;;  %vm20582_vm9 = vmmov %vm20575_vm1  ;;  %v5179_v2 = vor.u32 %v5178_v15, %v5177_v46 }
 0x3fc   :  { %14099 = vmatpush3.bf16.msra.mxu1 %v14914_v51  ;;  %14102 = vmatprep.mubr.msk.bf16.mxu1 %vm20575_vm1, %v5166_v38  ;;  %vm20584_vm1 = vsmask.f32 3328 }
 0x3fd   :  { %14145 = vmatpush3.bf16.msra.mxu0 %v14915_v55  ;;  %14100 = vmatprep.subr.bf16.mxu1 %v14916_v5  ;;  %v5170_v47 = vsel %vm20584_vm1, %v5165_v26, %v5169_v7  ;;  %vm20586_vm2 = vmmov %vm20584_vm1  ;;  %v5180_v33 = vsel %vm20584_vm1, %v5173_v58, %v5179_v2  ;;  %v14925_v55 = vld [vmem:[%s19933_s4 + $0x468] sm:$0xff]   ;;  %v5677_v26 = vrot.slane %v5660_v11, 1 }
 0x3fe   :  { %14146 = vmatprep.subr.bf16.mxu0 %v14917_v59  ;;  %v5174_v63 = vsel %vm20586_vm2, %v5169_v7, %v5173_v58  ;;  %vm20589_vm2 = vmmov %vm20583_vm6  ;;  %v6052_v58 = vshll.u32 %v12338_v45, 16 }
 0x3ff   :  { %vm20594_vm1 = vmmov %vm20589_vm2 }
 0x400   :  { %14101 = vmatpush3.bf16.msra.mxu1 %v14916_v5  ;;  %14123 = vmatmul.mubr.msk.bf16.gmra.mxu0 %vm20582_vm9, %v5317_v16  ;;  %vm20587_vm9 = vmmov %vm20583_vm6  ;;  %v6049_v16 = vshrl.u32 %v12338_v45, 16 }
 0x401   :  { %14147 = vmatpush3.bf16.msra.mxu0 %v14917_v59  ;;  %14150 = vmatprep.mubr.msk.bf16.mxu0 %vm20583_vm6, %v17247_v25  ;;  %v14921_v25 = vld [vmem:[%s19933_s4 + $0x428] sm:$0xff]   ;;  %v12339_v59 = vld [vmem:[%s19935_s0 + $0x50] sm:$0xf] }
 0x402   :  { %14126 = vmatprep.subr.bf16.mxu1 %v14918_v60  ;;  %14148 = vmatprep.subr.bf16.mxu0 %v14919_v39  ;;  %v6063_v38 = vshrl.u32 %v12339_v59, 16  ;;  %v6066_v62 = vshll.u32 %v12339_v59, 16  ;;  %v6051_v46 = vrot.slane %v6049_v16, 4 }
 0x403   :  { %14103 = vmatmul.mubr.msk.bf16.vlgmr.msra.gmra.mxu1 %vm20585_vm7, %v5170_v47  ;;  %vm20588_vm7 = vmmov %vm20583_vm6  ;;  %v12347_v47 = vld [vmem:[%s19935_s0 + $0x54] sm:$0x1] }
 0x404   :  { %14127 = vmatpush3.bf16.msra.mxu1 %v14918_v60  ;;  %14106 = vmatprep.mubr.msk.bf16.mxu1 %vm20587_vm9, %v5174_v63  ;;  %vm20590_vm9 = vmmov %vm20589_vm2  ;;  %v6065_v12 = vrot.slane %v6063_v38, 4 }
 0x405   :  { %14149 = vmatpush3.bf16.msra.mxu0 %v14919_v39  ;;  %14128 = vmatprep.subr.bf16.mxu1 %v14920_v44  ;;  %v12340_v39 = vld [vmem:[%s19935_s0 + $0x58] sm:$0xf] }
 0x406   :  { %v6077_v63 = vshrl.u32 %v12340_v39, 16  ;;  %v6080_v15 = vshll.u32 %v12340_v39, 16 }
 0x408   :  { %14129 = vmatpush3.bf16.msra.mxu1 %v14920_v44  ;;  %14151 = vmatmul.mubr.msk.bf16.vlgmr.msra.gmra.mxu0 %vm20583_vm6, %v17269_v0  ;;  %v14923_v0 = vld [vmem:[%s19933_s4 + $0x478] sm:$0xff]   ;;  %vm20592_vm6 = vsmask.f32 7424  ;;  %v6068_v44 = vrot.slane %v6066_v62, 5  ;;  %v17523_v62 = vld [vmem:[%s19935_s0 + $0x50] sm:$0xf] }
 0x409   :  { %14154 = vmatprep.mubr.msk.bf16.mxu0 %vm20588_vm7, %v17302_v23  ;;  %14130 = vmatprep.subr.bf16.mxu1 %v14921_v25  ;;  %v20591_v23 = vld [vmem:[#allocation27_spill] sm:$0xff]  ;;  %vm20593_vm7 = vmmov %vm20589_vm2 }
 0x40a   :  { %v5559_v13 = vsel %vm20592_vm6, %v5558_v14, %v20591_v23  ;;  %vm20597_vm6 = vmmov %vm20594_vm1  ;;  %v6069_v2 = vor.u32 %v6068_v44, %v6065_v12  ;;  %v6079_v14 = vrot.slane %v6077_v63, 4 }
 0x40b   :  { %14107 = vmatmul.mubr.msk.bf16.gmra.mxu1 %vm20589_vm2, %v5180_v33  ;;  %vm20595_vm2 = vmmov %vm20594_vm1  ;;  %v12346_v33 = vld [vmem:[%s19935_s0 + $0x4c] sm:$0x1] }
 0x40c   :  { %14131 = vmatpush3.bf16.msra.mxu1 %v14921_v25  ;;  %14134 = vmatprep.mubr.msk.bf16.mxu1 %vm20590_vm9, %v5427_v6  ;;  %vm20596_vm9 = vcmp.ne.s16.totalorder %v20535_v17, 0  ;;  %vm20603_vm3 = vmmov %vm20595_vm2  ;;  %v6054_v25 = vrot.slane %v6052_v58, 5  ;;  %v6082_v6 = vrot.slane %v6080_v15, 5  ;;  %v17549_v15 = vld [vmem:[%s19935_s0 + $0x60] sm:$0xf] }
 0x40d   :  { %14132 = vmatprep.subr.bf16.mxu1 %v14922_v24  ;;  %v5661_v51 = vsel %vm20596_vm9, %v17209_v30, 0  ;;  %v5430_v30 = vsel %vm15953_vm14, %v17240_v22, 0  ;;  %vm20600_vm9 = vcmp.ne.s16.totalorder %v20556_v57, 0 }
 0x40e   :  { %v5678_v4 = vrot.slane %v5661_v51, 1  ;;  %v5663_v48 = vsel %vm20600_vm9, %v17240_v22, 0  ;;  %v17479_v22 = vld [vmem:[%s19935_s0 + $0x60] sm:$0xf]  ;;  %v6058_v51 = vshll.u32 %v12346_v33, 16 }
 0x40f   :  { %v5682_v21 = vrot.slane %v5663_v48, 1  ;;  %v6091_v7 = vshrl.u32 %v17479_v22, 16  ;;  %v6094_v60 = vshll.u32 %v17479_v22, 16  ;;  %v12332_v48 = vld [vmem:[%s19934_s3 + $0x28] sm:$0xf] }
 0x410   :  { %14133 = vmatpush3.bf16.msra.mxu1 %v14922_v24  ;;  %14155 = vmatmul.mubr.msk.bf16.gmra.mxu0 %vm20593_vm7, %v5559_v13  ;;  %vm20598_vm7 = vcmask 1046528   ;;  %v6072_v24 = vshll.u32 %v12347_v47, 16  ;;  %v12362_v33 = vld [vmem:[%s19935_s0 + $0x54] sm:$0x1] }
 0x411   :  { %14158 = vmatprep.subr.bf16.mxu1 %v14923_v0  ;;  %v5679_v18 = vsel %vm20598_vm7, %v5677_v26, %v5678_v4  ;;  %vm20601_vm14 = vmmov %vm20598_vm7  ;;  %v6096_v13 = vrot.slane %v6094_v60, 5  ;;  %v6083_v26 = vor.u32 %v6082_v6, %v6079_v14  ;;  %v12363_v14 = vld [vmem:[%s19935_s0 + $0x5c] sm:$0x1]  ;;  %v14930_v6 = vld [vmem:[%s19939_s6 + $0x10] sm:$0xff]  }
 0x413   :  { %14135 = vmatmul.mubr.msk.bf16.vlgmr.msra.gmra.mxu1 %vm20594_vm1, %v5428_v29  ;;  %vm20599_vm1 = vcmp.ne.s16.totalorder %v20553_v41, 0  ;;  %v12348_v29 = vld [vmem:[%s19935_s0 + $0x5c] sm:$0x1] }
 0x414   :  { %14159 = vmatpush3.bf16.msra.mxu1 %v14923_v0  ;;  %14138 = vmatprep.mubr.msk.bf16.mxu1 %vm20595_vm2, %v5429_v61  ;;  %v5662_v8 = vsel %vm20599_vm1, %v17212_v1, 0  ;;  %vm20604_vm1 = vmmov %vm20598_vm7  ;;  %v6093_v0 = vrot.slane %v6091_v7, 4  ;;  %v6055_v61 = vor.u32 %v6054_v25, %v6051_v46  ;;  %v6034_v7 = vmax.bf16 %v12340_v39, %v12332_v48  ;;  %v17542_v39 = vld [vmem:[%s19935_s0 + $0x58] sm:$0xf] }
 0x415   :  { %14160 = vmatprep.subr.bf16.mxu1 %v14924_v28  ;;  %v5680_v5 = vrot.slane %v5662_v8, 1  ;;  %v5684_v1 = vsel %vm20604_vm1, %v5682_v21, %v20591_v23  ;;  %v6202_v46 = vshrl.u32 %v17523_v62, 16  ;;  %vm20614_vm1 = vmmov %vm20595_vm2 }
 0x416   :  { %v6056_v8 = vrot.slane %v6055_v61, 4  ;;  %v6097_v16 = vor.u32 %v6096_v13, %v6093_v0  ;;  %v14931_v0 = vld [vmem:[%s19933_s4 + $0x28] sm:$0xff]   ;;  %v6205_v61 = vshll.u32 %v17523_v62, 16 }
 0x417   :  { %v5681_v19 = vsel %vm20601_vm14, %v5678_v4, %v5680_v5  ;;  %v5683_v31 = vsel %vm20598_vm7, %v5680_v5, %v5682_v21  ;;  %v6074_v4 = vrot.slane %v6072_v24, 5  ;;  %v6060_v5 = vrot.slane %v6058_v51, 5  ;;  %v17516_v21 = vld [vmem:[%s19934_s3 + $0x2c] sm:$0xf] }
 0x418   :  { %14161 = vmatpush3.bf16.msra.mxu1 %v14924_v28  ;;  %v12331_v28 = vld [vmem:[%s19934_s3 + $0x24] sm:$0xf]  ;;  %v6035_v25 = vmax.bf16 %v17479_v22, %v17516_v21  ;;  %v17569_v22 = vld [vmem:[%s19935_s0 + $0x68] sm:$0xf]  ;;  %v12365_v21 = vld [vmem:[%s19935_s0 + $0x6c] sm:$0x1] }
 0x419   :  { %14162 = vmatprep.subr.bf16.mxu1 %v14925_v55  ;;  %v6033_v11 = vmax.bf16 %v12339_v59, %v12331_v28  ;;  %v6084_v59 = vrot.slane %v6083_v26, 4  ;;  %v6219_v26 = vshll.u32 %v17542_v39, 16  ;;  %vm20607_vm14 = vcmask 1043456  }
 0x41a   :  { %vm20609_vm9 = vmmov %vm20607_vm14  ;;  %vm20613_vm7 = vsmask.f32 7424 }
 0x41b   :  { %14139 = vmatmul.mubr.msk.bf16.gmra.mxu1 %vm20597_vm6, %v5430_v30  ;;  %vm20602_vm6 = vmmov %vm20595_vm2  ;;  %v12330_v30 = vld [vmem:[%s19934_s3 + $0x20] sm:$0xf] }
 0x41c   :  { %14163 = vmatpush3.bf16.msra.mxu1 %v14925_v55  ;;  %14166 = vmatprep.mubr.msk.bf16.mxu1 %vm20595_vm2, %v5679_v18  ;;  %v6070_v55 = vrot.slane %v6069_v2, 4  ;;  %v12349_v18 = vld [vmem:[%s19935_s0 + $0x64] sm:$0x1]  ;;  %v6098_v2 = vrot.slane %v6097_v16, 4 }
 0x41d   :  { %14164 = vmatprep.subr.bf16.mxu1 %v14926_v32  ;;  %v6100_v12 = vshll.u32 %v12349_v18, 16  ;;  %v6225_v18 = vshll.u32 %v12363_v14, 16 }
 0x41f   :  { %v6102_v24 = vrot.slane %v6100_v12, 5  ;;  %v6247_v12 = vshll.u32 %v17569_v22, 16 }
 0x420   :  { %14165 = vmatpush3.bf16.msra.mxu1 %v14926_v32  ;;  %v6086_v32 = vshll.u32 %v12348_v29, 16  ;;  %v6204_v29 = vrot.slane %v6202_v46, 4 }
 0x421   :  { %14190 = vmatprep.subr.bf16.mxu1 %v14927_v53 }
 0x422   :  { %v6088_v38 = vrot.slane %v6086_v32, 5  ;;  %v14932_v32 = vld [vmem:[%s19939_s6 + $0x8] sm:$0xff]  }
 0x423   :  { %14167 = vmatmul.mubr.msk.bf16.vlgmr.msra.gmra.mxu1 %vm20602_vm6, %v5681_v19  ;;  %v6032_v19 = vmax.bf16 %v12338_v45, %v12330_v30  ;;  %v14929_v45 = vld [vmem:[%s19933_s4 + $0x30] sm:$0xff]   ;;  %v6207_v30 = vrot.slane %v6205_v61, 5  ;;  %vm20612_vm6 = vsmask.f32 4352 }
 0x424   :  { %14170 = vmatprep.mubr.msk.bf16.mxu1 %vm20603_vm3, %v5683_v31  ;;  %14191 = vmatpush3.bf16.msra.mxu1 %v14927_v53  ;;  %v20605_v31 = vld [vmem:[#allocation2_spill] sm:$0xff]  ;;  %v14928_v53 = vld [vmem:[%s19939_s6 + $0x18] sm:$0xff]  }
 0x425   :  { %vm20606_vm3 = vnez %v20605_v31  ;;  %14174 = vmatprep.subr.bf16.mxu0 %v14928_v53  ;;  %14192 = vmatprep.subr.bf16.mxu1 %v14929_v45  ;;  %v14941_v31 = vld [vmem:[%s19933_s4 + $0x40] sm:$0xff]  }
 0x426   :  { %v6061_v60 = vsel %vm20606_vm3, %v6056_v8, %v6060_v5  ;;  %v6089_v58 = vsel %vm20606_vm3, %v6084_v59, %v6088_v38  ;;  %14175 = vmatpush3.bf16.msra.mxu0 %v14928_v53  ;;  %v6230_v8 = vshrl.u32 %v17549_v15, 16  ;;  %v6233_v5 = vshll.u32 %v17549_v15, 16  ;;  %v14933_v38 = vld [vmem:[%s19933_s4 + $0x20] sm:$0xff]  }
 0x427   :  { %v17535_v44 = vmax.bf16 %v6061_v60, %v6032_v19  ;;  %v17544_v63 = vmax.bf16 %v6089_v58, %v6034_v7  ;;  %14176 = vmatprep.subr.bf16.mxu0 %v14930_v6  ;;  %v6103_v48 = vsel %vm20606_vm3, %v6098_v2, %v6102_v24  ;;  %v6221_v59 = vrot.slane %v6219_v26, 5  ;;  %v17619_v26 = vld [vmem:[%s19936_s2 + $0x48] sm:$0xf] }
 0x428   :  { %14193 = vmatpush3.bf16.msra.mxu1 %v14929_v45  ;;  %v6227_v53 = vrot.slane %v6225_v18, 5  ;;  %v6232_v7 = vrot.slane %v6230_v8, 4  ;;  %v6235_v60 = vrot.slane %v6233_v5, 5  ;;  %v6244_v58 = vshrl.u32 %v17569_v22, 16  ;;  %v12378_v5 = vld [vmem:[%s19937_s1 + $0x28] sm:$0xf] }
 0x429   :  { %v6185_v13 = vmax.bf16 %v17523_v62, %v17535_v44  ;;  %v6187_v51 = vmax.bf16 %v17549_v15, %v17544_v63  ;;  %14194 = vmatprep.subr.bf16.mxu1 %v14931_v0  ;;  %v6208_v62 = vor.u32 %v6207_v30, %v6204_v29  ;;  %v6171_v44 = vmax.bf16 %v6103_v48, %v6035_v25  ;;  %v17606_v25 = vld [vmem:[%s19936_s2 + $0x40] sm:$0xf]  ;;  %v12394_v48 = vld [vmem:[%s19936_s2 + $0x44] sm:$0x1] }
 0x42a   :  { %14177 = vmatpush3.bf16.msra.mxu0 %v14930_v6  ;;  %v6253_v63 = vshll.u32 %v12365_v21, 16  ;;  %v6246_v2 = vrot.slane %v6244_v58, 4  ;;  %v6249_v24 = vrot.slane %v6247_v12, 5  ;;  %v14934_v29 = vld [vmem:[%s19939_s6] sm:$0xff]   ;;  %v12395_v12 = vld [vmem:[%s19936_s2 + $0x4c] sm:$0x1] }
 0x42b   :  { %14171 = vmatmul.mubr.msk.bf16.gmra.mxu1 %vm20595_vm2, %v5684_v1  ;;  %v6075_v1 = vsel %vm20606_vm3, %v6070_v55, %v6074_v4  ;;  %v12364_v55 = vld [vmem:[%s19935_s0 + $0x64] sm:$0x1]  ;;  %v6216_v4 = vshrl.u32 %v17542_v39, 16  ;;  %14178 = vmatprep.subr.bf16.mxu0 %v14932_v32  ;;  %v6188_v30 = vmax.bf16 %v17569_v22, %v6171_v44  ;;  %v6406_v44 = vshll.u32 %v17619_v26, 16  ;;  %vm20617_vm2 = vmmov %vm20609_vm9 }
 0x42c   :  { %v17537_v47 = vmax.bf16 %v6075_v1, %v6033_v11  ;;  %v6211_v11 = vshll.u32 %v12362_v33, 16  ;;  %14195 = vmatpush3.bf16.msra.mxu1 %v14931_v0  ;;  %v6239_v45 = vshll.u32 %v12364_v55, 16  ;;  %v6255_v6 = vrot.slane %v6253_v63, 5  ;;  %v12370_v0 = vld [vmem:[%s19937_s1 + $0x24] sm:$0xf] }
 0x42d   :  { %v6218_v1 = vrot.slane %v6216_v4, 4  ;;  %14196 = vmatprep.subr.bf16.mxu1 %v14933_v38  ;;  %v6250_v55 = vor.u32 %v6249_v24, %v6246_v2  ;;  %v12371_v4 = vld [vmem:[%s19937_s1 + $0x28] sm:$0xf]  ;;  %v12381_v63 = vld [vmem:[%s19937_s1 + $0x34] sm:$0xf] }
 0x42e   :  { %v6186_v28 = vmax.bf16 %v17542_v39, %v17537_v47  ;;  %v6213_v19 = vrot.slane %v6211_v11, 5  ;;  %v6209_v47 = vrot.slane %v6208_v62, 4  ;;  %v6236_v39 = vor.u32 %v6235_v60, %v6232_v7  ;;  %14179 = vmatpush3.bf16.msra.mxu0 %v14932_v32 }
 0x42f   :  { %v6222_v16 = vor.u32 %v6221_v59, %v6218_v1  ;;  %v6241_v46 = vrot.slane %v6239_v45, 5  ;;  %v6389_v32 = vshrl.u32 %v17606_v25, 16  ;;  %14180 = vmatprep.subr.bf16.mxu0 %v14934_v29  ;;  %v6251_v21 = vrot.slane %v6250_v55, 4 }
 0x430   :  { %14197 = vmatpush3.bf16.msra.mxu1 %v14933_v38  ;;  %v6214_v33 = vsel %vm20606_vm3, %v6209_v47, %v6213_v19  ;;  %v6237_v14 = vrot.slane %v6236_v39, 4  ;;  %v12380_v38 = vld [vmem:[%s19937_s1 + $0x30] sm:$0xf]  ;;  %v6392_v62 = vshll.u32 %v17606_v25, 16  ;;  %v6403_v7 = vshrl.u32 %v17619_v26, 16  ;;  %v14936_v47 = vld [vmem:[%s19933_s4 + $0x18] sm:$0xff]  }
 0x431   :  { %v6223_v15 = vrot.slane %v6222_v16, 4  ;;  %v6321_v11 = vmax.bf16 %v6214_v33, %v6185_v13  ;;  %v12372_v13 = vld [vmem:[%s19937_s1 + $0x2c] sm:$0xf]  ;;  %v6391_v1 = vrot.slane %v6389_v32, 4  ;;  %v6256_v60 = vsel %vm20606_vm3, %v6251_v21, %v6255_v6  ;;  %v12373_v16 = vld [vmem:[%s19937_s1 + $0x30] sm:$0xf] }
 0x432   :  { %v6242_v18 = vsel %vm20606_vm3, %v6237_v14, %v6241_v46  ;;  %14181 = vmatpush3.bf16.msra.mxu0 %v14934_v29  ;;  %v6324_v39 = vmax.bf16 %v6256_v60, %v6188_v30  ;;  %v12388_v46 = vld [vmem:[%s19936_s2 + $0x50] sm:$0xf]  ;;  %v6394_v2 = vrot.slane %v6392_v62, 5  ;;  %v12396_v33 = vld [vmem:[%s19936_s2 + $0x54] sm:$0x1]  ;;  %v6405_v6 = vrot.slane %v6403_v7, 4 }
 0x433   :  { %v6228_v61 = vsel %vm20606_vm3, %v6223_v15, %v6227_v53  ;;  %v6323_v19 = vmax.bf16 %v6242_v18, %v6187_v51  ;;  %v6338_v22 = vmax.bf16 %v12370_v0, %v6321_v11  ;;  %v6398_v53 = vshll.u32 %v12394_v48, 16  ;;  %v17645_v51 = vld [vmem:[%s19933_s4 + $0x58] sm:$0xff]   ;;  %14206 = vmatprep.subr.bf16.mxu0 %v14936_v47  ;;  %v12342_v7 = vld [vmem:[%s19935_s0 + $0x68] sm:$0xf] }
 0x434   :  { %v6322_v8 = vmax.bf16 %v6228_v61, %v6186_v28  ;;  %v12379_v28 = vld [vmem:[%s19937_s1 + $0x2c] sm:$0xf]  ;;  %14222 = vmatprep.subr.bf16.mxu1 %v17645_v51  ;;  %v6408_v0 = vrot.slane %v6406_v44, 5  ;;  %v6341_v29 = vmax.bf16 %v12373_v16, %v6324_v39  ;;  %v12389_v61 = vld [vmem:[%s19936_s2 + $0x58] sm:$0xf]  ;;  %v6395_v11 = vor.u32 %v6394_v2, %v6391_v1 }
 0x435   :  { %v6340_v45 = vmax.bf16 %v12372_v13, %v6323_v19  ;;  %v6355_v58 = vmax.bf16 %v12378_v5, %v6338_v22  ;;  %v6400_v14 = vrot.slane %v6398_v53, 5  ;;  %v6417_v18 = vshrl.u32 %v12388_v46, 16  ;;  %v12397_v5 = vld [vmem:[%s19936_s2 + $0x5c] sm:$0x1]  ;;  %v12334_v53 = vld [vmem:[%s19934_s3 + $0x30] sm:$0xf] }
 0x436   :  { %v6339_v59 = vmax.bf16 %v12371_v4, %v6322_v8  ;;  %v6412_v4 = vshll.u32 %v12395_v12, 16  ;;  %v6409_v30 = vor.u32 %v6408_v0, %v6405_v6  ;;  %v6420_v8 = vshll.u32 %v12388_v46, 16  ;;  %v12350_v12 = vld [vmem:[%s19935_s0 + $0x6c] sm:$0x1] }
 0x437   :  { %v6357_v24 = vmax.bf16 %v12380_v38, %v6340_v45  ;;  %v6372_v55 = vmax.bf16 %v17606_v25, %v6355_v58  ;;  %v6358_v13 = vmax.bf16 %v12381_v63, %v6341_v29  ;;  %v6396_v48 = vrot.slane %v6395_v11, 4 }
 0x438   :  { %v6356_v15 = vmax.bf16 %v12379_v28, %v6339_v59  ;;  %v6414_v21 = vrot.slane %v6412_v4, 5  ;;  %v6426_v19 = vshll.u32 %v12396_v33, 16  ;;  %v6410_v22 = vrot.slane %v6409_v30, 4 }
 0x439   :  { %v6419_v28 = vrot.slane %v6417_v18, 4  ;;  %v6422_v59 = vrot.slane %v6420_v8, 5  ;;  %v6431_v38 = vshrl.u32 %v12389_v61, 16  ;;  %v6374_v25 = vmax.bf16 %v12388_v46, %v6357_v24 }
 0x43a   :  { %v6373_v32 = vmax.bf16 %v17619_v26, %v6356_v15  ;;  %v6401_v1 = vsel %vm20606_vm3, %v6396_v48, %v6400_v14  ;;  %v6428_v26 = vrot.slane %v6426_v19, 5  ;;  %v6434_v62 = vshll.u32 %v12389_v61, 16  ;;  %v17693_v15 = vld [vmem:[%s19935_s0 + $0x70] sm:$0xf] }
 0x43b   :  { %v6415_v60 = vsel %vm20606_vm3, %v6410_v22, %v6414_v21  ;;  %v6423_v16 = vor.u32 %v6422_v59, %v6419_v28  ;;  %v6433_v45 = vrot.slane %v6431_v38, 4  ;;  %v6440_v58 = vshll.u32 %v12397_v5, 16  ;;  %v17708_v5 = vld [vmem:[%s19935_s0 + $0x70] sm:$0xf] }
 0x43c   :  { %v6375_v44 = vmax.bf16 %v12389_v61, %v6358_v13  ;;  %v6436_v47 = vrot.slane %v6434_v62, 5  ;;  %v6508_v39 = vmax.bf16 %v6401_v1, %v6372_v55  ;;  %v6509_v63 = vmax.bf16 %v6415_v60, %v6373_v32  ;;  %v12351_v61 = vld [vmem:[%s19935_s0 + $0x74] sm:$0x1] }
 0x43d   :  { %v6424_v46 = vrot.slane %v6423_v16, 4  ;;  %v6442_v2 = vrot.slane %v6440_v58, 5  ;;  %v6036_v24 = vmax.bf16 %v12342_v7, %v12334_v53  ;;  %v6105_v33 = vshrl.u32 %v12342_v7, 16  ;;  %v12366_v1 = vld [vmem:[%s19935_s0 + $0x74] sm:$0x1] }
 0x43e   :  { %v6437_v14 = vor.u32 %v6436_v47, %v6433_v45  ;;  %v12402_v6 = vcombine.low %v6509_v63, %v6509_v63  ;;  %v6108_v0 = vshll.u32 %v12342_v7, 16  ;;  %v6114_v29 = vshll.u32 %v12350_v12, 16  ;;  %v17720_v7 = vld [vmem:[%s19935_s0 + $0x78] sm:$0xf]  ;;  %v12335_v16 = vld [vmem:[%s19934_s3 + $0x34] sm:$0xf] }
 0x43f   :  { %v6429_v11 = vsel %vm20606_vm3, %v6424_v46, %v6428_v26  ;;  %v6107_v55 = vrot.slane %v6105_v33, 4  ;;  %v6119_v4 = vshrl.u32 %v17693_v15, 16  ;;  %v6122_v32 = vshll.u32 %v17693_v15, 16 }
 0x440   :  { %v6438_v30 = vrot.slane %v6437_v14, 4  ;;  %v6510_v18 = vmax.bf16 %v6429_v11, %v6374_v25  ;;  %v17703_v8 = vsel %vm20607_vm14, %v6508_v39, %v12402_v6  ;;  %v6110_v13 = vrot.slane %v6108_v0, 5  ;;  %vm20624_vm14 = vmmov %vm20612_vm6 }
 0x441   :  { %20608 = vst [vmem:[#allocation34_spill] sm:$0xff] %v17703_v8  ;;  %v6552_v48 = vshrl.u32 %v17703_v8, 16  ;;  %v6555_v21 = vshll.u32 %v17703_v8, 16  ;;  %v6116_v19 = vrot.slane %v6114_v29, 5  ;;  %v6121_v22 = vrot.slane %v6119_v4, 4 }
 0x442   :  { %v6443_v28 = vsel %vm20606_vm3, %v6438_v30, %v6442_v2  ;;  %v6111_v59 = vor.u32 %v6110_v13, %v6107_v55  ;;  %v6124_v38 = vrot.slane %v6122_v32, 5  ;;  %v6128_v25 = vshll.u32 %v12351_v61, 16  ;;  %v12367_v55 = vld [vmem:[%s19935_s0 + $0x7c] sm:$0x1] }
 0x443   :  { %v6511_v26 = vmax.bf16 %v6443_v28, %v6375_v44  ;;  %v6554_v62 = vrot.slane %v6552_v48, 3  ;;  %v6557_v53 = vrot.slane %v6555_v21, 4  ;;  %v6258_v60 = vshrl.u32 %v17708_v5, 16 }
 0x444   :  { %v6112_v45 = vrot.slane %v6111_v59, 4  ;;  %v6125_v58 = vor.u32 %v6124_v38, %v6121_v22  ;;  %v6130_v12 = vrot.slane %v6128_v25, 5  ;;  %v6261_v47 = vshll.u32 %v17708_v5, 16 }
 0x445   :  { %v12403_v39 = vcombine.low %v6511_v26, %v6511_v26  ;;  %v6558_v44 = vor.u32 %v6557_v53, %v6554_v62  ;;  %v6260_v63 = vrot.slane %v6258_v60, 4  ;;  %v6267_v46 = vshll.u32 %v12366_v1, 16  ;;  %v12374_v26 = vld [vmem:[%s19937_s1 + $0x34] sm:$0xf]  ;;  %v12398_v62 = vld [vmem:[%s19936_s2 + $0x64] sm:$0x1] }
 0x446   :  { %v6117_v2 = vsel %vm20606_vm3, %v6112_v45, %v6116_v19  ;;  %v6126_v33 = vrot.slane %v6125_v58, 4  ;;  %v6263_v14 = vrot.slane %v6261_v47, 5  ;;  %v6272_v6 = vshrl.u32 %v17720_v7, 16 }
 0x447   :  { %v17731_v0 = vsel %vm20609_vm9, %v6510_v18, %v12403_v39  ;;  %v17735_v29 = vsel %vm15514_vm12, 0, %v6558_v44  ;;  %v6037_v11 = vmax.bf16 %v17693_v15, %v12335_v16  ;;  %v6172_v61 = vmax.bf16 %v6117_v2, %v6036_v24  ;;  %v17747_v18 = vld [vmem:[%s19936_s2 + $0x60] sm:$0xf]  ;;  %v17768_v16 = vld [vmem:[%s19936_s2 + $0x68] sm:$0xf]  ;;  %vm20628_vm9 = vmmov %vm20613_vm7 }
 0x448   :  { %20610 = vst [vmem:[#allocation35_spill] sm:$0xff] %v17731_v0  ;;  %20611 = vst [vmem:[#allocation32_spill] sm:$0xff] %v17735_v29  ;;  %v6559_v4 = vshrl.u32 %v17731_v0, 16  ;;  %v6562_v32 = vshll.u32 %v17731_v0, 16  ;;  %v20073_v30 = vshll.u32 %v17735_v29, 16  ;;  %v6269_v13 = vrot.slane %v6267_v46, 5 }
 0x449   :  { %v20074_v48 = vshrl.u32 %v17735_v29, 16  ;;  %v6131_v15 = vsel %vm20606_vm3, %v6126_v33, %v6130_v12  ;;  %v6189_v24 = vmax.bf16 %v17708_v5, %v6172_v61  ;;  %v6264_v21 = vor.u32 %v6263_v14, %v6260_v63  ;;  %v12382_v63 = vld [vmem:[%s19937_s1 + $0x38] sm:$0xf]  ;;  %v12399_v46 = vld [vmem:[%s19936_s2 + $0x6c] sm:$0x1] }
 0x44a   :  { %v6561_v19 = vrot.slane %v6559_v4, 3  ;;  %v6564_v22 = vrot.slane %v6562_v32, 4  ;;  %v6615_v28 = vrot.slane %v20073_v30, 1  ;;  %v6274_v59 = vrot.slane %v6272_v6, 4 }
 0x44b   :  { %v6265_v38 = vrot.slane %v6264_v21, 4  ;;  %v6275_v25 = vshll.u32 %v17720_v7, 16  ;;  %v6281_v1 = vshll.u32 %v12367_v55, 16  ;;  %v6445_v5 = vshrl.u32 %v17747_v18, 16 }
 0x44c   :  { %v17763_v53 = vor.u32 %v6564_v22, %v6561_v19  ;;  %v6173_v60 = vmax.bf16 %v6131_v15, %v6037_v11  ;;  %v6448_v45 = vshll.u32 %v17747_v18, 16  ;;  %v6616_v12 = vor.u32 %v6615_v28, %v20074_v48  ;;  %v17794_v15 = vld [vmem:[%s19934_s3 + $0x38] sm:$0xf]  ;;  %v12352_v28 = vld [vmem:[%s19935_s0 + $0x7c] sm:$0x1] }
 0x44d   :  { %v6270_v47 = vsel %vm20606_vm3, %v6265_v38, %v6269_v13  ;;  %v6277_v39 = vrot.slane %v6275_v25, 5  ;;  %v6447_v2 = vrot.slane %v6445_v5, 4  ;;  %v6454_v11 = vshll.u32 %v12398_v62, 16  ;;  %v17801_v22 = vld [vmem:[%s19935_s0 + $0x78] sm:$0xf] }
 0x44e   :  { %v17785_v33 = vsel %vm20612_vm6, %v6558_v44, %v17763_v53  ;;  %v6325_v14 = vmax.bf16 %v6270_v47, %v6189_v24  ;;  %v6450_v6 = vrot.slane %v6448_v45, 5  ;;  %v6283_v32 = vrot.slane %v6281_v1, 5  ;;  %vm20630_vm6 = vmmov %vm20614_vm1 }
 0x44f   :  { %v20072_v55 = vshll.u32 %v17785_v33, 16  ;;  %v6278_v4 = vor.u32 %v6277_v39, %v6274_v59  ;;  %v6459_v13 = vshrl.u32 %v17768_v16, 16  ;;  %v6190_v21 = vmax.bf16 %v17720_v7, %v6173_v60 }
 0x450   :  { %v6342_v44 = vmax.bf16 %v12374_v26, %v6325_v14  ;;  %v6451_v19 = vor.u32 %v6450_v6, %v6447_v2  ;;  %v6462_v24 = vshll.u32 %v17768_v16, 16  ;;  %v6468_v1 = vshll.u32 %v12399_v46, 16  ;;  %v12375_v2 = vld [vmem:[%s19937_s1 + $0x38] sm:$0xf]  ;;  %v17824_v46 = vld [vmem:[%s19935_s0 + $0x80] sm:$0xf] }
 0x451   :  { %v17810_v38 = vrot.slane %v20072_v55, 1  ;;  %v6279_v7 = vrot.slane %v6278_v4, 4  ;;  %v6461_v25 = vrot.slane %v6459_v13, 4  ;;  %v6456_v5 = vrot.slane %v6454_v11, 5  ;;  %v12383_v14 = vld [vmem:[%s19937_s1 + $0x3c] sm:$0xf] }
 0x452   :  { %v6359_v26 = vmax.bf16 %v12382_v63, %v6342_v44  ;;  %v6452_v62 = vrot.slane %v6451_v19, 4  ;;  %v6464_v60 = vrot.slane %v6462_v24, 5  ;;  %v6470_v6 = vrot.slane %v6468_v1, 5  ;;  %v17849_v1 = vld [vmem:[%s19935_s0 + $0x80] sm:$0xf] }
 0x453   :  { %v6621_v47 = vsel %vm20613_vm7, %v6616_v12, %v17810_v38  ;;  %v6284_v39 = vsel %vm20606_vm3, %v6279_v7, %v6283_v32  ;;  %v6038_v11 = vmax.bf16 %v17801_v22, %v17794_v15  ;;  %v12353_v32 = vld [vmem:[%s19935_s0 + $0x84] sm:$0x1]  ;;  %v6133_v13 = vshrl.u32 %v17801_v22, 16  ;;  %vm20634_vm7 = vmmov %vm20617_vm2 }
 0x454   :  { %14198 = vmatprep.mubr.msk.bf16.mxu1 %vm20614_vm1, %v6621_v47  ;;  %v6326_v63 = vmax.bf16 %v6284_v39, %v6190_v21  ;;  %v6465_v12 = vor.u32 %v6464_v60, %v6461_v25  ;;  %v6376_v4 = vmax.bf16 %v17747_v18, %v6359_v26  ;;  %v6136_v44 = vshll.u32 %v17801_v22, 16  ;;  %v12337_v18 = vld [vmem:[%s19934_s3 + $0x3c] sm:$0xf] }
 0x455   :  { %v6142_v21 = vshll.u32 %v12352_v28, 16  ;;  %v6457_v7 = vsel %vm20606_vm3, %v6452_v62, %v6456_v5  ;;  %v6147_v15 = vshrl.u32 %v17824_v46, 16  ;;  %v6135_v22 = vrot.slane %v6133_v13, 4  ;;  %v12368_v62 = vld [vmem:[%s19935_s0 + $0x84] sm:$0x1] }
 0x456   :  { %v6343_v24 = vmax.bf16 %v12375_v2, %v6326_v63  ;;  %v6466_v25 = vrot.slane %v6465_v12, 4  ;;  %v6138_v28 = vrot.slane %v6136_v44, 5  ;;  %v6150_v60 = vshll.u32 %v17824_v46, 16  ;;  %v17864_v44 = vld [vmem:[%s19935_s0 + $0x88] sm:$0xf] }
 0x457   :  { %v6144_v26 = vrot.slane %v6142_v21, 5  ;;  %v6149_v2 = vrot.slane %v6147_v15, 4  ;;  %v6156_v63 = vshll.u32 %v12353_v32, 16  ;;  %v6286_v21 = vshrl.u32 %v17849_v1, 16 }
 0x458   :  { %v6360_v47 = vmax.bf16 %v12383_v14, %v6343_v24  ;;  %v6471_v39 = vsel %vm20606_vm3, %v6466_v25, %v6470_v6  ;;  %v6139_v55 = vor.u32 %v6138_v28, %v6135_v22  ;;  %v6152_v13 = vrot.slane %v6150_v60, 5 }
 0x459   :  { %v6289_v30 = vshll.u32 %v17849_v1, 16  ;;  %v6039_v6 = vmax.bf16 %v17824_v46, %v12337_v18  ;;  %v6158_v32 = vrot.slane %v6156_v63, 5  ;;  %v6295_v24 = vshll.u32 %v12368_v62, 16 }
 0x45a   :  { %v6377_v14 = vmax.bf16 %v17768_v16, %v6360_v47  ;;  %v6140_v15 = vrot.slane %v6139_v55, 4  ;;  %v6153_v22 = vor.u32 %v6152_v13, %v6149_v2  ;;  %v6288_v28 = vrot.slane %v6286_v21, 4 }
 0x45b   :  { %v6291_v60 = vrot.slane %v6289_v30, 5  ;;  %v6512_v0 = vmax.bf16 %v6457_v7, %v6376_v4  ;;  %v6297_v43 = vrot.slane %v6295_v24, 5  ;;  %v6300_v16 = vshrl.u32 %v17864_v44, 16 }
 0x45c   :  { %v6513_v23 = vmax.bf16 %v6471_v39, %v6377_v14  ;;  %v6145_v18 = vsel %vm20606_vm3, %v6140_v15, %v6144_v26  ;;  %v6154_v55 = vrot.slane %v6153_v22, 4  ;;  %v6303_v30 = vshll.u32 %v17864_v44, 16 }
 0x45d   :  { %v6292_v62 = vor.u32 %v6291_v60, %v6288_v28  ;;  %v6174_v7 = vmax.bf16 %v6145_v18, %v6038_v11  ;;  %v6302_v39 = vrot.slane %v6300_v16, 4  ;;  %v6309_v14 = vshll.u32 %v12369_v56, 16 }
 0x45e   :  { %v12404_v4 = vcombine.low %v6513_v23, %v6513_v23  ;;  %v6159_v63 = vsel %vm20606_vm3, %v6154_v55, %v6158_v32  ;;  %v6305_v21 = vrot.slane %v6303_v30, 5  ;;  %v17900_v23 = vld [vmem:[%s19936_s2 + $0x70] sm:$0xf]  ;;  %vm20636_vm1 = vcmp.ne.s16.totalorder %v20535_v17, 0 }
 0x45f   :  { %v6293_v13 = vrot.slane %v6292_v62, 4  ;;  %v6175_v15 = vmax.bf16 %v6159_v63, %v6039_v6  ;;  %v6191_v22 = vmax.bf16 %v17849_v1, %v6174_v7  ;;  %v12400_v1 = vld [vmem:[%s19936_s2 + $0x74] sm:$0x1]  ;;  %v6311_v18 = vrot.slane %v6309_v14, 5  ;;  %v12393_v62 = vld [vmem:[%s19936_s2 + $0x78] sm:$0xf] }
 0x460   :  { %v17894_v26 = vsel %vm20617_vm2, %v6512_v0, %v12404_v4  ;;  %v6306_v60 = vor.u32 %v6305_v21, %v6302_v39  ;;  %v12376_v0 = vld [vmem:[%s19937_s1 + $0x3c] sm:$0xf]  ;;  %v6473_v39 = vshrl.u32 %v17900_v23, 16  ;;  %v6482_v14 = vshll.u32 %v12400_v1, 16 }
 0x461   :  { %20618 = vst [vmem:[#allocation36_spill] sm:$0xff] %v17894_v26  ;;  %v6567_v32 = vshrl.u32 %v17894_v26, 16  ;;  %v6570_v28 = vshll.u32 %v17894_v26, 16  ;;  %v6298_v56 = vsel %vm20606_vm3, %v6293_v13, %v6297_v43  ;;  %v6192_v16 = vmax.bf16 %v17864_v44, %v6175_v15 }
 0x462   :  { %v6327_v55 = vmax.bf16 %v6298_v56, %v6191_v22  ;;  %v6307_v7 = vrot.slane %v6306_v60, 4  ;;  %v6476_v44 = vshll.u32 %v17900_v23, 16  ;;  %v6475_v60 = vrot.slane %v6473_v39, 4 }
 0x463   :  { %v6569_v30 = vrot.slane %v6567_v32, 3  ;;  %v6572_v4 = vrot.slane %v6570_v28, 4  ;;  %v12377_v32 = vld [vmem:[%s19937_s1 + $0x40] sm:$0xf]  ;;  %v6490_v26 = vshll.u32 %v12393_v62, 16 }
 0x464   :  { %v6344_v21 = vmax.bf16 %v12376_v0, %v6327_v55  ;;  %v6312_v56 = vsel %vm20606_vm3, %v6307_v7, %v6311_v18  ;;  %v12384_v28 = vld [vmem:[%s19937_s1 + $0x40] sm:$0xf]  ;;  %v6487_v0 = vshrl.u32 %v12393_v62, 16  ;;  %v12385_v7 = vld [vmem:[%s19937_s1 + $0x44] sm:$0xf] }
 0x465   :  { %v17929_v22 = vor.u32 %v6572_v4, %v6569_v30  ;;  %v6328_v1 = vmax.bf16 %v6312_v56, %v6192_v16  ;;  %v12401_v30 = vld [vmem:[%s19936_s2 + $0x7c] sm:$0x1]  ;;  %v6478_v4 = vrot.slane %v6476_v44, 5  ;;  %v20626_v16 = vshrl.u32 %v17785_v33, 16 }
 0x466   :  { %v6489_v39 = vrot.slane %v6487_v0, 4 }
 0x467   :  { %v17949_v18 = vsel %vm20624_vm14, %v17763_v53, %v17929_v22  ;;  %v6624_v56 = vor.u32 %v20626_v16, %v17810_v38  ;;  %v6345_v36 = vmax.bf16 %v12377_v32, %v6328_v1  ;;  %v6479_v53 = vor.u32 %v6478_v4, %v6475_v60  ;;  %v14937_v38 = vld [vmem:[%s19933_s4 + $0x50] sm:$0xff]  }
 0x468   :  { %v20086_v44 = vshll.u32 %v17949_v18, 16 }
 0x469   :  { %v6480_v32 = vrot.slane %v6479_v53, 4 }
 0x46a   :  { %v6628_v0 = vrot.slane %v20086_v44, 1 }
 0x497   :  { %v17771_v58 = vpop.f32.mrf.mxu0 }
 0x499   :  { %v17787_v61 = vpop.f32.mrf.mxu0 }
 0x49b   :  { %v17806_v59 = vpop.f32.mrf.mxu0 }
 0x49d   :  { %v17812_v45 = vpop.f32.mrf.mxu0 }
 0x4a0   :  { %v17838_v19 = vpop.f32.mrf.mxu0 }
 0x4a2   :  { %v17855_v5 = vpop.f32.mrf.mxu0 }
 0x4a3   :  { %v17859_v12 = vpop.f32.mrf.mxu1 }
 0x4a4   :  { %v17868_v48 = vpop.f32.mrf.mxu0 }
 0x4a5   :  { %20615 = vst [vmem:[#allocation30_spill] sm:$0xff] %v17868_v48  ;;  %v17872_v25 = vpop.f32.mrf.mxu1  ;;  %v6492_v48 = vrot.slane %v6490_v26, 5  ;;  %v17974_v26 = vsel %vm20628_vm9, %v6624_v56, %v6628_v0 }
 0x4a6   :  { %v17874_v8 = vpop.f32.mrf.mxu0  ;;  %20629 = vst [vmem:[#allocation44_spill] sm:$0xff] %v17974_v26  ;;  %14199 = vmatmul.mubr.msk.bf16.vlgmr.msra.gmra.mxu1 %vm20630_vm6, %v17974_v26  ;;  %vm20642_vm6 = vsmask.f32 7424 }
 0x4a7   :  { %20616 = vst [vmem:[#allocation2_spill] sm:$0xff] %v17874_v8  ;;  %v17880_v46 = vpop.f32.mrf.mxu1  ;;  %14223 = vmatpush3.bf16.msra.mxu1 %v17645_v51 }
 0x4a8   :  { %v17885_v47 = vpop.f32.mrf.mxu0  ;;  %14224 = vmatprep.subr.bf16.mxu1 %v14937_v38 }
 0x4a9   :  { %v17887_v2 = vpop.f32.mrf.mxu1 }
 0x4aa   :  { %v17891_v24 = vpop.f32.mrf.mxu0 }
 0x4ab   :  { %v17902_v11 = vpop.f32.mrf.mxu1  ;;  %14225 = vmatpush3.bf16.msra.mxu1 %v14937_v38  ;;  %v6984_v38 = vsel %vm15973_vm0, %v17735_v29, 0 }
 0x4ac   :  { %v17914_v6 = vpop.f32.mrf.mxu0 }
 0x4ad   :  { %20619 = vst [vmem:[#allocation37_spill] sm:$0xff] %v17914_v6  ;;  %v17920_v43 = vpop.f32.mrf.mxu1 }
 0x4ae   :  { %v17923_v63 = vpop.f32.mrf.mxu0 }
 0x4af   :  { %20620 = vst [vmem:[#allocation38_spill] sm:$0xff] %v17923_v63  ;;  %v17927_v15 = vpop.f32.mrf.mxu1 }
 0x4b0   :  { %20621 = vst [vmem:[#allocation39_spill] sm:$0xff] %v17927_v15  ;;  %v17939_v55 = vpop.f32.mrf.mxu0  ;;  %v6496_v15 = vshll.u32 %v12401_v30, 16 }
 0x4b1   :  { %20622 = vst [vmem:[#allocation40_spill] sm:$0xff] %v17939_v55  ;;  %v17944_v13 = vpop.f32.mrf.mxu1  ;;  %v6361_v55 = vmax.bf16 %v12384_v28, %v6344_v21  ;;  %v6493_v21 = vor.u32 %v6492_v48, %v6489_v39 }
 0x4b2   :  { %20623 = vst [vmem:[#allocation41_spill] sm:$0xff] %v17944_v13  ;;  %v17954_v10 = vpop.f32.mrf.mxu0  ;;  %v6484_v13 = vrot.slane %v6482_v14, 5  ;;  %v6498_v28 = vrot.slane %v6496_v15, 5 }
 0x4b3   :  { %20625 = vst [vmem:[#allocation42_spill] sm:$0xff] %v17954_v10  ;;  %v17960_v8 = vpop.f32.mrf.mxu1  ;;  %v6362_v10 = vmax.bf16 %v12385_v7, %v6345_v36  ;;  %v6378_v14 = vmax.bf16 %v17900_v23, %v6361_v55  ;;  %v6494_v4 = vrot.slane %v6493_v21, 4 }
 0x4b4   :  { %v17962_v63 = vpop.f32.mrf.mxu0  ;;  %v6485_v36 = vsel %vm20606_vm3, %v6480_v32, %v6484_v13 }
 0x4b5   :  { %v17966_v6 = vpop.f32.mrf.mxu1  ;;  %v6379_v60 = vmax.bf16 %v12393_v62, %v6362_v10  ;;  %v6499_v23 = vsel %vm20606_vm3, %v6494_v4, %v6498_v28  ;;  %v14939_v10 = vld [vmem:[%s19933_s4 + $0x48] sm:$0xff]   ;;  %v6514_v15 = vmax.bf16 %v6485_v36, %v6378_v14  ;;  %vm20631_vm3 = vmmov %vm20617_vm2  ;;  %v6985_v14 = vsel %vm15984_vm4, %v17785_v33, 0 }
 0x4b6   :  { %v17971_v1 = vpop.f32.mrf.mxu0  ;;  %14226 = vmatprep.subr.bf16.mxu1 %v14939_v10  ;;  %vm20637_vm2 = vmmov %vm20624_vm14  ;;  %vm20639_vm14 = vcmp.ne.s16.totalorder %v20553_v41, 0 }
 0x4b7   :  { %20627 = vst [vmem:[#allocation43_spill] sm:$0xff] %v17971_v1  ;;  %v17977_v30 = vpop.f32.mrf.mxu1  ;;  %v6515_v55 = vmax.bf16 %v6499_v23, %v6379_v60  ;;  %14227 = vmatpush3.bf16.msra.mxu1 %v14939_v10  ;;  %v18024_v23 = vld [vmem:[%s19933_s4 + $0x98] sm:$0xff]   ;;  %vm20640_vm9 = vmmov %vm20631_vm3 }
 0x4b8   :  { %v17983_v7 = vpop.f32.mrf.mxu0  ;;  %14228 = vmatprep.subr.bf16.mxu1 %v14941_v31 }
 0x4b9   :  { %v17986_v48 = vpop.f32.mrf.mxu1  ;;  %v12405_v51 = vcombine.low %v6515_v55, %v6515_v55  ;;  %v7003_v55 = vrot.slane %v6985_v14, 4 }
 0x4ba   :  { %v17993_v62 = vpop.f32.mrf.mxu0 }
 0x4bb   :  { %v17995_v13 = vpop.f32.mrf.mxu1  ;;  %v18005_v56 = vsel %vm20631_vm3, %v6514_v15, %v12405_v51  ;;  %v7002_v15 = vrot.slane %v6984_v38, 4  ;;  %v20094_v51 = vshrl.u32 %v17949_v18, 16  ;;  %14229 = vmatpush3.bf16.msra.mxu1 %v14941_v31  ;;  %v6849_v38 = vsel %vm20636_vm1, %v17785_v33, 0 }
 0x4bc   :  { %v17997_v39 = vpop.f32.mrf.mxu0  ;;  %20632 = vst [vmem:[#allocation45_spill] sm:$0xff] %v18005_v56  ;;  %v6575_v21 = vshrl.u32 %v18005_v56, 16  ;;  %v6578_v28 = vshll.u32 %v18005_v56, 16  ;;  %14254 = vmatprep.subr.bf16.mxu1 %v18024_v23  ;;  %v6867_v27 = vrot.slane %v6849_v38, 1  ;;  %vm20646_vm3 = vcmask 523264  }
 0x4bd   :  { %v17999_v16 = vpop.f32.mrf.mxu1  ;;  %v18032_v35 = vsel %vm20634_vm7, %v7002_v15, %v7003_v55  ;;  %v6632_v15 = vor.u32 %v20094_v51, %v6628_v0  ;;  %vm20647_vm7 = vcmask 1046528   ;;  %vm20648_vm1 = vcmp.ne.s16.totalorder %v20556_v57, 0 }
 0x4be   :  { %v18007_v53 = vpop.f32.mrf.mxu0  ;;  %v6577_v36 = vrot.slane %v6575_v21, 3  ;;  %v6580_v4 = vrot.slane %v6578_v28, 4  ;;  %20635 = vst [vmem:[#allocation47_spill] sm:$0xff] %v18032_v35  ;;  %v6986_v21 = vsel %vm16005_vm10, %v17949_v18, 0  ;;  %v6848_v28 = vsel %vm20534_vm8, %v17735_v29, 0 }
 0x4bf   :  { %v18009_v32 = vpop.f32.mrf.mxu1  ;;  %v7005_v31 = vrot.slane %v6986_v21, 4  ;;  %v6850_v21 = vsel %vm20639_vm14, %v17949_v18, 0  ;;  %vm20651_vm14 = vcmp.ne.s16.totalorder %v20546_v34, 0  ;;  %v4858_v34 = vadd.f32 %v17806_v59, %v17880_v46 }
 0x4c0   :  { %v18027_v44 = vpop.f32.mrf.mxu0  ;;  %v6581_v56 = vor.u32 %v6580_v4, %v6577_v36  ;;  %v20657_v59 = vshrl.u32 %v17735_v29, 16 }
 0x4c1   :  { %v18019_v60 = vpop.f32.mrf.mxu1  ;;  %20633 = vst [vmem:[#allocation46_spill] sm:$0xff] %v18027_v44  ;;  %v6866_v44 = vrot.slane %v6848_v28, 1  ;;  %v18075_v51 = vsel %vm20640_vm9, %v7003_v55, %v7005_v31  ;;  %vm20652_vm9 = vmmov %vm20646_vm3 }
 0x4c2   :  { %v18047_v36 = vsel %vm20637_vm2, %v17929_v22, %v6581_v56  ;;  %v18051_v4 = vsel %vm15514_vm12, %v6581_v56, 0  ;;  %v18058_v26 = vpop.f32.mrf.mxu0  ;;  %20641 = vst [vmem:[#allocation49_spill] sm:$0xff] %v18075_v51  ;;  %vm20649_vm2 = vmmov %vm20642_vm6  ;;  %v6869_v51 = vrot.slane %v6850_v21, 1  ;;  %v18132_v46 = vrot.slane %v20657_v59, 4 }
 0x4c3   :  { %v18029_v10 = vpop.f32.mrf.mxu1  ;;  %v20095_v40 = vshll.u32 %v18047_v36, 16  ;;  %20638 = vst [vmem:[#allocation48_spill] sm:$0xff] %v18058_v26  ;;  %v20096_v22 = vshll.u32 %v18051_v4, 16  ;;  %v20644_v28 = vshrl.u32 %v18047_v36, 16  ;;  %v18092_v55 = vsel %vm20648_vm1, %v18047_v36, 0 }
 0x4c4   :  { %vm20656_vm1 = vcmask 1046528  }
 0x4c5   :  { %v18043_v14 = vpop.f32.mrf.mxu1  ;;  %v6636_v56 = vrot.slane %v20095_v40, 1  ;;  %v18069_v0 = vrot.slane %v20096_v22, 1  ;;  %v18082_v40 = vpop.f32.mrf.mxu0  ;;  %v6868_v22 = vsel %vm20647_vm7, %v6866_v44, %v6867_v27  ;;  %v4855_v44 = vadd.f32 %v17771_v58, %v17859_v12  ;;  %vm20655_vm7 = vmmov %vm20652_vm9 }
 0x4c6   :  { %20645 = vst [vmem:[#allocation51_spill] sm:$0xff] %v18082_v40  ;;  %v20105_v58 = vrot.slane %v18092_v55, 1  ;;  %v6870_v40 = vsel %vm20656_vm1, %v6867_v27, %v6869_v51 }
 0x4c7   :  { %v18060_v35 = vpop.f32.mrf.mxu1  ;;  %v18078_v52 = vsel %vm20642_vm6, %v6632_v15, %v6636_v56  ;;  %v6640_v38 = vor.u32 %v20644_v28, %v6636_v56  ;;  %v7258_v56 = vsel %vm20545_vm15, %v17735_v29, 0  ;;  %v7259_v28 = vsel %vm20651_vm14, %v17785_v33, 0 }
 0x4c8   :  { %20643 = vst [vmem:[#allocation50_spill] sm:$0xff] %v18078_v52  ;;  %14202 = vmatprep.mubr.msk.bf16.mxu1 %vm20646_vm3, %v18078_v52  ;;  %v4847_v52 = vadd.f32 %v17787_v61, %v17872_v25  ;;  %vm20653_vm6 = vnez %v20530_v20  ;;  %vm20654_vm3 = vnez %v20549_v50  ;;  %v4850_v25 = vadd.f32 %v17812_v45, %v17887_v2  ;;  %v18125_v20 = vpop.f32.mrf.mxu0 }
 0x4c9   :  { %v18065_v1 = vpop.f32.mrf.mxu1  ;;  %v18096_v15 = vsel %vm20649_vm2, %v6640_v38, %v18069_v0  ;;  %v6987_v21 = vsel %vm20653_vm6, %v18047_v36, 0  ;;  %v6988_v38 = vsel %vm20654_vm3, %v18051_v4, 0  ;;  %v5008_v37 = vadd.f32 %v17960_v8, %v4855_v44 }
 0x4ca   :  { %20650 = vst [vmem:[#allocation52_spill] sm:$0xff] %v18096_v15  ;;  %14203 = vmatmul.mubr.msk.bf16.gmra.mxu1 %vm20652_vm9, %v18096_v15  ;;  %v7007_v61 = vrot.slane %v6987_v21, 4  ;;  %v7009_v12 = vrot.slane %v6988_v38, 4  ;;  %v7276_v50 = vrot.slane %v7258_v56, 5  ;;  %v7277_v41 = vrot.slane %v7259_v28, 5 }
 0x4cb   :  { %v18084_v26 = vpop.f32.mrf.mxu1  ;;  %14230 = vmatprep.mubr.msk.bf16.mxu1 %vm20655_vm7, %v6868_v22  ;;  %vm20658_vm2 = vcmask 1043456   ;;  %v20662_v8 = vshll.u32 %v17735_v29, 16  ;;  %v20663_v56 = vshrl.u32 %v17785_v33, 16  ;;  %vm20664_vm9 = vcmask 1042432  }
 0x4cc   :  { %v18135_v22 = vsel %vm20658_vm2, %v7005_v31, %v7007_v61  ;;  %vm20660_vm14 = vmmov %vm20658_vm2  ;;  %v18147_v27 = vsel %vm20664_vm9, %v7276_v50, %v7277_v41  ;;  %vm20666_vm7 = vcmp.ne.s16.totalorder %v20559_v9, 0  ;;  %v6872_v31 = vsel %vm20656_vm1, %v6869_v51, %v20105_v58 }
 0x4cd   :  { %v18108_v57 = vpop.f32.mrf.mxu1  ;;  %20659 = vst [vmem:[#allocation53_spill] sm:$0xff] %v18135_v22  ;;  %v18138_v21 = vsel %vm20660_vm14, %v7007_v61, %v7009_v12  ;;  %v7129_v2 = vrot.slane %v20662_v8, 5  ;;  %v7131_v28 = vrot.slane %v20663_v56, 4  ;;  %20665 = vst [vmem:[#allocation55_spill] sm:$0xff] %v18147_v27  ;;  %v7260_v44 = vsel %vm20666_vm7, %v17949_v18, 0  ;;  %v18160_v8 = vpop.f32.mrf.mxu0  ;;  %v14945_v56 = vld [vmem:[%s19933_s4 + $0x90] sm:$0xff]  }
 0x4ce   :  { %20661 = vst [vmem:[#allocation54_spill] sm:$0xff] %v18138_v21  ;;  %v6852_v38 = vsel %vm20571_vm11, %v18051_v4, 0  ;;  %v20667_v61 = vshll.u32 %v17785_v33, 16  ;;  %v7279_v59 = vrot.slane %v7260_v44, 5  ;;  %vm20668_vm2 = vcmp.ne.s16.totalorder %v20564_v54, 0 }
 0x4cf   :  { %v18127_v15 = vpop.f32.mrf.mxu1  ;;  %v7261_v51 = vsel %vm20668_vm2, %v18047_v36, 0  ;;  %vm20669_vm14 = vnez %v20577_v49  ;;  %v7625_v44 = vsel %vm20534_vm8, %v17785_v33, 0  ;;  %vm20670_vm9 = vcmp.ne.s16.totalorder %v20535_v17, 0 }
 0x4d0   :  { %v7132_v12 = vrot.slane %v20667_v61, 5  ;;  %v7262_v58 = vsel %vm20669_vm14, %v18051_v4, 0  ;;  %v18179_v61 = vsel %vm20670_vm9, %v17949_v18, 0  ;;  %v5006_v42 = vadd.f32 %v17966_v6, %v4847_v52  ;;  %v14947_v6 = vld [vmem:[%s19933_s4 + $0x88] sm:$0xff]  }
 0x4d1   :  { %v18140_v45 = vpop.f32.mrf.mxu1  ;;  %v5145_v9 = vadd.f32 %v17885_v47, %v5008_v37  ;;  %vm20671_vm7 = vcmask 1042432   ;;  %v7281_v27 = vrot.slane %v7261_v51, 5  ;;  %vm20672_vm1 = vcmask 523264   ;;  %v18198_v47 = vpop.f32.mrf.mxu0  ;;  %v20684_v51 = vld [vmem:[#allocation38_spill] sm:$0xff] }
 0x4d2   :  { %v18184_v54 = vsel %vm20671_vm7, %v7277_v41, %v7279_v59  ;;  %14231 = vmatmul.mubr.msk.bf16.vlgmr.msra.gmra.mxu1 %vm20672_vm1, %v6870_v40  ;;  %v7143_v49 = vshrl.u32 %v18051_v4, 16  ;;  %v7283_v3 = vrot.slane %v7262_v58, 5  ;;  %v7641_v22 = vrot.slane %v7625_v44, 1  ;;  %vm20673_vm2 = vmmov %vm20672_vm1  ;;  %v20685_v44 = vld [vmem:[#allocation39_spill] sm:$0xff] }
 0x4d3   :  { %v18162_v50 = vpop.f32.mrf.mxu1  ;;  %v7642_v17 = vrot.slane %v18179_v61, 1  ;;  %v5009_v29 = vadd.f32 %v17977_v30, %v4858_v34  ;;  %14255 = vmatpush3.bf16.msra.mxu1 %v18024_v23  ;;  %14234 = vmatprep.mubr.msk.bf16.mxu1 %vm20673_vm2, %v6872_v31  ;;  %v6873_v52 = vrot.slane %v6852_v38, 1  ;;  %v7130_v37 = vor.u32 %v7129_v2, %v18132_v46  ;;  %vm20674_vm9 = vmmov %vm20671_vm7  ;;  %v20741_v61 = vld [vmem:[#allocation27_spill] sm:$0xff] }
 0x4d4   :  { %v18196_v41 = vsel %vm20674_vm9, %v7279_v59, %v7281_v27  ;;  %14256 = vmatprep.subr.bf16.mxu1 %v14945_v56  ;;  %v7133_v58 = vor.u32 %v7132_v12, %v7131_v28  ;;  %v18204_v34 = vsel %vm20671_vm7, %v7281_v27, %v7283_v3  ;;  %vm20675_vm1 = vcmask 1046528  }
 0x4d5   :  { %v18186_v21 = vpop.f32.mrf.mxu1  ;;  %v18209_v30 = vsel %vm20675_vm1, %v7641_v22, %v7642_v17  ;;  %v18214_v23 = vor.u32 %v7143_v49, %v18069_v0  ;;  %v4871_v46 = vadd.f32 %v17838_v19, %v17902_v11  ;;  %v5007_v2 = vadd.f32 %v17986_v48, %v4850_v25  ;;  %v20678_v11 = vld [vmem:[#allocation37_spill] sm:$0xff]  ;;  %vm20680_vm2 = vmmov %vm20675_vm1 }
 0x4d6   :  { %v5143_v28 = vadd.f32 %v17891_v24, %v5006_v42  ;;  %v4863_v3 = vadd.f32 %v17855_v5, %v17920_v43  ;;  %v5284_v27 = vadd.f32 %v18029_v10, %v5145_v9  ;;  %v20676_v22 = vshrl.u32 %v17949_v18, 16  ;;  %v14153_v24 = vpop.f32.mrf.mxu0  ;;  %v14949_v10 = vld [vmem:[%s19933_s4 + $0x80] sm:$0xff]  }
 0x4d7   :  { %v14137_v40 = vpop.f32.mrf.mxu1  ;;  %v20677_v12 = vshll.u32 %v17949_v18, 16  ;;  %v5012_v59 = vadd.f32 %v17995_v13, %v4871_v46  ;;  %v5146_v48 = vadd.f32 %v20678_v11, %v5009_v29  ;;  %14257 = vmatpush3.bf16.msra.mxu1 %v14945_v56  ;;  %v20679_v42 = vrot.slane %v18092_v55, 1 }
 0x4d8   :  { %v7135_v38 = vrot.slane %v20676_v22, 4  ;;  %v5282_v19 = vadd.f32 %v18043_v14, %v5143_v28  ;;  %v5010_v9 = vadd.f32 %v17999_v16, %v4863_v3  ;;  %14258 = vmatprep.subr.bf16.mxu1 %v14947_v6  ;;  %vm20681_vm9 = vsmask.f32 3328  ;;  %v20687_v28 = vld [vmem:[#allocation41_spill] sm:$0xff]  ;;  %v20688_v3 = vld [vmem:[#allocation2_spill] sm:$0xff] }
 0x4d9   :  { %v5513_v31 = vpop.f32.mrf.mxu1  ;;  %v7136_v0 = vrot.slane %v20677_v12, 5  ;;  %v6874_v5 = vsel %vm20680_vm2, %v20679_v42, %v6873_v52  ;;  %v7134_v13 = vsel %vm20681_vm9, %v7130_v37, %v7133_v58  ;;  %v20682_v14 = vshrl.u32 %v18047_v36, 16  ;;  %v20686_v52 = vld [vmem:[#allocation30_spill] sm:$0xff]  ;;  %vm20694_vm2 = vmmov %vm20681_vm9 }
 0x4da   :  { %v20683_v25 = vshll.u32 %v18047_v36, 16  ;;  %v5285_v56 = vadd.f32 %v18060_v35, %v5146_v48  ;;  %v5144_v16 = vadd.f32 %v20684_v51, %v5007_v2  ;;  %v4874_v46 = vadd.f32 %v20686_v52, %v20685_v44  ;;  %v20692_v48 = vld [vmem:[#allocation42_spill] sm:$0xff]  ;;  %v5624_v44 = vpop.f32.mrf.mxu0  ;;  %vm20695_vm9 = vmmov %vm20694_vm2  ;;  %v20698_v52 = vld [vmem:[#allocation48_spill] sm:$0xff] }
 0x4db   :  { %v18234_v43 = vpop.f32.mrf.mxu1  ;;  %v7139_v29 = vrot.slane %v20682_v14, 4  ;;  %v4866_v22 = vadd.f32 %v20688_v3, %v20687_v28  ;;  %v5421_v12 = vadd.f32 %v17983_v7, %v5284_v27  ;;  %v7137_v37 = vor.u32 %v7136_v0, %v7135_v38  ;;  %v20690_v14 = vld [vmem:[#allocation40_spill] sm:$0xff]  ;;  %14259 = vmatpush3.bf16.msra.mxu1 %v14947_v6 }
 0x4dc   :  { %v7140_v55 = vrot.slane %v20683_v25, 5  ;;  %vm20689_vm7 = vcmask 523264   ;;  %v5283_v42 = vadd.f32 %v18065_v1, %v5144_v16  ;;  %v5149_v25 = vadd.f32 %v20690_v14, %v5012_v59  ;;  %14260 = vmatprep.subr.bf16.mxu1 %v14949_v10  ;;  %v14951_v1 = vld [vmem:[%s19933_s4 + $0xd8] sm:$0xff]  }
 0x4dd   :  { %v5526_v11 = vpop.f32.mrf.mxu1  ;;  %14235 = vmatmul.mubr.msk.bf16.gmra.mxu1 %vm20689_vm7, %v6874_v5  ;;  %v5419_v35 = vadd.f32 %v17993_v62, %v5282_v19  ;;  %vm20691_vm1 = vmmov %vm20689_vm7  ;;  %v5013_v2 = vadd.f32 %v18009_v32, %v4874_v46  ;;  %v5147_v51 = vadd.f32 %v20692_v48, %v5010_v9  ;;  %v5543_v7 = vadd.f32 %v18162_v50, %v5421_v12  ;;  %v18289_v12 = vld [vmem:[%s19938_s5 + $0x3] ss:$0 sm:$0xff]  ;;  %v20700_v48 = vld [vmem:[#allocation51_spill] sm:$0xff] }
 0x4de   :  { %14262 = vmatprep.mubr.msk.bf16.mxu1 %vm20691_vm1, %v7134_v13  ;;  %v7141_v38 = vor.u32 %v7140_v55, %v7139_v29  ;;  %v5011_v0 = vadd.f32 %v18019_v60, %v4866_v22  ;;  %v5288_v62 = vadd.f32 %v18084_v26, %v5149_v25  ;;  %v5422_v32 = vadd.f32 %v17997_v39, %v5285_v56  ;;  %v20696_v56 = vld [vmem:[#allocation43_spill] sm:$0xff]  ;;  %vm20699_vm7 = vmmov %vm20691_vm1 }
 0x4df   :  { %v14141_v27 = vpop.f32.mrf.mxu1  ;;  %v5541_v6 = vadd.f32 %v18186_v21, %v5419_v35  ;;  %v5286_v59 = vadd.f32 %v18108_v57, %v5147_v51  ;;  %v7145_v50 = vrot.slane %v7143_v49, 4  ;;  %v20693_v5 = vshll.u32 %v18051_v4, 16  ;;  %14261 = vmatpush3.bf16.msra.mxu1 %v14949_v10  ;;  %v14156_v21 = vpop.f32.mrf.mxu0  ;;  %v14953_v57 = vld [vmem:[%s19933_s4 + $0xd0] sm:$0xff]   ;;  %vm20729_vm14 = vmmov %vm20691_vm1 }
 0x4e0   :  { %v5544_v13 = vadd.f32 %v14137_v40, %v5422_v32  ;;  %v5420_v29 = vadd.f32 %v18007_v53, %v5283_v42  ;;  %v7138_v60 = vsel %vm20694_vm2, %v7133_v58, %v7137_v37  ;;  %v5150_v26 = vadd.f32 %v17962_v63, %v5013_v2  ;;  %14286 = vmatprep.subr.bf16.mxu1 %v14951_v1  ;;  %v20697_v53 = vld [vmem:[#allocation46_spill] sm:$0xff]  ;;  %vm20732_vm3 = vmmov %vm20691_vm1 }
 0x4e1   :  { %v5529_v19 = vpop.f32.mrf.mxu1  ;;  %v7146_v9 = vrot.slane %v20693_v5, 5  ;;  %v5654_v39 = vadd.f32 %v18160_v8, %v5543_v7  ;;  %v7142_v49 = vsel %vm20695_vm9, %v7137_v37, %v7141_v38  ;;  %v5148_v40 = vadd.f32 %v20696_v56, %v5011_v0  ;;  %vm20708_vm9 = vmmov %vm20691_vm1 }
 0x4e2   :  { %v5542_v16 = vadd.f32 %v5513_v31, %v5420_v29  ;;  %v5425_v10 = vadd.f32 %v20697_v53, %v5288_v62  ;;  %v5652_v58 = vadd.f32 %v18198_v47, %v5541_v6  ;;  %v5289_v63 = vadd.f32 %v18127_v15, %v5150_v26  ;;  %v5637_v15 = vpop.f32.mrf.mxu0  ;;  %v20704_v26 = vld [vmem:[#allocation3_spill] sm:$0xff] }
 0x4e3   :  { %v14168_v55 = vpop.f32.mrf.mxu1  ;;  %v5423_v46 = vadd.f32 %v20698_v52, %v5286_v59  ;;  %v7147_v3 = vor.u32 %v7146_v9, %v7145_v50  ;;  %v5287_v22 = vadd.f32 %v18140_v45, %v5148_v40  ;;  %v5655_v37 = vadd.f32 %v14153_v24, %v5544_v13  ;;  %v14955_v45 = vld [vmem:[%s19933_s4 + $0xc8] sm:$0xff]   ;;  %v20702_v13 = vld [vmem:[#allocation29_spill] sm:$0xff] }
 0x4e4   :  { %v5788_v8 = vadd.f32 %v14168_v55, %v5654_v39  ;;  %v5547_v47 = vadd.f32 %v18234_v43, %v5425_v10  ;;  %v5653_v2 = vadd.f32 %v5624_v44, %v5542_v16  ;;  %v5426_v51 = vadd.f32 %v20700_v48, %v5289_v63  ;;  %v14157_v62 = vpop.f32.mrf.mxu0  ;;  %v14957_v44 = vld [vmem:[%s19933_s4 + $0xc0] sm:$0xff]   ;;  %v20709_v40 = vld [vmem:[#allocation31_spill] sm:$0xff]  ;;  %v14938_v48 = vld [vmem:[%s19933_s4 + $0x10] sm:$0xff]  }
 0x4e5   :  { %v5755_v28 = vpop.f32.mrf.mxu1  ;;  %14263 = vmatmul.mubr.msk.bf16.vlgmr.msra.gmra.mxu1 %vm20699_vm7, %v7138_v60  ;;  %v5545_v42 = vadd.f32 %v5526_v11, %v5423_v46  ;;  %v7148_v0 = vsel %vm20694_vm2, %v7141_v38, %v7147_v3  ;;  %v20703_v29 = vmax.f32 %v20702_v13, 0.0  ;;  %v20705_v38 = vmax.f32 %v20704_v26, 0.0  ;;  %vm20711_vm7 = vmmov %vm20691_vm1  ;;  %v14959_v46 = vld [vmem:[%s19933_s4 + $0x118] sm:$0xff]   ;;  %v14963_v26 = vld [vmem:[%s19933_s4 + $0x108] sm:$0xff]  }
 0x4e6   :  { %v5786_v31 = vadd.f32 %v5755_v28, %v5652_v58  ;;  %14287 = vmatpush3.bf16.msra.mxu1 %v14951_v1  ;;  %14266 = vmatprep.mubr.msk.bf16.mxu1 %vm20691_vm1, %v7142_v49  ;;  %v5804_v24 = vadd.f32 %v18289_v12, %v5788_v8  ;;  %v5424_v1 = vadd.f32 %v18125_v20, %v5287_v22  ;;  %v7394_v20 = vsel %vm15518_vm13, %v17785_v33, 0  ;;  %vm20719_vm2 = vmmov %vm20691_vm1 }
 0x4e7   :  { %v14169_v14 = vpop.f32.mrf.mxu1  ;;  %14288 = vmatprep.subr.bf16.mxu1 %v14953_v57  ;;  %v5548_v6 = vadd.f32 %v14141_v27, %v5426_v51  ;;  %v5658_v32 = vadd.f32 %v14156_v21, %v5547_v47  ;;  %v5656_v50 = vadd.f32 %v5637_v15, %v5545_v42  ;;  %v20706_v21 = vld [vmem:[#allocation6_spill] sm:$0xff]  ;;  %v20710_v16 = vmax.f32 %v20709_v40, 0.0  ;;  %v14961_v51 = vld [vmem:[%s19933_s4 + $0x110] sm:$0xff]  }
 0x4e8   :  { %v5802_v25 = vadd.f32 %v18289_v12, %v5786_v31  ;;  %v5789_v35 = vadd.f32 %v14169_v14, %v5655_v37  ;;  %v5546_v9 = vadd.f32 %v5529_v19, %v5424_v1  ;;  %v20707_v55 = vmax.f32 %v20706_v21, 0.0  ;;  %v5640_v19 = vpop.f32.mrf.mxu0  ;;  %v20727_v40 = vld [vmem:[#allocation32_spill] sm:$0xff] }
 0x4e9   :  { %v5758_v7 = vpop.f32.mrf.mxu1  ;;  %v5659_v63 = vadd.f32 %v14157_v62, %v5548_v6  ;;  %v20717_v6 = vld [vmem:[#allocation8_spill] sm:$0xff] }
 0x4ea   :  { %v5805_v43 = vadd.f32 %v18289_v12, %v5789_v35  ;;  %v5787_v11 = vadd.f32 %v5758_v7, %v5653_v2  ;;  %14289 = vmatpush3.bf16.msra.mxu1 %v14953_v57  ;;  %v5810_v60 = vadd.f32 %v5802_v25, %v20703_v29  ;;  %v5812_v57 = vadd.f32 %v5804_v24, %v20707_v55  ;;  %v20713_v24 = vld [vmem:[#allocation11_spill] sm:$0xff]  ;;  %v20725_v55 = vld [vmem:[#allocation13_spill] sm:$0xff] }
 0x4eb   :  { %v14172_v59 = vpop.f32.mrf.mxu1  ;;  %14290 = vmatprep.subr.bf16.mxu1 %v14955_v45  ;;  %v5657_v22 = vadd.f32 %v5640_v19, %v5546_v9  ;;  %v7395_v25 = vsel %vm15710_vm5, %v17949_v18, 0  ;;  %v20714_v7 = vmax.f32 %v20713_v24, 0.0  ;;  %v14964_v24 = vld [vmem:[%s19933_s4 + $0xe8] sm:$0xff]  }
 0x4ec   :  { %v5813_v39 = vadd.f32 %v5805_v43, %v20705_v38  ;;  %v5803_v27 = vadd.f32 %v18289_v12, %v5787_v11  ;;  %v5792_v49 = vadd.f32 %v14172_v59, %v5658_v32  ;;  %v5818_v8 = vmax.f32 %v5810_v60, 0.0  ;;  %v20715_v11 = vld [vmem:[#allocation28_spill] sm:$0xff]  ;;  %v14940_v60 = vld [vmem:[%s19933_s4 + $0x8] sm:$0xff]  }
 0x4ed   :  { %v5771_v56 = vpop.f32.mrf.mxu1  ;;  %14267 = vmatmul.mubr.msk.bf16.gmra.mxu1 %vm20708_vm9, %v7148_v0  ;;  %v5820_v31 = vmax.f32 %v5812_v57, 0.0  ;;  %v20716_v0 = vmax.f32 %v20715_v11, 0.0  ;;  %v20718_v32 = vmax.f32 %v20717_v6, 0.0  ;;  %vm20720_vm9 = vmmov %vm20691_vm1  ;;  %v14967_v6 = vld [vmem:[%s19933_s4 + $0x138] sm:$0xff]  }
 0x4ee   :  { %v5811_v53 = vadd.f32 %v5803_v27, %v20710_v16  ;;  %v5790_v10 = vadd.f32 %v5771_v56, %v5656_v50  ;;  %14291 = vmatpush3.bf16.msra.mxu1 %v14955_v45  ;;  %14294 = vmatprep.mubr.msk.bf16.mxu1 %vm20711_vm7, %v7394_v20  ;;  %v5821_v58 = vmax.f32 %v5813_v39, 0.0  ;;  %v5808_v37 = vadd.f32 %v18289_v12, %v5792_v49  ;;  %v20721_v50 = vld [vmem:[#allocation12_spill] sm:$0xff]  ;;  %v20723_v20 = vld [vmem:[#allocation33_spill] sm:$0xff]  ;;  %v14942_v56 = vld [vmem:[%s19933_s4] sm:$0xff]  }
 0x4ef   :  { %v14173_v52 = vpop.f32.mrf.mxu1  ;;  %14292 = vmatprep.subr.bf16.mxu1 %v14957_v44  ;;  %vm20722_vm7 = vnez %v20721_v50  ;;  %v20724_v9 = vmax.f32 %v20723_v20, 0.0  ;;  %v6590_v16 = vsel %vm15518_vm13, %v20727_v40, 0  ;;  %v18527_v40 = vld [vmem:[%s19933_s4 + $0x178] sm:$0xff]  }
 0x4f0   :  { %v5819_v28 = vmax.f32 %v5811_v53, 0.0  ;;  %v5806_v3 = vadd.f32 %v18289_v12, %v5790_v10  ;;  %v5793_v15 = vadd.f32 %v14173_v52, %v5659_v63  ;;  %v5827_v35 = vpack.c.bf16 %v5821_v58, %v5820_v31  ;;  %v14965_v53 = vld [vmem:[%s19933_s4 + $0x100] sm:$0xff]   ;;  %v14944_v52 = vld [vmem:[%s19933_s4 + $0x78] sm:$0xff]   ;;  %20764 = vst [vmem:[#allocation37_spill] sm:$0xff] %v18527_v40 }
 0x4f1   :  { %v5774_v47 = vpop.f32.mrf.mxu1  ;;  %v5816_v62 = vadd.f32 %v5808_v37, %v20716_v0  ;;  %v20730_v10 = vld [vmem:[#allocation14_spill] sm:$0xff]  ;;  %v20744_v37 = vld [vmem:[#allocation47_spill] sm:$0xff] }
 0x4f2   :  { %v5791_v42 = vadd.f32 %v5774_v47, %v5657_v22  ;;  %v5826_v14 = vpack.c.bf16 %v5819_v28, %v5818_v8  ;;  %14293 = vmatpush3.bf16.msra.mxu1 %v14957_v44  ;;  %v5809_v2 = vadd.f32 %v18289_v12, %v5793_v15  ;;  %v5814_v1 = vadd.f32 %v5806_v3, %v20714_v7  ;;  %v20733_v58 = vld [vmem:[#allocation18_spill] sm:$0xff]  ;;  %v14952_v15 = vld [vmem:[%s19933_s4 + $0xb8] sm:$0xff]  }
 0x4f3   :  { %14318 = vmatprep.subr.bf16.mxu1 %v14959_v46  ;;  %v7396_v44 = vsel %vm20722_vm7, %v18047_v36, 0  ;;  %v5824_v27 = vmax.f32 %v5816_v62, 0.0  ;;  %vm20731_vm11 = vcmp.ne.s16.totalorder %v20730_v10, 0  ;;  %vm20734_vm15 = vcmp.ne.s16.totalorder %v20733_v58, 0  ;;  %v20747_v47 = vld [vmem:[#allocation49_spill] sm:$0xff]  ;;  %v14966_v7 = vld [vmem:[%s19933_s4 + $0xe0] sm:$0xff]  }
 0x4f4   :  { %v5807_v43 = vadd.f32 %v18289_v12, %v5791_v42  ;;  %14182 = vmatprep.mubr.msk.bf16.mxu0 %vm20691_vm1, %v5826_v14  ;;  %v5817_v59 = vadd.f32 %v5809_v2, %v20718_v32  ;;  %v15143_v12 = vld [vmem:[%s19933_s4 + $0x18] sm:$0xff]   ;;  %v5822_v38 = vmax.f32 %v5814_v1, 0.0  ;;  %v7627_v19 = vsel %vm20731_vm11, %v18047_v36, 0  ;;  %vm20737_vm11 = vmmov %vm20691_vm1  ;;  %v14956_v14 = vld [vmem:[%s19933_s4 + $0xa8] sm:$0xff]  }
 0x4f5   :  { %14183 = vmatmul.mubr.msk.bf16.vlgmr.msra.gmra.mxu0 %vm20719_vm2, %v5827_v35  ;;  %14295 = vmatmul.mubr.msk.bf16.vlgmr.msra.gmra.mxu1 %vm20720_vm9, %v7395_v25  ;;  %vm20726_vm2 = vnez %v20725_v55  ;;  %vm20728_vm9 = vmmov %vm20691_vm1  ;;  %v7628_v63 = vsel %vm20734_vm15, %v18051_v4, 0  ;;  %v6591_v28 = vsel %vm15710_vm5, %v17785_v33, 0  ;;  %v6592_v3 = vsel %vm20722_vm7, %v17949_v18, 0  ;;  %v14948_v33 = vld [vmem:[%s19933_s4 + $0x68] sm:$0xff]   ;;  %v14950_v18 = vld [vmem:[%s19933_s4 + $0x60] sm:$0xff]  }
 0x4f6   :  { %v5815_v13 = vadd.f32 %v5807_v43, %v20724_v9  ;;  %14207 = vmatpush3.bf16.msra.mxu0 %v15143_v12  ;;  %14319 = vmatpush3.bf16.msra.mxu1 %v14959_v46  ;;  %v5825_v29 = vmax.f32 %v5817_v59, 0.0  ;;  %v7397_v57 = vsel %vm20726_vm2, %v18051_v4, 0  ;;  %v7644_v46 = vrot.slane %v7627_v19, 1  ;;  %v14946_v4 = vld [vmem:[%s19933_s4 + $0x70] sm:$0xff]   ;;  %v20748_v42 = vld [vmem:[#allocation53_spill] sm:$0xff]  ;;  %v14958_v25 = vld [vmem:[%s19933_s4 + $0xa0] sm:$0xff]  }
 0x4f7   :  { %14208 = vmatprep.subr.bf16.mxu0 %v14938_v48  ;;  %14320 = vmatprep.subr.bf16.mxu1 %v14961_v51  ;;  %v7646_v8 = vrot.slane %v7628_v63, 1  ;;  %vm20736_vm15 = vcmask 1046528   ;;  %v20750_v35 = vld [vmem:[#allocation54_spill] sm:$0xff]  ;;  %v20752_v2 = vld [vmem:[#allocation55_spill] sm:$0xff]  ;;  %v20760_v1 = vld [vmem:[#allocation52_spill] sm:$0xff] }
 0x4f8   :  { %v5823_v39 = vmax.f32 %v5815_v13, 0.0  ;;  %14298 = vmatprep.mubr.msk.bf16.mxu1 %vm20691_vm1, %v7396_v44  ;;  %v5829_v49 = vpack.c.bf16 %v5825_v29, %v5824_v27  ;;  %v14968_v9 = vld [vmem:[%s19933_s4 + $0x130] sm:$0xff]   ;;  %v14969_v13 = vld [vmem:[%s19933_s4 + $0x128] sm:$0xff]   ;;  %v14970_v12 = vld [vmem:[%s19933_s4 + $0x158] sm:$0xff]  }
 0x4f9   :  { %v14972_v29 = vld [vmem:[%s19933_s4 + $0x150] sm:$0xff]  }
 0x4fa   :  { %14209 = vmatpush3.bf16.msra.mxu0 %v14938_v48  ;;  %v5828_v21 = vpack.c.bf16 %v5823_v39, %v5822_v38  ;;  %14321 = vmatpush3.bf16.msra.mxu1 %v14961_v51  ;;  %v14960_v48 = vld [vmem:[%s19933_s4 + $0xf8] sm:$0xff]   ;;  %v14962_v51 = vld [vmem:[%s19933_s4 + $0xf0] sm:$0xff]   ;;  %v14971_v38 = vld [vmem:[%s19933_s4 + $0x120] sm:$0xff]  }
 0x4fb   :  { %14210 = vmatprep.subr.bf16.mxu0 %v14940_v60  ;;  %14322 = vmatprep.subr.bf16.mxu1 %v14963_v26  ;;  %v14974_v39 = vld [vmem:[%s19933_s4 + $0x148] sm:$0xff]  }
 0x4fc   :  { %14186 = vmatprep.mubr.msk.bf16.mxu0 %vm20728_vm9, %v5828_v21  ;;  %vm20739_vm9 = vmmov %vm20691_vm1 }
 0x4fd   :  { %14187 = vmatmul.mubr.msk.bf16.gmra.mxu0 %vm20691_vm1, %v5829_v49  ;;  %14299 = vmatmul.mubr.msk.bf16.gmra.mxu1 %vm20729_vm14, %v7397_v57  ;;  %vm20735_vm14 = vmmov %vm20691_vm1  ;;  %v18516_v57 = vld [vmem:[%s19933_s4 + $0x198] sm:$0xff]   ;;  %v14976_v49 = vld [vmem:[%s19933_s4 + $0x140] sm:$0xff]  }
 0x4fe   :  { %14211 = vmatpush3.bf16.msra.mxu0 %v14940_v60  ;;  %14214 = vmatprep.mubr.msk.bf16.mxu0 %vm20732_vm3, %v6590_v16  ;;  %vm20738_vm3 = vmmov %vm20736_vm15 }
 0x4ff   :  { %14212 = vmatprep.subr.bf16.mxu0 %v14942_v56  ;;  %14323 = vmatpush3.bf16.msra.mxu1 %v14963_v26  ;;  %v7647_v22 = vsel %vm20738_vm3, %v7644_v46, %v7646_v8 }
 0x500   :  { %14324 = vmatprep.subr.bf16.mxu1 %v14965_v53  ;;  %14326 = vmatprep.mubr.msk.bf16.mxu1 %vm20735_vm14, %v18209_v30  ;;  %v7645_v30 = vsel %vm20736_vm15, %v7642_v17, %v7644_v46  ;;  %vm20740_vm14 = vmmov %vm20691_vm1  ;;  %v6593_v17 = vsel %vm20726_vm2, %v18047_v36, 0  ;;  %v14954_v36 = vld [vmem:[%s19933_s4 + $0xb0] sm:$0xff]   ;;  %v12313_v46 = vld [vmem:[%s19940_s7] ss:$0 sm:$0xff] }
 0x501   :  { %vm20742_vm15 = vmmov %vm20738_vm3 }
 0x502   :  { %14213 = vmatpush3.bf16.msra.mxu0 %v14942_v56  ;;  %v7648_v31 = vsel %vm20742_vm15, %v7646_v8, %v20741_v61  ;;  %vm20745_vm3 = vmmov %vm20691_vm1 }
 0x503   :  { %14238 = vmatprep.subr.bf16.mxu0 %v14944_v52  ;;  %14325 = vmatpush3.bf16.msra.mxu1 %v14965_v53  ;;  %vm20751_vm15 = vmmov %vm20691_vm1 }
 0x504   :  { %14350 = vmatprep.subr.bf16.mxu1 %v14967_v6 }
 0x505   :  { %14215 = vmatmul.mubr.msk.bf16.vlgmr.msra.gmra.mxu0 %vm20737_vm11, %v6591_v28  ;;  %vm20743_vm11 = vmmov %vm20691_vm1 }
 0x506   :  { %14239 = vmatpush3.bf16.msra.mxu0 %v14944_v52  ;;  %14218 = vmatprep.mubr.msk.bf16.mxu0 %vm20739_vm9, %v6592_v3  ;;  %vm20746_vm9 = vmmov %vm20691_vm1 }
 0x507   :  { %14240 = vmatprep.subr.bf16.mxu0 %v14946_v4  ;;  %14327 = vmatmul.mubr.msk.bf16.vlgmr.msra.gmra.mxu1 %vm20691_vm1, %v7645_v30 }
 0x508   :  { %14330 = vmatprep.mubr.msk.bf16.mxu1 %vm20740_vm14, %v7647_v22  ;;  %vm20749_vm14 = vmmov %vm20691_vm1  ;;  %14351 = vmatpush3.bf16.msra.mxu1 %v14967_v6 }
 0x509   :  { %14352 = vmatprep.subr.bf16.mxu1 %v14968_v9 }
 0x50a   :  { %14241 = vmatpush3.bf16.msra.mxu0 %v14946_v4 }
 0x50b   :  { %14242 = vmatprep.subr.bf16.mxu0 %v14948_v33 }
 0x50c   :  { %14353 = vmatpush3.bf16.msra.mxu1 %v14968_v9 }
 0x50d   :  { %14219 = vmatmul.mubr.msk.bf16.gmra.mxu0 %vm20743_vm11, %v6593_v17  ;;  %vm20753_vm11 = vmmov %vm20691_vm1  ;;  %14354 = vmatprep.subr.bf16.mxu1 %v14969_v13 }
 0x50e   :  { %14243 = vmatpush3.bf16.msra.mxu0 %v14948_v33  ;;  %14246 = vmatprep.mubr.msk.bf16.mxu0 %vm20745_vm3, %v20744_v37  ;;  %vm20754_vm3 = vmmov %vm20691_vm1 }
 0x50f   :  { %14244 = vmatprep.subr.bf16.mxu0 %v14950_v18  ;;  %14331 = vmatmul.mubr.msk.bf16.gmra.mxu1 %vm20746_vm9, %v7648_v31  ;;  %vm20755_vm9 = vmmov %vm20691_vm1 }
 0x510   :  { %14355 = vmatpush3.bf16.msra.mxu1 %v14969_v13 }
 0x511   :  { %14356 = vmatprep.subr.bf16.mxu1 %v14971_v38 }
 0x512   :  { %14245 = vmatpush3.bf16.msra.mxu0 %v14950_v18 }
 0x513   :  { %14270 = vmatprep.subr.bf16.mxu0 %v14952_v15 }
 0x514   :  { %14357 = vmatpush3.bf16.msra.mxu1 %v14971_v38 }
 0x515   :  { %14247 = vmatmul.mubr.msk.bf16.vlgmr.msra.gmra.mxu0 %vm20691_vm1, %v20747_v47  ;;  %14382 = vmatprep.subr.bf16.mxu1 %v18516_v57 }
 0x516   :  { %14271 = vmatpush3.bf16.msra.mxu0 %v14952_v15  ;;  %14250 = vmatprep.mubr.msk.bf16.mxu0 %vm20749_vm14, %v20748_v42  ;;  %vm20757_vm14 = vmmov %vm20691_vm1 }
 0x517   :  { %14272 = vmatprep.subr.bf16.mxu0 %v14954_v36 }
 0x51a   :  { %14273 = vmatpush3.bf16.msra.mxu0 %v14954_v36 }
 0x51b   :  { %14274 = vmatprep.subr.bf16.mxu0 %v14956_v14 }
 0x51d   :  { %14251 = vmatmul.mubr.msk.bf16.gmra.mxu0 %vm20751_vm15, %v20750_v35  ;;  %vm20759_vm15 = vmmov %vm20691_vm1 }
 0x51e   :  { %14275 = vmatpush3.bf16.msra.mxu0 %v14956_v14  ;;  %14278 = vmatprep.mubr.msk.bf16.mxu0 %vm20753_vm11, %v20752_v2  ;;  %vm20761_vm11 = vmmov %vm20691_vm1 }
 0x51f   :  { %14276 = vmatprep.subr.bf16.mxu0 %v14958_v25 }
 0x522   :  { %14277 = vmatpush3.bf16.msra.mxu0 %v14958_v25 }
 0x523   :  { %14302 = vmatprep.subr.bf16.mxu0 %v14960_v48 }
 0x525   :  { %14279 = vmatmul.mubr.msk.bf16.vlgmr.msra.gmra.mxu0 %vm20754_vm3, %v18184_v54  ;;  %v20756_v54 = vld [vmem:[#allocation44_spill] sm:$0xff]  ;;  %vm20762_vm3 = vsmask.f32 7424 }
 0x526   :  { %14303 = vmatpush3.bf16.msra.mxu0 %v14960_v48  ;;  %14282 = vmatprep.mubr.msk.bf16.mxu0 %vm20755_vm9, %v18196_v41  ;;  %v20758_v41 = vld [vmem:[#allocation50_spill] sm:$0xff]  ;;  %v7524_v43 = vsel %vm20762_vm3, %v18214_v23, %v20741_v61  ;;  %vm20763_vm9 = vmmov %vm20691_vm1 }
 0x527   :  { %14304 = vmatprep.subr.bf16.mxu0 %v14962_v51  ;;  %vm20770_vm3 = vmmov %vm20763_vm9 }
 0x52a   :  { %14305 = vmatpush3.bf16.msra.mxu0 %v14962_v51 }
 0x52b   :  { %14306 = vmatprep.subr.bf16.mxu0 %v14964_v24 }
 0x52d   :  { %14283 = vmatmul.mubr.msk.bf16.gmra.mxu0 %vm20691_vm1, %v18204_v34 }
 0x52e   :  { %14307 = vmatpush3.bf16.msra.mxu0 %v14964_v24  ;;  %14310 = vmatprep.mubr.msk.bf16.mxu0 %vm20757_vm14, %v20756_v54  ;;  %vm20119_vm14 = vcmask 64512  }
 0x52f   :  { %14308 = vmatprep.subr.bf16.mxu0 %v14966_v7 }
 0x532   :  { %14309 = vmatpush3.bf16.msra.mxu0 %v14966_v7 }
 0x533   :  { %14334 = vmatprep.subr.bf16.mxu0 %v14970_v12 }
 0x535   :  { %14311 = vmatmul.mubr.msk.bf16.vlgmr.msra.gmra.mxu0 %vm20759_vm15, %v20758_v41  ;;  %vm20767_vm15 = vsmask.f32 4352 }
 0x536   :  { %14314 = vmatprep.mubr.msk.bf16.mxu0 %vm20761_vm11, %v20760_v1  ;;  %14335 = vmatpush3.bf16.msra.mxu0 %v14970_v12  ;;  %vm20769_vm11 = vmmov %vm20763_vm9 }
 0x537   :  { %14336 = vmatprep.subr.bf16.mxu0 %v14972_v29 }
 0x53a   :  { %14337 = vmatpush3.bf16.msra.mxu0 %v14972_v29 }
 0x53b   :  { %14338 = vmatprep.subr.bf16.mxu0 %v14974_v39 }
 0x53d   :  { %14315 = vmatmul.mubr.msk.bf16.gmra.mxu0 %vm20763_vm9, %v7524_v43  ;;  %vm20773_vm9 = vsmask.f32 7424 }
 0x53e   :  { %14339 = vmatpush3.bf16.msra.mxu0 %v14974_v39 }
 0x53f   :  { %14340 = vmatprep.subr.bf16.mxu0 %v14976_v49 }
 0x542   :  { %14341 = vmatpush3.bf16.msra.mxu0 %v14976_v49 }
 0x543   :  { %14366 = vmatprep.subr.bf16.mxu0 %v18527_v40 }
 0x566   :  { %v18466_v11 = vpop.f32.mrf.mxu1 }
 0x568   :  { %v18468_v34 = vpop.f32.mrf.mxu1 }
 0x56a   :  { %v18470_v0 = vpop.f32.mrf.mxu1 }
 0x56c   :  { %v18472_v62 = vpop.f32.mrf.mxu1 }
 0x58a   :  { %v18477_v32 = vpop.f32.mrf.mxu1 }
 0x58c   :  { %v18479_v59 = vpop.f32.mrf.mxu1 }
 0x58e   :  { %v18481_v23 = vpop.f32.mrf.mxu1 }
 0x590   :  { %v18483_v44 = vpop.f32.mrf.mxu1 }
 0x592   :  { %v18485_v20 = vpop.f32.mrf.mxu1 }
 0x594   :  { %v18499_v60 = vpop.f32.mrf.mxu1 }
 0x596   :  { %v18501_v26 = vpop.f32.mrf.mxu1 }
 0x598   :  { %v18509_v27 = vpop.f32.mrf.mxu1 }
 0x59d   :  { %v18511_v21 = vpop.f32.mrf.mxu1 }
 0x59f   :  { %v18521_v56 = vpop.f32.mrf.mxu1 }
 0x5a1   :  { %v18529_v16 = vpop.f32.mrf.mxu1 }
 0x5a3   :  { %v18532_v53 = vpop.f32.mrf.mxu1 }
 0x5a5   :  { %v18534_v19 = vpop.f32.mrf.mxu1 }
 0x5a7   :  { %v18536_v63 = vpop.f32.mrf.mxu1 }
 0x5a9   :  { %v18538_v52 = vpop.f32.mrf.mxu1 }
 0x5ab   :  { %v18545_v4 = vpop.f32.mrf.mxu1 }
 0x5ad   :  { %v18553_v31 = vpop.f32.mrf.mxu1 }
 0x5af   :  { %v18561_v25 = vpop.f32.mrf.mxu1 }
 0x5b1   :  { %v18569_v54 = vpop.f32.mrf.mxu1 }
 0x5b3   :  { %v18577_v13 = vpop.f32.mrf.mxu1 }
 0x5b5   :  { %v14184_v8 = vpop.f32.mrf.mxu0 }
 0x5b6   :  { %v18543_v28 = vadd.f32 %v14184_v8, %v12313_v46 }
 0x5b7   :  { %v5915_v3 = vpop.f32.mrf.mxu0 }
 0x5b8   :  { %v12324_v30 = vmul.f32 -1.442695, %v18543_v28  ;;  %v18548_v22 = vadd.f32 %v12313_v46, %v5915_v3  ;;  %v18583_v3 = vpop.f32.mrf.mxu1 }
 0x5b9   :  { %v14185_v33 = vpop.f32.mrf.mxu0 }
 0x5ba   :  { %15079 = vpow2.f32 %v12324_v30  ;;  %v12322_v17 = vmul.f32 -1.442695, %v18548_v22  ;;  %v18551_v18 = vadd.f32 %v14185_v33, %v12313_v46 }
 0x5bb   :  { %v5918_v37 = vpop.f32.mrf.mxu0 }
 0x5bc   :  { %15081 = vpow2.f32 %v12322_v17  ;;  %v12325_v15 = vmul.f32 -1.442695, %v18551_v18  ;;  %v18556_v36 = vadd.f32 %v12313_v46, %v5918_v37 }
 0x5bd   :  { %v14188_v47 = vpop.f32.mrf.mxu0 }
 0x5be   :  { %15083 = vpow2.f32 %v12325_v15  ;;  %v12323_v42 = vmul.f32 -1.442695, %v18556_v36  ;;  %v18559_v14 = vadd.f32 %v14188_v47, %v12313_v46  ;;  %v18589_v47 = vpop.f32.mrf.mxu1 }
 0x5bf   :  { %v5931_v35 = vpop.f32.mrf.mxu0 }
 0x5c0   :  { %15085 = vpow2.f32 %v12323_v42  ;;  %v12328_v2 = vmul.f32 -1.442695, %v18559_v14  ;;  %v18564_v48 = vadd.f32 %v12313_v46, %v5931_v35 }
 0x5c1   :  { %v14189_v51 = vpop.f32.mrf.mxu0 }
 0x5c2   :  { %15087 = vpow2.f32 %v12328_v2  ;;  %v12326_v24 = vmul.f32 -1.442695, %v18564_v48  ;;  %v18567_v7 = vadd.f32 %v14189_v51, %v12313_v46 }
 0x5c3   :  { %v5934_v41 = vpop.f32.mrf.mxu0 }
 0x5c4   :  { %15089 = vpow2.f32 %v12326_v24  ;;  %v12329_v1 = vmul.f32 -1.442695, %v18567_v7  ;;  %v18572_v43 = vadd.f32 %v12313_v46, %v5934_v41  ;;  %v20765_v24 = vlaneseq }
 0x5c5   :  { %v18574_v6 = vpop.f32.mrf.mxu0 }
 0x5c6   :  { %15091 = vpow2.f32 %v12329_v1  ;;  %v12327_v9 = vmul.f32 -1.442695, %v18572_v43  ;;  %v18594_v41 = vand.u32 127, %v20765_v24 }
 0x5c7   :  { %v15080_v12 = vpop.eup %15079  ;;  %v18579_v29 = vpop.f32.mrf.mxu0 }
 0x5c8   :  { %v5975_v38 = vadd.f32 1.0, %v15080_v12  ;;  %15093 = vpow2.f32 %v12327_v9  ;;  %20766 = vst [vmem:[#allocation38_spill] sm:$0xff] %v18594_v41  ;;  %v18598_v12 = vpop.f32.mrf.mxu1  ;;  %vm20120_vm1 = vcmp.lt.s32.totalorder %v18594_v41, 1 }
 0x5c9   :  { %v15082_v39 = vpop.eup %15081  ;;  %v18581_v49 = vpop.f32.mrf.mxu0 }
 0x5ca   :  { %15095 = vrcp.f32 %v5975_v38  ;;  %v5973_v8 = vadd.f32 1.0, %v15082_v39 }
 0x5cb   :  { %v15084_v46 = vpop.eup %15083  ;;  %v18585_v30 = vpop.f32.mrf.mxu0 }
 0x5cc   :  { %15097 = vrcp.f32 %v5973_v8  ;;  %v5976_v33 = vadd.f32 1.0, %v15084_v46 }
 0x5cd   :  { %v15086_v17 = vpop.eup %15085  ;;  %v18587_v37 = vpop.f32.mrf.mxu0 }
 0x5ce   :  { %15099 = vrcp.f32 %v5976_v33  ;;  %v5974_v15 = vadd.f32 1.0, %v15086_v17  ;;  %v6842_v41 = vadd.f32 %v18587_v37, %v18477_v32 }
 0x5cf   :  { %v15088_v42 = vpop.eup %15087  ;;  %v18591_v35 = vpop.f32.mrf.mxu0 }
 0x5d0   :  { %15101 = vrcp.f32 %v5974_v15  ;;  %v5979_v2 = vadd.f32 1.0, %v15088_v42  ;;  %v18603_v15 = vpop.f32.mrf.mxu1 }
 0x5d1   :  { %v15090_v51 = vpop.eup %15089  ;;  %v18596_v1 = vpop.f32.mrf.mxu0 }
 0x5d2   :  { %15103 = vrcp.f32 %v5979_v2  ;;  %v5977_v9 = vadd.f32 1.0, %v15090_v51 }
 0x5d3   :  { %v15092_v38 = vpop.eup %15091  ;;  %v18600_v39 = vpop.f32.mrf.mxu0 }
 0x5d4   :  { %15105 = vrcp.f32 %v5977_v9  ;;  %v5980_v8 = vadd.f32 1.0, %v15092_v38 }
 0x5d5   :  { %v15094_v46 = vpop.eup %15093  ;;  %v14248_v33 = vpop.f32.mrf.mxu0 }
 0x5d6   :  { %15107 = vrcp.f32 %v5980_v8  ;;  %v5978_v17 = vadd.f32 1.0, %v15094_v46  ;;  %v18615_v8 = vpop.f32.mrf.mxu1 }
 0x5d7   :  { %v15096_v42 = vpop.eup %15095  ;;  %v7081_v24 = vpop.f32.mrf.mxu0 }
 0x5d8   :  { %v5999_v2 = vsel %vm20120_vm1, %v15096_v42, %v18543_v28  ;;  %15109 = vrcp.f32 %v5978_v17 }
 0x5d9   :  { %v15098_v51 = vpop.eup %15097  ;;  %6008 = vst.msk [vmem:[%s19941_s8 + $0x10] sm:$0xff] %vm20119_vm14, %v5999_v2  ;;  %v14249_v9 = vpop.f32.mrf.mxu0 }
 0x5da   :  { %v5997_v38 = vsel %vm20120_vm1, %v15098_v51, %v18548_v22  ;;  %v18631_v51 = vpop.f32.mrf.mxu1 }
 0x5db   :  { %v15100_v46 = vpop.eup %15099  ;;  %6006 = vst.msk [vmem:[%s19941_s8] sm:$0xff] %vm20119_vm14, %v5997_v38  ;;  %v7084_v28 = vpop.f32.mrf.mxu0 }
 0x5dc   :  { %v6000_v17 = vsel %vm20120_vm1, %v15100_v46, %v18551_v18 }
 0x5dd   :  { %v15102_v42 = vpop.eup %15101  ;;  %6009 = vst.msk [vmem:[%s19941_s8 + $0x18] sm:$0xff] %vm20119_vm14, %v6000_v17  ;;  %v14252_v22 = vpop.f32.mrf.mxu0 }
 0x5de   :  { %v5998_v2 = vsel %vm20120_vm1, %v15102_v42, %v18556_v36  ;;  %v18647_v42 = vpop.f32.mrf.mxu1 }
 0x5df   :  { %v15104_v61 = vpop.eup %15103  ;;  %6007 = vst.msk [vmem:[%s19941_s8 + $0x8] sm:$0xff] %vm20119_vm14, %v5998_v2  ;;  %v7097_v18 = vpop.f32.mrf.mxu0  ;;  %v6826_v2 = vadd.f32 %v18574_v6, %v18466_v11  ;;  %v6829_v11 = vadd.f32 %v18581_v49, %v18470_v0  ;;  %v6834_v0 = vadd.f32 %v18591_v35, %v18479_v59 }
 0x5e0   :  { %v6003_v38 = vsel %vm20120_vm1, %v15104_v61, %v18559_v14  ;;  %v18667_v10 = vpop.f32.mrf.mxu1 }
 0x5e1   :  { %v15106_v46 = vpop.eup %15105  ;;  %6012 = vst.msk [vmem:[%s19941_s8 + $0x30] sm:$0xff] %vm20119_vm14, %v6003_v38  ;;  %v14253_v36 = vpop.f32.mrf.mxu0  ;;  %v6980_v37 = vadd.f32 %v18521_v56, %v6834_v0 }
 0x5e2   :  { %v6001_v17 = vsel %vm20120_vm1, %v15106_v46, %v18564_v48 }
 0x5e3   :  { %v15108_v58 = vpop.eup %15107  ;;  %6010 = vst.msk [vmem:[%s19941_s8 + $0x20] sm:$0xff] %vm20119_vm14, %v6001_v17  ;;  %v7100_v61 = vpop.f32.mrf.mxu0  ;;  %v6818_v17 = vadd.f32 %v18579_v29, %v18468_v34 }
 0x5e4   :  { %v6004_v14 = vsel %vm20120_vm1, %v15108_v58, %v18567_v7  ;;  %v6978_v7 = vadd.f32 %v18485_v20, %v6826_v2  ;;  %v14328_v29 = vpop.f32.mrf.mxu1 }
 0x5e5   :  { %v15110_v38 = vpop.eup %15109  ;;  %6013 = vst.msk [vmem:[%s19941_s8 + $0x38] sm:$0xff] %vm20119_vm14, %v6004_v14  ;;  %v14280_v48 = vpop.f32.mrf.mxu0  ;;  %v6976_v34 = vadd.f32 %v18499_v60, %v6818_v17  ;;  %v6982_v17 = vadd.f32 %v18511_v21, %v6842_v41 }
 0x5e6   :  { %v6002_v46 = vsel %vm20120_vm1, %v15110_v38, %v18572_v43  ;;  %v6821_v43 = vadd.f32 %v18585_v30, %v18472_v62  ;;  %v7114_v14 = vadd.f32 %v14248_v33, %v6978_v7  ;;  %v7719_v30 = vpop.f32.mrf.mxu1  ;;  %vm20799_vm1 = vcmask 1046528  }
 0x5e7   :  { %6011 = vst.msk [vmem:[%s19941_s8 + $0x28] sm:$0xff] %vm20119_vm14, %v6002_v46  ;;  %v7355_v58 = vpop.f32.mrf.mxu0  ;;  %v7112_v40 = vadd.f32 %v7081_v24, %v6976_v34  ;;  %v6979_v46 = vadd.f32 %v18501_v26, %v6829_v11  ;;  %v6845_v26 = vadd.f32 %v18596_v1, %v18481_v23  ;;  %v7118_v35 = vadd.f32 %v14252_v22, %v6982_v17 }
 0x5e8   :  { %v6977_v2 = vadd.f32 %v18509_v27, %v6821_v43  ;;  %v7252_v62 = vadd.f32 %v18534_v19, %v7114_v14  ;;  %v6837_v19 = vadd.f32 %v18600_v39, %v18483_v44  ;;  %vm20798_vm14 = vcmask 523264  }
 0x5e9   :  { %v14281_v6 = vpop.f32.mrf.mxu0  ;;  %v7115_v20 = vadd.f32 %v14249_v9, %v6979_v46  ;;  %v7250_v32 = vadd.f32 %v18536_v63, %v7112_v40  ;;  %v14329_v9 = vpop.f32.mrf.mxu1  ;;  %v6983_v23 = vadd.f32 %v18529_v16, %v6845_v26  ;;  %v7256_v1 = vadd.f32 %v18553_v31, %v7118_v35  ;;  %v12542_v31 = vld [vmem:[%s19938_s5] ss:$0 sm:$0xff] }
 0x5ea   :  { %v7113_v60 = vadd.f32 %v7084_v28, %v6977_v2  ;;  %v7388_v7 = vadd.f32 %v14280_v48, %v7252_v62  ;;  %v7116_v28 = vadd.f32 %v7097_v18, %v6980_v37  ;;  %v6981_v44 = vadd.f32 %v18532_v53, %v6837_v19 }
 0x5eb   :  { %v7358_v38 = vpop.f32.mrf.mxu0  ;;  %v7386_v24 = vadd.f32 %v7355_v58, %v7250_v32  ;;  %v7253_v27 = vadd.f32 %v18538_v52, %v7115_v20  ;;  %v7722_v48 = vpop.f32.mrf.mxu1  ;;  %v7119_v58 = vadd.f32 %v14253_v36, %v6983_v23 }
 0x5ec   :  { %v7251_v41 = vadd.f32 %v18545_v4, %v7113_v60  ;;  %v7509_v40 = vadd.f32 %v18583_v3, %v7388_v7  ;;  %v7254_v39 = vadd.f32 %v18561_v25, %v7116_v28  ;;  %v7117_v16 = vadd.f32 %v7100_v61, %v6981_v44 }
 0x5ed   :  { %v14284_v49 = vpop.f32.mrf.mxu0  ;;  %v7389_v21 = vadd.f32 %v14281_v6, %v7253_v27  ;;  %v7507_v52 = vadd.f32 %v18589_v47, %v7386_v24  ;;  %v14332_v36 = vpop.f32.mrf.mxu1  ;;  %v7257_v25 = vadd.f32 %v18569_v54, %v7119_v58 }
 0x5ee   :  { %v7387_v56 = vadd.f32 %v7358_v38, %v7251_v41  ;;  %v7392_v6 = vadd.f32 %v14284_v49, %v7256_v1  ;;  %v7255_v20 = vadd.f32 %v18577_v13, %v7117_v16 }
 0x5ef   :  { %v7371_v33 = vpop.f32.mrf.mxu0  ;;  %v7510_v3 = vadd.f32 %v18598_v12, %v7389_v21  ;;  %v7735_v17 = vpop.f32.mrf.mxu1 }
 0x5f0   :  { %v7390_v14 = vadd.f32 %v7371_v33, %v7254_v39  ;;  %v7508_v53 = vadd.f32 %v18603_v15, %v7387_v56  ;;  %v7513_v12 = vadd.f32 %v18615_v8, %v7392_v6 }
 0x5f1   :  { %v14285_v59 = vpop.f32.mrf.mxu0  ;;  %v14333_v19 = vpop.f32.mrf.mxu1 }
 0x5f2   :  { %v7393_v61 = vadd.f32 %v14285_v59, %v7257_v25  ;;  %v7511_v62 = vadd.f32 %v18631_v51, %v7390_v14 }
 0x5f3   :  { %v7374_v11 = vpop.f32.mrf.mxu0  ;;  %v7738_v58 = vpop.f32.mrf.mxu1 }
 0x5f4   :  { %v7391_v15 = vadd.f32 %v7374_v11, %v7255_v20  ;;  %v7514_v8 = vadd.f32 %v18647_v42, %v7393_v61 }
 0x5f5   :  { %v14312_v63 = vpop.f32.mrf.mxu0 }
 0x5f6   :  { %v7619_v22 = vadd.f32 %v14312_v63, %v7509_v40  ;;  %v7512_v21 = vadd.f32 %v18667_v10, %v7391_v15 }
 0x5f7   :  { %v7586_v18 = vpop.f32.mrf.mxu0 }
 0x5f8   :  { %v7752_v4 = vadd.f32 %v14328_v29, %v7619_v22  ;;  %v7617_v43 = vadd.f32 %v7586_v18, %v7507_v52 }
 0x5f9   :  { %v14313_v34 = vpop.f32.mrf.mxu0 }
 0x5fa   :  { %v7750_v47 = vadd.f32 %v7719_v30, %v7617_v43  ;;  %v7620_v38 = vadd.f32 %v14313_v34, %v7510_v3  ;;  %v7767_v0 = vadd.f32 %v12542_v31, %v7752_v4 }
 0x5fb   :  { %v7589_v46 = vpop.f32.mrf.mxu0 }
 0x5fc   :  { %v7753_v29 = vadd.f32 %v14329_v9, %v7620_v38  ;;  %v7618_v49 = vadd.f32 %v7589_v46, %v7508_v53  ;;  %v7765_v33 = vadd.f32 %v12542_v31, %v7750_v47  ;;  %v7775_v54 = vmax.f32 %v7767_v0, 0.0 }
 0x5fd   :  { %v14316_v2 = vpop.f32.mrf.mxu0 }
 0x5fe   :  { %v7768_v30 = vadd.f32 %v12542_v31, %v7753_v29  ;;  %v7751_v60 = vadd.f32 %v7722_v48, %v7618_v49  ;;  %v7623_v7 = vadd.f32 %v14316_v2, %v7513_v12  ;;  %v7773_v27 = vmax.f32 %v7765_v33, 0.0 }
 0x5ff   :  { %v7602_v32 = vpop.f32.mrf.mxu0 }
 0x600   :  { %v7776_v26 = vmax.f32 %v7768_v30, 0.0  ;;  %v7766_v37 = vadd.f32 %v12542_v31, %v7751_v60  ;;  %v7621_v35 = vadd.f32 %v7602_v32, %v7511_v62  ;;  %v7756_v24 = vadd.f32 %v14332_v36, %v7623_v7  ;;  %v14977_v32 = vld [vmem:[%s19933_s4 + $0x188] sm:$0xff]  }
 0x601   :  { %v14317_v59 = vpop.f32.mrf.mxu0 }
 0x602   :  { %v7782_v13 = vpack.c.bf16 %v7776_v26, %v7775_v54  ;;  %v7774_v9 = vmax.f32 %v7766_v37, 0.0  ;;  %v7754_v51 = vadd.f32 %v7735_v17, %v7621_v35  ;;  %v7624_v28 = vadd.f32 %v14317_v59, %v7514_v8 }
 0x603   :  { %v7605_v41 = vpop.f32.mrf.mxu0  ;;  %v7771_v63 = vadd.f32 %v12542_v31, %v7756_v24 }
 0x604   :  { %v7794_v40 = vshrl.u32 %v7782_v13, 16  ;;  %v7797_v11 = vshll.u32 %v7782_v13, 16  ;;  %v7781_v23 = vpack.c.bf16 %v7774_v9, %v7773_v27  ;;  %v7757_v56 = vadd.f32 %v14333_v19, %v7624_v28 }
 0x605   :  { %v7622_v1 = vadd.f32 %v7605_v41, %v7512_v21  ;;  %v7769_v44 = vadd.f32 %v12542_v31, %v7754_v51  ;;  %v7779_v43 = vmax.f32 %v7771_v63, 0.0 }
 0x606   :  { %v7796_v22 = vrot.slane %v7794_v40, 3  ;;  %v7799_v52 = vrot.slane %v7797_v11, 4  ;;  %v7786_v48 = vshrl.u32 %v7781_v23, 16  ;;  %v7789_v42 = vshll.u32 %v7781_v23, 16  ;;  %v14979_v11 = vld [vmem:[%s19933_s4 + $0x180] sm:$0xff]  }
 0x607   :  { %v7772_v39 = vadd.f32 %v12542_v31, %v7757_v56  ;;  %v7755_v18 = vadd.f32 %v7738_v58, %v7622_v1  ;;  %v7777_v34 = vmax.f32 %v7769_v44, 0.0 }
 0x608   :  { %v7788_v6 = vrot.slane %v7786_v48, 3  ;;  %v7791_v4 = vrot.slane %v7789_v42, 4  ;;  %v7800_v16 = vor.u32 %v7799_v52, %v7796_v22 }
 0x609   :  { %v7780_v3 = vmax.f32 %v7772_v39, 0.0  ;;  %v7770_v10 = vadd.f32 %v12542_v31, %v7755_v18  ;;  %v14975_v31 = vld [vmem:[%s19933_s4 + $0x190] sm:$0xff]  }
 0x60a   :  { %v7792_v14 = vor.u32 %v7791_v4, %v7788_v6  ;;  %v14980_v4 = vld [vmem:[%s19933_s4 + $0x170] sm:$0xff]  }
 0x60b   :  { %v7784_v47 = vpack.c.bf16 %v7780_v3, %v7779_v43  ;;  %v7778_v38 = vmax.f32 %v7770_v10, 0.0  ;;  %v14981_v43 = vld [vmem:[%s19933_s4 + $0x1d8] sm:$0xff]  }
 0x60c   :  { %v18713_v36 = vsel %vm20767_vm15, %v7792_v14, %v7800_v16  ;;  %v18717_v25 = vsel %vm15514_vm12, 0, %v7792_v14  ;;  %v20783_v14 = vld [vmem:[#allocation10_spill] sm:$0xff] }
 0x60d   :  { %v7812_v46 = vshrl.u32 %v7784_v47, 16  ;;  %v7815_v0 = vshll.u32 %v7784_v47, 16  ;;  %v7783_v29 = vpack.c.bf16 %v7778_v38, %v7777_v34  ;;  %v7827_v49 = vsel %vm15518_vm13, %v18717_v25, 0  ;;  %v20785_v47 = vld [vmem:[#allocation37_spill] sm:$0xff] }
 0x60e   :  { %14358 = vmatprep.mubr.msk.bf16.mxu1 %vm20769_vm11, %v7827_v49  ;;  %v7828_v12 = vsel %vm15710_vm5, %v18713_v36, 0  ;;  %v7850_v61 = vshll.u32 %v18717_v25, 16  ;;  %v7855_v20 = vshll.u32 %v18713_v36, 16  ;;  %v7848_v60 = vshrl.u32 %v18717_v25, 16  ;;  %vm20774_vm11 = vmmov %vm20767_vm15 }
 0x60f   :  { %v7814_v2 = vrot.slane %v7812_v46, 3  ;;  %v7817_v62 = vrot.slane %v7815_v0, 4  ;;  %v7803_v33 = vshrl.u32 %v7783_v29, 16  ;;  %v7806_v30 = vshll.u32 %v7783_v29, 16  ;;  %14359 = vmatmul.mubr.msk.bf16.vlgmr.msra.gmra.mxu1 %vm20770_vm3, %v7828_v12  ;;  %v14983_v12 = vld [vmem:[%s19933_s4 + $0x1d0] sm:$0xff]  }
 0x610   :  { %14383 = vmatpush3.bf16.msra.mxu1 %v18516_v57  ;;  %v7852_v17 = vrot.slane %v7850_v61, 1  ;;  %v8221_v26 = vsel %vm15973_vm0, %v18717_v25, 0  ;;  %v8222_v57 = vsel %vm15984_vm4, %v18713_v36, 0  ;;  %v7857_v24 = vrot.slane %v7855_v20, 1 }
 0x611   :  { %v7805_v7 = vrot.slane %v7803_v33, 3  ;;  %v7808_v15 = vrot.slane %v7806_v30, 4  ;;  %14384 = vmatprep.subr.bf16.mxu1 %v14975_v31  ;;  %v7818_v8 = vor.u32 %v7817_v62, %v7814_v2  ;;  %v8239_v13 = vrot.slane %v8221_v26, 4  ;;  %v20793_v26 = vld [vmem:[#allocation23_spill] sm:$0xff] }
 0x612   :  { %v7853_v35 = vor.u32 %v7852_v17, %v7848_v60  ;;  %v8240_v9 = vrot.slane %v8222_v57, 4  ;;  %v7859_v28 = vshrl.u32 %v18713_v36, 16 }
 0x613   :  { %v7809_v59 = vor.u32 %v7808_v15, %v7805_v7  ;;  %v18782_v42 = vsel %vm15514_vm12, %v7818_v8, 0  ;;  %v14984_v7 = vld [vmem:[%s19933_s4 + $0x160] sm:$0xff]  }
 0x614   :  { %v7858_v27 = vsel %vm20773_vm9, %v7853_v35, %v7857_v24  ;;  %14385 = vmatpush3.bf16.msra.mxu1 %v14975_v31  ;;  %v7861_v23 = vor.u32 %v7859_v28, %v7857_v24  ;;  %vm20775_vm9 = vmmov %vm20770_vm3  ;;  %v7879_v29 = vshll.u32 %v18782_v42, 16  ;;  %v14982_v31 = vld [vmem:[%s19933_s4 + $0x168] sm:$0xff]   ;;  %v20791_v15 = vld [vmem:[#allocation22_spill] sm:$0xff] }
 0x615   :  { %v18751_v19 = vsel %vm20767_vm15, %v7800_v16, %v7809_v59  ;;  %v18754_v51 = vsel %vm20774_vm11, %v7809_v59, %v7818_v8  ;;  %14342 = vmatprep.mubr.msk.bf16.mxu0 %vm20770_vm3, %v7858_v27  ;;  %14386 = vmatprep.subr.bf16.mxu1 %v14977_v32  ;;  %vm20776_vm15 = vmmov %vm20770_vm3  ;;  %vm20777_vm11 = vcmask 1043456   ;;  %v8085_v16 = vsel %vm20534_vm8, %v18717_v25, 0  ;;  %v20796_v24 = vld [vmem:[#allocation21_spill] sm:$0xff]  ;;  %v14985_v59 = vld [vmem:[%s19933_s4 + $0x1c8] sm:$0xff]  }
 0x616   :  { %v7829_v21 = vsel %vm20722_vm7, %v18751_v19, 0  ;;  %v7830_v41 = vsel %vm20726_vm2, %v18754_v51, 0  ;;  %v7863_v40 = vshll.u32 %v18751_v19, 16  ;;  %v7871_v63 = vshll.u32 %v18754_v51, 16 }
 0x617   :  { %14362 = vmatprep.mubr.msk.bf16.mxu1 %vm20775_vm9, %v7829_v21  ;;  %v8241_v56 = vsel %vm20777_vm11, %v8239_v13, %v8240_v9  ;;  %v7867_v22 = vshrl.u32 %v18751_v19, 16  ;;  %v8223_v48 = vsel %vm16005_vm10, %v18751_v19, 0  ;;  %v8224_v44 = vsel %vm20653_vm6, %v18754_v51, 0  ;;  %v20800_v13 = vld [vmem:[#allocation14_spill] sm:$0xff] }
 0x618   :  { %14363 = vmatmul.mubr.msk.bf16.gmra.mxu1 %vm20776_vm15, %v7830_v41  ;;  %v7865_v1 = vrot.slane %v7863_v40, 1  ;;  %vm20780_vm9 = vsmask.f32 7424  ;;  %v7873_v6 = vrot.slane %v7871_v63, 1  ;;  %vm20781_vm15 = vmmov %vm20770_vm3  ;;  %v8242_v3 = vrot.slane %v8223_v48, 4 }
 0x619   :  { %14387 = vmatpush3.bf16.msra.mxu1 %v14977_v32  ;;  %14390 = vmatprep.mubr.msk.bf16.mxu1 %vm20770_vm3, %v8241_v56  ;;  %vm20784_vm11 = vcmp.ne.s16.totalorder %v20783_v14, 0  ;;  %vm20786_vm3 = vmmov %vm20780_vm9  ;;  %v7875_v46 = vshrl.u32 %v18754_v51, 16  ;;  %v8244_v0 = vrot.slane %v8224_v44, 4  ;;  %v8103_v62 = vrot.slane %v8085_v16, 1  ;;  %v14987_v44 = vld [vmem:[%s19933_s4 + $0x1c0] sm:$0xff]   ;;  %v14988_v16 = vld [vmem:[%s19933_s4 + $0x1b0] sm:$0xff]  }
 0x61a   :  { %v18789_v39 = vsel %vm20780_vm9, %v7861_v23, %v7865_v1  ;;  %14388 = vmatprep.subr.bf16.mxu1 %v14979_v11  ;;  %v7869_v18 = vor.u32 %v7867_v22, %v7865_v1  ;;  %v8086_v34 = vsel %vm20784_vm11, %v18713_v36, 0  ;;  %vm20787_vm9 = vmmov %vm20781_vm15  ;;  %v18830_v17 = vrot.slane %v7879_v29, 1  ;;  %v14986_v1 = vld [vmem:[%s19933_s4 + $0x1b8] sm:$0xff]  }
 0x61b   :  { %14343 = vmatmul.mubr.msk.bf16.vlgmr.msra.gmra.mxu0 %vm20781_vm15, %v18789_v39  ;;  %v7877_v49 = vor.u32 %v7875_v46, %v7873_v6  ;;  %vm20788_vm15 = vcmask 1043456   ;;  %v8104_v33 = vrot.slane %v8086_v34, 1  ;;  %vm20789_vm11 = vmmov %vm20787_vm9  ;;  %v20810_v34 = vld [vmem:[#allocation25_spill] sm:$0xff] }
 0x61c   :  { %14367 = vmatpush3.bf16.msra.mxu0 %v20785_v47  ;;  %v18811_v38 = vsel %vm20786_vm3, %v7869_v18, %v7873_v6  ;;  %v8243_v2 = vsel %vm20788_vm15, %v8240_v9, %v8242_v3  ;;  %vm20790_vm3 = vmmov %vm20788_vm15  ;;  %vm20792_vm15 = vnez %v20791_v15 }
 0x61d   :  { %14346 = vmatprep.mubr.msk.bf16.mxu0 %vm20787_vm9, %v18811_v38  ;;  %14389 = vmatpush3.bf16.msra.mxu1 %v14979_v11  ;;  %v8245_v30 = vsel %vm20790_vm3, %v8242_v3, %v8244_v0  ;;  %v8495_v32 = vsel %vm20792_vm15, %v18717_v25, 0  ;;  %vm20795_vm3 = vsmask.f32 7424  ;;  %v8105_v27 = vsel %vm20799_vm1, %v8103_v62, %v8104_v33  ;;  %v20803_v11 = vld [vmem:[#allocation18_spill] sm:$0xff]  ;;  %v14990_v25 = vld [vmem:[%s19933_s4 + $0x1a8] sm:$0xff]  }
 0x61e   :  { %14368 = vmatprep.subr.bf16.mxu0 %v14980_v4  ;;  %14414 = vmatprep.subr.bf16.mxu1 %v14981_v43  ;;  %v18844_v35 = vsel %vm20795_vm3, %v7877_v49, %v18830_v17  ;;  %vm20802_vm3 = vmmov %vm20798_vm14  ;;  %v8513_v21 = vrot.slane %v8495_v32, 5  ;;  %vm20805_vm1 = vcmask 1043456   ;;  %vm20812_vm15 = vcmask 1046528  }
 0x61f   :  { %v8366_v62 = vrot.slane %v7850_v61, 5  ;;  %v14991_v61 = vld [vmem:[%s19933_s4 + $0x210] sm:$0xff]  }
 0x620   :  { %14369 = vmatpush3.bf16.msra.mxu0 %v14980_v4  ;;  %14391 = vmatmul.mubr.msk.bf16.vlgmr.msra.gmra.mxu1 %vm20789_vm11, %v8243_v2  ;;  %vm20794_vm11 = vcmp.ne.s16.totalorder %v20793_v26, 0  ;;  %v20806_v4 = vld [vmem:[#allocation24_spill] sm:$0xff] }
 0x621   :  { %14394 = vmatprep.mubr.msk.bf16.mxu1 %vm20787_vm9, %v8245_v30  ;;  %14415 = vmatpush3.bf16.msra.mxu1 %v14981_v43  ;;  %v8496_v57 = vsel %vm20794_vm11, %v18713_v36, 0  ;;  %vm20797_vm9 = vnez %v20796_v24  ;;  %vm20801_vm11 = vcmp.ne.s16.totalorder %v20800_v13, 0  ;;  %v8368_v30 = vrot.slane %v7859_v28, 4 }
 0x622   :  { %14370 = vmatprep.subr.bf16.mxu0 %v14982_v31  ;;  %14416 = vmatprep.subr.bf16.mxu1 %v14983_v12  ;;  %v8225_v8 = vsel %vm20797_vm9, %v18782_v42, 0  ;;  %v8087_v9 = vsel %vm20801_vm11, %v18751_v19, 0  ;;  %v8514_v41 = vrot.slane %v8496_v57, 5  ;;  %vm20804_vm9 = vcmp.ne.s16.totalorder %v20803_v11, 0 }
 0x623   :  { %14347 = vmatmul.mubr.msk.bf16.gmra.mxu0 %vm20798_vm14, %v18844_v35  ;;  %v8088_v23 = vsel %vm20804_vm9, %v18754_v51, 0  ;;  %v8246_v56 = vrot.slane %v8225_v8, 4  ;;  %v8106_v48 = vrot.slane %v8087_v9, 1  ;;  %vm20807_vm14 = vcmp.ne.s16.totalorder %v20806_v4, 0  ;;  %vm20808_vm9 = vmmov %vm20802_vm3 }
 0x624   :  { %14371 = vmatpush3.bf16.msra.mxu0 %v14982_v31  ;;  %14374 = vmatprep.mubr.msk.bf16.mxu0 %vm20802_vm3, %v8105_v27  ;;  %v8108_v6 = vrot.slane %v8088_v23, 1  ;;  %v8497_v43 = vsel %vm20807_vm14, %v18751_v19, 0  ;;  %vm20809_vm11 = vcmask 1042432   ;;  %v14989_v31 = vld [vmem:[%s19933_s4 + $0x218] sm:$0xff]   ;;  %vm20813_vm14 = vmmov %vm20802_vm3  ;;  %v14992_v27 = vld [vmem:[%s19933_s4 + $0x1a0] sm:$0xff]   ;;  %v8372_v9 = vrot.slane %v7867_v22, 4 }
 0x625   :  { %14417 = vmatpush3.bf16.msra.mxu1 %v14983_v12  ;;  %14372 = vmatprep.subr.bf16.mxu0 %v14984_v7  ;;  %v8247_v18 = vsel %vm20805_vm1, %v8244_v0, %v8246_v56  ;;  %v8515_v3 = vsel %vm20809_vm11, %v8513_v21, %v8514_v41  ;;  %vm20811_vm1 = vcmp.ne.s16.totalorder %v20810_v34, 0  ;;  %v8107_v0 = vsel %vm20812_vm15, %v8104_v33, %v8106_v48  ;;  %v20823_v23 = vld [vmem:[#allocation26_spill] sm:$0xff] }
 0x626   :  { %14418 = vmatprep.subr.bf16.mxu1 %v14985_v59  ;;  %v8498_v47 = vsel %vm20811_vm1, %v18754_v51, 0  ;;  %v8516_v49 = vrot.slane %v8497_v43, 5  ;;  %v8365_v12 = vrot.slane %v7848_v60, 4  ;;  %v8369_v33 = vrot.slane %v7855_v20, 5  ;;  %v20816_v60 = vld [vmem:[#allocation19_spill] sm:$0xff]  ;;  %vm20819_vm1 = vmmov %vm20813_vm14  ;;  %v14995_v43 = vld [vmem:[%s19933_s4 + $0x200] sm:$0xff]  }
 0x627   :  { %vm20817_vm11 = vnez %v20816_v60  ;;  %v8373_v21 = vrot.slane %v7863_v40, 5  ;;  %v8376_v22 = vrot.slane %v7875_v46, 4  ;;  %v8377_v40 = vrot.slane %v7871_v63, 5 }
 0x628   :  { %14373 = vmatpush3.bf16.msra.mxu0 %v14984_v7  ;;  %14395 = vmatmul.mubr.msk.bf16.gmra.mxu1 %vm20808_vm9, %v8247_v18  ;;  %vm20814_vm9 = vmmov %vm20812_vm15  ;;  %v8518_v7 = vrot.slane %v8498_v47, 5  ;;  %v8089_v32 = vsel %vm20817_vm11, %v18782_v42, 0  ;;  %v8367_v28 = vor.u32 %v8366_v62, %v8365_v12  ;;  %v8370_v57 = vor.u32 %v8369_v33, %v8368_v30 }
 0x629   :  { %14419 = vmatpush3.bf16.msra.mxu1 %v14985_v59  ;;  %14422 = vmatprep.mubr.msk.bf16.mxu1 %vm20802_vm3, %v8515_v3  ;;  %v8109_v2 = vsel %vm20814_vm9, %v8106_v48, %v8108_v6  ;;  %vm20815_vm15 = vmmov %vm20802_vm3  ;;  %vm20818_vm3 = vcmask 1042432   ;;  %v8110_v59 = vrot.slane %v8089_v32, 1  ;;  %v8374_v18 = vor.u32 %v8373_v21, %v8372_v9 }
 0x62a   :  { %14398 = vmatprep.subr.bf16.mxu0 %v14986_v1  ;;  %14420 = vmatprep.subr.bf16.mxu1 %v14987_v44  ;;  %v8517_v20 = vsel %vm20818_vm3, %v8514_v41, %v8516_v49  ;;  %vm20821_vm9 = vmmov %vm20819_vm1  ;;  %v8378_v3 = vor.u32 %v8377_v40, %v8376_v22  ;;  %v8380_v63 = vshrl.u32 %v18782_v42, 16  ;;  %v8631_v62 = vsel %vm15518_vm13, %v18713_v36, 0  ;;  %v15006_v22 = vld [vmem:[%s19933_s4 + $0x278] sm:$0xff]   ;;  %v15008_v40 = vld [vmem:[%s19933_s4 + $0x270] sm:$0xff]  }
 0x62b   :  { %14375 = vmatmul.mubr.msk.bf16.vlgmr.msra.gmra.mxu0 %vm20813_vm14, %v8107_v0  ;;  %vm20820_vm14 = vmmov %vm20818_vm3  ;;  %vm20824_vm3 = vnez %v20823_v23  ;;  %v8633_v32 = vsel %vm20722_vm7, %v18754_v51, 0 }
 0x62c   :  { %14399 = vmatpush3.bf16.msra.mxu0 %v14986_v1  ;;  %14378 = vmatprep.mubr.msk.bf16.mxu0 %vm20815_vm15, %v8109_v2  ;;  %v8519_v8 = vsel %vm20820_vm14, %v8516_v49, %v8518_v7  ;;  %vm20822_vm15 = vcmask 1046528   ;;  %v8499_v56 = vsel %vm20824_vm3, %v18782_v42, 0  ;;  %v14993_v1 = vld [vmem:[%s19933_s4 + $0x208] sm:$0xff]   ;;  %vm20825_vm14 = vsmask.f32 3328  ;;  %vm20830_vm3 = vmmov %vm20819_vm1  ;;  %v14998_v2 = vld [vmem:[%s19933_s4 + $0x1e0] sm:$0xff]  }
 0x62d   :  { %14421 = vmatpush3.bf16.msra.mxu1 %v14987_v44  ;;  %14400 = vmatprep.subr.bf16.mxu0 %v14988_v16  ;;  %v8111_v41 = vsel %vm20822_vm15, %v8108_v6, %v8110_v59  ;;  %v8371_v48 = vsel %vm20825_vm14, %v8367_v28, %v8370_v57  ;;  %v8520_v44 = vrot.slane %v8499_v56, 5  ;;  %v14994_v6 = vld [vmem:[%s19933_s4 + $0x1f8] sm:$0xff]   ;;  %vm20827_vm15 = vcmask 1042432   ;;  %vm20828_vm14 = vmmov %vm20819_vm1 }
 0x62e   :  { %14446 = vmatprep.subr.bf16.mxu1 %v14989_v31  ;;  %v8382_v49 = vrot.slane %v8380_v63, 4  ;;  %v8760_v30 = vor.u32 %v8380_v63, %v18830_v17  ;;  %v8632_v17 = vsel %vm15710_vm5, %v18751_v19, 0 }
 0x62f   :  { %v8521_v46 = vsel %vm20827_vm15, %v8518_v7, %v8520_v44  ;;  %v15000_v7 = vld [vmem:[%s19933_s4 + $0x230] sm:$0xff]   ;;  %v15007_v44 = vld [vmem:[%s19933_s4 + $0x240] sm:$0xff]  }
 0x630   :  { %14401 = vmatpush3.bf16.msra.mxu0 %v14988_v16  ;;  %14423 = vmatmul.mubr.msk.bf16.vlgmr.msra.gmra.mxu1 %vm20819_vm1, %v8517_v20  ;;  %v14996_v16 = vld [vmem:[%s19933_s4 + $0x1f0] sm:$0xff]   ;;  %v8862_v20 = vsel %vm20534_vm8, %v18713_v36, 0 }
 0x631   :  { %14426 = vmatprep.mubr.msk.bf16.mxu1 %vm20821_vm9, %v8519_v8  ;;  %14447 = vmatpush3.bf16.msra.mxu1 %v14989_v31  ;;  %vm20826_vm9 = vmmov %vm20819_vm1  ;;  %v8383_v31 = vrot.slane %v7879_v29, 5  ;;  %v15002_v8 = vld [vmem:[%s19933_s4 + $0x220] sm:$0xff]  }
 0x632   :  { %14402 = vmatprep.subr.bf16.mxu0 %v14990_v25  ;;  %14448 = vmatprep.subr.bf16.mxu1 %v14991_v61 }
 0x633   :  { %14379 = vmatmul.mubr.msk.bf16.gmra.mxu0 %vm20819_vm1, %v8111_v41  ;;  %v8384_v12 = vor.u32 %v8383_v31, %v8382_v49 }
 0x634   :  { %14403 = vmatpush3.bf16.msra.mxu0 %v14990_v25  ;;  %14406 = vmatprep.mubr.msk.bf16.mxu0 %vm20826_vm9, %v8371_v48  ;;  %vm20829_vm9 = vsmask.f32 3328  ;;  %v15005_v48 = vld [vmem:[%s19933_s4 + $0x248] sm:$0xff]  }
 0x635   :  { %14449 = vmatpush3.bf16.msra.mxu1 %v14991_v61  ;;  %14404 = vmatprep.subr.bf16.mxu0 %v14992_v27  ;;  %v8375_v47 = vsel %vm20829_vm9, %v8370_v57, %v8374_v18  ;;  %vm20831_vm15 = vmmov %vm20829_vm9  ;;  %v8385_v29 = vsel %vm20829_vm9, %v8378_v3, %v8384_v12  ;;  %v15001_v61 = vld [vmem:[%s19933_s4 + $0x228] sm:$0xff]   ;;  %v8878_v57 = vrot.slane %v8862_v20, 1 }
 0x636   :  { %14450 = vmatprep.subr.bf16.mxu1 %v14993_v1  ;;  %v8379_v0 = vsel %vm20831_vm15, %v8374_v18, %v8378_v3  ;;  %vm20834_vm15 = vmmov %vm20819_vm1  ;;  %v15010_v18 = vld [vmem:[%s19933_s4 + $0x268] sm:$0xff]  }
 0x637   :  { %vm20838_vm9 = vmmov %vm20819_vm1 }
 0x638   :  { %14405 = vmatpush3.bf16.msra.mxu0 %v14992_v27  ;;  %14427 = vmatmul.mubr.msk.bf16.gmra.mxu1 %vm20819_vm1, %v8521_v46  ;;  %v19048_v46 = vld [vmem:[%s19933_s4 + $0x298] sm:$0xff]  }
 0x639   :  { %14451 = vmatpush3.bf16.msra.mxu1 %v14993_v1  ;;  %14454 = vmatprep.mubr.msk.bf16.mxu1 %vm20828_vm14, %v18789_v39  ;;  %v14997_v39 = vld [vmem:[%s19933_s4 + $0x1e8] sm:$0xff]   ;;  %vm20832_vm14 = vmmov %vm20819_vm1  ;;  %v15003_v1 = vld [vmem:[%s19933_s4 + $0x258] sm:$0xff]   ;;  %20851 = vst [vmem:[#allocation30_spill] sm:$0xff] %v19048_v46 }
 0x63a   :  { %14430 = vmatprep.subr.bf16.mxu0 %v14994_v6  ;;  %14452 = vmatprep.subr.bf16.mxu1 %v14995_v43 }
 0x63b   :  { %14407 = vmatmul.mubr.msk.bf16.vlgmr.msra.gmra.mxu0 %vm20830_vm3, %v8375_v47  ;;  %vm20833_vm3 = vmmov %vm20819_vm1 }
 0x63c   :  { %14431 = vmatpush3.bf16.msra.mxu0 %v14994_v6  ;;  %14410 = vmatprep.mubr.msk.bf16.mxu0 %vm20819_vm1, %v8379_v0  ;;  %v19039_v6 = vld [vmem:[%s19933_s4 + $0x2b8] sm:$0xff]  }
 0x63d   :  { %14453 = vmatpush3.bf16.msra.mxu1 %v14995_v43  ;;  %14432 = vmatprep.subr.bf16.mxu0 %v14996_v16  ;;  %20850 = vst [vmem:[#allocation39_spill] sm:$0xff] %v19039_v6  ;;  %v15012_v43 = vld [vmem:[%s19933_s4 + $0x260] sm:$0xff]  }
 0x63e   :  { %14478 = vmatprep.subr.bf16.mxu1 %v15006_v22 }
 0x640   :  { %14433 = vmatpush3.bf16.msra.mxu0 %v14996_v16  ;;  %14455 = vmatmul.mubr.msk.bf16.vlgmr.msra.gmra.mxu1 %vm20832_vm14, %v18811_v38  ;;  %v14999_v38 = vld [vmem:[%s19933_s4 + $0x238] sm:$0xff]   ;;  %vm20836_vm14 = vsmask.f32 7424 }
 0x641   :  { %14458 = vmatprep.mubr.msk.bf16.mxu1 %vm20833_vm3, %v18844_v35  ;;  %14434 = vmatprep.subr.bf16.mxu0 %v14997_v39  ;;  %v20835_v35 = vld [vmem:[#allocation27_spill] sm:$0xff]  ;;  %vm20837_vm3 = vmmov %vm20819_vm1 }
 0x642   :  { %v8761_v33 = vsel %vm20836_vm14, %v8760_v30, %v20835_v35  ;;  %vm20841_vm14 = vmmov %vm20837_vm3  ;;  %14479 = vmatpush3.bf16.msra.mxu1 %v15006_v22 }
 0x643   :  { %14411 = vmatmul.mubr.msk.bf16.gmra.mxu0 %vm20834_vm15, %v8385_v29  ;;  %vm20839_vm15 = vmmov %vm20819_vm1  ;;  %14480 = vmatprep.subr.bf16.mxu1 %v15008_v40 }
 0x644   :  { %14435 = vmatpush3.bf16.msra.mxu0 %v14997_v39  ;;  %14438 = vmatprep.mubr.msk.bf16.mxu0 %vm20819_vm1, %v8631_v62  ;;  %vm20840_vm1 = vcmp.ne.s16.totalorder %v20783_v14, 0  ;;  %vm20847_vm8 = vmmov %vm20841_vm14 }
 0x645   :  { %14436 = vmatprep.subr.bf16.mxu0 %v14998_v2  ;;  %v8863_v25 = vsel %vm20840_vm1, %v18751_v19, 0  ;;  %v8634_v19 = vsel %vm20726_vm2, %v18782_v42, 0  ;;  %vm20845_vm1 = vcmp.ne.s16.totalorder %v20803_v11, 0 }
 0x646   :  { %v8879_v28 = vrot.slane %v8863_v25, 1  ;;  %v8865_v9 = vsel %vm20845_vm1, %v18782_v42, 0  ;;  %v15004_v42 = vld [vmem:[%s19933_s4 + $0x250] sm:$0xff]   ;;  %14481 = vmatpush3.bf16.msra.mxu1 %v15008_v40 }
 0x647   :  { %v8883_v21 = vrot.slane %v8865_v9, 1  ;;  %14482 = vmatprep.subr.bf16.mxu1 %v15010_v18 }
 0x648   :  { %14437 = vmatpush3.bf16.msra.mxu0 %v14998_v2  ;;  %14459 = vmatmul.mubr.msk.bf16.gmra.mxu1 %vm20837_vm3, %v8761_v33  ;;  %vm20842_vm3 = vcmask 1046528  }
 0x649   :  { %14462 = vmatprep.subr.bf16.mxu0 %v14999_v38  ;;  %v8880_v59 = vsel %vm20842_vm3, %v8878_v57, %v8879_v28  ;;  %vm20846_vm11 = vmmov %vm20842_vm3 }
 0x64a   :  { %14483 = vmatpush3.bf16.msra.mxu1 %v15010_v18 }
 0x64b   :  { %14439 = vmatmul.mubr.msk.bf16.vlgmr.msra.gmra.mxu0 %vm20838_vm9, %v8632_v17  ;;  %vm20843_vm9 = vcmp.ne.s16.totalorder %v20800_v13, 0  ;;  %14484 = vmatprep.subr.bf16.mxu1 %v15012_v43 }
 0x64c   :  { %14463 = vmatpush3.bf16.msra.mxu0 %v14999_v38  ;;  %14442 = vmatprep.mubr.msk.bf16.mxu0 %vm20839_vm15, %v8633_v32  ;;  %v8864_v36 = vsel %vm20843_vm9, %v18754_v51, 0  ;;  %vm20844_vm15 = vmmov %vm20841_vm14 }
 0x64d   :  { %14464 = vmatprep.subr.bf16.mxu0 %v15000_v7  ;;  %v8881_v27 = vrot.slane %v8864_v36, 1  ;;  %vm20848_vm9 = vmmov %vm20842_vm3 }
 0x64e   :  { %v8885_v51 = vsel %vm20848_vm9, %v8883_v21, %v20835_v35  ;;  %14485 = vmatpush3.bf16.msra.mxu1 %v15012_v43 }
 0x64f   :  { %v8882_v41 = vsel %vm20846_vm11, %v8879_v28, %v8881_v27  ;;  %v8884_v56 = vsel %vm20842_vm3, %v8881_v27, %v8883_v21  ;;  %14510 = vmatprep.subr.bf16.mxu1 %v19048_v46  ;;  %vm20873_vm11 = vmmov %vm20841_vm14 }
 0x650   :  { %14465 = vmatpush3.bf16.msra.mxu0 %v15000_v7  ;;  %vm20875_vm1 = vmmov %vm20873_vm11 }
 0x651   :  { %14466 = vmatprep.subr.bf16.mxu0 %v15001_v61 }
 0x653   :  { %14443 = vmatmul.mubr.msk.bf16.gmra.mxu0 %vm20841_vm14, %v8634_v19 }
 0x654   :  { %14467 = vmatpush3.bf16.msra.mxu0 %v15001_v61  ;;  %14470 = vmatprep.mubr.msk.bf16.mxu0 %vm20844_vm15, %v8880_v59  ;;  %vm20849_vm15 = vmmov %vm20847_vm8 }
 0x655   :  { %14468 = vmatprep.subr.bf16.mxu0 %v15002_v8 }
 0x658   :  { %14469 = vmatpush3.bf16.msra.mxu0 %v15002_v8 }
 0x659   :  { %14494 = vmatprep.subr.bf16.mxu0 %v15003_v1 }
 0x65b   :  { %14471 = vmatmul.mubr.msk.bf16.vlgmr.msra.gmra.mxu0 %vm20841_vm14, %v8882_v41  ;;  %vm20879_vm14 = vsmask.f32 7424 }
 0x65c   :  { %14474 = vmatprep.mubr.msk.bf16.mxu0 %vm20847_vm8, %v8884_v56  ;;  %14495 = vmatpush3.bf16.msra.mxu0 %v15003_v1  ;;  %vm20870_vm8 = vsmask.f32 4352 }
 0x65d   :  { %14496 = vmatprep.subr.bf16.mxu0 %v15004_v42  ;;  %vm20880_vm3 = vmmov %vm20870_vm8 }
 0x65e   :  { %vm20881_vm9 = vmmov %vm20880_vm3 }
 0x660   :  { %14497 = vmatpush3.bf16.msra.mxu0 %v15004_v42 }
 0x661   :  { %14498 = vmatprep.subr.bf16.mxu0 %v15005_v48 }
 0x663   :  { %14475 = vmatmul.mubr.msk.bf16.gmra.mxu0 %vm20849_vm15, %v8885_v51  ;;  %vm20882_vm15 = vmmov %vm20875_vm1 }
 0x664   :  { %14499 = vmatpush3.bf16.msra.mxu0 %v15005_v48 }
 0x665   :  { %14500 = vmatprep.subr.bf16.mxu0 %v15007_v44 }
 0x668   :  { %14501 = vmatpush3.bf16.msra.mxu0 %v15007_v44 }
 0x669   :  { %14526 = vmatprep.subr.bf16.mxu0 %v19039_v6 }
 0x6cf   :  { %v14360_v3 = vpop.f32.mrf.mxu1 }
 0x6d1   :  { %v8054_v63 = vpop.f32.mrf.mxu1 }
 0x6d3   :  { %v14361_v16 = vpop.f32.mrf.mxu1 }
 0x6d5   :  { %v8057_v47 = vpop.f32.mrf.mxu1 }
 0x6d8   :  { %v14364_v0 = vpop.f32.mrf.mxu1 }
 0x6da   :  { %v8070_v49 = vpop.f32.mrf.mxu1 }
 0x6db   :  { %v14344_v31 = vpop.f32.mrf.mxu0 }
 0x6dc   :  { %v19051_v39 = vpop.f32.mrf.mxu1  ;;  %v8063_v11 = vadd.f32 %v14360_v3, %v14344_v31 }
 0x6dd   :  { %v7953_v12 = vpop.f32.mrf.mxu0 }
 0x6de   :  { %v19053_v2 = vpop.f32.mrf.mxu1  ;;  %v8055_v26 = vadd.f32 %v8054_v63, %v7953_v12 }
 0x6df   :  { %v14345_v29 = vpop.f32.mrf.mxu0 }
 0x6e0   :  { %v14392_v62 = vpop.f32.mrf.mxu1  ;;  %v8066_v14 = vadd.f32 %v14361_v16, %v14345_v29 }
 0x6e1   :  { %v7956_v30 = vpop.f32.mrf.mxu0 }
 0x6e2   :  { %v8318_v38 = vpop.f32.mrf.mxu1  ;;  %v8058_v55 = vadd.f32 %v8057_v47, %v7956_v30 }
 0x6e3   :  { %v14348_v33 = vpop.f32.mrf.mxu0 }
 0x6e4   :  { %v14393_v7 = vpop.f32.mrf.mxu1  ;;  %v8079_v6 = vadd.f32 %v14364_v0, %v14348_v33 }
 0x6e5   :  { %v7969_v17 = vpop.f32.mrf.mxu0 }
 0x6e6   :  { %v8321_v32 = vpop.f32.mrf.mxu1  ;;  %v8071_v31 = vadd.f32 %v8070_v49, %v7969_v17 }
 0x6e7   :  { %v14349_v25 = vpop.f32.mrf.mxu0 }
 0x6e8   :  { %v14396_v61 = vpop.f32.mrf.mxu1 }
 0x6e9   :  { %v7972_v20 = vpop.f32.mrf.mxu0 }
 0x6ea   :  { %v19055_v28 = vpop.f32.mrf.mxu1 }
 0x6eb   :  { %v14376_v57 = vpop.f32.mrf.mxu0 }
 0x6ec   :  { %v19057_v8 = vpop.f32.mrf.mxu1  ;;  %v8215_v15 = vadd.f32 %v14376_v57, %v8063_v11 }
 0x6ed   :  { %v8182_v19 = vpop.f32.mrf.mxu0 }
 0x6ee   :  { %v19059_v59 = vpop.f32.mrf.mxu1  ;;  %v8213_v10 = vadd.f32 %v8182_v19, %v8055_v26  ;;  %v8351_v37 = vadd.f32 %v14392_v62, %v8215_v15 }
 0x6ef   :  { %v14377_v36 = vpop.f32.mrf.mxu0 }
 0x6f0   :  { %v14424_v27 = vpop.f32.mrf.mxu1  ;;  %v8216_v50 = vadd.f32 %v14377_v36, %v8066_v14  ;;  %v8349_v53 = vadd.f32 %v8318_v38, %v8213_v10  ;;  %v8082_v14 = vadd.f32 %v19051_v39, %v14349_v25  ;;  %v8074_v10 = vadd.f32 %v19053_v2, %v7972_v20 }
 0x6f1   :  { %v8185_v9 = vpop.f32.mrf.mxu0 }
 0x6f2   :  { %v8592_v21 = vpop.f32.mrf.mxu1  ;;  %v8214_v45 = vadd.f32 %v8185_v9, %v8058_v55  ;;  %v8352_v63 = vadd.f32 %v14393_v7, %v8216_v50 }
 0x6f3   :  { %v14380_v41 = vpop.f32.mrf.mxu0 }
 0x6f4   :  { %v14425_v56 = vpop.f32.mrf.mxu1  ;;  %v8350_v26 = vadd.f32 %v8321_v32, %v8214_v45 }
 0x6f5   :  { %v8198_v51 = vpop.f32.mrf.mxu0 }
 0x6f6   :  { %v8595_v42 = vpop.f32.mrf.mxu1  ;;  %v8217_v11 = vadd.f32 %v8198_v51, %v8071_v31 }
 0x6f7   :  { %v14381_v1 = vpop.f32.mrf.mxu0 }
 0x6f8   :  { %v19061_v40 = vpop.f32.mrf.mxu1  ;;  %v8220_v49 = vadd.f32 %v14381_v1, %v8082_v14 }
 0x6f9   :  { %v8201_v48 = vpop.f32.mrf.mxu0 }
 0x6fa   :  { %v19063_v43 = vpop.f32.mrf.mxu1  ;;  %v8218_v45 = vadd.f32 %v8201_v48, %v8074_v10 }
 0x6fb   :  { %v14408_v22 = vpop.f32.mrf.mxu0 }
 0x6fc   :  { %v19065_v60 = vpop.f32.mrf.mxu1  ;;  %v8489_v5 = vadd.f32 %v14408_v22, %v8351_v37 }
 0x6fd   :  { %v8456_v44 = vpop.f32.mrf.mxu0  ;;  %20852 = vst [vmem:[#allocation41_spill] sm:$0xff] %v19065_v60  ;;  %v8219_v60 = vadd.f32 %v14380_v41, %v8079_v6  ;;  %v8353_v6 = vadd.f32 %v19055_v28, %v8217_v11 }
 0x6fe   :  { %v19067_v13 = vpop.f32.mrf.mxu1  ;;  %v8625_v57 = vadd.f32 %v14424_v27, %v8489_v5 }
 0x6ff   :  { %v14409_v18 = vpop.f32.mrf.mxu0  ;;  %20853 = vst [vmem:[#allocation2_spill] sm:$0xff] %v19067_v13  ;;  %v8355_v0 = vadd.f32 %v14396_v61, %v8219_v60  ;;  %v8356_v60 = vadd.f32 %v19057_v8, %v8220_v49 }
 0x700   :  { %v14456_v58 = vpop.f32.mrf.mxu1  ;;  %v8490_v16 = vadd.f32 %v14409_v18, %v8352_v63 }
 0x701   :  { %v8459_v35 = vpop.f32.mrf.mxu0 }
 0x702   :  { %v8823_v3 = vpop.f32.mrf.mxu1  ;;  %v8488_v47 = vadd.f32 %v8459_v35, %v8350_v26  ;;  %v8626_v38 = vadd.f32 %v14425_v56, %v8490_v16 }
 0x703   :  { %v14412_v23 = vpop.f32.mrf.mxu0 }
 0x704   :  { %v14457_v29 = vpop.f32.mrf.mxu1  ;;  %v8493_v50 = vadd.f32 %v14412_v23, %v8355_v0  ;;  %v8624_v39 = vadd.f32 %v8595_v42, %v8488_v47  ;;  %v20858_v48 = vld [vmem:[#allocation41_spill] sm:$0xff] }
 0x705   :  { %v8472_v34 = vpop.f32.mrf.mxu0 }
 0x706   :  { %v8826_v62 = vpop.f32.mrf.mxu1  ;;  %v8491_v33 = vadd.f32 %v8472_v34, %v8353_v6  ;;  %v8629_v23 = vadd.f32 %v19061_v40, %v8493_v50  ;;  %v8354_v34 = vadd.f32 %v19059_v59, %v8218_v45  ;;  %v20860_v11 = vld [vmem:[#allocation2_spill] sm:$0xff] }
 0x707   :  { %v14413_v4 = vpop.f32.mrf.mxu0 }
 0x708   :  { %v8494_v25 = vadd.f32 %v14413_v4, %v8356_v60 }
 0x709   :  { %v19069_v24 = vpop.f32.mrf.mxu0 }
 0x70a   :  { %20854 = vst [vmem:[#allocation40_spill] sm:$0xff] %v19069_v24  ;;  %v8487_v24 = vadd.f32 %v8456_v44, %v8349_v53  ;;  %v8630_v22 = vadd.f32 %v20858_v48, %v8494_v25 }
 0x70b   :  { %v14440_v46 = vpop.f32.mrf.mxu0 }
 0x70c   :  { %v8746_v55 = vadd.f32 %v14440_v46, %v8625_v57  ;;  %v8623_v37 = vadd.f32 %v8592_v21, %v8487_v24  ;;  %v19078_v24 = vld [vmem:[%s19938_s5 + $0x1] ss:$0 sm:$0xff]  ;;  %v14460_v46 = vpop.f32.mrf.mxu1 }
 0x70d   :  { %v8713_v52 = vpop.f32.mrf.mxu0  ;;  %v20857_v21 = vld [vmem:[#allocation34_spill] sm:$0xff] }
 0x70e   :  { %v8744_v30 = vadd.f32 %v8713_v52, %v8623_v37  ;;  %v8856_v17 = vadd.f32 %v14456_v58, %v8746_v55  ;;  %v20855_v58 = vld [vmem:[#allocation35_spill] sm:$0xff]  ;;  %v6544_v41 = vunpack.c.l.bf16 %v20857_v21  ;;  %v8839_v51 = vpop.f32.mrf.mxu1  ;;  %v6545_v40 = vunpack.c.h.bf16 %v20857_v21 }
 0x70f   :  { %v14441_v54 = vpop.f32.mrf.mxu0  ;;  %v6546_v61 = vunpack.c.l.bf16 %v20855_v58  ;;  %v6547_v59 = vunpack.c.h.bf16 %v20855_v58 }
 0x710   :  { %v8747_v7 = vadd.f32 %v14441_v54, %v8626_v38  ;;  %v8854_v32 = vadd.f32 %v8823_v3, %v8744_v30  ;;  %v8627_v54 = vadd.f32 %v19063_v43, %v8491_v33 }
 0x711   :  { %v8716_v13 = vpop.f32.mrf.mxu0  ;;  %v20856_v27 = vld [vmem:[#allocation40_spill] sm:$0xff] }
 0x712   :  { %v8745_v2 = vadd.f32 %v8716_v13, %v8624_v39  ;;  %v8857_v36 = vadd.f32 %v14457_v29, %v8747_v7  ;;  %v8492_v9 = vadd.f32 %v20856_v27, %v8354_v34  ;;  %v14461_v29 = vpop.f32.mrf.mxu1  ;;  %v20865_v39 = vld [vmem:[#allocation36_spill] sm:$0xff] }
 0x713   :  { %v14444_v12 = vpop.f32.mrf.mxu0  ;;  %v6549_v58 = vunpack.c.h.bf16 %v20865_v39 }
 0x714   :  { %v8750_v28 = vadd.f32 %v14444_v12, %v8629_v23  ;;  %v8855_v42 = vadd.f32 %v8826_v62, %v8745_v2  ;;  %v8628_v12 = vadd.f32 %v20860_v11, %v8492_v9  ;;  %v8842_v45 = vpop.f32.mrf.mxu1  ;;  %v15011_v11 = vld [vmem:[%s19933_s4 + $0x2b0] sm:$0xff]  }
 0x715   :  { %v8729_v15 = vpop.f32.mrf.mxu0 }
 0x716   :  { %v8748_v13 = vadd.f32 %v8729_v15, %v8627_v54  ;;  %v8860_v31 = vadd.f32 %v14460_v46, %v8750_v28 }
 0x717   :  { %v14445_v53 = vpop.f32.mrf.mxu0 }
 0x718   :  { %v8751_v63 = vadd.f32 %v14445_v53, %v8630_v22  ;;  %v8858_v26 = vadd.f32 %v8839_v51, %v8748_v13  ;;  %v20864_v53 = vld [vmem:[#allocation45_spill] sm:$0xff] }
 0x719   :  { %v8732_v5 = vpop.f32.mrf.mxu0  ;;  %v6550_v50 = vunpack.c.l.bf16 %v20864_v53 }
 0x71a   :  { %v8749_v0 = vadd.f32 %v8732_v5, %v8628_v12  ;;  %v8861_v30 = vadd.f32 %v14461_v29, %v8751_v63 }
 0x71b   :  { %v14472_v35 = vpop.f32.mrf.mxu0 }
 0x71c   :  { %v8989_v52 = vadd.f32 %v14472_v35, %v8856_v17  ;;  %v6548_v17 = vunpack.c.l.bf16 %v20865_v39  ;;  %v6551_v35 = vunpack.c.h.bf16 %v20864_v53  ;;  %v8859_v2 = vadd.f32 %v8842_v45, %v8749_v0 }
 0x71d   :  { %v8956_v20 = vpop.f32.mrf.mxu0 }
 0x71e   :  { %v9004_v8 = vadd.f32 %v19078_v24, %v8989_v52  ;;  %v8987_v19 = vadd.f32 %v8956_v20, %v8854_v32 }
 0x71f   :  { %v14473_v56 = vpop.f32.mrf.mxu0 }
 0x720   :  { %v9002_v4 = vadd.f32 %v19078_v24, %v8987_v19  ;;  %v8990_v1 = vadd.f32 %v14473_v56, %v8857_v36  ;;  %v19091_v18 = vadd.f32 %v9004_v8, %v6546_v61 }
 0x721   :  { %v8959_v44 = vpop.f32.mrf.mxu0 }
 0x722   :  { %20859 = vst [vmem:[#allocation42_spill] sm:$0xff] %v19091_v18  ;;  %v9005_v43 = vadd.f32 %v19078_v24, %v8990_v1  ;;  %v8988_v3 = vadd.f32 %v8959_v44, %v8855_v42  ;;  %v19095_v57 = vadd.f32 %v9002_v4, %v6544_v41  ;;  %v20140_v37 = vmax.f32 %v19091_v18, 0.0 }
 0x723   :  { %v14476_v16 = vpop.f32.mrf.mxu0 }
 0x724   :  { %20861 = vst [vmem:[#allocation43_spill] sm:$0xff] %v19095_v57  ;;  %v19097_v14 = vadd.f32 %v9005_v43, %v6547_v59  ;;  %v9003_v15 = vadd.f32 %v19078_v24, %v8988_v3  ;;  %v8993_v47 = vadd.f32 %v14476_v16, %v8860_v31  ;;  %v20142_v33 = vmax.f32 %v19095_v57, 0.0 }
 0x725   :  { %v8972_v55 = vpop.f32.mrf.mxu0 }
 0x726   :  { %20862 = vst [vmem:[#allocation46_spill] sm:$0xff] %v19097_v14  ;;  %v20141_v10 = vmax.f32 %v19097_v14, 0.0  ;;  %v19102_v49 = vadd.f32 %v9003_v15, %v6545_v40  ;;  %v8991_v6 = vadd.f32 %v8972_v55, %v8858_v26  ;;  %v9008_v62 = vadd.f32 %v19078_v24, %v8993_v47 }
 0x727   :  { %v14477_v38 = vpop.f32.mrf.mxu0 }
 0x728   :  { %20863 = vst [vmem:[#allocation48_spill] sm:$0xff] %v19102_v49  ;;  %v9027_v5 = vpack.c.bf16 %v20141_v10, %v20140_v37  ;;  %v20139_v7 = vmax.f32 %v19102_v49, 0.0  ;;  %v9006_v60 = vadd.f32 %v19078_v24, %v8991_v6  ;;  %v8994_v46 = vadd.f32 %v14477_v38, %v8861_v30  ;;  %v20876_v6 = vld [vmem:[#allocation39_spill] sm:$0xff] }
 0x729   :  { %v8975_v23 = vpop.f32.mrf.mxu0  ;;  %v19119_v34 = vadd.f32 %v9008_v62, %v6550_v50  ;;  %v15013_v38 = vld [vmem:[%s19933_s4 + $0x2a8] sm:$0xff]  }
 0x72a   :  { %v9039_v52 = vshrl.u32 %v9027_v5, 16  ;;  %v9042_v32 = vshll.u32 %v9027_v5, 16  ;;  %v9026_v25 = vpack.c.bf16 %v20139_v7, %v20142_v33  ;;  %v9009_v54 = vadd.f32 %v19078_v24, %v8994_v46 }
 0x72b   :  { %20866 = vst [vmem:[#allocation51_spill] sm:$0xff] %v19119_v34  ;;  %v8992_v61 = vadd.f32 %v8975_v23, %v8859_v2  ;;  %v19123_v36 = vadd.f32 %v9006_v60, %v6548_v17  ;;  %v20136_v41 = vmax.f32 %v19119_v34, 0.0 }
 0x72c   :  { %v9041_v20 = vrot.slane %v9039_v52, 3  ;;  %v9044_v28 = vrot.slane %v9042_v32, 4  ;;  %v9031_v8 = vshrl.u32 %v9026_v25, 16  ;;  %v9034_v19 = vshll.u32 %v9026_v25, 16 }
 0x72d   :  { %20867 = vst [vmem:[#allocation29_spill] sm:$0xff] %v19123_v36  ;;  %v19125_v27 = vadd.f32 %v9009_v54, %v6551_v35  ;;  %v9007_v9 = vadd.f32 %v19078_v24, %v8992_v61  ;;  %v20137_v1 = vmax.f32 %v19123_v36, 0.0 }
 0x72e   :  { %v9033_v13 = vrot.slane %v9031_v8, 3  ;;  %v9036_v21 = vrot.slane %v9034_v19, 4  ;;  %v9045_v4 = vor.u32 %v9044_v28, %v9041_v20 }
 0x72f   :  { %20868 = vst [vmem:[#allocation3_spill] sm:$0xff] %v19125_v27  ;;  %v20135_v56 = vmax.f32 %v19125_v27, 0.0  ;;  %v19130_v51 = vadd.f32 %v9007_v9, %v6549_v58  ;;  %v15015_v9 = vld [vmem:[%s19933_s4 + $0x2a0] sm:$0xff]  }
 0x730   :  { %v9037_v59 = vor.u32 %v9036_v21, %v9033_v13 }
 0x731   :  { %20869 = vst [vmem:[#allocation6_spill] sm:$0xff] %v19130_v51  ;;  %v9029_v42 = vpack.c.bf16 %v20135_v56, %v20136_v41  ;;  %v20134_v48 = vmax.f32 %v19130_v51, 0.0 }
 0x732   :  { %v19139_v24 = vsel %vm20870_vm8, %v9037_v59, %v9045_v4  ;;  %v19143_v40 = vsel %vm15514_vm12, 0, %v9037_v59  ;;  %vm20885_vm8 = vmmov %vm20875_vm1 }
 0x733   :  { %v9057_v44 = vshrl.u32 %v9029_v42, 16  ;;  %v9060_v43 = vshll.u32 %v9029_v42, 16  ;;  %v9028_v3 = vpack.c.bf16 %v20134_v48, %v20137_v1  ;;  %v9072_v63 = vsel %vm15518_vm13, %v19143_v40, 0 }
 0x734   :  { %14502 = vmatprep.mubr.msk.bf16.mxu0 %vm20873_vm11, %v9072_v63  ;;  %v9073_v16 = vsel %vm15710_vm5, %v19139_v24, 0  ;;  %v9095_v26 = vshll.u32 %v19143_v40, 16  ;;  %v9100_v29 = vshll.u32 %v19139_v24, 16  ;;  %v9093_v53 = vshrl.u32 %v19143_v40, 16  ;;  %vm20886_vm11 = vmmov %vm20875_vm1 }
 0x735   :  { %v9059_v15 = vrot.slane %v9057_v44, 3  ;;  %v9062_v47 = vrot.slane %v9060_v43, 4  ;;  %v9048_v0 = vshrl.u32 %v9028_v3, 16  ;;  %v9051_v55 = vshll.u32 %v9028_v3, 16  ;;  %14503 = vmatmul.mubr.msk.bf16.vlgmr.msra.gmra.mxu0 %vm20875_vm1, %v9073_v16 }
 0x736   :  { %14527 = vmatpush3.bf16.msra.mxu0 %v20876_v6  ;;  %v9097_v50 = vrot.slane %v9095_v26, 1  ;;  %v9466_v5 = vsel %vm15973_vm0, %v19143_v40, 0  ;;  %v9467_v17 = vsel %vm15984_vm4, %v19139_v24, 0  ;;  %v9102_v35 = vrot.slane %v9100_v29, 1 }
 0x737   :  { %v9050_v62 = vrot.slane %v9048_v0, 3  ;;  %v9053_v30 = vrot.slane %v9051_v55, 4  ;;  %14528 = vmatprep.subr.bf16.mxu0 %v15011_v11  ;;  %v9063_v46 = vor.u32 %v9062_v47, %v9059_v15  ;;  %v9484_v52 = vrot.slane %v9466_v5, 4  ;;  %v15016_v0 = vld [vmem:[%s19933_s4 + $0x290] sm:$0xff]   ;;  %v15017_v55 = vld [vmem:[%s19933_s4 + $0x2f8] sm:$0xff]   ;;  %v20897_v5 = vld [vmem:[#allocation30_spill] sm:$0xff] }
 0x738   :  { %v9098_v60 = vor.u32 %v9097_v50, %v9093_v53  ;;  %v9485_v32 = vrot.slane %v9467_v17, 4  ;;  %v9104_v58 = vshrl.u32 %v19139_v24, 16  ;;  %vm20887_vm1 = vcmask 1043456   ;;  %v20893_v50 = vld [vmem:[#allocation9_spill] sm:$0xff] }
 0x739   :  { %v9054_v2 = vor.u32 %v9053_v30, %v9050_v62  ;;  %v19212_v3 = vsel %vm15514_vm12, %v9063_v46, 0  ;;  %v20895_v30 = vld [vmem:[#allocation10_spill] sm:$0xff] }
 0x73a   :  { %v9103_v23 = vsel %vm20879_vm14, %v9098_v60, %v9102_v35  ;;  %14529 = vmatpush3.bf16.msra.mxu0 %v15011_v11  ;;  %v9106_v13 = vor.u32 %v9104_v58, %v9102_v35  ;;  %vm20889_vm14 = vmmov %vm20885_vm8 }
 0x73b   :  { %v19181_v25 = vsel %vm20880_vm3, %v9045_v4, %v9054_v2  ;;  %v19184_v54 = vsel %vm20881_vm9, %v9054_v2, %v9063_v46  ;;  %14486 = vmatprep.mubr.msk.bf16.mxu1 %vm20882_vm15, %v9103_v23  ;;  %14530 = vmatprep.subr.bf16.mxu0 %v15013_v38  ;;  %v9486_v4 = vsel %vm20887_vm1, %v9484_v52, %v9485_v32  ;;  %vm20891_vm3 = vsmask.f32 7424  ;;  %vm20892_vm9 = vmmov %vm20885_vm8  ;;  %v15018_v23 = vld [vmem:[%s19933_s4 + $0x288] sm:$0xff]   ;;  %v15019_v52 = vld [vmem:[%s19933_s4 + $0x2f0] sm:$0xff]  }
 0x73c   :  { %v9074_v20 = vsel %vm20722_vm7, %v19181_v25, 0  ;;  %v9075_v8 = vsel %vm20726_vm2, %v19184_v54, 0  ;;  %v9108_v19 = vshll.u32 %v19181_v25, 16  ;;  %v9116_v21 = vshll.u32 %v19184_v54, 16  ;;  %vm20899_vm1 = vmmov %vm20892_vm9 }
 0x73d   :  { %14506 = vmatprep.mubr.msk.bf16.mxu0 %vm20885_vm8, %v9074_v20  ;;  %v9112_v42 = vshrl.u32 %v19181_v25, 16  ;;  %v9468_v43 = vsel %vm16005_vm10, %v19181_v25, 0  ;;  %v9469_v11 = vsel %vm20653_vm6, %v19184_v54, 0  ;;  %vm20894_vm15 = vnez %v20893_v50 }
 0x73e   :  { %14507 = vmatmul.mubr.msk.bf16.gmra.mxu0 %vm20886_vm11, %v9075_v8  ;;  %v9110_v59 = vrot.slane %v9108_v19, 1  ;;  %v9118_v47 = vrot.slane %v9116_v21, 1  ;;  %v9487_v6 = vrot.slane %v9468_v43, 4  ;;  %v9330_v62 = vsel %vm20894_vm15, %v19143_v40, 0  ;;  %vm20898_vm11 = vmmov %vm20891_vm3 }
 0x73f   :  { %14531 = vmatpush3.bf16.msra.mxu0 %v15013_v38  ;;  %14534 = vmatprep.mubr.msk.bf16.mxu0 %vm20889_vm14, %v9486_v4  ;;  %vm20896_vm8 = vcmp.ne.s16.totalorder %v20895_v30, 0  ;;  %v9120_v60 = vshrl.u32 %v19184_v54, 16  ;;  %v9489_v35 = vrot.slane %v9469_v11, 4  ;;  %v9124_v46 = vshll.u32 %v19212_v3, 16  ;;  %v20906_v11 = vld [vmem:[#allocation23_spill] sm:$0xff] }
 0x740   :  { %v19219_v16 = vsel %vm20891_vm3, %v9106_v13, %v9110_v59  ;;  %14532 = vmatprep.subr.bf16.mxu0 %v15015_v9  ;;  %v9114_v15 = vor.u32 %v9112_v42, %v9110_v59  ;;  %v9331_v38 = vsel %vm20896_vm8, %v19139_v24, 0  ;;  %vm20900_vm14 = vcmask 1043456   ;;  %vm20901_vm3 = vmmov %vm20899_vm1  ;;  %v15020_v59 = vld [vmem:[%s19933_s4 + $0x280] sm:$0xff]  }
 0x741   :  { %14487 = vmatmul.mubr.msk.bf16.vlgmr.msra.gmra.mxu1 %vm20892_vm9, %v19219_v16  ;;  %v9122_v2 = vor.u32 %v9120_v60, %v9118_v47  ;;  %v9488_v20 = vsel %vm20900_vm14, %v9485_v32, %v9487_v6  ;;  %v9348_v8 = vrot.slane %v9330_v62, 1  ;;  %v9349_v13 = vrot.slane %v9331_v38, 1  ;;  %vm20902_vm9 = vmmov %vm20900_vm14  ;;  %v20904_v32 = vld [vmem:[#allocation22_spill] sm:$0xff] }
 0x742   :  { %14511 = vmatpush3.bf16.msra.mxu1 %v20897_v5  ;;  %v19241_v17 = vsel %vm20898_vm11, %v9114_v15, %v9118_v47  ;;  %v19260_v4 = vrot.slane %v9124_v46, 1  ;;  %vm20903_vm8 = vmmov %vm20899_vm1  ;;  %vm20905_vm11 = vnez %v20904_v32  ;;  %vm20908_vm14 = vsmask.f32 7424  ;;  %v20913_v38 = vld [vmem:[#allocation14_spill] sm:$0xff] }
 0x743   :  { %14490 = vmatprep.mubr.msk.bf16.mxu1 %vm20899_vm1, %v19241_v17  ;;  %14533 = vmatpush3.bf16.msra.mxu0 %v15015_v9  ;;  %v9490_v9 = vsel %vm20902_vm9, %v9487_v6, %v9489_v35  ;;  %v9740_v43 = vsel %vm20905_vm11, %v19143_v40, 0  ;;  %vm20907_vm1 = vcmp.ne.s16.totalorder %v20906_v11, 0  ;;  %v15021_v6 = vld [vmem:[%s19933_s4 + $0x2e8] sm:$0xff]   ;;  %vm20911_vm9 = vmmov %vm20903_vm8  ;;  %vm20926_vm11 = vcmask 1046528   ;;  %v15027_v40 = vld [vmem:[%s19933_s4 + $0x330] sm:$0xff]  }
 0x744   :  { %14512 = vmatprep.subr.bf16.mxu1 %v15016_v0  ;;  %14558 = vmatprep.subr.bf16.mxu0 %v15017_v55  ;;  %v9741_v15 = vsel %vm20907_vm1, %v19139_v24, 0  ;;  %v19274_v47 = vsel %vm20908_vm14, %v9122_v2, %v19260_v4  ;;  %vm20914_vm1 = vcmp.ne.s16.totalorder %v20913_v38, 0  ;;  %vm20915_vm14 = vmmov %vm20911_vm9  ;;  %v9758_v2 = vrot.slane %v9740_v43, 5 }
 0x745   :  { %v9332_v5 = vsel %vm20914_vm1, %v19181_v25, 0  ;;  %vm20922_vm1 = vcmask 1042432  }
 0x746   :  { %14513 = vmatpush3.bf16.msra.mxu1 %v15016_v0  ;;  %14535 = vmatmul.mubr.msk.bf16.vlgmr.msra.gmra.mxu0 %vm20901_vm3, %v9488_v20  ;;  %v20909_v0 = vld [vmem:[#allocation21_spill] sm:$0xff]  ;;  %v9759_v20 = vrot.slane %v9741_v15, 5  ;;  %v9351_v41 = vrot.slane %v9332_v5, 1 }
 0x747   :  { %14538 = vmatprep.mubr.msk.bf16.mxu0 %vm20903_vm8, %v9490_v9  ;;  %14559 = vmatpush3.bf16.msra.mxu0 %v15017_v55  ;;  %vm20910_vm3 = vnez %v20909_v0  ;;  %vm20912_vm8 = vcmask 1046528   ;;  %v20916_v9 = vld [vmem:[#allocation18_spill] sm:$0xff]  ;;  %v20924_v5 = vld [vmem:[#allocation25_spill] sm:$0xff] }
 0x748   :  { %14514 = vmatprep.subr.bf16.mxu1 %v15018_v23  ;;  %14560 = vmatprep.subr.bf16.mxu0 %v15019_v52  ;;  %v9470_v55 = vsel %vm20910_vm3, %v19212_v3, 0  ;;  %v9350_v62 = vsel %vm20912_vm8, %v9348_v8, %v9349_v13  ;;  %vm20917_vm3 = vcmp.ne.s16.totalorder %v20916_v9, 0  ;;  %v15022_v8 = vld [vmem:[%s19933_s4 + $0x2d8] sm:$0xff]  }
 0x749   :  { %14491 = vmatmul.mubr.msk.bf16.gmra.mxu1 %vm20911_vm9, %v19274_v47  ;;  %v9333_v48 = vsel %vm20917_vm3, %v19184_v54, 0  ;;  %v9491_v56 = vrot.slane %v9470_v55, 4  ;;  %vm20918_vm9 = vcmask 1043456   ;;  %vm20921_vm3 = vmmov %vm20915_vm14  ;;  %v15024_v55 = vld [vmem:[%s19933_s4 + $0x2d0] sm:$0xff]  }
 0x74a   :  { %14515 = vmatpush3.bf16.msra.mxu1 %v15018_v23  ;;  %14518 = vmatprep.mubr.msk.bf16.mxu1 %vm20915_vm14, %v9350_v62  ;;  %v15023_v23 = vld [vmem:[%s19933_s4 + $0x2e0] sm:$0xff]   ;;  %v9353_v15 = vrot.slane %v9333_v48, 1  ;;  %v20919_v62 = vld [vmem:[#allocation24_spill] sm:$0xff]  ;;  %vm20923_vm14 = vmmov %vm20921_vm3  ;;  %v9352_v48 = vsel %vm20926_vm11, %v9349_v13, %v9351_v41 }
 0x74b   :  { %14561 = vmatpush3.bf16.msra.mxu0 %v15019_v52  ;;  %14516 = vmatprep.subr.bf16.mxu1 %v15020_v59  ;;  %v9492_v43 = vsel %vm20918_vm9, %v9489_v35, %v9491_v56  ;;  %vm20920_vm8 = vcmp.ne.s16.totalorder %v20919_v62, 0  ;;  %v9760_v52 = vsel %vm20922_vm1, %v9758_v2, %v9759_v20  ;;  %vm20925_vm9 = vcmp.ne.s16.totalorder %v20924_v5, 0 }
 0x74c   :  { %14562 = vmatprep.subr.bf16.mxu0 %v15021_v6  ;;  %v9742_v1 = vsel %vm20920_vm8, %v19181_v25, 0  ;;  %v9743_v56 = vsel %vm20925_vm9, %v19184_v54, 0  ;;  %vm20927_vm8 = vmmov %vm20921_vm3 }
 0x74d   :  { %v9761_v35 = vrot.slane %v9742_v1, 5  ;;  %v9614_v1 = vrot.slane %v9100_v29, 5  ;;  %v9763_v13 = vrot.slane %v9743_v56, 5  ;;  %vm20933_vm9 = vmmov %vm20927_vm8  ;;  %v15028_v56 = vld [vmem:[%s19933_s4 + $0x2c0] sm:$0xff]  }
 0x74e   :  { %14517 = vmatpush3.bf16.msra.mxu1 %v15020_v59  ;;  %14539 = vmatmul.mubr.msk.bf16.gmra.mxu0 %vm20921_vm3, %v9492_v43  ;;  %v15025_v59 = vld [vmem:[%s19933_s4 + $0x338] sm:$0xff]   ;;  %vm20928_vm3 = vmmov %vm20926_vm11  ;;  %v9611_v43 = vrot.slane %v9095_v26, 5 }
 0x74f   :  { %14563 = vmatpush3.bf16.msra.mxu0 %v15021_v6  ;;  %14566 = vmatprep.mubr.msk.bf16.mxu0 %vm20923_vm14, %v9760_v52  ;;  %v9610_v6 = vrot.slane %v9093_v53, 4  ;;  %v9354_v2 = vsel %vm20928_vm3, %v9351_v41, %v9353_v15  ;;  %v9613_v52 = vrot.slane %v9104_v58, 4  ;;  %vm20929_vm11 = vmmov %vm20927_vm8  ;;  %v20930_v53 = vld [vmem:[#allocation19_spill] sm:$0xff]  ;;  %vm20932_vm14 = vcmask 1042432  }
 0x750   :  { %14542 = vmatprep.subr.bf16.mxu1 %v15022_v8  ;;  %14564 = vmatprep.subr.bf16.mxu0 %v15023_v23  ;;  %vm20931_vm1 = vnez %v20930_v53  ;;  %v15026_v41 = vld [vmem:[%s19933_s4 + $0x2c8] sm:$0xff]   ;;  %v9762_v26 = vsel %vm20932_vm14, %v9759_v20, %v9761_v35  ;;  %vm20935_vm3 = vmmov %vm20933_vm9  ;;  %v9618_v20 = vrot.slane %v9108_v19, 5  ;;  %v9622_v19 = vrot.slane %v9116_v21, 5 }
 0x751   :  { %14519 = vmatmul.mubr.msk.bf16.vlgmr.msra.gmra.mxu1 %vm20927_vm8, %v9352_v48  ;;  %v9334_v48 = vsel %vm20931_vm1, %v19212_v3, 0  ;;  %v9612_v29 = vor.u32 %v9611_v43, %v9610_v6  ;;  %v9615_v58 = vor.u32 %v9614_v1, %v9613_v52  ;;  %vm20934_vm8 = vmmov %vm20932_vm14  ;;  %v15030_v1 = vld [vmem:[%s19933_s4 + $0x318] sm:$0xff]   ;;  %v9625_v21 = vshrl.u32 %v19212_v3, 16 }
 0x752   :  { %14543 = vmatpush3.bf16.msra.mxu1 %v15022_v8  ;;  %14522 = vmatprep.mubr.msk.bf16.mxu1 %vm20929_vm11, %v9354_v2  ;;  %v9764_v8 = vsel %vm20934_vm8, %v9761_v35, %v9763_v13  ;;  %v9617_v2 = vrot.slane %v9112_v42, 4  ;;  %vm20936_vm11 = vcmask 1046528   ;;  %v20937_v35 = vld [vmem:[#allocation26_spill] sm:$0xff]  ;;  %vm20940_vm8 = vsmask.f32 3328 }
 0x753   :  { %14565 = vmatpush3.bf16.msra.mxu0 %v15023_v23  ;;  %14544 = vmatprep.subr.bf16.mxu1 %v15024_v55  ;;  %v9355_v23 = vrot.slane %v9334_v48, 1  ;;  %vm20938_vm14 = vnez %v20937_v35  ;;  %v9616_v43 = vsel %vm20940_vm8, %v9612_v29, %v9615_v58  ;;  %v9621_v42 = vrot.slane %v9120_v60, 4  ;;  %v15031_v48 = vld [vmem:[%s19933_s4 + $0x320] sm:$0xff]   ;;  %vm20943_vm8 = vmmov %vm20935_vm3 }
 0x754   :  { %14590 = vmatprep.subr.bf16.mxu0 %v15025_v59  ;;  %v9744_v6 = vsel %vm20938_vm14, %v19212_v3, 0  ;;  %v9619_v52 = vor.u32 %v9618_v20, %v9617_v2  ;;  %vm20945_vm14 = vmmov %vm20943_vm8  ;;  %v9627_v29 = vrot.slane %v9625_v21, 4  ;;  %v10005_v2 = vor.u32 %v9625_v21, %v19260_v4 }
 0x755   :  { %v9877_v4 = vsel %vm15710_vm5, %v19181_v25, 0 }
 0x756   :  { %14545 = vmatpush3.bf16.msra.mxu1 %v15024_v55  ;;  %14567 = vmatmul.mubr.msk.bf16.vlgmr.msra.gmra.mxu0 %vm20933_vm9, %v9762_v26  ;;  %v9356_v55 = vsel %vm20936_vm11, %v9353_v15, %v9355_v23  ;;  %vm20939_vm9 = vmmov %vm20935_vm3  ;;  %v9765_v15 = vrot.slane %v9744_v6, 5  ;;  %vm20941_vm11 = vcmask 1042432   ;;  %v9623_v26 = vor.u32 %v9622_v19, %v9621_v42  ;;  %v15034_v23 = vld [vmem:[%s19933_s4 + $0x300] sm:$0xff]  }
 0x757   :  { %14570 = vmatprep.mubr.msk.bf16.mxu0 %vm20935_vm3, %v9764_v8  ;;  %14591 = vmatpush3.bf16.msra.mxu0 %v15025_v59  ;;  %v15029_v59 = vld [vmem:[%s19933_s4 + $0x328] sm:$0xff]   ;;  %v9628_v8 = vrot.slane %v9124_v46, 5  ;;  %v9878_v6 = vsel %vm20722_vm7, %v19184_v54, 0  ;;  %v10107_v42 = vsel %vm20894_vm15, %v19139_v24, 0 }
 0x758   :  { %14546 = vmatprep.subr.bf16.mxu1 %v15026_v41  ;;  %14592 = vmatprep.subr.bf16.mxu0 %v15027_v40  ;;  %v9766_v60 = vsel %vm20941_vm11, %v9763_v13, %v9765_v15  ;;  %v10123_v15 = vrot.slane %v10107_v42, 1 }
 0x759   :  { %14523 = vmatmul.mubr.msk.bf16.gmra.mxu1 %vm20939_vm9, %v9356_v55  ;;  %vm20942_vm9 = vmmov %vm20935_vm3  ;;  %v15036_v55 = vld [vmem:[%s19933_s4 + $0x350] sm:$0xff]  }
 0x75a   :  { %14547 = vmatpush3.bf16.msra.mxu1 %v15026_v41  ;;  %14550 = vmatprep.mubr.msk.bf16.mxu1 %vm20935_vm3, %v9616_v43  ;;  %v15032_v41 = vld [vmem:[%s19933_s4 + $0x310] sm:$0xff]   ;;  %vm20944_vm3 = vsmask.f32 3328  ;;  %v15037_v43 = vld [vmem:[%s19933_s4 + $0x348] sm:$0xff]  }
 0x75b   :  { %14593 = vmatpush3.bf16.msra.mxu0 %v15027_v40  ;;  %14548 = vmatprep.subr.bf16.mxu1 %v15028_v56  ;;  %v9620_v40 = vsel %vm20944_vm3, %v9615_v58, %v9619_v52  ;;  %vm20946_vm11 = vmmov %vm20944_vm3  ;;  %v9629_v58 = vor.u32 %v9628_v8, %v9627_v29  ;;  %v15042_v29 = vld [vmem:[%s19933_s4 + $0x398] sm:$0xff]   ;;  %v15044_v8 = vld [vmem:[%s19933_s4 + $0x390] sm:$0xff]  }
 0x75c   :  { %14594 = vmatprep.subr.bf16.mxu0 %v15029_v59  ;;  %v9624_v13 = vsel %vm20946_vm11, %v9619_v52, %v9623_v26  ;;  %vm20949_vm11 = vmmov %vm20943_vm8  ;;  %v15038_v52 = vld [vmem:[%s19933_s4 + $0x340] sm:$0xff]  }
 0x75d   :  { %v9630_v46 = vsel %vm20944_vm3, %v9623_v26, %v9629_v58  ;;  %v15046_v58 = vld [vmem:[%s19933_s4 + $0x388] sm:$0xff]  }
 0x75e   :  { %14549 = vmatpush3.bf16.msra.mxu1 %v15028_v56  ;;  %14571 = vmatmul.mubr.msk.bf16.gmra.mxu0 %vm20942_vm9, %v9766_v60  ;;  %vm20947_vm9 = vmmov %vm20943_vm8  ;;  %v9876_v56 = vsel %vm15518_vm13, %v19139_v24, 0 }
 0x75f   :  { %14595 = vmatpush3.bf16.msra.mxu0 %v15029_v59  ;;  %14598 = vmatprep.mubr.msk.bf16.mxu0 %vm20943_vm8, %v19219_v16  ;;  %v15033_v16 = vld [vmem:[%s19933_s4 + $0x308] sm:$0xff]  }
 0x760   :  { %14574 = vmatprep.subr.bf16.mxu1 %v15030_v1  ;;  %14596 = vmatprep.subr.bf16.mxu0 %v15031_v48 }
 0x761   :  { %14551 = vmatmul.mubr.msk.bf16.vlgmr.msra.gmra.mxu1 %vm20945_vm14, %v9620_v40  ;;  %vm20948_vm14 = vmmov %vm20943_vm8  ;;  %v15039_v40 = vld [vmem:[%s19933_s4 + $0x378] sm:$0xff]  }
 0x762   :  { %14575 = vmatpush3.bf16.msra.mxu1 %v15030_v1  ;;  %14554 = vmatprep.mubr.msk.bf16.mxu1 %vm20947_vm9, %v9624_v13  ;;  %vm20950_vm9 = vmmov %vm20943_vm8  ;;  %v15041_v13 = vld [vmem:[%s19933_s4 + $0x368] sm:$0xff]  }
 0x763   :  { %14597 = vmatpush3.bf16.msra.mxu0 %v15031_v48  ;;  %14576 = vmatprep.subr.bf16.mxu1 %v15032_v41  ;;  %vm20954_vm3 = vmmov %vm20950_vm9 }
 0x764   :  { %14622 = vmatprep.subr.bf16.mxu0 %v15042_v29 }
 0x766   :  { %14577 = vmatpush3.bf16.msra.mxu1 %v15032_v41  ;;  %14599 = vmatmul.mubr.msk.bf16.vlgmr.msra.gmra.mxu0 %vm20943_vm8, %v19241_v17  ;;  %v15035_v17 = vld [vmem:[%s19933_s4 + $0x358] sm:$0xff]   ;;  %vm20952_vm8 = vsmask.f32 7424 }
 0x767   :  { %14602 = vmatprep.mubr.msk.bf16.mxu0 %vm20948_vm14, %v19274_v47  ;;  %14578 = vmatprep.subr.bf16.mxu1 %v15033_v16  ;;  %v20951_v47 = vld [vmem:[#allocation27_spill] sm:$0xff]  ;;  %vm20953_vm14 = vmmov %vm20950_vm9 }
 0x768   :  { %v10006_v20 = vsel %vm20952_vm8, %v10005_v2, %v20951_v47  ;;  %vm20957_vm8 = vmmov %vm20954_vm3  ;;  %14623 = vmatpush3.bf16.msra.mxu0 %v15042_v29 }
 0x769   :  { %14555 = vmatmul.mubr.msk.bf16.gmra.mxu1 %vm20949_vm11, %v9630_v46  ;;  %vm20955_vm11 = vmmov %vm20954_vm3  ;;  %14624 = vmatprep.subr.bf16.mxu0 %v15044_v8  ;;  %v15048_v46 = vld [vmem:[%s19933_s4 + $0x380] sm:$0xff]  }
 0x76a   :  { %14579 = vmatpush3.bf16.msra.mxu1 %v15033_v16  ;;  %14582 = vmatprep.mubr.msk.bf16.mxu1 %vm20950_vm9, %v9876_v56  ;;  %vm20956_vm9 = vcmp.ne.s16.totalorder %v20895_v30, 0  ;;  %vm20964_vm15 = vmmov %vm20957_vm8  ;;  %v15043_v16 = vld [vmem:[%s19933_s4 + $0x360] sm:$0xff]   ;;  %v19478_v56 = vld [vmem:[%s19933_s4 + $0x3b8] sm:$0xff]  }
 0x76b   :  { %14580 = vmatprep.subr.bf16.mxu1 %v15034_v23  ;;  %v10108_v59 = vsel %vm20956_vm9, %v19181_v25, 0  ;;  %v9879_v25 = vsel %vm20726_vm2, %v19212_v3, 0  ;;  %vm20961_vm9 = vcmp.ne.s16.totalorder %v20916_v9, 0  ;;  %20968 = vst [vmem:[#allocation11_spill] sm:$0xff] %v19478_v56 }
 0x76c   :  { %v10124_v19 = vrot.slane %v10108_v59, 1  ;;  %v10110_v60 = vsel %vm20961_vm9, %v19212_v3, 0  ;;  %v15040_v3 = vld [vmem:[%s19933_s4 + $0x370] sm:$0xff]   ;;  %14625 = vmatpush3.bf16.msra.mxu0 %v15044_v8 }
 0x76d   :  { %v10128_v26 = vrot.slane %v10110_v60, 1  ;;  %14626 = vmatprep.subr.bf16.mxu0 %v15046_v58 }
 0x76e   :  { %14581 = vmatpush3.bf16.msra.mxu1 %v15034_v23  ;;  %14603 = vmatmul.mubr.msk.bf16.gmra.mxu0 %vm20953_vm14, %v10006_v20  ;;  %vm20958_vm14 = vcmask 1046528   ;;  %v19469_v23 = vld [vmem:[%s19933_s4 + $0x3d8] sm:$0xff]  }
 0x76f   :  { %14606 = vmatprep.subr.bf16.mxu1 %v15035_v17  ;;  %v10125_v1 = vsel %vm20958_vm14, %v10123_v15, %v10124_v19  ;;  %vm20962_vm1 = vmmov %vm20958_vm14  ;;  %20967 = vst [vmem:[#allocation31_spill] sm:$0xff] %v19469_v23 }
 0x770   :  { %vm20963_vm14 = vmmov %vm20962_vm1  ;;  %14627 = vmatpush3.bf16.msra.mxu0 %v15046_v58 }
 0x771   :  { %14583 = vmatmul.mubr.msk.bf16.vlgmr.msra.gmra.mxu1 %vm20954_vm3, %v9877_v4  ;;  %vm20959_vm3 = vcmp.ne.s16.totalorder %v20913_v38, 0  ;;  %14628 = vmatprep.subr.bf16.mxu0 %v15048_v46 }
 0x772   :  { %14607 = vmatpush3.bf16.msra.mxu1 %v15035_v17  ;;  %14586 = vmatprep.mubr.msk.bf16.mxu1 %vm20955_vm11, %v9878_v6  ;;  %v10109_v24 = vsel %vm20959_vm3, %v19184_v54, 0  ;;  %vm20960_vm11 = vmmov %vm20957_vm8 }
 0x773   :  { %14608 = vmatprep.subr.bf16.mxu1 %v15036_v55  ;;  %v10126_v48 = vrot.slane %v10109_v24, 1  ;;  %vm20965_vm3 = vmmov %vm20962_vm1 }
 0x774   :  { %v10130_v54 = vsel %vm20965_vm3, %v10128_v26, %v20951_v47  ;;  %14629 = vmatpush3.bf16.msra.mxu0 %v15048_v46 }
 0x775   :  { %v10127_v21 = vsel %vm20962_vm1, %v10124_v19, %v10126_v48  ;;  %v10129_v41 = vsel %vm20963_vm14, %v10126_v48, %v10128_v26  ;;  %14654 = vmatprep.subr.bf16.mxu0 %v19478_v56  ;;  %vm20976_vm1 = vmmov %vm20957_vm8 }
 0x776   :  { %14609 = vmatpush3.bf16.msra.mxu1 %v15036_v55  ;;  %vm20978_vm9 = vmmov %vm20976_vm1 }
 0x777   :  { %14610 = vmatprep.subr.bf16.mxu1 %v15037_v43  ;;  %vm20988_vm3 = vmmov %vm20976_vm1 }
 0x779   :  { %14587 = vmatmul.mubr.msk.bf16.gmra.mxu1 %vm20957_vm8, %v9879_v25 }
 0x77a   :  { %14611 = vmatpush3.bf16.msra.mxu1 %v15037_v43  ;;  %14614 = vmatprep.mubr.msk.bf16.mxu1 %vm20960_vm11, %v10125_v1  ;;  %vm20966_vm11 = vmmov %vm20957_vm8 }
 0x77b   :  { %14612 = vmatprep.subr.bf16.mxu1 %v15038_v52 }
 0x77e   :  { %14613 = vmatpush3.bf16.msra.mxu1 %v15038_v52 }
 0x77f   :  { %14638 = vmatprep.subr.bf16.mxu1 %v15039_v40 }
 0x781   :  { %14615 = vmatmul.mubr.msk.bf16.vlgmr.msra.gmra.mxu1 %vm20957_vm8, %v10127_v21  ;;  %vm20982_vm8 = vsmask.f32 7424 }
 0x782   :  { %14618 = vmatprep.mubr.msk.bf16.mxu1 %vm20964_vm15, %v10129_v41  ;;  %14639 = vmatpush3.bf16.msra.mxu1 %v15039_v40  ;;  %vm20973_vm15 = vsmask.f32 4352 }
 0x783   :  { %14640 = vmatprep.subr.bf16.mxu1 %v15040_v3  ;;  %vm20983_vm14 = vmmov %vm20973_vm15 }
 0x786   :  { %14641 = vmatpush3.bf16.msra.mxu1 %v15040_v3 }
 0x787   :  { %14642 = vmatprep.subr.bf16.mxu1 %v15041_v13 }
 0x789   :  { %14619 = vmatmul.mubr.msk.bf16.gmra.mxu1 %vm20966_vm11, %v10130_v54  ;;  %vm20989_vm11 = vmmov %vm20976_vm1 }
 0x78a   :  { %14643 = vmatpush3.bf16.msra.mxu1 %v15041_v13 }
 0x78b   :  { %14644 = vmatprep.subr.bf16.mxu1 %v15043_v16 }
 0x78e   :  { %14645 = vmatpush3.bf16.msra.mxu1 %v15043_v16 }
 0x78f   :  { %14670 = vmatprep.subr.bf16.mxu1 %v19469_v23 }
 0x7f5   :  { %v14504_v2 = vpop.f32.mrf.mxu0 }
 0x7f7   :  { %v9299_v17 = vpop.f32.mrf.mxu0 }
 0x7f9   :  { %v14505_v20 = vpop.f32.mrf.mxu0 }
 0x7fb   :  { %v9302_v55 = vpop.f32.mrf.mxu0 }
 0x7fe   :  { %v14508_v4 = vpop.f32.mrf.mxu0 }
 0x800   :  { %v19481_v6 = vpop.f32.mrf.mxu0 }
 0x801   :  { %v14488_v59 = vpop.f32.mrf.mxu1 }
 0x802   :  { %v19483_v43 = vpop.f32.mrf.mxu0  ;;  %v9308_v9 = vadd.f32 %v14504_v2, %v14488_v59 }
 0x803   :  { %v9198_v42 = vpop.f32.mrf.mxu1 }
 0x804   :  { %v19485_v19 = vpop.f32.mrf.mxu0  ;;  %v9300_v11 = vadd.f32 %v9299_v17, %v9198_v42 }
 0x805   :  { %v14489_v15 = vpop.f32.mrf.mxu1 }
 0x806   :  { %v14536_v52 = vpop.f32.mrf.mxu0  ;;  %v9311_v30 = vadd.f32 %v14505_v20, %v14489_v15 }
 0x807   :  { %v9201_v25 = vpop.f32.mrf.mxu1 }
 0x808   :  { %v9563_v1 = vpop.f32.mrf.mxu0  ;;  %v9303_v28 = vadd.f32 %v9302_v55, %v9201_v25 }
 0x809   :  { %v14492_v24 = vpop.f32.mrf.mxu1 }
 0x80a   :  { %v14537_v48 = vpop.f32.mrf.mxu0 }
 0x80b   :  { %v9214_v60 = vpop.f32.mrf.mxu1 }
 0x80c   :  { %v9566_v26 = vpop.f32.mrf.mxu0  ;;  %v9316_v17 = vadd.f32 %v19481_v6, %v9214_v60 }
 0x80d   :  { %v14493_v21 = vpop.f32.mrf.mxu1 }
 0x80e   :  { %v19487_v41 = vpop.f32.mrf.mxu0 }
 0x80f   :  { %v9217_v54 = vpop.f32.mrf.mxu1 }
 0x810   :  { %v19489_v40 = vpop.f32.mrf.mxu0 }
 0x811   :  { %v14520_v3 = vpop.f32.mrf.mxu1 }
 0x812   :  { %v19491_v13 = vpop.f32.mrf.mxu0  ;;  %v9460_v32 = vadd.f32 %v14520_v3, %v9308_v9 }
 0x813   :  { %v9427_v29 = vpop.f32.mrf.mxu1 }
 0x814   :  { %v19493_v8 = vpop.f32.mrf.mxu0  ;;  %v9458_v50 = vadd.f32 %v9427_v29, %v9300_v11  ;;  %v9596_v39 = vadd.f32 %v14536_v52, %v9460_v32 }
 0x815   :  { %v14521_v16 = vpop.f32.mrf.mxu1 }
 0x816   :  { %v14568_v58 = vpop.f32.mrf.mxu0  ;;  %v9461_v61 = vadd.f32 %v14521_v16, %v9311_v30  ;;  %v9594_v31 = vadd.f32 %v9563_v1, %v9458_v50  ;;  %v9327_v30 = vadd.f32 %v19483_v43, %v14493_v21  ;;  %v9319_v50 = vadd.f32 %v19485_v19, %v9217_v54 }
 0x817   :  { %v9430_v46 = vpop.f32.mrf.mxu1 }
 0x818   :  { %v9837_v7 = vpop.f32.mrf.mxu0  ;;  %v9459_v23 = vadd.f32 %v9430_v46, %v9303_v28 }
 0x819   :  { %v14524_v37 = vpop.f32.mrf.mxu1 }
 0x81a   :  { %v14569_v10 = vpop.f32.mrf.mxu0  ;;  %v9595_v11 = vadd.f32 %v9566_v26, %v9459_v23 }
 0x81b   :  { %v9443_v33 = vpop.f32.mrf.mxu1 }
 0x81c   :  { %v9840_v27 = vpop.f32.mrf.mxu0  ;;  %v9462_v32 = vadd.f32 %v9443_v33, %v9316_v17 }
 0x81d   :  { %v14525_v51 = vpop.f32.mrf.mxu1 }
 0x81e   :  { %v19495_v49 = vpop.f32.mrf.mxu0 }
 0x81f   :  { %v9446_v34 = vpop.f32.mrf.mxu1 }
 0x820   :  { %v19497_v57 = vpop.f32.mrf.mxu0 }
 0x821   :  { %v14552_v36 = vpop.f32.mrf.mxu1 }
 0x822   :  { %v19499_v53 = vpop.f32.mrf.mxu0  ;;  %v9734_v12 = vadd.f32 %v14552_v36, %v9596_v39 }
 0x823   :  { %v9701_v18 = vpop.f32.mrf.mxu1  ;;  %20969 = vst [vmem:[#allocation28_spill] sm:$0xff] %v19499_v53  ;;  %v9324_v53 = vadd.f32 %v14508_v4, %v14492_v24  ;;  %v9465_v4 = vadd.f32 %v14525_v51, %v9327_v30 }
 0x824   :  { %v19501_v38 = vpop.f32.mrf.mxu0  ;;  %v9732_v59 = vadd.f32 %v9701_v18, %v9594_v31  ;;  %v9870_v3 = vadd.f32 %v14568_v58, %v9734_v12  ;;  %v9598_v12 = vadd.f32 %v19489_v40, %v9462_v32 }
 0x825   :  { %v14553_v14 = vpop.f32.mrf.mxu1  ;;  %20970 = vst [vmem:[#allocation8_spill] sm:$0xff] %v19501_v38  ;;  %v9597_v38 = vadd.f32 %v14537_v48, %v9461_v61  ;;  %v9464_v9 = vadd.f32 %v14524_v37, %v9324_v53 }
 0x826   :  { %v14600_v63 = vpop.f32.mrf.mxu0  ;;  %v9868_v39 = vadd.f32 %v9837_v7, %v9732_v59  ;;  %v9601_v7 = vadd.f32 %v19491_v13, %v9465_v4 }
 0x827   :  { %v9704_v47 = vpop.f32.mrf.mxu1  ;;  %v9735_v20 = vadd.f32 %v14553_v14, %v9597_v38  ;;  %v9600_v18 = vadd.f32 %v19487_v41, %v9464_v9  ;;  %v9463_v14 = vadd.f32 %v9446_v34, %v9319_v50  ;;  %v12834_v34 = vld [vmem:[%s19938_s5 + $0x2] ss:$0 sm:$0xff] }
 0x828   :  { %v10068_v22 = vpop.f32.mrf.mxu0  ;;  %v9733_v28 = vadd.f32 %v9704_v47, %v9595_v11 }
 0x829   :  { %v14556_v35 = vpop.f32.mrf.mxu1  ;;  %v9871_v53 = vadd.f32 %v14569_v10, %v9735_v20 }
 0x82a   :  { %v14601_v15 = vpop.f32.mrf.mxu0  ;;  %v9738_v38 = vadd.f32 %v14556_v35, %v9600_v18  ;;  %v9869_v33 = vadd.f32 %v9840_v27, %v9733_v28  ;;  %v20971_v41 = vld [vmem:[#allocation28_spill] sm:$0xff] }
 0x82b   :  { %v9717_v5 = vpop.f32.mrf.mxu1 }
 0x82c   :  { %v10071_v61 = vpop.f32.mrf.mxu0  ;;  %v9736_v47 = vadd.f32 %v9717_v5, %v9598_v12  ;;  %v9874_v10 = vadd.f32 %v19495_v49, %v9738_v38  ;;  %v20972_v16 = vld [vmem:[#allocation8_spill] sm:$0xff] }
 0x82d   :  { %v14557_v62 = vpop.f32.mrf.mxu1 }
 0x82e   :  { %v14604_v19 = vpop.f32.mrf.mxu0  ;;  %v9739_v1 = vadd.f32 %v14557_v62, %v9601_v7  ;;  %v9872_v24 = vadd.f32 %v19497_v57, %v9736_v47 }
 0x82f   :  { %v9720_v0 = vpop.f32.mrf.mxu1 }
 0x830   :  { %v10084_v60 = vpop.f32.mrf.mxu0  ;;  %v9875_v54 = vadd.f32 %v20971_v41, %v9739_v1 }
 0x831   :  { %v14584_v56 = vpop.f32.mrf.mxu1 }
 0x832   :  { %v9991_v36 = vadd.f32 %v14584_v56, %v9870_v3 }
 0x833   :  { %v9958_v44 = vpop.f32.mrf.mxu1 }
 0x834   :  { %v9989_v37 = vadd.f32 %v9958_v44, %v9868_v39  ;;  %v10101_v43 = vadd.f32 %v14600_v63, %v9991_v36  ;;  %v9599_v44 = vadd.f32 %v19493_v8, %v9463_v14 }
 0x835   :  { %v14585_v45 = vpop.f32.mrf.mxu1 }
 0x836   :  { %v9992_v6 = vadd.f32 %v14585_v45, %v9871_v53  ;;  %v10099_v25 = vadd.f32 %v10068_v22, %v9989_v37  ;;  %v9737_v5 = vadd.f32 %v9720_v0, %v9599_v44 }
 0x837   :  { %v9961_v2 = vpop.f32.mrf.mxu1 }
 0x838   :  { %v9990_v51 = vadd.f32 %v9961_v2, %v9869_v33  ;;  %v10102_v63 = vadd.f32 %v14601_v15, %v9992_v6  ;;  %v9873_v58 = vadd.f32 %v20972_v16, %v9737_v5  ;;  %v14605_v2 = vpop.f32.mrf.mxu0 }
 0x839   :  { %v14588_v42 = vpop.f32.mrf.mxu1 }
 0x83a   :  { %v9995_v35 = vadd.f32 %v14588_v42, %v9874_v10  ;;  %v10100_v62 = vadd.f32 %v10071_v61, %v9990_v51  ;;  %v10087_v36 = vpop.f32.mrf.mxu0 }
 0x83b   :  { %v9974_v55 = vpop.f32.mrf.mxu1 }
 0x83c   :  { %v9993_v21 = vadd.f32 %v9974_v55, %v9872_v24  ;;  %v10105_v46 = vadd.f32 %v14604_v19, %v9995_v35  ;;  %v15072_v24 = vld [vmem:[%s19933_s4 + $0x470] sm:$0xff]  }
 0x83d   :  { %v14589_v31 = vpop.f32.mrf.mxu1 }
 0x83e   :  { %v9996_v8 = vadd.f32 %v14589_v31, %v9875_v54  ;;  %v10103_v20 = vadd.f32 %v10084_v60, %v9993_v21 }
 0x83f   :  { %v9977_v23 = vpop.f32.mrf.mxu1 }
 0x840   :  { %v9994_v9 = vadd.f32 %v9977_v23, %v9873_v58  ;;  %v10106_v55 = vadd.f32 %v14605_v2, %v9996_v8  ;;  %v15049_v58 = vld [vmem:[%s19933_s4 + $0x3c8] sm:$0xff]   ;;  %v21010_v2 = vld [vmem:[#allocation21_spill] sm:$0xff] }
 0x841   :  { %v14616_v56 = vpop.f32.mrf.mxu1 }
 0x842   :  { %v10234_v52 = vadd.f32 %v14616_v56, %v10101_v43  ;;  %v10104_v61 = vadd.f32 %v10087_v36, %v9994_v9 }
 0x843   :  { %v10201_v45 = vpop.f32.mrf.mxu1 }
 0x844   :  { %v10232_v27 = vadd.f32 %v10201_v45, %v10099_v25  ;;  %v10249_v26 = vadd.f32 %v12834_v34, %v10234_v52 }
 0x845   :  { %v14617_v48 = vpop.f32.mrf.mxu1 }
 0x846   :  { %v10235_v22 = vadd.f32 %v14617_v48, %v10102_v63  ;;  %v10247_v40 = vadd.f32 %v12834_v34, %v10232_v27  ;;  %v10257_v59 = vmax.f32 %v10249_v26, 0.0 }
 0x847   :  { %v10204_v49 = vpop.f32.mrf.mxu1 }
 0x848   :  { %v10250_v13 = vadd.f32 %v12834_v34, %v10235_v22  ;;  %v10233_v29 = vadd.f32 %v10204_v49, %v10100_v62  ;;  %v10255_v15 = vmax.f32 %v10247_v40, 0.0  ;;  %v20979_v40 = vld [vmem:[#allocation31_spill] sm:$0xff] }
 0x849   :  { %v14620_v0 = vpop.f32.mrf.mxu1 }
 0x84a   :  { %v10258_v57 = vmax.f32 %v10250_v13, 0.0  ;;  %v10248_v17 = vadd.f32 %v12834_v34, %v10233_v29  ;;  %v10238_v42 = vadd.f32 %v14620_v0, %v10105_v46 }
 0x84b   :  { %v10217_v11 = vpop.f32.mrf.mxu1 }
 0x84c   :  { %v10264_v3 = vpack.c.bf16 %v10258_v57, %v10257_v59  ;;  %v10256_v30 = vmax.f32 %v10248_v17, 0.0  ;;  %v10236_v32 = vadd.f32 %v10217_v11, %v10103_v20  ;;  %v10253_v18 = vadd.f32 %v12834_v34, %v10238_v42 }
 0x84d   :  { %v14621_v28 = vpop.f32.mrf.mxu1 }
 0x84e   :  { %v10276_v39 = vshrl.u32 %v10264_v3, 16  ;;  %v10279_v50 = vshll.u32 %v10264_v3, 16  ;;  %v10263_v4 = vpack.c.bf16 %v10256_v30, %v10255_v15  ;;  %v10239_v31 = vadd.f32 %v14621_v28, %v10106_v55 }
 0x84f   :  { %v10220_v37 = vpop.f32.mrf.mxu1  ;;  %v10251_v23 = vadd.f32 %v12834_v34, %v10236_v32  ;;  %v10261_v7 = vmax.f32 %v10253_v18, 0.0 }
 0x850   :  { %v10278_v53 = vrot.slane %v10276_v39, 3  ;;  %v10281_v14 = vrot.slane %v10279_v50, 4  ;;  %v10268_v38 = vshrl.u32 %v10263_v4, 16  ;;  %v10271_v12 = vshll.u32 %v10263_v4, 16  ;;  %v15051_v4 = vld [vmem:[%s19933_s4 + $0x3c0] sm:$0xff]  }
 0x851   :  { %v10254_v6 = vadd.f32 %v12834_v34, %v10239_v31  ;;  %v10237_v33 = vadd.f32 %v10220_v37, %v10104_v61  ;;  %v10259_v25 = vmax.f32 %v10251_v23, 0.0 }
 0x852   :  { %v10270_v43 = vrot.slane %v10268_v38, 3  ;;  %v10273_v47 = vrot.slane %v10271_v12, 4  ;;  %v10282_v51 = vor.u32 %v10281_v14, %v10278_v53 }
 0x853   :  { %v10262_v56 = vmax.f32 %v10254_v6, 0.0  ;;  %v10252_v19 = vadd.f32 %v12834_v34, %v10237_v33  ;;  %v15047_v34 = vld [vmem:[%s19933_s4 + $0x3d0] sm:$0xff]  }
 0x854   :  { %v10274_v52 = vor.u32 %v10273_v47, %v10270_v43 }
 0x855   :  { %v10266_v1 = vpack.c.bf16 %v10262_v56, %v10261_v7  ;;  %v10260_v44 = vmax.f32 %v10252_v19, 0.0  ;;  %v15052_v7 = vld [vmem:[%s19933_s4 + $0x3b0] sm:$0xff]   ;;  %v15053_v56 = vld [vmem:[%s19933_s4 + $0x418] sm:$0xff]  }
 0x856   :  { %v19518_v10 = vsel %vm20973_vm15, %v10274_v52, %v10282_v51  ;;  %v19522_v27 = vsel %vm15514_vm12, 0, %v10274_v52  ;;  %vm20990_vm15 = vcmask 1043456  }
 0x857   :  { %v10294_v63 = vshrl.u32 %v10266_v1, 16  ;;  %v10297_v5 = vshll.u32 %v10266_v1, 16  ;;  %v10265_v35 = vpack.c.bf16 %v10260_v44, %v10259_v25  ;;  %v10309_v48 = vsel %vm15518_vm13, %v19522_v27, 0  ;;  %v20997_v25 = vld [vmem:[#allocation10_spill] sm:$0xff]  ;;  %v20999_v44 = vld [vmem:[#allocation11_spill] sm:$0xff] }
 0x858   :  { %14646 = vmatprep.mubr.msk.bf16.mxu1 %vm20976_vm1, %v10309_v48  ;;  %v10310_v26 = vsel %vm15710_vm5, %v19518_v10, 0  ;;  %v10332_v22 = vshll.u32 %v19522_v27, 16  ;;  %v10337_v62 = vshll.u32 %v19518_v10, 16  ;;  %v10330_v13 = vshrl.u32 %v19522_v27, 16 }
 0x859   :  { %v10296_v21 = vrot.slane %v10294_v63, 3  ;;  %v10299_v41 = vrot.slane %v10297_v5, 4  ;;  %v10285_v54 = vshrl.u32 %v10265_v35, 16  ;;  %v10288_v49 = vshll.u32 %v10265_v35, 16  ;;  %14647 = vmatmul.mubr.msk.bf16.vlgmr.msra.gmra.mxu1 %vm20978_vm9, %v10310_v26  ;;  %vm20993_vm9 = vmmov %vm20982_vm8  ;;  %v15055_v26 = vld [vmem:[%s19933_s4 + $0x410] sm:$0xff]  }
 0x85a   :  { %14671 = vmatpush3.bf16.msra.mxu1 %v20979_v40  ;;  %v10334_v29 = vrot.slane %v10332_v22, 1  ;;  %v10703_v0 = vsel %vm15973_vm0, %v19522_v27, 0  ;;  %v10704_v59 = vsel %vm15984_vm4, %v19518_v10, 0  ;;  %v10339_v17 = vrot.slane %v10337_v62, 1  ;;  %vm20984_vm0 = vmmov %vm20983_vm14 }
 0x85b   :  { %v10287_v8 = vrot.slane %v10285_v54, 3  ;;  %v10290_v16 = vrot.slane %v10288_v49, 4  ;;  %14672 = vmatprep.subr.bf16.mxu1 %v15047_v34  ;;  %v10300_v9 = vor.u32 %v10299_v41, %v10296_v21  ;;  %v10721_v11 = vrot.slane %v10703_v0, 4  ;;  %vm20985_vm4 = vmmov %vm20976_vm1 }
 0x85c   :  { %v10335_v57 = vor.u32 %v10334_v29, %v10330_v13  ;;  %v10722_v15 = vrot.slane %v10704_v59, 4  ;;  %v10341_v32 = vshrl.u32 %v19518_v10, 16  ;;  %v15056_v29 = vld [vmem:[%s19933_s4 + $0x3a0] sm:$0xff]  }
 0x85d   :  { %v10291_v42 = vor.u32 %v10290_v16, %v10287_v8  ;;  %v19587_v12 = vsel %vm15514_vm12, %v10300_v9, 0  ;;  %vm20994_vm12 = vmmov %vm20976_vm1  ;;  %v21005_v8 = vld [vmem:[#allocation22_spill] sm:$0xff] }
 0x85e   :  { %v10340_v20 = vsel %vm20982_vm8, %v10335_v57, %v10339_v17  ;;  %14673 = vmatpush3.bf16.msra.mxu1 %v15047_v34  ;;  %v10343_v18 = vor.u32 %v10341_v32, %v10339_v17  ;;  %v10723_v61 = vsel %vm20990_vm15, %v10721_v11, %v10722_v15  ;;  %v10361_v35 = vshll.u32 %v19587_v12, 16  ;;  %v15054_v34 = vld [vmem:[%s19933_s4 + $0x3a8] sm:$0xff]  }
 0x85f   :  { %v19556_v3 = vsel %vm20983_vm14, %v10282_v51, %v10291_v42  ;;  %v19559_v30 = vsel %vm20984_vm0, %v10291_v42, %v10300_v9  ;;  %14630 = vmatprep.mubr.msk.bf16.mxu0 %vm20985_vm4, %v10340_v20  ;;  %14674 = vmatprep.subr.bf16.mxu1 %v15049_v58  ;;  %v20995_v51 = vld [vmem:[#allocation9_spill] sm:$0xff]  ;;  %vm21000_vm14 = vmmov %vm20976_vm1  ;;  %v15057_v57 = vld [vmem:[%s19933_s4 + $0x408] sm:$0xff]  }
 0x860   :  { %v10311_v28 = vsel %vm20722_vm7, %v19556_v3, 0  ;;  %v10312_v39 = vsel %vm20726_vm2, %v19559_v30, 0  ;;  %v10345_v50 = vshll.u32 %v19556_v3, 16  ;;  %v10353_v31 = vshll.u32 %v19559_v30, 16  ;;  %vm21001_vm0 = vmmov %vm20990_vm15  ;;  %v21014_v9 = vld [vmem:[#allocation14_spill] sm:$0xff] }
 0x861   :  { %14650 = vmatprep.mubr.msk.bf16.mxu1 %vm20988_vm3, %v10311_v28  ;;  %v10349_v53 = vshrl.u32 %v19556_v3, 16  ;;  %v10705_v38 = vsel %vm16005_vm10, %v19556_v3, 0  ;;  %v10706_v6 = vsel %vm20653_vm6, %v19559_v30, 0  ;;  %vm20996_vm10 = vnez %v20995_v51  ;;  %vm21002_vm4 = vmmov %vm20976_vm1 }
 0x862   :  { %14651 = vmatmul.mubr.msk.bf16.gmra.mxu1 %vm20989_vm11, %v10312_v39  ;;  %v10347_v37 = vrot.slane %v10345_v50, 1  ;;  %v10355_v47 = vrot.slane %v10353_v31, 1  ;;  %v10724_v19 = vrot.slane %v10705_v38, 4  ;;  %v10567_v52 = vsel %vm20996_vm10, %v19522_v27, 0  ;;  %vm21003_vm3 = vmmov %vm21001_vm0  ;;  %v21019_v38 = vld [vmem:[#allocation24_spill] sm:$0xff] }
 0x863   :  { %14675 = vmatpush3.bf16.msra.mxu1 %v15049_v58  ;;  %14678 = vmatprep.mubr.msk.bf16.mxu1 %vm20976_vm1, %v10723_v61  ;;  %vm20998_vm6 = vcmp.ne.s16.totalorder %v20997_v25, 0  ;;  %v10357_v63 = vshrl.u32 %v19559_v30, 16  ;;  %v10726_v5 = vrot.slane %v10706_v6, 4  ;;  %v10585_v41 = vrot.slane %v10567_v52, 1  ;;  %vm21004_vm11 = vmmov %vm20976_vm1  ;;  %v21007_v58 = vld [vmem:[#allocation23_spill] sm:$0xff]  ;;  %v15059_v61 = vld [vmem:[%s19933_s4 + $0x400] sm:$0xff]  }
 0x864   :  { %v19594_v33 = vsel %vm20993_vm9, %v10343_v18, %v10347_v37  ;;  %14676 = vmatprep.subr.bf16.mxu1 %v15051_v4  ;;  %v10351_v43 = vor.u32 %v10349_v53, %v10347_v37  ;;  %v10568_v1 = vsel %vm20998_vm6, %v19518_v10, 0  ;;  %v10725_v21 = vsel %vm21001_vm0, %v10722_v15, %v10724_v19  ;;  %vm21009_vm9 = vmmov %vm20982_vm8  ;;  %v21017_v15 = vld [vmem:[#allocation18_spill] sm:$0xff]  ;;  %v15061_v52 = vld [vmem:[%s19933_s4 + $0x458] sm:$0xff]  }
 0x865   :  { %14631 = vmatmul.mubr.msk.bf16.vlgmr.msra.gmra.mxu0 %vm20994_vm12, %v19594_v33  ;;  %v10359_v48 = vor.u32 %v10357_v63, %v10355_v47  ;;  %v10586_v54 = vrot.slane %v10568_v1, 1  ;;  %v10727_v49 = vsel %vm21003_vm3, %v10724_v19, %v10726_v5  ;;  %v19635_v40 = vrot.slane %v10361_v35, 1  ;;  %vm21012_vm6 = vmmov %vm21002_vm4 }
 0x866   :  { %14655 = vmatpush3.bf16.msra.mxu0 %v20999_v44  ;;  %v19616_v45 = vsel %vm20982_vm8, %v10351_v43, %v10355_v47  ;;  %vm21006_vm15 = vnez %v21005_v8  ;;  %vm21008_vm1 = vcmp.ne.s16.totalorder %v21007_v58, 0  ;;  %vm21011_vm12 = vnez %v21010_v2  ;;  %vm21016_vm0 = vmmov %vm21002_vm4  ;;  %v15060_v43 = vld [vmem:[%s19933_s4 + $0x3f0] sm:$0xff]   ;;  %v21024_v47 = vld [vmem:[#allocation25_spill] sm:$0xff] }
 0x867   :  { %14634 = vmatprep.mubr.msk.bf16.mxu0 %vm21000_vm14, %v19616_v45  ;;  %14677 = vmatpush3.bf16.msra.mxu1 %v15051_v4  ;;  %v10977_v16 = vsel %vm21006_vm15, %v19522_v27, 0  ;;  %v10978_v46 = vsel %vm21008_vm1, %v19518_v10, 0  ;;  %v19649_v0 = vsel %vm21009_vm9, %v10359_v48, %v19635_v40  ;;  %v10707_v59 = vsel %vm21011_vm12, %v19587_v12, 0  ;;  %v15058_v4 = vld [vmem:[%s19933_s4 + $0x3f8] sm:$0xff]   ;;  %vm21021_vm15 = vmmov %vm21016_vm0  ;;  %v15062_v27 = vld [vmem:[%s19933_s4 + $0x3e8] sm:$0xff]  }
 0x868   :  { %14656 = vmatprep.subr.bf16.mxu0 %v15052_v7  ;;  %14702 = vmatprep.subr.bf16.mxu1 %v15053_v56  ;;  %vm21013_vm8 = vcmask 1046528   ;;  %vm21015_vm14 = vcmp.ne.s16.totalorder %v21014_v9, 0  ;;  %v10995_v20 = vrot.slane %v10977_v16, 5  ;;  %v10996_v11 = vrot.slane %v10978_v46, 5  ;;  %vm21023_vm9 = vmmov %vm21016_vm0  ;;  %v21036_v46 = vld [vmem:[#allocation26_spill] sm:$0xff] }
 0x869   :  { %v10587_v17 = vsel %vm21013_vm8, %v10585_v41, %v10586_v54  ;;  %v10569_v42 = vsel %vm21015_vm14, %v19556_v3, 0  ;;  %v10728_v39 = vrot.slane %v10707_v59, 4  ;;  %vm21022_vm1 = vcmask 1042432   ;;  %v15065_v59 = vld [vmem:[%s19933_s4 + $0x448] sm:$0xff]  }
 0x86a   :  { %14657 = vmatpush3.bf16.msra.mxu0 %v15052_v7  ;;  %14679 = vmatmul.mubr.msk.bf16.vlgmr.msra.gmra.mxu1 %vm21002_vm4, %v10725_v21  ;;  %vm21018_vm4 = vcmp.ne.s16.totalorder %v21017_v15, 0  ;;  %v10588_v18 = vrot.slane %v10569_v42, 1  ;;  %v10997_v6 = vsel %vm21022_vm1, %v10995_v20, %v10996_v11  ;;  %vm21025_vm12 = vcmp.ne.s16.totalorder %v21024_v47, 0  ;;  %v15066_v20 = vld [vmem:[%s19933_s4 + $0x438] sm:$0xff]  }
 0x86b   :  { %14682 = vmatprep.mubr.msk.bf16.mxu1 %vm21004_vm11, %v10727_v49  ;;  %14703 = vmatpush3.bf16.msra.mxu1 %v15053_v56  ;;  %v10570_v28 = vsel %vm21018_vm4, %v19559_v30, 0  ;;  %v10729_v37 = vsel %vm21003_vm3, %v10726_v5, %v10728_v39  ;;  %vm21020_vm11 = vcmp.ne.s16.totalorder %v21019_v38, 0  ;;  %v10980_v7 = vsel %vm21025_vm12, %v19559_v30, 0  ;;  %vm21031_vm3 = vmmov %vm21022_vm1  ;;  %v15068_v39 = vld [vmem:[%s19933_s4 + $0x430] sm:$0xff]   ;;  %v15070_v38 = vld [vmem:[%s19933_s4 + $0x420] sm:$0xff]  }
 0x86c   :  { %14658 = vmatprep.subr.bf16.mxu0 %v15054_v34  ;;  %14704 = vmatprep.subr.bf16.mxu1 %v15055_v26  ;;  %v10590_v14 = vrot.slane %v10570_v28, 1  ;;  %v10979_v23 = vsel %vm21020_vm11, %v19556_v3, 0  ;;  %v10847_v1 = vrot.slane %v10330_v13, 4  ;;  %v10848_v5 = vrot.slane %v10332_v22, 5  ;;  %v21029_v13 = vld [vmem:[#allocation19_spill] sm:$0xff]  ;;  %v15063_v22 = vld [vmem:[%s19933_s4 + $0x450] sm:$0xff]   ;;  %vm21032_vm11 = vmmov %vm21016_vm0 }
 0x86d   :  { %14635 = vmatmul.mubr.msk.bf16.gmra.mxu0 %vm21012_vm6, %v19649_v0  ;;  %vm21026_vm6 = vmmov %vm21013_vm8  ;;  %v10998_v19 = vrot.slane %v10979_v23, 5  ;;  %v10850_v48 = vrot.slane %v10341_v32, 4  ;;  %vm21030_vm4 = vnez %v21029_v13  ;;  %v10854_v8 = vrot.slane %v10349_v53, 4 }
 0x86e   :  { %14659 = vmatpush3.bf16.msra.mxu0 %v15054_v34  ;;  %14662 = vmatprep.mubr.msk.bf16.mxu0 %vm21016_vm0, %v10587_v17  ;;  %v10589_v56 = vsel %vm21026_vm6, %v10586_v54, %v10588_v18  ;;  %vm21027_vm8 = vmmov %vm21016_vm0  ;;  %v10851_v34 = vrot.slane %v10337_v62, 5  ;;  %v10571_v21 = vsel %vm21030_vm4, %v19587_v12, 0  ;;  %v10849_v32 = vor.u32 %v10848_v5, %v10847_v1 }
 0x86f   :  { %14705 = vmatpush3.bf16.msra.mxu1 %v15055_v26  ;;  %14660 = vmatprep.subr.bf16.mxu0 %v15056_v29  ;;  %vm21028_vm14 = vmmov %vm21026_vm6  ;;  %v11000_v26 = vrot.slane %v10980_v7, 5  ;;  %v10999_v62 = vsel %vm21031_vm3, %v10996_v11, %v10998_v19  ;;  %v10592_v49 = vrot.slane %v10571_v21, 1  ;;  %v10855_v16 = vrot.slane %v10345_v50, 5  ;;  %v15067_v11 = vld [vmem:[%s19933_s4 + $0x440] sm:$0xff]  }
 0x870   :  { %14706 = vmatprep.subr.bf16.mxu1 %v15057_v57  ;;  %v10591_v44 = vsel %vm21028_vm14, %v10588_v18, %v10590_v14  ;;  %v10852_v41 = vor.u32 %v10851_v34, %v10850_v48  ;;  %vm21037_vm12 = vnez %v21036_v46  ;;  %v10858_v53 = vrot.slane %v10357_v63, 4  ;;  %vm21040_vm14 = vmmov %vm21016_vm0  ;;  %v15078_v48 = vld [vmem:[%s19939_s6] sm:$0xff]  }
 0x871   :  { %v10981_v2 = vsel %vm21037_vm12, %v19587_v12, 0  ;;  %v10859_v50 = vrot.slane %v10353_v31, 5  ;;  %v10856_v42 = vor.u32 %v10855_v16, %v10854_v8  ;;  %v10862_v31 = vshrl.u32 %v19587_v12, 16 }
 0x872   :  { %14661 = vmatpush3.bf16.msra.mxu0 %v15056_v29  ;;  %14683 = vmatmul.mubr.msk.bf16.gmra.mxu1 %vm21021_vm15, %v10729_v37  ;;  %vm21033_vm15 = vmmov %vm21022_vm1  ;;  %v15064_v29 = vld [vmem:[%s19933_s4 + $0x3e0] sm:$0xff]   ;;  %v11002_v17 = vrot.slane %v10981_v2, 5  ;;  %v10865_v37 = vrot.slane %v10361_v35, 5  ;;  %v11113_v23 = vsel %vm15518_vm13, %v19518_v10, 0  ;;  %v11115_v47 = vsel %vm20722_vm7, %v19559_v30, 0 }
 0x873   :  { %14707 = vmatpush3.bf16.msra.mxu1 %v15057_v57  ;;  %14710 = vmatprep.mubr.msk.bf16.mxu1 %vm21023_vm9, %v10997_v6  ;;  %v11001_v54 = vsel %vm21033_vm15, %v10998_v19, %v11000_v26  ;;  %vm21034_vm1 = vmmov %vm21016_vm0  ;;  %v10860_v28 = vor.u32 %v10859_v50, %v10858_v53  ;;  %v11242_v6 = vor.u32 %v10862_v31, %v19635_v40  ;;  %v11114_v40 = vsel %vm15710_vm5, %v19556_v3, 0 }
 0x874   :  { %14686 = vmatprep.subr.bf16.mxu0 %v15058_v4  ;;  %14708 = vmatprep.subr.bf16.mxu1 %v15059_v61  ;;  %vm21035_vm9 = vmmov %vm21026_vm6  ;;  %v11344_v60 = vsel %vm20996_vm10, %v19518_v10, 0  ;;  %vm21060_vm7 = vcmask 1046528  }
 0x875   :  { %14663 = vmatmul.mubr.msk.bf16.vlgmr.msra.gmra.mxu0 %vm21027_vm8, %v10589_v56  ;;  %v10593_v58 = vsel %vm21035_vm9, %v10590_v14, %v10592_v49  ;;  %vm21038_vm6 = vmmov %vm21016_vm0  ;;  %vm21039_vm8 = vsmask.f32 3328  ;;  %v15073_v56 = vld [vmem:[%s19933_s4 + $0x468] sm:$0xff]   ;;  %v11360_v55 = vrot.slane %v11344_v60, 1 }
 0x876   :  { %14687 = vmatpush3.bf16.msra.mxu0 %v15058_v4  ;;  %14666 = vmatprep.mubr.msk.bf16.mxu0 %vm21016_vm0, %v10591_v44  ;;  %v10853_v57 = vsel %vm21039_vm8, %v10849_v32, %v10852_v41  ;;  %vm21041_vm0 = vmmov %vm21031_vm3 }
 0x877   :  { %14709 = vmatpush3.bf16.msra.mxu1 %v15059_v61  ;;  %14688 = vmatprep.subr.bf16.mxu0 %v15060_v43  ;;  %v11003_v63 = vsel %vm21041_vm0, %v11000_v26, %v11002_v17  ;;  %vm21042_vm4 = vmmov %vm21034_vm1  ;;  %v10864_v61 = vrot.slane %v10862_v31, 4 }
 0x878   :  { %14734 = vmatprep.subr.bf16.mxu1 %v15061_v52  ;;  %vm21043_vm3 = vmmov %vm21034_vm1 }
 0x879   :  { %vm21045_vm15 = vmmov %vm21034_vm1  ;;  %v10866_v14 = vor.u32 %v10865_v37, %v10864_v61 }
 0x87a   :  { %14689 = vmatpush3.bf16.msra.mxu0 %v15060_v43  ;;  %14711 = vmatmul.mubr.msk.bf16.vlgmr.msra.gmra.mxu1 %vm21032_vm11, %v10999_v62  ;;  %vm21044_vm11 = vmmov %vm21039_vm8 }
 0x87b   :  { %14714 = vmatprep.mubr.msk.bf16.mxu1 %vm21034_vm1, %v11001_v54  ;;  %14735 = vmatpush3.bf16.msra.mxu1 %v15061_v52  ;;  %v10857_v4 = vsel %vm21044_vm11, %v10852_v41, %v10856_v42  ;;  %vm21046_vm1 = vmmov %vm21039_vm8  ;;  %v15074_v52 = vld [vmem:[%s19933_s4 + $0x460] sm:$0xff]  }
 0x87c   :  { %14690 = vmatprep.subr.bf16.mxu0 %v15062_v27  ;;  %14736 = vmatprep.subr.bf16.mxu1 %v15063_v22  ;;  %v10861_v18 = vsel %vm21046_vm1, %v10856_v42, %v10860_v28  ;;  %vm21047_vm9 = vmmov %vm21043_vm3 }
 0x87d   :  { %14667 = vmatmul.mubr.msk.bf16.gmra.mxu0 %vm21038_vm6, %v10593_v58  ;;  %vm21048_vm12 = vmmov %vm21043_vm3 }
 0x87e   :  { %14691 = vmatpush3.bf16.msra.mxu0 %v15062_v27  ;;  %14694 = vmatprep.mubr.msk.bf16.mxu0 %vm21040_vm14, %v10853_v57  ;;  %vm21049_vm6 = vmmov %vm21043_vm3 }
 0x87f   :  { %14737 = vmatpush3.bf16.msra.mxu1 %v15063_v22  ;;  %14692 = vmatprep.subr.bf16.mxu0 %v15064_v29  ;;  %vm21050_vm8 = vmmov %vm21046_vm1  ;;  %vm21061_vm1 = vcmp.ne.s16.totalorder %v21014_v9, 0  ;;  %v15075_v9 = vld [vmem:[%s19939_s6 + $0x18] sm:$0xff]  }
 0x880   :  { %14738 = vmatprep.subr.bf16.mxu1 %v15065_v59  ;;  %v10867_v35 = vsel %vm21050_vm8, %v10860_v28, %v10866_v14  ;;  %vm21051_vm14 = vmmov %vm21043_vm3  ;;  %v11346_v10 = vsel %vm21061_vm1, %v19559_v30, 0 }
 0x881   :  { %vm21052_vm0 = vmmov %vm21043_vm3  ;;  %v11363_v51 = vrot.slane %v11346_v10, 1 }
 0x882   :  { %14693 = vmatpush3.bf16.msra.mxu0 %v15064_v29  ;;  %14715 = vmatmul.mubr.msk.bf16.gmra.mxu1 %vm21042_vm4, %v11003_v63  ;;  %vm21054_vm4 = vsmask.f32 7424  ;;  %vm21056_vm13 = vmmov %vm21052_vm0 }
 0x883   :  { %14739 = vmatpush3.bf16.msra.mxu1 %v15065_v59  ;;  %14742 = vmatprep.mubr.msk.bf16.mxu1 %vm21043_vm3, %v19594_v33  ;;  %v15069_v33 = vld [vmem:[%s19933_s4 + $0x428] sm:$0xff]   ;;  %vm21055_vm3 = vmmov %vm21052_vm0 }
 0x884   :  { %14718 = vmatprep.subr.bf16.mxu0 %v15066_v20  ;;  %14740 = vmatprep.subr.bf16.mxu1 %v15067_v11  ;;  %vm21057_vm11 = vmmov %vm21052_vm0 }
 0x885   :  { %14695 = vmatmul.mubr.msk.bf16.vlgmr.msra.gmra.mxu0 %vm21045_vm15, %v10857_v4  ;;  %vm21058_vm15 = vcmp.ne.s16.totalorder %v20997_v25, 0  ;;  %vm21059_vm5 = vmmov %vm21052_vm0 }
 0x886   :  { %14719 = vmatpush3.bf16.msra.mxu0 %v15066_v20  ;;  %14698 = vmatprep.mubr.msk.bf16.mxu0 %vm21047_vm9, %v10861_v18  ;;  %v11345_v7 = vsel %vm21058_vm15, %v19556_v3, 0  ;;  %v11116_v3 = vsel %vm20726_vm2, %v19587_v12, 0  ;;  %vm21062_vm10 = vmmov %vm21052_vm0  ;;  %vm21063_vm9 = vcmp.ne.s16.totalorder %v21017_v15, 0  ;;  %v15077_v15 = vld [vmem:[%s19939_s6 + $0x8] sm:$0xff]  }
 0x887   :  { %14741 = vmatpush3.bf16.msra.mxu1 %v15067_v11  ;;  %14720 = vmatprep.subr.bf16.mxu0 %v15068_v39  ;;  %v11361_v19 = vrot.slane %v11345_v7, 1  ;;  %v11347_v1 = vsel %vm21063_vm9, %v19587_v12, 0  ;;  %vm21064_vm2 = vmmov %vm21060_vm7  ;;  %v15076_v12 = vld [vmem:[%s19939_s6 + $0x10] sm:$0xff]  }
 0x888   :  { %v11365_v36 = vrot.slane %v11347_v1, 1  ;;  %vm21067_vm8 = vmmov %vm21052_vm0  ;;  %14766 = vmatprep.subr.bf16.mxu1 %v15075_v9 }
 0x889   :  { %v11362_v25 = vsel %vm21060_vm7, %v11360_v55, %v11361_v19  ;;  %v11364_v44 = vsel %vm21064_vm2, %v11361_v19, %v11363_v51 }
 0x88a   :  { %14721 = vmatpush3.bf16.msra.mxu0 %v15068_v39  ;;  %14743 = vmatmul.mubr.msk.bf16.vlgmr.msra.gmra.mxu1 %vm21048_vm12, %v19616_v45  ;;  %v15071_v45 = vld [vmem:[%s19933_s4 + $0x478] sm:$0xff]   ;;  %vm21065_vm12 = vmmov %vm21052_vm0 }
 0x88b   :  { %14746 = vmatprep.mubr.msk.bf16.mxu1 %vm21049_vm6, %v19649_v0  ;;  %14722 = vmatprep.subr.bf16.mxu0 %v15069_v33  ;;  %v21053_v0 = vld [vmem:[#allocation27_spill] sm:$0xff]  ;;  %vm21066_vm6 = vmmov %vm21064_vm2 }
 0x88c   :  { %v11243_v43 = vsel %vm21054_vm4, %v11242_v6, %v21053_v0  ;;  %v11366_v5 = vsel %vm21066_vm6, %v11363_v51, %v11365_v36  ;;  %14767 = vmatpush3.bf16.msra.mxu1 %v15075_v9  ;;  %vm21085_vm4 = vmmov %vm21052_vm0 }
 0x88d   :  { %14699 = vmatmul.mubr.msk.bf16.gmra.mxu0 %vm21051_vm14, %v10867_v35  ;;  %vm21068_vm14 = vmmov %vm21064_vm2  ;;  %14768 = vmatprep.subr.bf16.mxu1 %v15076_v12 }
 0x88e   :  { %14723 = vmatpush3.bf16.msra.mxu0 %v15069_v33  ;;  %14726 = vmatprep.mubr.msk.bf16.mxu0 %vm21052_vm0, %v11113_v23  ;;  %v11367_v30 = vsel %vm21068_vm14, %v11365_v36, %v21053_v0 }
 0x88f   :  { %14724 = vmatprep.subr.bf16.mxu0 %v15070_v38 }
 0x890   :  { %14769 = vmatpush3.bf16.msra.mxu1 %v15076_v12 }
 0x891   :  { %14770 = vmatprep.subr.bf16.mxu1 %v15077_v15 }
 0x892   :  { %14725 = vmatpush3.bf16.msra.mxu0 %v15070_v38  ;;  %14747 = vmatmul.mubr.msk.bf16.gmra.mxu1 %vm21055_vm3, %v11243_v43  ;;  %vm21090_vm3 = vmmov %vm21052_vm0 }
 0x893   :  { %14750 = vmatprep.subr.bf16.mxu0 %v15071_v45 }
 0x894   :  { %14771 = vmatpush3.bf16.msra.mxu1 %v15077_v15 }
 0x895   :  { %14727 = vmatmul.mubr.msk.bf16.vlgmr.msra.gmra.mxu0 %vm21056_vm13, %v11114_v40  ;;  %14772 = vmatprep.subr.bf16.mxu1 %v15078_v48  ;;  %vm21093_vm13 = vmmov %vm21052_vm0 }
 0x896   :  { %14751 = vmatpush3.bf16.msra.mxu0 %v15071_v45  ;;  %14730 = vmatprep.mubr.msk.bf16.mxu0 %vm21057_vm11, %v11115_v47  ;;  %vm21094_vm11 = vmmov %vm21052_vm0 }
 0x897   :  { %14752 = vmatprep.subr.bf16.mxu0 %v15072_v24 }
 0x898   :  { %14773 = vmatpush3.bf16.msra.mxu1 %v15078_v48 }
 0x89a   :  { %14753 = vmatpush3.bf16.msra.mxu0 %v15072_v24 }
 0x89b   :  { %14754 = vmatprep.subr.bf16.mxu0 %v15073_v56 }
 0x89d   :  { %14731 = vmatmul.mubr.msk.bf16.gmra.mxu0 %vm21059_vm5, %v11116_v3  ;;  %vm21097_vm5 = vcmask 64512  }
 0x89e   :  { %14755 = vmatpush3.bf16.msra.mxu0 %v15073_v56  ;;  %14758 = vmatprep.mubr.msk.bf16.mxu0 %vm21062_vm10, %v11362_v25  ;;  %vm21099_vm1 = vmmov %vm21097_vm5 }
 0x89f   :  { %14756 = vmatprep.subr.bf16.mxu0 %v15074_v52  ;;  %vm21101_vm9 = vmmov %vm21099_vm1 }
 0x8a2   :  { %14757 = vmatpush3.bf16.msra.mxu0 %v15074_v52 }
 0x8a5   :  { %14759 = vmatmul.mubr.msk.bf16.vlgmr.msra.gmra.mxu0 %vm21065_vm12, %v11364_v44  ;;  %vm21103_vm12 = vmmov %vm21099_vm1 }
 0x8a6   :  { %14762 = vmatprep.mubr.msk.bf16.mxu0 %vm21067_vm8, %v11366_v5  ;;  %vm21105_vm8 = vmmov %vm21099_vm1 }
 0x8ad   :  { %14763 = vmatmul.mubr.msk.bf16.gmra.mxu0 %vm21052_vm0, %v11367_v30  ;;  %vm21107_vm0 = vmmov %vm21099_vm1 }
 0x919   :  { %v14648_v34 = vpop.f32.mrf.mxu1 }
 0x91b   :  { %v10536_v26 = vpop.f32.mrf.mxu1 }
 0x91d   :  { %v14649_v13 = vpop.f32.mrf.mxu1 }
 0x91f   :  { %v10539_v21 = vpop.f32.mrf.mxu1 }
 0x922   :  { %v14652_v27 = vpop.f32.mrf.mxu1 }
 0x924   :  { %v10552_v22 = vpop.f32.mrf.mxu1 }
 0x925   :  { %v14632_v62 = vpop.f32.mrf.mxu0 }
 0x926   :  { %v19832_v32 = vpop.f32.mrf.mxu1  ;;  %v10545_v60 = vadd.f32 %v14648_v34, %v14632_v62 }
 0x927   :  { %v10435_v41 = vpop.f32.mrf.mxu0 }
 0x928   :  { %v19834_v54 = vpop.f32.mrf.mxu1  ;;  %v10537_v55 = vadd.f32 %v10536_v26, %v10435_v41 }
 0x929   :  { %v14633_v49 = vpop.f32.mrf.mxu0 }
 0x92a   :  { %v14680_v29 = vpop.f32.mrf.mxu1  ;;  %v10548_v10 = vadd.f32 %v14649_v13, %v14633_v49 }
 0x92b   :  { %v10438_v8 = vpop.f32.mrf.mxu0 }
 0x92c   :  { %v10800_v16 = vpop.f32.mrf.mxu1  ;;  %v10540_v36 = vadd.f32 %v10539_v21, %v10438_v8 }
 0x92d   :  { %v14636_v58 = vpop.f32.mrf.mxu0 }
 0x92e   :  { %v14681_v46 = vpop.f32.mrf.mxu1  ;;  %v10561_v48 = vadd.f32 %v14652_v27, %v14636_v58 }
 0x92f   :  { %v10451_v2 = vpop.f32.mrf.mxu0 }
 0x930   :  { %v10803_v59 = vpop.f32.mrf.mxu1 }
 0x931   :  { %v14637_v57 = vpop.f32.mrf.mxu0 }
 0x932   :  { %v19836_v53 = vpop.f32.mrf.mxu1  ;;  %v10564_v21 = vadd.f32 %v19832_v32, %v14637_v57 }
 0x933   :  { %v10454_v50 = vpop.f32.mrf.mxu0 }
 0x934   :  { %v10816_v17 = vpop.f32.mrf.mxu1 }
 0x935   :  { %v14664_v42 = vpop.f32.mrf.mxu0 }
 0x936   :  { %v19838_v20 = vpop.f32.mrf.mxu1  ;;  %v10697_v52 = vadd.f32 %v14664_v42, %v10545_v60 }
 0x937   :  { %v10664_v11 = vpop.f32.mrf.mxu0 }
 0x938   :  { %v19840_v63 = vpop.f32.mrf.mxu1  ;;  %v10695_v51 = vadd.f32 %v10664_v11, %v10537_v55  ;;  %v10833_v5 = vadd.f32 %v14680_v29, %v10697_v52  ;;  %v10556_v11 = vadd.f32 %v19834_v54, %v10454_v50 }
 0x939   :  { %v14665_v28 = vpop.f32.mrf.mxu0 }
 0x93a   :  { %v14712_v31 = vpop.f32.mrf.mxu1  ;;  %v10698_v44 = vadd.f32 %v14665_v28, %v10548_v10  ;;  %v10831_v15 = vadd.f32 %v10800_v16, %v10695_v51 }
 0x93b   :  { %v10667_v39 = vpop.f32.mrf.mxu0 }
 0x93c   :  { %v11074_v4 = vpop.f32.mrf.mxu1  ;;  %v10696_v12 = vadd.f32 %v10667_v39, %v10540_v36  ;;  %v10834_v62 = vadd.f32 %v14681_v46, %v10698_v44 }
 0x93d   :  { %v14668_v18 = vpop.f32.mrf.mxu0 }
 0x93e   :  { %v14713_v61 = vpop.f32.mrf.mxu1  ;;  %v10701_v26 = vadd.f32 %v14668_v18, %v10561_v48  ;;  %v10832_v49 = vadd.f32 %v10803_v59, %v10696_v12 }
 0x93f   :  { %v10680_v37 = vpop.f32.mrf.mxu0 }
 0x940   :  { %v11077_v33 = vpop.f32.mrf.mxu1 }
 0x941   :  { %v14669_v14 = vpop.f32.mrf.mxu0 }
 0x942   :  { %v19842_v35 = vpop.f32.mrf.mxu1  ;;  %v10702_v27 = vadd.f32 %v14669_v14, %v10564_v21 }
 0x943   :  { %v10683_v38 = vpop.f32.mrf.mxu0 }
 0x944   :  { %v19844_v45 = vpop.f32.mrf.mxu1  ;;  %v10700_v18 = vadd.f32 %v10683_v38, %v10556_v11 }
 0x945   :  { %v14696_v23 = vpop.f32.mrf.mxu0  ;;  %21069 = vst [vmem:[#allocation33_spill] sm:$0xff] %v19844_v45 }
 0x946   :  { %v19846_v24 = vpop.f32.mrf.mxu1  ;;  %v10836_v14 = vadd.f32 %v19840_v63, %v10700_v18 }
 0x947   :  { %v10938_v6 = vpop.f32.mrf.mxu0  ;;  %21070 = vst [vmem:[#allocation32_spill] sm:$0xff] %v19846_v24  ;;  %v10553_v24 = vadd.f32 %v10552_v22, %v10451_v2  ;;  %v10837_v22 = vadd.f32 %v19836_v53, %v10701_v26  ;;  %v21075_v26 = vld [vmem:[#allocation43_spill] sm:$0xff] }
 0x948   :  { %v19848_v7 = vpop.f32.mrf.mxu1  ;;  %v10969_v34 = vadd.f32 %v10938_v6, %v10831_v15 }
 0x949   :  { %v14697_v0 = vpop.f32.mrf.mxu0  ;;  %21071 = vst [vmem:[#allocation47_spill] sm:$0xff] %v19848_v7  ;;  %v10971_v7 = vadd.f32 %v14696_v23, %v10833_v5  ;;  %v10699_v41 = vadd.f32 %v10680_v37, %v10553_v24 }
 0x94a   :  { %v14744_v3 = vpop.f32.mrf.mxu1  ;;  %v10972_v13 = vadd.f32 %v14697_v0, %v10834_v62  ;;  %v11105_v16 = vadd.f32 %v11074_v4, %v10969_v34 }
 0x94b   :  { %v10941_v43 = vpop.f32.mrf.mxu0  ;;  %v11107_v8 = vadd.f32 %v14712_v31, %v10971_v7  ;;  %v10835_v58 = vadd.f32 %v10816_v17, %v10699_v41  ;;  %v10838_v31 = vadd.f32 %v19838_v20, %v10702_v27  ;;  %v21076_v41 = vmax.f32 %v21075_v26, 0.0  ;;  %v21081_v27 = vld [vmem:[#allocation48_spill] sm:$0xff] }
 0x94c   :  { %v11305_v30 = vpop.f32.mrf.mxu1  ;;  %v10970_v28 = vadd.f32 %v10941_v43, %v10832_v49  ;;  %v11108_v23 = vadd.f32 %v14713_v61, %v10972_v13  ;;  %v21072_v38 = vld [vmem:[#allocation33_spill] sm:$0xff] }
 0x94d   :  { %v14700_v40 = vpop.f32.mrf.mxu0 }
 0x94e   :  { %v14745_v42 = vpop.f32.mrf.mxu1  ;;  %v10975_v6 = vadd.f32 %v14700_v40, %v10837_v22  ;;  %v11106_v57 = vadd.f32 %v11077_v33, %v10970_v28  ;;  %v12980_v33 = vld [vmem:[%s19938_s5 + $0x3] ss:$0 sm:$0xff]  ;;  %v21073_v51 = vld [vmem:[#allocation32_spill] sm:$0xff]  ;;  %v21082_v22 = vmax.f32 %v21081_v27, 0.0 }
 0x94f   :  { %v10954_v47 = vpop.f32.mrf.mxu0 }
 0x950   :  { %v11308_v2 = vpop.f32.mrf.mxu1  ;;  %v10973_v59 = vadd.f32 %v10954_v47, %v10835_v58  ;;  %v11111_v24 = vadd.f32 %v19842_v35, %v10975_v6  ;;  %v21074_v44 = vld [vmem:[#allocation47_spill] sm:$0xff] }
 0x951   :  { %v14701_v56 = vpop.f32.mrf.mxu0 }
 0x952   :  { %v14748_v54 = vpop.f32.mrf.mxu1  ;;  %v10976_v43 = vadd.f32 %v14701_v56, %v10838_v31  ;;  %v11109_v7 = vadd.f32 %v21072_v38, %v10973_v59 }
 0x953   :  { %v10957_v19 = vpop.f32.mrf.mxu0 }
 0x954   :  { %v10974_v47 = vadd.f32 %v10957_v19, %v10836_v14  ;;  %v11321_v52 = vpop.f32.mrf.mxu1  ;;  %v11112_v35 = vadd.f32 %v21073_v51, %v10976_v43 }
 0x955   :  { %v14728_v25 = vpop.f32.mrf.mxu0 }
 0x956   :  { %v11228_v46 = vadd.f32 %v14728_v25, %v11107_v8  ;;  %v11110_v5 = vadd.f32 %v21074_v44, %v10974_v47  ;;  %v21079_v8 = vld [vmem:[#allocation42_spill] sm:$0xff]  ;;  %v21088_v47 = vld [vmem:[#allocation3_spill] sm:$0xff] }
 0x957   :  { %v11195_v1 = vpop.f32.mrf.mxu0 }
 0x958   :  { %v11226_v37 = vadd.f32 %v11195_v1, %v11105_v16  ;;  %v11338_v50 = vadd.f32 %v14744_v3, %v11228_v46 }
 0x959   :  { %v14729_v9 = vpop.f32.mrf.mxu0 }
 0x95a   :  { %v11229_v32 = vadd.f32 %v14729_v9, %v11108_v23  ;;  %v11336_v17 = vadd.f32 %v11305_v30, %v11226_v37  ;;  %v14749_v9 = vpop.f32.mrf.mxu1 }
 0x95b   :  { %v11198_v45 = vpop.f32.mrf.mxu0 }
 0x95c   :  { %v11227_v53 = vadd.f32 %v11198_v45, %v11106_v57  ;;  %v11339_v55 = vadd.f32 %v14745_v42, %v11229_v32  ;;  %v11324_v46 = vpop.f32.mrf.mxu1 }
 0x95d   :  { %v14732_v60 = vpop.f32.mrf.mxu0 }
 0x95e   :  { %v11232_v3 = vadd.f32 %v14732_v60, %v11111_v24  ;;  %v11337_v56 = vadd.f32 %v11308_v2, %v11227_v53  ;;  %v21077_v60 = vld [vmem:[#allocation46_spill] sm:$0xff] }
 0x95f   :  { %v11211_v29 = vpop.f32.mrf.mxu0  ;;  %v21078_v13 = vmax.f32 %v21077_v60, 0.0 }
 0x960   :  { %v11230_v25 = vadd.f32 %v11211_v29, %v11109_v7  ;;  %v11342_v15 = vadd.f32 %v14748_v54, %v11232_v3  ;;  %v21080_v29 = vmax.f32 %v21079_v8, 0.0  ;;  %v21086_v7 = vld [vmem:[#allocation51_spill] sm:$0xff] }
 0x961   :  { %v14733_v39 = vpop.f32.mrf.mxu0 }
 0x962   :  { %v11233_v12 = vadd.f32 %v14733_v39, %v11112_v35  ;;  %v11340_v34 = vadd.f32 %v11321_v52, %v11230_v25  ;;  %v21091_v52 = vld [vmem:[#allocation6_spill] sm:$0xff] }
 0x963   :  { %v11214_v0 = vpop.f32.mrf.mxu0  ;;  %v21092_v3 = vmax.f32 %v21091_v52, 0.0 }
 0x964   :  { %v11231_v62 = vadd.f32 %v11214_v0, %v11110_v5  ;;  %v11343_v18 = vadd.f32 %v14749_v9, %v11233_v12 }
 0x965   :  { %v14760_v4 = vpop.f32.mrf.mxu0 }
 0x966   :  { %v11471_v61 = vadd.f32 %v14760_v4, %v11338_v50  ;;  %v11341_v0 = vadd.f32 %v11324_v46, %v11231_v62 }
 0x967   :  { %v11438_v40 = vpop.f32.mrf.mxu0 }
 0x968   :  { %v11469_v20 = vadd.f32 %v11438_v40, %v11336_v17  ;;  %v11486_v1 = vadd.f32 %v12980_v33, %v11471_v61  ;;  %v21083_v17 = vld [vmem:[#allocation29_spill] sm:$0xff]  ;;  %v21087_v61 = vmax.f32 %v21086_v7, 0.0 }
 0x969   :  { %v14761_v63 = vpop.f32.mrf.mxu0  ;;  %v21084_v43 = vmax.f32 %v21083_v17, 0.0 }
 0x96a   :  { %v11484_v45 = vadd.f32 %v12980_v33, %v11469_v20  ;;  %v11472_v10 = vadd.f32 %v14761_v63, %v11339_v55  ;;  %v11494_v11 = vadd.f32 %v11486_v1, %v21080_v29  ;;  %v21089_v20 = vmax.f32 %v21088_v47, 0.0 }
 0x96b   :  { %v11441_v36 = vpop.f32.mrf.mxu0 }
 0x96c   :  { %v11487_v19 = vadd.f32 %v12980_v33, %v11472_v10  ;;  %v11470_v30 = vadd.f32 %v11441_v36, %v11337_v56  ;;  %v11492_v42 = vadd.f32 %v11484_v45, %v21076_v41  ;;  %v11502_v32 = vmax.f32 %v11494_v11, 0.0 }
 0x96d   :  { %v14764_v48 = vpop.f32.mrf.mxu0 }
 0x96e   :  { %v11495_v49 = vadd.f32 %v11487_v19, %v21078_v13  ;;  %v11485_v21 = vadd.f32 %v12980_v33, %v11470_v30  ;;  %v11475_v28 = vadd.f32 %v14764_v48, %v11342_v15  ;;  %v11500_v23 = vmax.f32 %v11492_v42, 0.0 }
 0x96f   :  { %v11454_v16 = vpop.f32.mrf.mxu0 }
 0x970   :  { %v11493_v58 = vadd.f32 %v11485_v21, %v21082_v22  ;;  %v11473_v2 = vadd.f32 %v11454_v16, %v11340_v34  ;;  %v11503_v39 = vmax.f32 %v11495_v49, 0.0  ;;  %v11490_v57 = vadd.f32 %v12980_v33, %v11475_v28 }
 0x971   :  { %v14765_v37 = vpop.f32.mrf.mxu0 }
 0x972   :  { %v11501_v6 = vmax.f32 %v11493_v58, 0.0  ;;  %v11488_v59 = vadd.f32 %v12980_v33, %v11473_v2  ;;  %v11476_v31 = vadd.f32 %v14765_v37, %v11343_v18  ;;  %v11509_v14 = vpack.c.bf16 %v11503_v39, %v11502_v32 }
 0x973   :  { %v11457_v54 = vpop.f32.mrf.mxu0  ;;  %v11498_v40 = vadd.f32 %v11490_v57, %v21087_v61 }
 0x974   :  { %v11508_v50 = vpack.c.bf16 %v11501_v6, %v11500_v23  ;;  %v11474_v4 = vadd.f32 %v11457_v54, %v11341_v0  ;;  %v11491_v53 = vadd.f32 %v12980_v33, %v11476_v31  ;;  %v11496_v24 = vadd.f32 %v11488_v59, %v21084_v43 }
 0x975   :  { %v11506_v56 = vmax.f32 %v11498_v40, 0.0 }
 0x976   :  { %v11489_v38 = vadd.f32 %v12980_v33, %v11474_v4  ;;  %14774 = vmatprep.mubr.msk.bf16.mxu1 %vm21085_vm4, %v11508_v50  ;;  %v11499_v55 = vadd.f32 %v11491_v53, %v21089_v20  ;;  %v11504_v45 = vmax.f32 %v11496_v24, 0.0  ;;  %v12981_v33 = vld [vmem:[%s19940_s7] ss:$0 sm:$0xff] }
 0x977   :  { %14775 = vmatmul.mubr.msk.bf16.vlgmr.msra.gmra.mxu1 %vm21090_vm3, %v11509_v14  ;;  %v21095_v4 = vld [vmem:[#allocation38_spill] sm:$0xff]  ;;  %vm21109_vm3 = vmmov %vm21107_vm0 }
 0x978   :  { %v11497_v25 = vadd.f32 %v11489_v38, %v21092_v3  ;;  %v11507_v63 = vmax.f32 %v11499_v55, 0.0  ;;  %vm21096_vm15 = vcmp.lt.s32.totalorder %v21095_v4, 1 }
 0x979   :  { %vm21098_vm7 = vmmov %vm21096_vm15 }
 0x97a   :  { %v11505_v10 = vmax.f32 %v11497_v25, 0.0  ;;  %v11511_v35 = vpack.c.bf16 %v11507_v63, %v11506_v56  ;;  %vm21100_vm10 = vmmov %vm21098_vm7 }
 0x97b   :  { %vm21102_vm2 = vmmov %vm21098_vm7 }
 0x97c   :  { %v11510_v51 = vpack.c.bf16 %v11505_v10, %v11504_v45  ;;  %vm21104_vm6 = vmmov %vm21102_vm2 }
 0x97d   :  { %vm21106_vm14 = vmmov %vm21102_vm2 }
 0x97e   :  { %14778 = vmatprep.mubr.msk.bf16.mxu1 %vm21093_vm13, %v11510_v51  ;;  %vm21108_vm4 = vmmov %vm21102_vm2 }
 0x97f   :  { %14779 = vmatmul.mubr.msk.bf16.gmra.mxu1 %vm21094_vm11, %v11511_v35  ;;  %vm21110_vm13 = vmmov %vm21102_vm2 }
 0x980   :  { %vm21111_vm11 = vmmov %vm21107_vm0 }
 0xa37   :  { %v14776_v1 = vpop.f32.mrf.mxu1 }
 0xa38   :  { %v11606_v36 = vadd.f32 %v14776_v1, %v12981_v33 }
 0xa39   :  { %v11597_v44 = vpop.f32.mrf.mxu1 }
 0xa3a   :  { %v12992_v5 = vmul.f32 -1.442695, %v11606_v36  ;;  %v11598_v19 = vadd.f32 %v12981_v33, %v11597_v44 }
 0xa3b   :  { %v14777_v30 = vpop.f32.mrf.mxu1 }
 0xa3c   :  { %15111 = vpow2.f32 %v12992_v5  ;;  %v12990_v9 = vmul.f32 -1.442695, %v11598_v19  ;;  %v11609_v12 = vadd.f32 %v14777_v30, %v12981_v33 }
 0xa3d   :  { %v11600_v15 = vpop.f32.mrf.mxu1 }
 0xa3e   :  { %15113 = vpow2.f32 %v12990_v9  ;;  %v12993_v48 = vmul.f32 -1.442695, %v11609_v12  ;;  %v11601_v34 = vadd.f32 %v12981_v33, %v11600_v15 }
 0xa3f   :  { %v14780_v62 = vpop.f32.mrf.mxu1 }
 0xa40   :  { %15115 = vpow2.f32 %v12993_v48  ;;  %v12991_v26 = vmul.f32 -1.442695, %v11601_v34  ;;  %v11622_v41 = vadd.f32 %v14780_v62, %v12981_v33 }
 0xa41   :  { %v11613_v42 = vpop.f32.mrf.mxu1 }
 0xa42   :  { %15117 = vpow2.f32 %v12991_v26  ;;  %v12996_v60 = vmul.f32 -1.442695, %v11622_v41  ;;  %v11614_v13 = vadd.f32 %v12981_v33, %v11613_v42 }
 0xa43   :  { %v14781_v49 = vpop.f32.mrf.mxu1 }
 0xa44   :  { %15119 = vpow2.f32 %v12996_v60  ;;  %v12994_v21 = vmul.f32 -1.442695, %v11614_v13  ;;  %v11625_v8 = vadd.f32 %v14781_v49, %v12981_v33 }
 0xa45   :  { %v11616_v29 = vpop.f32.mrf.mxu1 }
 0xa46   :  { %15121 = vpow2.f32 %v12994_v21  ;;  %v12997_v11 = vmul.f32 -1.442695, %v11625_v8  ;;  %v11617_v28 = vadd.f32 %v12981_v33, %v11616_v29 }
 0xa48   :  { %15123 = vpow2.f32 %v12997_v11  ;;  %v12995_v16 = vmul.f32 -1.442695, %v11617_v28 }
 0xa49   :  { %v15112_v27 = vpop.eup %15111 }
 0xa4a   :  { %v11654_v22 = vadd.f32 1.0, %v15112_v27  ;;  %15125 = vpow2.f32 %v12995_v16 }
 0xa4b   :  { %v15114_v58 = vpop.eup %15113 }
 0xa4c   :  { %15127 = vrcp.f32 %v11654_v22  ;;  %v11652_v2 = vadd.f32 1.0, %v15114_v58 }
 0xa4d   :  { %v15116_v46 = vpop.eup %15115 }
 0xa4e   :  { %15129 = vrcp.f32 %v11652_v2  ;;  %v11655_v39 = vadd.f32 1.0, %v15116_v46 }
 0xa4f   :  { %v15118_v18 = vpop.eup %15117 }
 0xa50   :  { %15131 = vrcp.f32 %v11655_v39  ;;  %v11653_v37 = vadd.f32 1.0, %v15118_v18 }
 0xa51   :  { %v15120_v23 = vpop.eup %15119 }
 0xa52   :  { %15133 = vrcp.f32 %v11653_v37  ;;  %v11658_v6 = vadd.f32 1.0, %v15120_v23 }
 0xa53   :  { %v15122_v59 = vpop.eup %15121 }
 0xa54   :  { %15135 = vrcp.f32 %v11658_v6  ;;  %v11656_v0 = vadd.f32 1.0, %v15122_v59 }
 0xa55   :  { %v15124_v32 = vpop.eup %15123 }
 0xa56   :  { %15137 = vrcp.f32 %v11656_v0  ;;  %v11659_v57 = vadd.f32 1.0, %v15124_v32 }
 0xa57   :  { %v15126_v31 = vpop.eup %15125 }
 0xa58   :  { %15139 = vrcp.f32 %v11659_v57  ;;  %v11657_v54 = vadd.f32 1.0, %v15126_v31 }
 0xa59   :  { %v15128_v50 = vpop.eup %15127 }
 0xa5a   :  { %v11678_v14 = vsel %vm21096_vm15, %v15128_v50, %v11606_v36  ;;  %15141 = vrcp.f32 %v11657_v54 }
 0xa5b   :  { %v15130_v53 = vpop.eup %15129  ;;  %13000 = vst.msk [vmem:[%s19941_s8 + $0x50] sm:$0xff] %vm21097_vm5, %v11678_v14 }
 0xa5c   :  { %v11676_v17 = vsel %vm21098_vm7, %v15130_v53, %v11598_v19 }
 0xa5d   :  { %v15132_v43 = vpop.eup %15131  ;;  %12998 = vst.msk [vmem:[%s19941_s8 + $0x40] sm:$0xff] %vm21099_vm1, %v11676_v17 }
 0xa5e   :  { %v11679_v24 = vsel %vm21100_vm10, %v15132_v43, %v11609_v12 }
 0xa5f   :  { %v15134_v38 = vpop.eup %15133  ;;  %13001 = vst.msk [vmem:[%s19941_s8 + $0x58] sm:$0xff] %vm21101_vm9, %v11679_v24 }
 0xa60   :  { %v11677_v7 = vsel %vm21102_vm2, %v15134_v38, %v11601_v34 }
 0xa61   :  { %v15136_v61 = vpop.eup %15135  ;;  %12999 = vst.msk [vmem:[%s19941_s8 + $0x48] sm:$0xff] %vm21103_vm12, %v11677_v7 }
 0xa62   :  { %v11682_v40 = vsel %vm21104_vm6, %v15136_v61, %v11622_v41 }
 0xa63   :  { %v15138_v47 = vpop.eup %15137  ;;  %13004 = vst.msk [vmem:[%s19941_s8 + $0x70] sm:$0xff] %vm21105_vm8, %v11682_v40 }
 0xa64   :  { %v11680_v20 = vsel %vm21106_vm14, %v15138_v47, %v11614_v13 }
 0xa65   :  { %v15140_v55 = vpop.eup %15139  ;;  %13002 = vst.msk [vmem:[%s19941_s8 + $0x60] sm:$0xff] %vm21107_vm0, %v11680_v20 }
 0xa66   :  { %v11683_v52 = vsel %vm21108_vm4, %v15140_v55, %v11625_v8 }
 0xa67   :  { %v15142_v3 = vpop.eup %15141  ;;  %13005 = vst.msk [vmem:[%s19941_s8 + $0x78] sm:$0xff] %vm21109_vm3, %v11683_v52 }
 0xa68   :  { %v11681_v25 = vsel %vm21110_vm13, %v15142_v3, %v11617_v28 }
 0xa69   :  { %13003 = vst.msk [vmem:[%s19941_s8 + $0x68] sm:$0xff] %vm21111_vm11, %v11681_v25 }

</bundles_post_ra>
